<compile_context>
chip_gen: v7x
topology: tpu7x:2x2x1
jax: 0.10.0
libtpu: 0.0.40
codegen_flags: <defaults>
</compile_context>

<pallas_src>
import functools

import jax
import jax.numpy as jnp
from jax.experimental import pallas as pl
from jax.experimental.pallas import tpu as pltpu

HEAD = 4
ATTN_HIDDEN = 64
BN_EPS = 1e-5

_LANE = 128
_ROW_ALIGN = 16          # bf16 sublane packing -> keep M padded to 16


def _round_up(x, m):
    return (x + m - 1) // m * m


# --------------------------------------------------------------------------
# Fused Conv2d (im2col matmul) + BatchNorm2d (batch stats) + ReLU: one step.
# --------------------------------------------------------------------------
def _conv_bn_relu_kernel(p_ref, w_ref, g_ref, b_ref, o_ref, *, m_true, eps):
    conv = jnp.dot(p_ref[...], w_ref[...], preferred_element_type=jnp.float32)
    inv_m = 1.0 / m_true
    # Padded slab rows are zero -> contribute 0 to both sums; divide by true M.
    # (E[x^2]-mean^2 in f32: documented precision choice, fine at these scales.)
    mean = jnp.sum(conv, axis=0, keepdims=True) * inv_m
    var = jnp.sum(conv * conv, axis=0, keepdims=True) * inv_m - mean * mean
    scale = g_ref[...] * jax.lax.rsqrt(var + eps)
    shift = b_ref[...] - mean * scale
    o_ref[...] = jnp.maximum(conv * scale + shift, 0.0).astype(o_ref.dtype)


def _fused_matmul_bn_relu(patches, w_kc, gamma, beta, *, eps=BN_EPS):
    """patches: (M, K) im2col slab; w_kc: (K, Cout).  Returns (M, Cout) bf16."""
    m, k = patches.shape
    cout = w_kc.shape[1]
    mp = _round_up(m, _ROW_ALIGN)
    kp = _round_up(k, _LANE)
    cp = _round_up(cout, _LANE)

    p_pad = jnp.pad(patches.astype(jnp.bfloat16), ((0, mp - m), (0, kp - k)))
    w_pad = jnp.pad(w_kc.astype(jnp.bfloat16), ((0, kp - k), (0, cp - cout)))
    g_pad = jnp.pad(gamma.astype(jnp.float32), (0, cp - cout)).reshape(1, cp)
    b_pad = jnp.pad(beta.astype(jnp.float32), (0, cp - cout)).reshape(1, cp)

    out = pl.pallas_call(
        functools.partial(_conv_bn_relu_kernel, m_true=float(m), eps=float(eps)),
        out_shape=jax.ShapeDtypeStruct((mp, cp), jnp.bfloat16),
        grid=(1,),
        in_specs=[pl.BlockSpec((mp, kp), lambda i: (0, 0)),
                  pl.BlockSpec((kp, cp), lambda i: (0, 0)),
                  pl.BlockSpec((1, cp), lambda i: (0, 0)),
                  pl.BlockSpec((1, cp), lambda i: (0, 0))],
        out_specs=pl.BlockSpec((mp, cp), lambda i: (0, 0)),
        compiler_params=pltpu.CompilerParams(
            dimension_semantics=("arbitrary",)),
    )(p_pad, w_pad, g_pad, b_pad)
    return out[:m, :cout]


def _im2col_nhwc(x, kh, kw, ph, pw):
    """NHWC im2col (stride=1); K ordered (kh, kw, cin)."""
    n, h, w, c = x.shape
    oh = h + 2 * ph - kh + 1
    ow = w + 2 * pw - kw + 1
    xp = jnp.pad(x, ((0, 0), (ph, ph), (pw, pw), (0, 0)))
    cols = [xp[:, i:i + oh, j:j + ow, :] for i in range(kh) for j in range(kw)]
    patches = jnp.stack(cols, axis=3).reshape(n * oh * ow, kh * kw * c)
    return patches, oh, ow


def _w_to_kc(w_oihw):
    cout, cin, kh, kw = w_oihw.shape
    return jnp.transpose(w_oihw, (2, 3, 1, 0)).reshape(kh * kw * cin, cout)


def conv_bn_relu(x_nhwc, w_oihw, gamma, beta, padding):
    n = x_nhwc.shape[0]
    cout, _cin, kh, kw = w_oihw.shape
    patches, oh, ow = _im2col_nhwc(x_nhwc, kh, kw, *padding)
    out = _fused_matmul_bn_relu(patches, _w_to_kc(w_oihw), gamma, beta)
    return out.reshape(n, oh, ow, cout)          # stays NHWC, bf16


def _maxpool2x2(x_nhwc):
    n, h, w, c = x_nhwc.shape
    x = x_nhwc[:, :h // 2 * 2, :w // 2 * 2, :]
    x = x.reshape(n, h // 2, 2, w // 2, 2, c)
    return jnp.max(x, axis=(2, 4))


# --------------------------------------------------------------------------
# Fused tail: conv5 + BN5 + ReLU + 4-head channel attention + ReLU + GAP + FC
# --------------------------------------------------------------------------
def _tail_kernel(p5_ref, w5_ref, g5_ref, b5_ref, wqkv_ref, bqkv_ref,
                 pool_ref, wfc_ref, bfc_ref, o_ref, *, m_true, head, dh, eps):
    # ---- conv5 + BN(batch stats) + ReLU ------------------------------------
    conv = jnp.dot(p5_ref[...], w5_ref[...], preferred_element_type=jnp.float32)
    inv_m = 1.0 / m_true
    mean = jnp.sum(conv, axis=0, keepdims=True) * inv_m
    var = jnp.sum(conv * conv, axis=0, keepdims=True) * inv_m - mean * mean
    scale = g5_ref[...] * jax.lax.rsqrt(var + eps)
    shift = b5_ref[...] - mean * scale
    h = jnp.maximum(conv * scale + shift, 0.0).astype(jnp.bfloat16)
    # padded lanes of h are exactly zero (gamma/beta padded with zeros).

    # ---- multi-head channel attention + ReLU + GAP (pool matmul) -----------
    c = head * dh
    qkv = jnp.dot(h, wqkv_ref[...], preferred_element_type=jnp.float32)
    qkv = qkv + bqkv_ref[...]
    q, k, v = qkv[:, :c], qkv[:, c:2 * c], qkv[:, 2 * c:]
    s = q * k
    pool = pool_ref[...]
    feat = jnp.zeros((pool.shape[0], dh), jnp.float32)
    for hd in range(head):
        seg = s[:, hd * dh:(hd + 1) * dh]
        seg = seg - jnp.max(seg, axis=1, keepdims=True)        # softmax over channels
        e = jnp.exp(seg)
        prob = e * pl.reciprocal(jnp.sum(e, axis=1, keepdims=True), approx=True)
        a = jnp.maximum(prob * v[:, hd * dh:(hd + 1) * dh], 0.0)
        feat = feat + jnp.dot(pool, a, preferred_element_type=jnp.float32)

    # ---- final Linear(64 -> 4) ---------------------------------------------
    o_ref[...] = (jnp.dot(feat, wfc_ref[...], preferred_element_type=jnp.float32)
                  + bfc_ref[...])


def tail_conv5_attn_gap_fc(h4_nhwc, p, *, head=HEAD, dh=ATTN_HIDDEN, eps=BN_EPS):
    n, _hh, _ww, _cin = h4_nhwc.shape
    patches, oh, ow = _im2col_nhwc(h4_nhwc, 3, 3, 1, 1)
    m, k = patches.shape
    cout5 = p['w5'].shape[0]
    c = head * dh
    mp = _round_up(m, _ROW_ALIGN)
    kp = _round_up(k, _LANE)
    cp = _round_up(cout5, _LANE)
    np_ = _round_up(n, 8)
    fcp = _LANE

    p_pad = jnp.pad(patches.astype(jnp.bfloat16), ((0, mp - m), (0, kp - k)))
    w5_pad = jnp.pad(_w_to_kc(p['w5']).astype(jnp.bfloat16),
                     ((0, kp - k), (0, cp - cout5)))
    g5 = jnp.pad(p['g5'].astype(jnp.float32), (0, cp - cout5)).reshape(1, cp)
    b5 = jnp.pad(p['b5'].astype(jnp.float32), (0, cp - cout5)).reshape(1, cp)

    def _wmat(wt):                               # (head, dh, cin) -> (cp, head*dh)
        w2 = jnp.transpose(wt.reshape(c, cout5), (1, 0))
        return jnp.pad(w2.astype(jnp.bfloat16), ((0, cp - cout5), (0, 0)))

    wqkv = jnp.concatenate([_wmat(p['wq']), _wmat(p['wk']), _wmat(p['wv'])], axis=1)
    bqkv = jnp.concatenate([p['bq'].reshape(-1), p['bk'].reshape(-1),
                            p['bv'].reshape(-1)]).astype(jnp.float32).reshape(1, 3 * c)

    # GAP over (head, h, w) expressed as a per-batch pooling matmul.
    rows = jnp.arange(mp)
    pool = ((rows[None, :] // (oh * ow)) == jnp.arange(np_)[:, None]) \
        & (rows[None, :] < m)
    pool = pool.astype(jnp.float32) / float(head * oh * ow)

    n_out = p['wfc'].shape[0]
    wfc = jnp.pad(p['wfc'].T.astype(jnp.float32), ((0, 0), (0, fcp - n_out)))
    bfc = jnp.pad(p['bfc'].astype(jnp.float32), (0, fcp - n_out)).reshape(1, fcp)

    out = pl.pallas_call(
        functools.partial(_tail_kernel, m_true=float(m), head=head, dh=dh,
                          eps=float(eps)),
        out_shape=jax.ShapeDtypeStruct((np_, fcp), jnp.float32),
        grid=(1,),
        in_specs=[pl.BlockSpec((mp, kp), lambda i: (0, 0)),
                  pl.BlockSpec((kp, cp), lambda i: (0, 0)),
                  pl.BlockSpec((1, cp), lambda i: (0, 0)),
                  pl.BlockSpec((1, cp), lambda i: (0, 0)),
                  pl.BlockSpec((cp, 3 * c), lambda i: (0, 0)),
                  pl.BlockSpec((1, 3 * c), lambda i: (0, 0)),
                  pl.BlockSpec((np_, mp), lambda i: (0, 0)),
                  pl.BlockSpec((dh, fcp), lambda i: (0, 0)),
                  pl.BlockSpec((1, fcp), lambda i: (0, 0))],
        out_specs=pl.BlockSpec((np_, fcp), lambda i: (0, 0)),
        compiler_params=pltpu.CompilerParams(
            dimension_semantics=("arbitrary",)),
    )(p_pad, w5_pad, g5, b5, wqkv, bqkv, pool, wfc, bfc)
    return out[:n, :n_out]


# --------------------------------------------------------------------------
# Full forward (Pallas path) + pure-JAX reference
# --------------------------------------------------------------------------
def mhcnn_forward(x_nchw, p):
    x = jnp.transpose(x_nchw, (0, 2, 3, 1)).astype(jnp.bfloat16)   # NHWC, bf16
    n = x.shape[0]

    # conv1a + conv1b merged into one kernel via a block-diagonal weight.
    pa, oh, ow = _im2col_nhwc(x, 10, 2, 4, 0)
    pb, oh_b, ow_b = _im2col_nhwc(x, 2, 8, 0, 3)
    assert (oh, ow) == (oh_b, ow_b)
    slab1 = jnp.concatenate([pa, pb], axis=1)
    wa = _w_to_kc(p['w1a'])
    wb = _w_to_kc(p['w1b'])
    ka, ca = wa.shape
    kb, cb = wb.shape
    w_bd = jnp.zeros((ka + kb, ca + cb), jnp.float32)
    w_bd = w_bd.at[:ka, :ca].set(wa).at[ka:, ca:].set(wb)
    g1 = jnp.concatenate([p['g1a'], p['g1b']])
    b1 = jnp.concatenate([p['b1a'], p['b1b']])
    y1 = _fused_matmul_bn_relu(slab1, w_bd, g1, b1).reshape(n, oh, ow, ca + cb)
    h = jnp.concatenate([y1[..., :ca], y1[..., ca:]], axis=1)      # cat along H

    h = conv_bn_relu(h, p['w2'], p['g2'], p['b2'], (1, 1))
    h = _maxpool2x2(h)
    h = conv_bn_relu(h, p['w3'], p['g3'], p['b3'], (1, 1))
    h = _maxpool2x2(h)
    h = conv_bn_relu(h, p['w4'], p['g4'], p['b4'], (1, 1))
    return tail_conv5_attn_gap_fc(h, p)                            # (N, 4)


def _conv_bn_relu_ref(x_nhwc, w_oihw, gamma, beta, padding, *, eps=BN_EPS):
    ph, pw = padding
    conv = jax.lax.conv_general_dilated(
        x_nhwc.astype(jnp.bfloat16), w_oihw.astype(jnp.bfloat16),
        window_strides=(1, 1), padding=[(ph, ph), (pw, pw)],
        dimension_numbers=("NHWC", "OIHW", "NHWC"),
        preferred_element_type=jnp.float32)
    mean = jnp.mean(conv, axis=(0, 1, 2), keepdims=True)
    var = jnp.mean((conv - mean) ** 2, axis=(0, 1, 2), keepdims=True)
    y = (conv - mean) * jax.lax.rsqrt(var + eps) * gamma + beta
    return jnp.maximum(y, 0.0)


def mhcnn_forward_ref(x_nchw, p):
    x = jnp.transpose(x_nchw, (0, 2, 3, 1))
    xa = _conv_bn_relu_ref(x, p['w1a'], p['g1a'], p['b1a'], (4, 0))
    xb = _conv_bn_relu_ref(x, p['w1b'], p['g1b'], p['b1b'], (0, 3))
    h = jnp.concatenate([xa, xb], axis=1)
    h = _conv_bn_relu_ref(h, p['w2'], p['g2'], p['b2'], (1, 1))
    h = _maxpool2x2(h)
    h = _conv_bn_relu_ref(h, p['w3'], p['g3'], p['b3'], (1, 1))
    h = _maxpool2x2(h)
    h = _conv_bn_relu_ref(h, p['w4'], p['g4'], p['b4'], (1, 1))
    h = _conv_bn_relu_ref(h, p['w5'], p['g5'], p['b5'], (1, 1))
    hb = h.astype(jnp.bfloat16)
    outs = []
    for i in range(HEAD):
        q = jnp.einsum('nhwc,dc->nhwd', hb, p['wq'][i].astype(jnp.bfloat16),
                       preferred_element_type=jnp.float32) + p['bq'][i]
        k = jnp.einsum('nhwc,dc->nhwd', hb, p['wk'][i].astype(jnp.bfloat16),
                       preferred_element_type=jnp.float32) + p['bk'][i]
        v = jnp.einsum('nhwc,dc->nhwd', hb, p['wv'][i].astype(jnp.bfloat16),
                       preferred_element_type=jnp.float32) + p['bv'][i]
        outs.append(jax.nn.softmax(q * k, axis=-1) * v)            # softmax over channels
    attn = jnp.maximum(jnp.concatenate(outs, axis=1), 0.0)         # cat along H, ReLU
    feat = jnp.mean(attn, axis=(1, 2))
    return feat @ p['wfc'].T + p['bfc']


if __name__ == "__main__":
    N, H, W = 2, 16, 16

    key = jax.random.PRNGKey(0)
    ks = iter(jax.random.split(key, 32))

    def nrm(shape, scale):
        return scale * jax.random.normal(next(ks), shape, dtype=jnp.float32)

    p = {
        # conv weights (conv bias omitted: cancels exactly under batch-stats BN)
        'w1a': nrm((16, 1, 10, 2), 0.2), 'g1a': 1.0 + nrm((16,), 0.1), 'b1a': nrm((16,), 0.1),
        'w1b': nrm((16, 1, 2, 8), 0.2), 'g1b': 1.0 + nrm((16,), 0.1), 'b1b': nrm((16,), 0.1),
        'w2': nrm((32, 16, 3, 3), 0.1), 'g2': 1.0 + nrm((32,), 0.1), 'b2': nrm((32,), 0.1),
        'w3': nrm((48, 32, 3, 3), 0.1), 'g3': 1.0 + nrm((48,), 0.1), 'b3': nrm((48,), 0.1),
        'w4': nrm((64, 48, 3, 3), 0.1), 'g4': 1.0 + nrm((64,), 0.1), 'b4': nrm((64,), 0.1),
        'w5': nrm((80, 64, 3, 3), 0.1), 'g5': 1.0 + nrm((80,), 0.1), 'b5': nrm((80,), 0.1),
        # attention 1x1 convs (with bias) and final FC
        'wq': nrm((HEAD, ATTN_HIDDEN, 80), 0.1), 'bq': nrm((HEAD, ATTN_HIDDEN), 0.1),
        'wk': nrm((HEAD, ATTN_HIDDEN, 80), 0.1), 'bk': nrm((HEAD, ATTN_HIDDEN), 0.1),
        'wv': nrm((HEAD, ATTN_HIDDEN, 80), 0.1), 'bv': nrm((HEAD, ATTN_HIDDEN), 0.1),
        'wfc': nrm((4, ATTN_HIDDEN), 0.2), 'bfc': nrm((4,), 0.1),
    }
    x = jax.random.normal(next(ks), (N, 1, H, W), dtype=jnp.float32)

    out = jax.block_until_ready(jax.jit(mhcnn_forward)(x, p))
    assert out.shape == (N, 4), out.shape

    ref = jax.block_until_ready(jax.jit(mhcnn_forward_ref)(x, p))
    max_err = float(jnp.max(jnp.abs(out - ref)))
    assert jnp.allclose(out, ref, atol=1e-2, rtol=1e-2), max_err

    print("KERNEL_OK")
</pallas_src>

<mosaic_0001>
module attributes {stable_mosaic.version = 11 : i64} {
  func.func @_conv_bn_relu_kernel(%arg0: i32, %arg1: memref<464x128xbf16, #tpu.memory_space<vmem>>, %arg2: memref<128x128xbf16, #tpu.memory_space<vmem>>, %arg3: memref<1x128xf32, #tpu.memory_space<vmem>>, %arg4: memref<1x128xf32, #tpu.memory_space<vmem>>, %arg5: memref<464x128xbf16, #tpu.memory_space<vmem>>) attributes {dimension_semantics = [#tpu.dimension_semantics<arbitrary>], iteration_bounds = array<i64: 1>, scalar_prefetch = 0 : i64, scratch_operands = 0 : i64, tpu.core_type = #tpu.core_type<tc>, window_params = [{pipeline_mode = #tpu.pipeline_mode<synchronous>, transform_indices = @transform_0, window_bounds = array<i64: 464, 128>}, {pipeline_mode = #tpu.pipeline_mode<synchronous>, transform_indices = @transform_1, window_bounds = array<i64: 128, 128>}, {pipeline_mode = #tpu.pipeline_mode<synchronous>, transform_indices = @transform_2, window_bounds = array<i64: 1, 128>}, {pipeline_mode = #tpu.pipeline_mode<synchronous>, transform_indices = @transform_3, window_bounds = array<i64: 1, 128>}, {pipeline_mode = #tpu.pipeline_mode<synchronous>, transform_indices = @transform_4, window_bounds = array<i64: 464, 128>}]} {
    %c0 = arith.constant 0 : index
    %c0_0 = arith.constant 0 : index
    %0 = vector.load %arg1[%c0, %c0_0] : memref<464x128xbf16, #tpu.memory_space<vmem>>, vector<464x128xbf16>
    %c0_1 = arith.constant 0 : index
    %c0_2 = arith.constant 0 : index
    %1 = vector.load %arg2[%c0_1, %c0_2] : memref<128x128xbf16, #tpu.memory_space<vmem>>, vector<128x128xbf16>
    %cst = arith.constant dense<0.000000e+00> : vector<464x128xf32>
    %2 = tpu.matmul %0, %1, %cst {dimension_numbers = #tpu.dot_dimension_numbers<[1], [0], [0], [1], [0, 0, 1, 1], [], []>} : vector<464x128xbf16>, vector<128x128xbf16>, vector<464x128xf32> -> vector<464x128xf32>
    %cst_3 = arith.constant dense<0.000000e+00> : vector<128xf32>
    %3 = vector.multi_reduction <add>, %2, %cst_3 [0] : vector<464x128xf32> to vector<128xf32>
    %4 = vector.shape_cast %3 : vector<128xf32> to vector<1x128xf32>
    %cst_4 = arith.constant 0.00222222228 : f32
    %5 = vector.broadcast %cst_4 : f32 to vector<1x128xf32>
    %6 = arith.mulf %4, %5 : vector<1x128xf32>
    %7 = arith.mulf %2, %2 : vector<464x128xf32>
    %cst_5 = arith.constant dense<0.000000e+00> : vector<128xf32>
    %8 = vector.multi_reduction <add>, %7, %cst_5 [0] : vector<464x128xf32> to vector<128xf32>
    %9 = vector.shape_cast %8 : vector<128xf32> to vector<1x128xf32>
    %cst_6 = arith.constant 0.00222222228 : f32
    %10 = vector.broadcast %cst_6 : f32 to vector<1x128xf32>
    %11 = arith.mulf %9, %10 : vector<1x128xf32>
    %12 = arith.mulf %6, %6 : vector<1x128xf32>
    %13 = arith.subf %11, %12 : vector<1x128xf32>
    %c0_7 = arith.constant 0 : index
    %c0_8 = arith.constant 0 : index
    %14 = vector.load %arg3[%c0_7, %c0_8] : memref<1x128xf32, #tpu.memory_space<vmem>>, vector<1x128xf32>
    %cst_9 = arith.constant 9.99999974E-6 : f32
    %15 = vector.broadcast %cst_9 : f32 to vector<1x128xf32>
    %16 = arith.addf %13, %15 : vector<1x128xf32>
    %17 = math.rsqrt %16 : vector<1x128xf32>
    %18 = arith.mulf %14, %17 : vector<1x128xf32>
    %c0_10 = arith.constant 0 : index
    %c0_11 = arith.constant 0 : index
    %19 = vector.load %arg4[%c0_10, %c0_11] : memref<1x128xf32, #tpu.memory_space<vmem>>, vector<1x128xf32>
    %20 = arith.mulf %6, %18 : vector<1x128xf32>
    %21 = arith.subf %19, %20 : vector<1x128xf32>
    %22 = vector.broadcast %18 : vector<1x128xf32> to vector<464x128xf32>
    %23 = arith.mulf %2, %22 : vector<464x128xf32>
    %24 = vector.broadcast %21 : vector<1x128xf32> to vector<464x128xf32>
    %25 = arith.addf %23, %24 : vector<464x128xf32>
    %cst_12 = arith.constant 0.000000e+00 : f32
    %26 = vector.broadcast %cst_12 : f32 to vector<464x128xf32>
    %27 = arith.maximumf %25, %26 : vector<464x128xf32>
    %28 = arith.truncf %27 : vector<464x128xf32> to vector<464x128xbf16>
    %c0_13 = arith.constant 0 : index
    %c0_14 = arith.constant 0 : index
    %29 = vector.load %arg5[%c0_13, %c0_14] : memref<464x128xbf16, #tpu.memory_space<vmem>>, vector<464x128xbf16>
    tpu.vector_store %arg5[%c0_13, %c0_14], %28 {strides = array<i32>} : memref<464x128xbf16, #tpu.memory_space<vmem>>, vector<464x128xbf16>,
    return
  }
  func.func @transform_0(%arg0: i32) -> (i32, i32) {
    %c0_i32 = arith.constant 0 : i32
    %c0_i32_0 = arith.constant 0 : i32
    %c0_i32_1 = arith.constant 0 : i32
    return %c0_i32, %c0_i32_0 : i32, i32
  }
  func.func @transform_1(%arg0: i32) -> (i32, i32) {
    %c0_i32 = arith.constant 0 : i32
    %c0_i32_0 = arith.constant 0 : i32
    %c0_i32_1 = arith.constant 0 : i32
    return %c0_i32, %c0_i32_0 : i32, i32
  }
  func.func @transform_2(%arg0: i32) -> (i32, i32) {
    %c0_i32 = arith.constant 0 : i32
    %c0_i32_0 = arith.constant 0 : i32
    %c0_i32_1 = arith.constant 0 : i32
    return %c0_i32, %c0_i32_0 : i32, i32
  }
  func.func @transform_3(%arg0: i32) -> (i32, i32) {
    %c0_i32 = arith.constant 0 : i32
    %c0_i32_0 = arith.constant 0 : i32
    %c0_i32_1 = arith.constant 0 : i32
    return %c0_i32, %c0_i32_0 : i32, i32
  }
  func.func @transform_4(%arg0: i32) -> (i32, i32) {
    %c0_i32 = arith.constant 0 : i32
    %c0_i32_0 = arith.constant 0 : i32
    %c0_i32_1 = arith.constant 0 : i32
    return %c0_i32, %c0_i32_0 : i32, i32
  }
}

module attributes {stable_mosaic.version = 11 : i64} {
  func.func @_conv_bn_relu_kernel(%arg0: i32, %arg1: memref<912x256xbf16, #tpu.memory_space<vmem>>, %arg2: memref<256x128xbf16, #tpu.memory_space<vmem>>, %arg3: memref<1x128xf32, #tpu.memory_space<vmem>>, %arg4: memref<1x128xf32, #tpu.memory_space<vmem>>, %arg5: memref<912x128xbf16, #tpu.memory_space<vmem>>) attributes {dimension_semantics = [#tpu.dimension_semantics<arbitrary>], iteration_bounds = array<i64: 1>, scalar_prefetch = 0 : i64, scratch_operands = 0 : i64, tpu.core_type = #tpu.core_type<tc>, window_params = [{pipeline_mode = #tpu.pipeline_mode<synchronous>, transform_indices = @transform_0, window_bounds = array<i64: 912, 256>}, {pipeline_mode = #tpu.pipeline_mode<synchronous>, transform_indices = @transform_1, window_bounds = array<i64: 256, 128>}, {pipeline_mode = #tpu.pipeline_mode<synchronous>, transform_indices = @transform_2, window_bounds = array<i64: 1, 128>}, {pipeline_mode = #tpu.pipeline_mode<synchronous>, transform_indices = @transform_3, window_bounds = array<i64: 1, 128>}, {pipeline_mode = #tpu.pipeline_mode<synchronous>, transform_indices = @transform_4, window_bounds = array<i64: 912, 128>}]} {
    %c0 = arith.constant 0 : index
    %c0_0 = arith.constant 0 : index
    %0 = vector.load %arg1[%c0, %c0_0] : memref<912x256xbf16, #tpu.memory_space<vmem>>, vector<912x256xbf16>
    %c0_1 = arith.constant 0 : index
    %c0_2 = arith.constant 0 : index
    %1 = vector.load %arg2[%c0_1, %c0_2] : memref<256x128xbf16, #tpu.memory_space<vmem>>, vector<256x128xbf16>
    %cst = arith.constant dense<0.000000e+00> : vector<912x128xf32>
    %2 = tpu.matmul %0, %1, %cst {dimension_numbers = #tpu.dot_dimension_numbers<[1], [0], [0], [1], [0, 0, 1, 1], [], []>} : vector<912x256xbf16>, vector<256x128xbf16>, vector<912x128xf32> -> vector<912x128xf32>
    %cst_3 = arith.constant dense<0.000000e+00> : vector<128xf32>
    %3 = vector.multi_reduction <add>, %2, %cst_3 [0] : vector<912x128xf32> to vector<128xf32>
    %4 = vector.shape_cast %3 : vector<128xf32> to vector<1x128xf32>
    %cst_4 = arith.constant 0.00111111114 : f32
    %5 = vector.broadcast %cst_4 : f32 to vector<1x128xf32>
    %6 = arith.mulf %4, %5 : vector<1x128xf32>
    %7 = arith.mulf %2, %2 : vector<912x128xf32>
    %cst_5 = arith.constant dense<0.000000e+00> : vector<128xf32>
    %8 = vector.multi_reduction <add>, %7, %cst_5 [0] : vector<912x128xf32> to vector<128xf32>
    %9 = vector.shape_cast %8 : vector<128xf32> to vector<1x128xf32>
    %cst_6 = arith.constant 0.00111111114 : f32
    %10 = vector.broadcast %cst_6 : f32 to vector<1x128xf32>
    %11 = arith.mulf %9, %10 : vector<1x128xf32>
    %12 = arith.mulf %6, %6 : vector<1x128xf32>
    %13 = arith.subf %11, %12 : vector<1x128xf32>
    %c0_7 = arith.constant 0 : index
    %c0_8 = arith.constant 0 : index
    %14 = vector.load %arg3[%c0_7, %c0_8] : memref<1x128xf32, #tpu.memory_space<vmem>>, vector<1x128xf32>
    %cst_9 = arith.constant 9.99999974E-6 : f32
    %15 = vector.broadcast %cst_9 : f32 to vector<1x128xf32>
    %16 = arith.addf %13, %15 : vector<1x128xf32>
    %17 = math.rsqrt %16 : vector<1x128xf32>
    %18 = arith.mulf %14, %17 : vector<1x128xf32>
    %c0_10 = arith.constant 0 : index
    %c0_11 = arith.constant 0 : index
    %19 = vector.load %arg4[%c0_10, %c0_11] : memref<1x128xf32, #tpu.memory_space<vmem>>, vector<1x128xf32>
    %20 = arith.mulf %6, %18 : vector<1x128xf32>
    %21 = arith.subf %19, %20 : vector<1x128xf32>
    %22 = vector.broadcast %18 : vector<1x128xf32> to vector<912x128xf32>
    %23 = arith.mulf %2, %22 : vector<912x128xf32>
    %24 = vector.broadcast %21 : vector<1x128xf32> to vector<912x128xf32>
    %25 = arith.addf %23, %24 : vector<912x128xf32>
    %cst_12 = arith.constant 0.000000e+00 : f32
    %26 = vector.broadcast %cst_12 : f32 to vector<912x128xf32>
    %27 = arith.maximumf %25, %26 : vector<912x128xf32>
    %28 = arith.truncf %27 : vector<912x128xf32> to vector<912x128xbf16>
    %c0_13 = arith.constant 0 : index
    %c0_14 = arith.constant 0 : index
    %29 = vector.load %arg5[%c0_13, %c0_14] : memref<912x128xbf16, #tpu.memory_space<vmem>>, vector<912x128xbf16>
    tpu.vector_store %arg5[%c0_13, %c0_14], %28 {strides = array<i32>} : memref<912x128xbf16, #tpu.memory_space<vmem>>, vector<912x128xbf16>,
    return
  }
  func.func @transform_0(%arg0: i32) -> (i32, i32) {
    %c0_i32 = arith.constant 0 : i32
    %c0_i32_0 = arith.constant 0 : i32
    %c0_i32_1 = arith.constant 0 : i32
    return %c0_i32, %c0_i32_0 : i32, i32
  }
  func.func @transform_1(%arg0: i32) -> (i32, i32) {
    %c0_i32 = arith.constant 0 : i32
    %c0_i32_0 = arith.constant 0 : i32
    %c0_i32_1 = arith.constant 0 : i32
    return %c0_i32, %c0_i32_0 : i32, i32
  }
  func.func @transform_2(%arg0: i32) -> (i32, i32) {
    %c0_i32 = arith.constant 0 : i32
    %c0_i32_0 = arith.constant 0 : i32
    %c0_i32_1 = arith.constant 0 : i32
    return %c0_i32, %c0_i32_0 : i32, i32
  }
  func.func @transform_3(%arg0: i32) -> (i32, i32) {
    %c0_i32 = arith.constant 0 : i32
    %c0_i32_0 = arith.constant 0 : i32
    %c0_i32_1 = arith.constant 0 : i32
    return %c0_i32, %c0_i32_0 : i32, i32
  }
  func.func @transform_4(%arg0: i32) -> (i32, i32) {
    %c0_i32 = arith.constant 0 : i32
    %c0_i32_0 = arith.constant 0 : i32
    %c0_i32_1 = arith.constant 0 : i32
    return %c0_i32, %c0_i32_0 : i32, i32
  }
}

module attributes {stable_mosaic.version = 11 : i64} {
  func.func @_conv_bn_relu_kernel(%arg0: i32, %arg1: memref<224x384xbf16, #tpu.memory_space<vmem>>, %arg2: memref<384x128xbf16, #tpu.memory_space<vmem>>, %arg3: memref<1x128xf32, #tpu.memory_space<vmem>>, %arg4: memref<1x128xf32, #tpu.memory_space<vmem>>, %arg5: memref<224x128xbf16, #tpu.memory_space<vmem>>) attributes {dimension_semantics = [#tpu.dimension_semantics<arbitrary>], iteration_bounds = array<i64: 1>, scalar_prefetch = 0 : i64, scratch_operands = 0 : i64, tpu.core_type = #tpu.core_type<tc>, window_params = [{pipeline_mode = #tpu.pipeline_mode<synchronous>, transform_indices = @transform_0, window_bounds = array<i64: 224, 384>}, {pipeline_mode = #tpu.pipeline_mode<synchronous>, transform_indices = @transform_1, window_bounds = array<i64: 384, 128>}, {pipeline_mode = #tpu.pipeline_mode<synchronous>, transform_indices = @transform_2, window_bounds = array<i64: 1, 128>}, {pipeline_mode = #tpu.pipeline_mode<synchronous>, transform_indices = @transform_3, window_bounds = array<i64: 1, 128>}, {pipeline_mode = #tpu.pipeline_mode<synchronous>, transform_indices = @transform_4, window_bounds = array<i64: 224, 128>}]} {
    %c0 = arith.constant 0 : index
    %c0_0 = arith.constant 0 : index
    %0 = vector.load %arg1[%c0, %c0_0] : memref<224x384xbf16, #tpu.memory_space<vmem>>, vector<224x384xbf16>
    %c0_1 = arith.constant 0 : index
    %c0_2 = arith.constant 0 : index
    %1 = vector.load %arg2[%c0_1, %c0_2] : memref<384x128xbf16, #tpu.memory_space<vmem>>, vector<384x128xbf16>
    %cst = arith.constant dense<0.000000e+00> : vector<224x128xf32>
    %2 = tpu.matmul %0, %1, %cst {dimension_numbers = #tpu.dot_dimension_numbers<[1], [0], [0], [1], [0, 0, 1, 1], [], []>} : vector<224x384xbf16>, vector<384x128xbf16>, vector<224x128xf32> -> vector<224x128xf32>
    %cst_3 = arith.constant dense<0.000000e+00> : vector<128xf32>
    %3 = vector.multi_reduction <add>, %2, %cst_3 [0] : vector<224x128xf32> to vector<128xf32>
    %4 = vector.shape_cast %3 : vector<128xf32> to vector<1x128xf32>
    %cst_4 = arith.constant 0.00476190494 : f32
    %5 = vector.broadcast %cst_4 : f32 to vector<1x128xf32>
    %6 = arith.mulf %4, %5 : vector<1x128xf32>
    %7 = arith.mulf %2, %2 : vector<224x128xf32>
    %cst_5 = arith.constant dense<0.000000e+00> : vector<128xf32>
    %8 = vector.multi_reduction <add>, %7, %cst_5 [0] : vector<224x128xf32> to vector<128xf32>
    %9 = vector.shape_cast %8 : vector<128xf32> to vector<1x128xf32>
    %cst_6 = arith.constant 0.00476190494 : f32
    %10 = vector.broadcast %cst_6 : f32 to vector<1x128xf32>
    %11 = arith.mulf %9, %10 : vector<1x128xf32>
    %12 = arith.mulf %6, %6 : vector<1x128xf32>
    %13 = arith.subf %11, %12 : vector<1x128xf32>
    %c0_7 = arith.constant 0 : index
    %c0_8 = arith.constant 0 : index
    %14 = vector.load %arg3[%c0_7, %c0_8] : memref<1x128xf32, #tpu.memory_space<vmem>>, vector<1x128xf32>
    %cst_9 = arith.constant 9.99999974E-6 : f32
    %15 = vector.broadcast %cst_9 : f32 to vector<1x128xf32>
    %16 = arith.addf %13, %15 : vector<1x128xf32>
    %17 = math.rsqrt %16 : vector<1x128xf32>
    %18 = arith.mulf %14, %17 : vector<1x128xf32>
    %c0_10 = arith.constant 0 : index
    %c0_11 = arith.constant 0 : index
    %19 = vector.load %arg4[%c0_10, %c0_11] : memref<1x128xf32, #tpu.memory_space<vmem>>, vector<1x128xf32>
    %20 = arith.mulf %6, %18 : vector<1x128xf32>
    %21 = arith.subf %19, %20 : vector<1x128xf32>
    %22 = vector.broadcast %18 : vector<1x128xf32> to vector<224x128xf32>
    %23 = arith.mulf %2, %22 : vector<224x128xf32>
    %24 = vector.broadcast %21 : vector<1x128xf32> to vector<224x128xf32>
    %25 = arith.addf %23, %24 : vector<224x128xf32>
    %cst_12 = arith.constant 0.000000e+00 : f32
    %26 = vector.broadcast %cst_12 : f32 to vector<224x128xf32>
    %27 = arith.maximumf %25, %26 : vector<224x128xf32>
    %28 = arith.truncf %27 : vector<224x128xf32> to vector<224x128xbf16>
    %c0_13 = arith.constant 0 : index
    %c0_14 = arith.constant 0 : index
    %29 = vector.load %arg5[%c0_13, %c0_14] : memref<224x128xbf16, #tpu.memory_space<vmem>>, vector<224x128xbf16>
    tpu.vector_store %arg5[%c0_13, %c0_14], %28 {strides = array<i32>} : memref<224x128xbf16, #tpu.memory_space<vmem>>, vector<224x128xbf16>,
    return
  }
  func.func @transform_0(%arg0: i32) -> (i32, i32) {
    %c0_i32 = arith.constant 0 : i32
    %c0_i32_0 = arith.constant 0 : i32
    %c0_i32_1 = arith.constant 0 : i32
    return %c0_i32, %c0_i32_0 : i32, i32
  }
  func.func @transform_1(%arg0: i32) -> (i32, i32) {
    %c0_i32 = arith.constant 0 : i32
    %c0_i32_0 = arith.constant 0 : i32
    %c0_i32_1 = arith.constant 0 : i32
    return %c0_i32, %c0_i32_0 : i32, i32
  }
  func.func @transform_2(%arg0: i32) -> (i32, i32) {
    %c0_i32 = arith.constant 0 : i32
    %c0_i32_0 = arith.constant 0 : i32
    %c0_i32_1 = arith.constant 0 : i32
    return %c0_i32, %c0_i32_0 : i32, i32
  }
  func.func @transform_3(%arg0: i32) -> (i32, i32) {
    %c0_i32 = arith.constant 0 : i32
    %c0_i32_0 = arith.constant 0 : i32
    %c0_i32_1 = arith.constant 0 : i32
    return %c0_i32, %c0_i32_0 : i32, i32
  }
  func.func @transform_4(%arg0: i32) -> (i32, i32) {
    %c0_i32 = arith.constant 0 : i32
    %c0_i32_0 = arith.constant 0 : i32
    %c0_i32_1 = arith.constant 0 : i32
    return %c0_i32, %c0_i32_0 : i32, i32
  }
}

module attributes {stable_mosaic.version = 11 : i64} {
  func.func @_conv_bn_relu_kernel(%arg0: i32, %arg1: memref<48x512xbf16, #tpu.memory_space<vmem>>, %arg2: memref<512x128xbf16, #tpu.memory_space<vmem>>, %arg3: memref<1x128xf32, #tpu.memory_space<vmem>>, %arg4: memref<1x128xf32, #tpu.memory_space<vmem>>, %arg5: memref<48x128xbf16, #tpu.memory_space<vmem>>) attributes {dimension_semantics = [#tpu.dimension_semantics<arbitrary>], iteration_bounds = array<i64: 1>, scalar_prefetch = 0 : i64, scratch_operands = 0 : i64, tpu.core_type = #tpu.core_type<tc>, window_params = [{pipeline_mode = #tpu.pipeline_mode<synchronous>, transform_indices = @transform_0, window_bounds = array<i64: 48, 512>}, {pipeline_mode = #tpu.pipeline_mode<synchronous>, transform_indices = @transform_1, window_bounds = array<i64: 512, 128>}, {pipeline_mode = #tpu.pipeline_mode<synchronous>, transform_indices = @transform_2, window_bounds = array<i64: 1, 128>}, {pipeline_mode = #tpu.pipeline_mode<synchronous>, transform_indices = @transform_3, window_bounds = array<i64: 1, 128>}, {pipeline_mode = #tpu.pipeline_mode<synchronous>, transform_indices = @transform_4, window_bounds = array<i64: 48, 128>}]} {
    %c0 = arith.constant 0 : index
    %c0_0 = arith.constant 0 : index
    %0 = vector.load %arg1[%c0, %c0_0] : memref<48x512xbf16, #tpu.memory_space<vmem>>, vector<48x512xbf16>
    %c0_1 = arith.constant 0 : index
    %c0_2 = arith.constant 0 : index
    %1 = vector.load %arg2[%c0_1, %c0_2] : memref<512x128xbf16, #tpu.memory_space<vmem>>, vector<512x128xbf16>
    %cst = arith.constant dense<0.000000e+00> : vector<48x128xf32>
    %2 = tpu.matmul %0, %1, %cst {dimension_numbers = #tpu.dot_dimension_numbers<[1], [0], [0], [1], [0, 0, 1, 1], [], []>} : vector<48x512xbf16>, vector<512x128xbf16>, vector<48x128xf32> -> vector<48x128xf32>
    %cst_3 = arith.constant dense<0.000000e+00> : vector<128xf32>
    %3 = vector.multi_reduction <add>, %2, %cst_3 [0] : vector<48x128xf32> to vector<128xf32>
    %4 = vector.shape_cast %3 : vector<128xf32> to vector<1x128xf32>
    %cst_4 = arith.constant 0.0238095243 : f32
    %5 = vector.broadcast %cst_4 : f32 to vector<1x128xf32>
    %6 = arith.mulf %4, %5 : vector<1x128xf32>
    %7 = arith.mulf %2, %2 : vector<48x128xf32>
    %cst_5 = arith.constant dense<0.000000e+00> : vector<128xf32>
    %8 = vector.multi_reduction <add>, %7, %cst_5 [0] : vector<48x128xf32> to vector<128xf32>
    %9 = vector.shape_cast %8 : vector<128xf32> to vector<1x128xf32>
    %cst_6 = arith.constant 0.0238095243 : f32
    %10 = vector.broadcast %cst_6 : f32 to vector<1x128xf32>
    %11 = arith.mulf %9, %10 : vector<1x128xf32>
    %12 = arith.mulf %6, %6 : vector<1x128xf32>
    %13 = arith.subf %11, %12 : vector<1x128xf32>
    %c0_7 = arith.constant 0 : index
    %c0_8 = arith.constant 0 : index
    %14 = vector.load %arg3[%c0_7, %c0_8] : memref<1x128xf32, #tpu.memory_space<vmem>>, vector<1x128xf32>
    %cst_9 = arith.constant 9.99999974E-6 : f32
    %15 = vector.broadcast %cst_9 : f32 to vector<1x128xf32>
    %16 = arith.addf %13, %15 : vector<1x128xf32>
    %17 = math.rsqrt %16 : vector<1x128xf32>
    %18 = arith.mulf %14, %17 : vector<1x128xf32>
    %c0_10 = arith.constant 0 : index
    %c0_11 = arith.constant 0 : index
    %19 = vector.load %arg4[%c0_10, %c0_11] : memref<1x128xf32, #tpu.memory_space<vmem>>, vector<1x128xf32>
    %20 = arith.mulf %6, %18 : vector<1x128xf32>
    %21 = arith.subf %19, %20 : vector<1x128xf32>
    %22 = vector.broadcast %18 : vector<1x128xf32> to vector<48x128xf32>
    %23 = arith.mulf %2, %22 : vector<48x128xf32>
    %24 = vector.broadcast %21 : vector<1x128xf32> to vector<48x128xf32>
    %25 = arith.addf %23, %24 : vector<48x128xf32>
    %cst_12 = arith.constant 0.000000e+00 : f32
    %26 = vector.broadcast %cst_12 : f32 to vector<48x128xf32>
    %27 = arith.maximumf %25, %26 : vector<48x128xf32>
    %28 = arith.truncf %27 : vector<48x128xf32> to vector<48x128xbf16>
    %c0_13 = arith.constant 0 : index
    %c0_14 = arith.constant 0 : index
    %29 = vector.load %arg5[%c0_13, %c0_14] : memref<48x128xbf16, #tpu.memory_space<vmem>>, vector<48x128xbf16>
    tpu.vector_store %arg5[%c0_13, %c0_14], %28 {strides = array<i32>} : memref<48x128xbf16, #tpu.memory_space<vmem>>, vector<48x128xbf16>,
    return
  }
  func.func @transform_0(%arg0: i32) -> (i32, i32) {
    %c0_i32 = arith.constant 0 : i32
    %c0_i32_0 = arith.constant 0 : i32
    %c0_i32_1 = arith.constant 0 : i32
    return %c0_i32, %c0_i32_0 : i32, i32
  }
  func.func @transform_1(%arg0: i32) -> (i32, i32) {
    %c0_i32 = arith.constant 0 : i32
    %c0_i32_0 = arith.constant 0 : i32
    %c0_i32_1 = arith.constant 0 : i32
    return %c0_i32, %c0_i32_0 : i32, i32
  }
  func.func @transform_2(%arg0: i32) -> (i32, i32) {
    %c0_i32 = arith.constant 0 : i32
    %c0_i32_0 = arith.constant 0 : i32
    %c0_i32_1 = arith.constant 0 : i32
    return %c0_i32, %c0_i32_0 : i32, i32
  }
  func.func @transform_3(%arg0: i32) -> (i32, i32) {
    %c0_i32 = arith.constant 0 : i32
    %c0_i32_0 = arith.constant 0 : i32
    %c0_i32_1 = arith.constant 0 : i32
    return %c0_i32, %c0_i32_0 : i32, i32
  }
  func.func @transform_4(%arg0: i32) -> (i32, i32) {
    %c0_i32 = arith.constant 0 : i32
    %c0_i32_0 = arith.constant 0 : i32
    %c0_i32_1 = arith.constant 0 : i32
    return %c0_i32, %c0_i32_0 : i32, i32
  }
}

module attributes {stable_mosaic.version = 11 : i64} {
  func.func @_tail_kernel(%arg0: i32, %arg1: memref<48x640xbf16, #tpu.memory_space<vmem>>, %arg2: memref<640x128xbf16, #tpu.memory_space<vmem>>, %arg3: memref<1x128xf32, #tpu.memory_space<vmem>>, %arg4: memref<1x128xf32, #tpu.memory_space<vmem>>, %arg5: memref<128x768xbf16, #tpu.memory_space<vmem>>, %arg6: memref<1x768xf32, #tpu.memory_space<vmem>>, %arg7: memref<8x48xf32, #tpu.memory_space<vmem>>, %arg8: memref<64x128xf32, #tpu.memory_space<vmem>>, %arg9: memref<1x128xf32, #tpu.memory_space<vmem>>, %arg10: memref<8x128xf32, #tpu.memory_space<vmem>>) attributes {dimension_semantics = [#tpu.dimension_semantics<arbitrary>], iteration_bounds = array<i64: 1>, scalar_prefetch = 0 : i64, scratch_operands = 0 : i64, tpu.core_type = #tpu.core_type<tc>, window_params = [{pipeline_mode = #tpu.pipeline_mode<synchronous>, transform_indices = @transform_0, window_bounds = array<i64: 48, 640>}, {pipeline_mode = #tpu.pipeline_mode<synchronous>, transform_indices = @transform_1, window_bounds = array<i64: 640, 128>}, {pipeline_mode = #tpu.pipeline_mode<synchronous>, transform_indices = @transform_2, window_bounds = array<i64: 1, 128>}, {pipeline_mode = #tpu.pipeline_mode<synchronous>, transform_indices = @transform_3, window_bounds = array<i64: 1, 128>}, {pipeline_mode = #tpu.pipeline_mode<synchronous>, transform_indices = @transform_4, window_bounds = array<i64: 128, 768>}, {pipeline_mode = #tpu.pipeline_mode<synchronous>, transform_indices = @transform_5, window_bounds = array<i64: 1, 768>}, {pipeline_mode = #tpu.pipeline_mode<synchronous>, transform_indices = @transform_6, window_bounds = array<i64: 8, 48>}, {pipeline_mode = #tpu.pipeline_mode<synchronous>, transform_indices = @transform_7, window_bounds = array<i64: 64, 128>}, {pipeline_mode = #tpu.pipeline_mode<synchronous>, transform_indices = @transform_8, window_bounds = array<i64: 1, 128>}, {pipeline_mode = #tpu.pipeline_mode<synchronous>, transform_indices = @transform_9, window_bounds = array<i64: 8, 128>}]} {
    %c0 = arith.constant 0 : index
    %c0_0 = arith.constant 0 : index
    %0 = vector.load %arg1[%c0, %c0_0] : memref<48x640xbf16, #tpu.memory_space<vmem>>, vector<48x640xbf16>
    %c0_1 = arith.constant 0 : index
    %c0_2 = arith.constant 0 : index
    %1 = vector.load %arg2[%c0_1, %c0_2] : memref<640x128xbf16, #tpu.memory_space<vmem>>, vector<640x128xbf16>
    %cst = arith.constant dense<0.000000e+00> : vector<48x128xf32>
    %2 = tpu.matmul %0, %1, %cst {dimension_numbers = #tpu.dot_dimension_numbers<[1], [0], [0], [1], [0, 0, 1, 1], [], []>} : vector<48x640xbf16>, vector<640x128xbf16>, vector<48x128xf32> -> vector<48x128xf32>
    %cst_3 = arith.constant dense<0.000000e+00> : vector<128xf32>
    %3 = vector.multi_reduction <add>, %2, %cst_3 [0] : vector<48x128xf32> to vector<128xf32>
    %4 = vector.shape_cast %3 : vector<128xf32> to vector<1x128xf32>
    %cst_4 = arith.constant 0.0238095243 : f32
    %5 = vector.broadcast %cst_4 : f32 to vector<1x128xf32>
    %6 = arith.mulf %4, %5 : vector<1x128xf32>
    %7 = arith.mulf %2, %2 : vector<48x128xf32>
    %cst_5 = arith.constant dense<0.000000e+00> : vector<128xf32>
    %8 = vector.multi_reduction <add>, %7, %cst_5 [0] : vector<48x128xf32> to vector<128xf32>
    %9 = vector.shape_cast %8 : vector<128xf32> to vector<1x128xf32>
    %cst_6 = arith.constant 0.0238095243 : f32
    %10 = vector.broadcast %cst_6 : f32 to vector<1x128xf32>
    %11 = arith.mulf %9, %10 : vector<1x128xf32>
    %12 = arith.mulf %6, %6 : vector<1x128xf32>
    %13 = arith.subf %11, %12 : vector<1x128xf32>
    %c0_7 = arith.constant 0 : index
    %c0_8 = arith.constant 0 : index
    %14 = vector.load %arg3[%c0_7, %c0_8] : memref<1x128xf32, #tpu.memory_space<vmem>>, vector<1x128xf32>
    %cst_9 = arith.constant 9.99999974E-6 : f32
    %15 = vector.broadcast %cst_9 : f32 to vector<1x128xf32>
    %16 = arith.addf %13, %15 : vector<1x128xf32>
    %17 = math.rsqrt %16 : vector<1x128xf32>
    %18 = arith.mulf %14, %17 : vector<1x128xf32>
    %c0_10 = arith.constant 0 : index
    %c0_11 = arith.constant 0 : index
    %19 = vector.load %arg4[%c0_10, %c0_11] : memref<1x128xf32, #tpu.memory_space<vmem>>, vector<1x128xf32>
    %20 = arith.mulf %6, %18 : vector<1x128xf32>
    %21 = arith.subf %19, %20 : vector<1x128xf32>
    %22 = vector.broadcast %18 : vector<1x128xf32> to vector<48x128xf32>
    %23 = arith.mulf %2, %22 : vector<48x128xf32>
    %24 = vector.broadcast %21 : vector<1x128xf32> to vector<48x128xf32>
    %25 = arith.addf %23, %24 : vector<48x128xf32>
    %cst_12 = arith.constant 0.000000e+00 : f32
    %26 = vector.broadcast %cst_12 : f32 to vector<48x128xf32>
    %27 = arith.maximumf %25, %26 : vector<48x128xf32>
    %28 = arith.truncf %27 : vector<48x128xf32> to vector<48x128xbf16>
    %c0_13 = arith.constant 0 : index
    %c0_14 = arith.constant 0 : index
    %29 = vector.load %arg5[%c0_13, %c0_14] : memref<128x768xbf16, #tpu.memory_space<vmem>>, vector<128x768xbf16>
    %cst_15 = arith.constant dense<0.000000e+00> : vector<48x768xf32>
    %30 = tpu.matmul %28, %29, %cst_15 {dimension_numbers = #tpu.dot_dimension_numbers<[1], [0], [0], [1], [0, 0, 1, 1], [], []>} : vector<48x128xbf16>, vector<128x768xbf16>, vector<48x768xf32> -> vector<48x768xf32>
    %c0_16 = arith.constant 0 : index
    %c0_17 = arith.constant 0 : index
    %31 = vector.load %arg6[%c0_16, %c0_17] : memref<1x768xf32, #tpu.memory_space<vmem>>, vector<1x768xf32>
    %32 = vector.broadcast %31 : vector<1x768xf32> to vector<48x768xf32>
    %33 = arith.addf %30, %32 : vector<48x768xf32>
    %34 = vector.extract_strided_slice %33 {offsets = [0, 0], sizes = [48, 256], strides = [1, 1]} : vector<48x768xf32> to vector<48x256xf32>
    %35 = vector.extract_strided_slice %33 {offsets = [0, 256], sizes = [48, 256], strides = [1, 1]} : vector<48x768xf32> to vector<48x256xf32>
    %36 = vector.extract_strided_slice %33 {offsets = [0, 512], sizes = [48, 256], strides = [1, 1]} : vector<48x768xf32> to vector<48x256xf32>
    %37 = arith.mulf %34, %35 : vector<48x256xf32>
    %c0_18 = arith.constant 0 : index
    %c0_19 = arith.constant 0 : index
    %38 = vector.load %arg7[%c0_18, %c0_19] : memref<8x48xf32, #tpu.memory_space<vmem>>, vector<8x48xf32>
    %cst_20 = arith.constant 0.000000e+00 : f32
    %39 = vector.broadcast %cst_20 : f32 to vector<8x64xf32>
    %40 = vector.extract_strided_slice %37 {offsets = [0, 0], sizes = [48, 64], strides = [1, 1]} : vector<48x256xf32> to vector<48x64xf32>
    %cst_21 = arith.constant dense<0xFF800000> : vector<48xf32>
    %41 = vector.multi_reduction <maximumf>, %40, %cst_21 [1] : vector<48x64xf32> to vector<48xf32>
    %42 = vector.shape_cast %41 : vector<48xf32> to vector<48x1xf32>
    %43 = vector.broadcast %42 : vector<48x1xf32> to vector<48x64xf32>
    %44 = arith.subf %40, %43 : vector<48x64xf32>
    %45 = math.exp %44 : vector<48x64xf32>
    %cst_22 = arith.constant dense<0.000000e+00> : vector<48xf32>
    %46 = vector.multi_reduction <add>, %45, %cst_22 [1] : vector<48x64xf32> to vector<48xf32>
    %47 = vector.shape_cast %46 : vector<48xf32> to vector<48x1xf32>
    %48 = tpu.reciprocal %47 {approx = true} : vector<48x1xf32> -> vector<48x1xf32>
    %49 = vector.broadcast %48 : vector<48x1xf32> to vector<48x64xf32>
    %50 = arith.mulf %45, %49 : vector<48x64xf32>
    %51 = vector.extract_strided_slice %36 {offsets = [0, 0], sizes = [48, 64], strides = [1, 1]} : vector<48x256xf32> to vector<48x64xf32>
    %52 = arith.mulf %50, %51 : vector<48x64xf32>
    %cst_23 = arith.constant 0.000000e+00 : f32
    %53 = vector.broadcast %cst_23 : f32 to vector<48x64xf32>
    %54 = arith.maximumf %52, %53 : vector<48x64xf32>
    %cst_24 = arith.constant dense<0.000000e+00> : vector<8x64xf32>
    %55 = tpu.matmul %38, %54, %cst_24 {dimension_numbers = #tpu.dot_dimension_numbers<[1], [0], [0], [1], [0, 0, 1, 1], [], []>} : vector<8x48xf32>, vector<48x64xf32>, vector<8x64xf32> -> vector<8x64xf32>
    %56 = arith.addf %39, %55 : vector<8x64xf32>
    %57 = vector.extract_strided_slice %37 {offsets = [0, 64], sizes = [48, 64], strides = [1, 1]} : vector<48x256xf32> to vector<48x64xf32>
    %cst_25 = arith.constant dense<0xFF800000> : vector<48xf32>
    %58 = vector.multi_reduction <maximumf>, %57, %cst_25 [1] : vector<48x64xf32> to vector<48xf32>
    %59 = vector.shape_cast %58 : vector<48xf32> to vector<48x1xf32>
    %60 = vector.broadcast %59 : vector<48x1xf32> to vector<48x64xf32>
    %61 = arith.subf %57, %60 : vector<48x64xf32>
    %62 = math.exp %61 : vector<48x64xf32>
    %cst_26 = arith.constant dense<0.000000e+00> : vector<48xf32>
    %63 = vector.multi_reduction <add>, %62, %cst_26 [1] : vector<48x64xf32> to vector<48xf32>
    %64 = vector.shape_cast %63 : vector<48xf32> to vector<48x1xf32>
    %65 = tpu.reciprocal %64 {approx = true} : vector<48x1xf32> -> vector<48x1xf32>
    %66 = vector.broadcast %65 : vector<48x1xf32> to vector<48x64xf32>
    %67 = arith.mulf %62, %66 : vector<48x64xf32>
    %68 = vector.extract_strided_slice %36 {offsets = [0, 64], sizes = [48, 64], strides = [1, 1]} : vector<48x256xf32> to vector<48x64xf32>
    %69 = arith.mulf %67, %68 : vector<48x64xf32>
    %cst_27 = arith.constant 0.000000e+00 : f32
    %70 = vector.broadcast %cst_27 : f32 to vector<48x64xf32>
    %71 = arith.maximumf %69, %70 : vector<48x64xf32>
    %cst_28 = arith.constant dense<0.000000e+00> : vector<8x64xf32>
    %72 = tpu.matmul %38, %71, %cst_28 {dimension_numbers = #tpu.dot_dimension_numbers<[1], [0], [0], [1], [0, 0, 1, 1], [], []>} : vector<8x48xf32>, vector<48x64xf32>, vector<8x64xf32> -> vector<8x64xf32>
    %73 = arith.addf %56, %72 : vector<8x64xf32>
    %74 = vector.extract_strided_slice %37 {offsets = [0, 128], sizes = [48, 64], strides = [1, 1]} : vector<48x256xf32> to vector<48x64xf32>
    %cst_29 = arith.constant dense<0xFF800000> : vector<48xf32>
    %75 = vector.multi_reduction <maximumf>, %74, %cst_29 [1] : vector<48x64xf32> to vector<48xf32>
    %76 = vector.shape_cast %75 : vector<48xf32> to vector<48x1xf32>
    %77 = vector.broadcast %76 : vector<48x1xf32> to vector<48x64xf32>
    %78 = arith.subf %74, %77 : vector<48x64xf32>
    %79 = math.exp %78 : vector<48x64xf32>
    %cst_30 = arith.constant dense<0.000000e+00> : vector<48xf32>
    %80 = vector.multi_reduction <add>, %79, %cst_30 [1] : vector<48x64xf32> to vector<48xf32>
    %81 = vector.shape_cast %80 : vector<48xf32> to vector<48x1xf32>
    %82 = tpu.reciprocal %81 {approx = true} : vector<48x1xf32> -> vector<48x1xf32>
    %83 = vector.broadcast %82 : vector<48x1xf32> to vector<48x64xf32>
    %84 = arith.mulf %79, %83 : vector<48x64xf32>
    %85 = vector.extract_strided_slice %36 {offsets = [0, 128], sizes = [48, 64], strides = [1, 1]} : vector<48x256xf32> to vector<48x64xf32>
    %86 = arith.mulf %84, %85 : vector<48x64xf32>
    %cst_31 = arith.constant 0.000000e+00 : f32
    %87 = vector.broadcast %cst_31 : f32 to vector<48x64xf32>
    %88 = arith.maximumf %86, %87 : vector<48x64xf32>
    %cst_32 = arith.constant dense<0.000000e+00> : vector<8x64xf32>
    %89 = tpu.matmul %38, %88, %cst_32 {dimension_numbers = #tpu.dot_dimension_numbers<[1], [0], [0], [1], [0, 0, 1, 1], [], []>} : vector<8x48xf32>, vector<48x64xf32>, vector<8x64xf32> -> vector<8x64xf32>
    %90 = arith.addf %73, %89 : vector<8x64xf32>
    %91 = vector.extract_strided_slice %37 {offsets = [0, 192], sizes = [48, 64], strides = [1, 1]} : vector<48x256xf32> to vector<48x64xf32>
    %cst_33 = arith.constant dense<0xFF800000> : vector<48xf32>
    %92 = vector.multi_reduction <maximumf>, %91, %cst_33 [1] : vector<48x64xf32> to vector<48xf32>
    %93 = vector.shape_cast %92 : vector<48xf32> to vector<48x1xf32>
    %94 = vector.broadcast %93 : vector<48x1xf32> to vector<48x64xf32>
    %95 = arith.subf %91, %94 : vector<48x64xf32>
    %96 = math.exp %95 : vector<48x64xf32>
    %cst_34 = arith.constant dense<0.000000e+00> : vector<48xf32>
    %97 = vector.multi_reduction <add>, %96, %cst_34 [1] : vector<48x64xf32> to vector<48xf32>
    %98 = vector.shape_cast %97 : vector<48xf32> to vector<48x1xf32>
    %99 = tpu.reciprocal %98 {approx = true} : vector<48x1xf32> -> vector<48x1xf32>
    %100 = vector.broadcast %99 : vector<48x1xf32> to vector<48x64xf32>
    %101 = arith.mulf %96, %100 : vector<48x64xf32>
    %102 = vector.extract_strided_slice %36 {offsets = [0, 192], sizes = [48, 64], strides = [1, 1]} : vector<48x256xf32> to vector<48x64xf32>
    %103 = arith.mulf %101, %102 : vector<48x64xf32>
    %cst_35 = arith.constant 0.000000e+00 : f32
    %104 = vector.broadcast %cst_35 : f32 to vector<48x64xf32>
    %105 = arith.maximumf %103, %104 : vector<48x64xf32>
    %cst_36 = arith.constant dense<0.000000e+00> : vector<8x64xf32>
    %106 = tpu.matmul %38, %105, %cst_36 {dimension_numbers = #tpu.dot_dimension_numbers<[1], [0], [0], [1], [0, 0, 1, 1], [], []>} : vector<8x48xf32>, vector<48x64xf32>, vector<8x64xf32> -> vector<8x64xf32>
    %107 = arith.addf %90, %106 : vector<8x64xf32>
    %c0_37 = arith.constant 0 : index
    %c0_38 = arith.constant 0 : index
    %108 = vector.load %arg8[%c0_37, %c0_38] : memref<64x128xf32, #tpu.memory_space<vmem>>, vector<64x128xf32>
    %cst_39 = arith.constant dense<0.000000e+00> : vector<8x128xf32>
    %109 = tpu.matmul %107, %108, %cst_39 {dimension_numbers = #tpu.dot_dimension_numbers<[1], [0], [0], [1], [0, 0, 1, 1], [], []>} : vector<8x64xf32>, vector<64x128xf32>, vector<8x128xf32> -> vector<8x128xf32>
    %c0_40 = arith.constant 0 : index
    %c0_41 = arith.constant 0 : index
    %110 = vector.load %arg9[%c0_40, %c0_41] : memref<1x128xf32, #tpu.memory_space<vmem>>, vector<1x128xf32>
    %111 = vector.broadcast %110 : vector<1x128xf32> to vector<8x128xf32>
    %112 = arith.addf %109, %111 : vector<8x128xf32>
    %c0_42 = arith.constant 0 : index
    %c0_43 = arith.constant 0 : index
    %113 = vector.load %arg10[%c0_42, %c0_43] : memref<8x128xf32, #tpu.memory_space<vmem>>, vector<8x128xf32>
    tpu.vector_store %arg10[%c0_42, %c0_43], %112 {strides = array<i32>} : memref<8x128xf32, #tpu.memory_space<vmem>>, vector<8x128xf32>,
    return
  }
  func.func @transform_0(%arg0: i32) -> (i32, i32) {
    %c0_i32 = arith.constant 0 : i32
    %c0_i32_0 = arith.constant 0 : i32
    %c0_i32_1 = arith.constant 0 : i32
    return %c0_i32, %c0_i32_0 : i32, i32
  }
  func.func @transform_1(%arg0: i32) -> (i32, i32) {
    %c0_i32 = arith.constant 0 : i32
    %c0_i32_0 = arith.constant 0 : i32
    %c0_i32_1 = arith.constant 0 : i32
    return %c0_i32, %c0_i32_0 : i32, i32
  }
  func.func @transform_2(%arg0: i32) -> (i32, i32) {
    %c0_i32 = arith.constant 0 : i32
    %c0_i32_0 = arith.constant 0 : i32
    %c0_i32_1 = arith.constant 0 : i32
    return %c0_i32, %c0_i32_0 : i32, i32
  }
  func.func @transform_3(%arg0: i32) -> (i32, i32) {
    %c0_i32 = arith.constant 0 : i32
    %c0_i32_0 = arith.constant 0 : i32
    %c0_i32_1 = arith.constant 0 : i32
    return %c0_i32, %c0_i32_0 : i32, i32
  }
  func.func @transform_4(%arg0: i32) -> (i32, i32) {
    %c0_i32 = arith.constant 0 : i32
    %c0_i32_0 = arith.constant 0 : i32
    %c0_i32_1 = arith.constant 0 : i32
    return %c0_i32, %c0_i32_0 : i32, i32
  }
  func.func @transform_5(%arg0: i32) -> (i32, i32) {
    %c0_i32 = arith.constant 0 : i32
    %c0_i32_0 = arith.constant 0 : i32
    %c0_i32_1 = arith.constant 0 : i32
    return %c0_i32, %c0_i32_0 : i32, i32
  }
  func.func @transform_6(%arg0: i32) -> (i32, i32) {
    %c0_i32 = arith.constant 0 : i32
    %c0_i32_0 = arith.constant 0 : i32
    %c0_i32_1 = arith.constant 0 : i32
    return %c0_i32, %c0_i32_0 : i32, i32
  }
  func.func @transform_7(%arg0: i32) -> (i32, i32) {
    %c0_i32 = arith.constant 0 : i32
    %c0_i32_0 = arith.constant 0 : i32
    %c0_i32_1 = arith.constant 0 : i32
    return %c0_i32, %c0_i32_0 : i32, i32
  }
  func.func @transform_8(%arg0: i32) -> (i32, i32) {
    %c0_i32 = arith.constant 0 : i32
    %c0_i32_0 = arith.constant 0 : i32
    %c0_i32_1 = arith.constant 0 : i32
    return %c0_i32, %c0_i32_0 : i32, i32
  }
  func.func @transform_9(%arg0: i32) -> (i32, i32) {
    %c0_i32 = arith.constant 0 : i32
    %c0_i32_0 = arith.constant 0 : i32
    %c0_i32_1 = arith.constant 0 : i32
    return %c0_i32, %c0_i32_0 : i32, i32
  }
}

</mosaic_0001>

<bundles_post_ra>
// kernel: mhcnn_forward.5
= control target key start
LH: loop header
LB: loop body
LE: loop exit
PB: predicated region body
PF: predicated region fallthrough
CT: control target
= control target key end

     0   :  { %v1806_v0 = vmov 0.0   ;;  %vm1807_vm0 = vmmov 0   ;;  %s2643_s1 = inlined_call_operand.vmem [shape: bf16[128,128], index: 1, kind: input, shape index: {}]   ;;  %s2644_s0 = inlined_call_operand.vmem [shape: bf16[464,128], index: 0, kind: input, shape index: {}]   ;;  %s2645_s2 = inlined_call_operand.vmem [shape: f32[1,128], index: 2, kind: input, shape index: {}]   ;;  %s2646_s3 = inlined_call_operand.vmem [shape: f32[1,128], index: 3, kind: input, shape index: {}]   ;;  %s2647_s4 = inlined_call_operand.vmem [shape: bf16[464,128], index: 4, kind: output, shape index: {}]  }
   0x1   :  { %1617 = vmatprep.subr.bf16.mxu0 %v1806_v0  ;;  %v1767_v1 = vld [vmem:[%s2643_s1] sm:$0xff]   ;;  %1633 = vmatprep.mubr.msk.bf16.mxu0 %vm1807_vm0, %v1806_v0  ;;  %v1768_v2 = vld [vmem:[%s2643_s1 + $0x8] sm:$0xff]   ;;  %v1769_v3 = vld [vmem:[%s2643_s1 + $0x10] sm:$0xff]  }
   0x2   :  { %1749 = vmatprep.subr.bf16.mxu1 %v1806_v0  ;;  %1693 = vmatprep.mubr.msk.bf16.mxu1 %vm1807_vm0, %v1806_v0  ;;  %v1770_v4 = vld [vmem:[%s2643_s1 + $0x18] sm:$0xff]   ;;  %v1771_v5 = vld [vmem:[%s2643_s1 + $0x20] sm:$0xff]   ;;  %v1772_v6 = vld [vmem:[%s2643_s1 + $0x28] sm:$0xff]  }
   0x3   :  { %1618 = vmatpush3.bf16.msra.mxu0 %v1767_v1  ;;  %1757 = vmatpush3.bf16.msra.mxu1 %v1767_v1  ;;  %v1773_v7 = vld [vmem:[%s2643_s1 + $0x30] sm:$0xff]   ;;  %v1774_v8 = vld [vmem:[%s2643_s1 + $0x38] sm:$0xff]   ;;  %v1775_v9 = vld [vmem:[%s2644_s0] sm:$0xff]  }
   0x4   :  { %1619 = vmatprep.subr.bf16.mxu0 %v1806_v0  ;;  %1750 = vmatprep.subr.bf16.mxu1 %v1806_v0  ;;  %v1783_v10 = vld [vmem:[%s2644_s0 + $0x78] sm:$0xff]   ;;  %v1776_v11 = vld [vmem:[%s2644_s0 + $0x8] sm:$0xff]   ;;  %v1785_v12 = vld [vmem:[%s2644_s0 + $0x80] sm:$0xff]  }
   0x5   :  { %v1777_v13 = vld [vmem:[%s2644_s0 + $0x10] sm:$0xff]   ;;  %v1787_v14 = vld [vmem:[%s2644_s0 + $0x88] sm:$0xff]   ;;  %v1778_v15 = vld [vmem:[%s2644_s0 + $0x18] sm:$0xff]  }
   0x6   :  { %v1789_v16 = vld [vmem:[%s2644_s0 + $0x90] sm:$0xff]   ;;  %v1779_v17 = vld [vmem:[%s2644_s0 + $0x20] sm:$0xff]   ;;  %v1791_v18 = vld [vmem:[%s2644_s0 + $0x98] sm:$0xff]  }
   0x7   :  { %1620 = vmatpush3.bf16.msra.mxu0 %v1768_v2  ;;  %1758 = vmatpush3.bf16.msra.mxu1 %v1768_v2  ;;  %v1780_v19 = vld [vmem:[%s2644_s0 + $0x28] sm:$0xff]   ;;  %v1793_v20 = vld [vmem:[%s2644_s0 + $0xa0] sm:$0xff]   ;;  %v1781_v21 = vld [vmem:[%s2644_s0 + $0x30] sm:$0xff]  }
   0x8   :  { %1621 = vmatprep.subr.bf16.mxu0 %v1806_v0  ;;  %1751 = vmatprep.subr.bf16.mxu1 %v1806_v0  ;;  %v1795_v22 = vld [vmem:[%s2644_s0 + $0xa8] sm:$0xff]   ;;  %v1782_v23 = vld [vmem:[%s2644_s0 + $0x38] sm:$0xff]   ;;  %v1797_v24 = vld [vmem:[%s2644_s0 + $0xb0] sm:$0xff]  }
   0x9   :  { %v1784_v25 = vld [vmem:[%s2644_s0 + $0x40] sm:$0xff]   ;;  %v1798_v26 = vld [vmem:[%s2644_s0 + $0xb8] sm:$0xff]   ;;  %v1786_v27 = vld [vmem:[%s2644_s0 + $0x48] sm:$0xff]  }
   0xa   :  { %v1799_v28 = vld [vmem:[%s2644_s0 + $0xc0] sm:$0xff]   ;;  %v1788_v29 = vld [vmem:[%s2644_s0 + $0x50] sm:$0xff]   ;;  %v1800_v30 = vld [vmem:[%s2644_s0 + $0xc8] sm:$0xff]  }
   0xb   :  { %1622 = vmatpush3.bf16.msra.mxu0 %v1769_v3  ;;  %1759 = vmatpush3.bf16.msra.mxu1 %v1769_v3  ;;  %v1790_v31 = vld [vmem:[%s2644_s0 + $0x58] sm:$0xff]   ;;  %v1801_v32 = vld [vmem:[%s2644_s0 + $0xd0] sm:$0xff]   ;;  %v1792_v33 = vld [vmem:[%s2644_s0 + $0x60] sm:$0xff]  }
   0xc   :  { %1623 = vmatprep.subr.bf16.mxu0 %v1806_v0  ;;  %1752 = vmatprep.subr.bf16.mxu1 %v1806_v0  ;;  %v1802_v34 = vld [vmem:[%s2644_s0 + $0xd8] sm:$0xff]   ;;  %v1794_v35 = vld [vmem:[%s2644_s0 + $0x68] sm:$0xff]   ;;  %v1803_v36 = vld [vmem:[%s2644_s0 + $0xe0] sm:$0xff]  }
   0xd   :  { %v1796_v37 = vld [vmem:[%s2644_s0 + $0x70] sm:$0xff]  }
   0xf   :  { %1624 = vmatpush3.bf16.msra.mxu0 %v1770_v4  ;;  %1760 = vmatpush3.bf16.msra.mxu1 %v1770_v4 }
  0x10   :  { %1625 = vmatprep.subr.bf16.mxu0 %v1806_v0  ;;  %1753 = vmatprep.subr.bf16.mxu1 %v1806_v0 }
  0x13   :  { %1626 = vmatpush3.bf16.msra.mxu0 %v1771_v5  ;;  %1761 = vmatpush3.bf16.msra.mxu1 %v1771_v5 }
  0x14   :  { %1627 = vmatprep.subr.bf16.mxu0 %v1806_v0  ;;  %1754 = vmatprep.subr.bf16.mxu1 %v1806_v0 }
  0x17   :  { %1628 = vmatpush3.bf16.msra.mxu0 %v1772_v6  ;;  %1762 = vmatpush3.bf16.msra.mxu1 %v1772_v6 }
  0x18   :  { %1629 = vmatprep.subr.bf16.mxu0 %v1806_v0  ;;  %1755 = vmatprep.subr.bf16.mxu1 %v1806_v0 }
  0x1b   :  { %1630 = vmatpush3.bf16.msra.mxu0 %v1773_v7  ;;  %1763 = vmatpush3.bf16.msra.mxu1 %v1773_v7 }
  0x1c   :  { %1631 = vmatprep.subr.bf16.mxu0 %v1806_v0  ;;  %1756 = vmatprep.subr.bf16.mxu1 %v1806_v0 }
  0x1f   :  { %1632 = vmatpush3.bf16.msra.mxu0 %v1774_v8  ;;  %1764 = vmatpush3.bf16.msra.mxu1 %v1774_v8 }
  0x22   :  { %1634 = vmatmul.mubr.bf16.vlgmr.msra.gmra.mrb[0].mxu0 %v1775_v9  ;;  %1694 = vmatmul.mubr.bf16.vlgmr.msra.gmra.mrb[0].mxu1 %v1783_v10 }
  0x23   :  { %1637 = vmatprep.mubr.msk.bf16.mxu0 %vm1807_vm0, %v1806_v0  ;;  %1697 = vmatprep.mubr.msk.bf16.mxu1 %vm1807_vm0, %v1806_v0 }
  0x2a   :  { %1638 = vmatmul.mubr.bf16.gmra.mrb[4].mxu0 %v1776_v11  ;;  %1698 = vmatmul.mubr.bf16.gmra.mrb[4].mxu1 %v1785_v12 }
  0x2b   :  { %1641 = vmatprep.mubr.msk.bf16.mxu0 %vm1807_vm0, %v1806_v0  ;;  %1701 = vmatprep.mubr.msk.bf16.mxu1 %vm1807_vm0, %v1806_v0 }
  0x32   :  { %1642 = vmatmul.mubr.bf16.gmra.mrb[8].mxu0 %v1777_v13  ;;  %1702 = vmatmul.mubr.bf16.gmra.mrb[8].mxu1 %v1787_v14 }
  0x33   :  { %1645 = vmatprep.mubr.msk.bf16.mxu0 %vm1807_vm0, %v1806_v0  ;;  %1705 = vmatprep.mubr.msk.bf16.mxu1 %vm1807_vm0, %v1806_v0 }
  0x3a   :  { %1646 = vmatmul.mubr.bf16.gmra.mrb[12].mxu0 %v1778_v15  ;;  %1706 = vmatmul.mubr.bf16.gmra.mrb[12].mxu1 %v1789_v16 }
  0x3b   :  { %1649 = vmatprep.mubr.msk.bf16.mxu0 %vm1807_vm0, %v1806_v0  ;;  %1709 = vmatprep.mubr.msk.bf16.mxu1 %vm1807_vm0, %v1806_v0 }
  0x42   :  { %1650 = vmatmul.mubr.bf16.gmra.mrb[16].mxu0 %v1779_v17  ;;  %1710 = vmatmul.mubr.bf16.gmra.mrb[16].mxu1 %v1791_v18 }
  0x43   :  { %1653 = vmatprep.mubr.msk.bf16.mxu0 %vm1807_vm0, %v1806_v0  ;;  %1713 = vmatprep.mubr.msk.bf16.mxu1 %vm1807_vm0, %v1806_v0 }
  0x4a   :  { %1654 = vmatmul.mubr.bf16.gmra.mrb[20].mxu0 %v1780_v19  ;;  %1714 = vmatmul.mubr.bf16.gmra.mrb[20].mxu1 %v1793_v20 }
  0x4b   :  { %1657 = vmatprep.mubr.msk.bf16.mxu0 %vm1807_vm0, %v1806_v0  ;;  %1717 = vmatprep.mubr.msk.bf16.mxu1 %vm1807_vm0, %v1806_v0 }
  0x52   :  { %1658 = vmatmul.mubr.bf16.gmra.mrb[24].mxu0 %v1781_v21  ;;  %1718 = vmatmul.mubr.bf16.gmra.mrb[24].mxu1 %v1795_v22 }
  0x53   :  { %1661 = vmatprep.mubr.msk.bf16.mxu0 %vm1807_vm0, %v1806_v0  ;;  %1721 = vmatprep.mubr.msk.bf16.mxu1 %vm1807_vm0, %v1806_v0 }
  0x5a   :  { %1662 = vmatmul.mubr.bf16.gmra.mrb[28].mxu0 %v1782_v23  ;;  %1722 = vmatmul.mubr.bf16.gmra.mrb[28].mxu1 %v1797_v24 }
  0x5b   :  { %1665 = vmatprep.mubr.msk.bf16.mxu0 %vm1807_vm0, %v1806_v0  ;;  %1725 = vmatprep.mubr.msk.bf16.mxu1 %vm1807_vm0, %v1806_v0 }
  0x62   :  { %1666 = vmatmul.mubr.bf16.gmra.mrb[32].mxu0 %v1784_v25  ;;  %1726 = vmatmul.mubr.bf16.gmra.mrb[32].mxu1 %v1798_v26 }
  0x63   :  { %1669 = vmatprep.mubr.msk.bf16.mxu0 %vm1807_vm0, %v1806_v0  ;;  %1729 = vmatprep.mubr.msk.bf16.mxu1 %vm1807_vm0, %v1806_v0 }
  0x6a   :  { %1670 = vmatmul.mubr.bf16.gmra.mrb[36].mxu0 %v1786_v27  ;;  %1730 = vmatmul.mubr.bf16.gmra.mrb[36].mxu1 %v1799_v28 }
  0x6b   :  { %1673 = vmatprep.mubr.msk.bf16.mxu0 %vm1807_vm0, %v1806_v0  ;;  %1733 = vmatprep.mubr.msk.bf16.mxu1 %vm1807_vm0, %v1806_v0 }
  0x72   :  { %1674 = vmatmul.mubr.bf16.gmra.mrb[40].mxu0 %v1788_v29  ;;  %1734 = vmatmul.mubr.bf16.gmra.mrb[40].mxu1 %v1800_v30 }
  0x73   :  { %1677 = vmatprep.mubr.msk.bf16.mxu0 %vm1807_vm0, %v1806_v0  ;;  %1737 = vmatprep.mubr.msk.bf16.mxu1 %vm1807_vm0, %v1806_v0 }
  0x7a   :  { %1678 = vmatmul.mubr.bf16.gmra.mrb[44].mxu0 %v1790_v31  ;;  %1738 = vmatmul.mubr.bf16.gmra.mrb[44].mxu1 %v1801_v32 }
  0x7b   :  { %1681 = vmatprep.mubr.msk.bf16.mxu0 %vm1807_vm0, %v1806_v0  ;;  %1741 = vmatprep.mubr.msk.bf16.mxu1 %vm1807_vm0, %v1806_v0 }
  0x82   :  { %1682 = vmatmul.mubr.bf16.gmra.mrb[48].mxu0 %v1792_v33  ;;  %1742 = vmatmul.mubr.bf16.gmra.mrb[48].mxu1 %v1802_v34 }
  0x83   :  { %1685 = vmatprep.mubr.msk.bf16.mxu0 %vm1807_vm0, %v1806_v0  ;;  %1745 = vmatprep.mubr.msk.bf16.mxu1 %vm1807_vm0, %v1806_v0 }
  0x8a   :  { %1686 = vmatmul.mubr.bf16.gmra.mrb[52].mxu0 %v1794_v35  ;;  %1746 = vmatmul.mubr.bf16.gmra.mrb[52].mxu1 %v1803_v36 }
  0x8b   :  { %1689 = vmatprep.mubr.msk.bf16.mxu0 %vm1807_vm0, %v1806_v0 }
  0x92   :  { %1690 = vmatmul.mubr.bf16.gmra.mrb[56].mxu0 %v1796_v37 }
  0xf5   :  { %v2018_v38 = vpop.f32.mrb[0].mxu0  ;;  %v2020_v39 = vpop.f32.mrb[0].mxu1 }
  0xf6   :  { %v1635_v40 = vpop.f32.mrb[1].mxu0  ;;  %v1695_v41 = vpop.f32.mrb[1].mxu1  ;;  %v643_v44 = vmul.f32 %v2018_v38, %v2018_v38 }
  0xf7   :  { %v2022_v42 = vpop.f32.mrb[2].mxu0  ;;  %v2024_v43 = vpop.f32.mrb[2].mxu1 }
  0xf8   :  { %v579_v45 = vadd.f32 %v2022_v42, %v2018_v38  ;;  %v644_v46 = vmul.f32 %v2022_v42, %v2022_v42  ;;  %v1636_v47 = vpop.f32.mrb[3].mxu0  ;;  %v1696_v48 = vpop.f32.mrb[3].mxu1 }
  0xfa   :  { %v701_v49 = vadd.f32 %v644_v46, %v643_v44 }
  0xfd   :  { %v2032_v50 = vpop.f32.mrb[4].mxu0  ;;  %v2034_v51 = vpop.f32.mrb[4].mxu1 }
  0xfe   :  { %v580_v52 = vadd.f32 %v579_v45, %v2032_v50  ;;  %v645_v53 = vmul.f32 %v2032_v50, %v2032_v50  ;;  %v1639_v54 = vpop.f32.mrb[5].mxu0  ;;  %v1699_v55 = vpop.f32.mrb[5].mxu1 }
  0xff   :  { %v2039_v56 = vpop.f32.mrb[6].mxu0  ;;  %v2041_v57 = vpop.f32.mrb[6].mxu1 }
 0x100   :  { %v702_v58 = vadd.f32 %v701_v49, %v645_v53  ;;  %v581_v59 = vadd.f32 %v580_v52, %v2039_v56  ;;  %v646_v60 = vmul.f32 %v2039_v56, %v2039_v56  ;;  %v1640_v61 = vpop.f32.mrb[7].mxu0  ;;  %v1700_v62 = vpop.f32.mrb[7].mxu1 }
 0x102   :  { %v703_v63 = vadd.f32 %v702_v58, %v646_v60 }
 0x105   :  { %v2046_v0 = vpop.f32.mrb[8].mxu0  ;;  %v2048_v1 = vpop.f32.mrb[8].mxu1 }
 0x106   :  { %v582_v2 = vadd.f32 %v581_v59, %v2046_v0  ;;  %v647_v3 = vmul.f32 %v2046_v0, %v2046_v0  ;;  %v1643_v4 = vpop.f32.mrb[9].mxu0  ;;  %v1703_v5 = vpop.f32.mrb[9].mxu1 }
 0x107   :  { %v2053_v6 = vpop.f32.mrb[10].mxu0  ;;  %v2055_v7 = vpop.f32.mrb[10].mxu1 }
 0x108   :  { %v704_v8 = vadd.f32 %v703_v63, %v647_v3  ;;  %v583_v9 = vadd.f32 %v582_v2, %v2053_v6  ;;  %v648_v10 = vmul.f32 %v2053_v6, %v2053_v6  ;;  %v1644_v11 = vpop.f32.mrb[11].mxu0  ;;  %v1704_v12 = vpop.f32.mrb[11].mxu1 }
 0x10a   :  { %v705_v13 = vadd.f32 %v704_v8, %v648_v10 }
 0x10d   :  { %v2060_v14 = vpop.f32.mrb[12].mxu0  ;;  %v2062_v15 = vpop.f32.mrb[12].mxu1 }
 0x10e   :  { %v584_v16 = vadd.f32 %v583_v9, %v2060_v14  ;;  %v649_v17 = vmul.f32 %v2060_v14, %v2060_v14  ;;  %v1647_v18 = vpop.f32.mrb[13].mxu0  ;;  %v1707_v19 = vpop.f32.mrb[13].mxu1 }
 0x10f   :  { %v2067_v20 = vpop.f32.mrb[14].mxu0  ;;  %v2069_v21 = vpop.f32.mrb[14].mxu1 }
 0x110   :  { %v706_v22 = vadd.f32 %v705_v13, %v649_v17  ;;  %v585_v23 = vadd.f32 %v584_v16, %v2067_v20  ;;  %v650_v24 = vmul.f32 %v2067_v20, %v2067_v20  ;;  %v1648_v25 = vpop.f32.mrb[15].mxu0  ;;  %v1708_v26 = vpop.f32.mrb[15].mxu1 }
 0x112   :  { %v707_v27 = vadd.f32 %v706_v22, %v650_v24 }
 0x115   :  { %v2074_v28 = vpop.f32.mrb[16].mxu0  ;;  %v2076_v29 = vpop.f32.mrb[16].mxu1 }
 0x116   :  { %v586_v30 = vadd.f32 %v585_v23, %v2074_v28  ;;  %v651_v31 = vmul.f32 %v2074_v28, %v2074_v28  ;;  %v1651_v32 = vpop.f32.mrb[17].mxu0  ;;  %v1711_v33 = vpop.f32.mrb[17].mxu1 }
 0x117   :  { %v2081_v34 = vpop.f32.mrb[18].mxu0  ;;  %v2083_v35 = vpop.f32.mrb[18].mxu1 }
 0x118   :  { %v708_v36 = vadd.f32 %v707_v27, %v651_v31  ;;  %v587_v37 = vadd.f32 %v586_v30, %v2081_v34  ;;  %v652_v40 = vmul.f32 %v2081_v34, %v2081_v34  ;;  %v1652_v41 = vpop.f32.mrb[19].mxu0  ;;  %v1712_v44 = vpop.f32.mrb[19].mxu1 }
 0x11a   :  { %v709_v45 = vadd.f32 %v708_v36, %v652_v40 }
 0x11d   :  { %v2088_v46 = vpop.f32.mrb[20].mxu0  ;;  %v2090_v47 = vpop.f32.mrb[20].mxu1 }
 0x11e   :  { %v588_v48 = vadd.f32 %v587_v37, %v2088_v46  ;;  %v653_v49 = vmul.f32 %v2088_v46, %v2088_v46  ;;  %v1655_v52 = vpop.f32.mrb[21].mxu0  ;;  %v1715_v53 = vpop.f32.mrb[21].mxu1 }
 0x11f   :  { %v2095_v54 = vpop.f32.mrb[22].mxu0  ;;  %v2097_v55 = vpop.f32.mrb[22].mxu1 }
 0x120   :  { %v710_v58 = vadd.f32 %v709_v45, %v653_v49  ;;  %v589_v59 = vadd.f32 %v588_v48, %v2095_v54  ;;  %v654_v60 = vmul.f32 %v2095_v54, %v2095_v54  ;;  %v1656_v61 = vpop.f32.mrb[23].mxu0  ;;  %v1716_v62 = vpop.f32.mrb[23].mxu1 }
 0x122   :  { %v711_v63 = vadd.f32 %v710_v58, %v654_v60 }
 0x125   :  { %v2102_v2 = vpop.f32.mrb[24].mxu0  ;;  %v2104_v3 = vpop.f32.mrb[24].mxu1 }
 0x126   :  { %v590_v4 = vadd.f32 %v589_v59, %v2102_v2  ;;  %v655_v5 = vmul.f32 %v2102_v2, %v2102_v2  ;;  %v1659_v8 = vpop.f32.mrb[25].mxu0  ;;  %v1719_v9 = vpop.f32.mrb[25].mxu1 }
 0x127   :  { %v2109_v10 = vpop.f32.mrb[26].mxu0  ;;  %v2111_v11 = vpop.f32.mrb[26].mxu1 }
 0x128   :  { %v712_v12 = vadd.f32 %v711_v63, %v655_v5  ;;  %v591_v13 = vadd.f32 %v590_v4, %v2109_v10  ;;  %v656_v16 = vmul.f32 %v2109_v10, %v2109_v10  ;;  %v1660_v17 = vpop.f32.mrb[27].mxu0  ;;  %v1720_v18 = vpop.f32.mrb[27].mxu1 }
 0x12a   :  { %v713_v19 = vadd.f32 %v712_v12, %v656_v16 }
 0x12d   :  { %v2116_v22 = vpop.f32.mrb[28].mxu0  ;;  %v2118_v23 = vpop.f32.mrb[28].mxu1 }
 0x12e   :  { %v592_v24 = vadd.f32 %v591_v13, %v2116_v22  ;;  %v657_v25 = vmul.f32 %v2116_v22, %v2116_v22  ;;  %v1663_v26 = vpop.f32.mrb[29].mxu0  ;;  %v1723_v27 = vpop.f32.mrb[29].mxu1 }
 0x12f   :  { %v2123_v30 = vpop.f32.mrb[30].mxu0  ;;  %v2125_v31 = vpop.f32.mrb[30].mxu1 }
 0x130   :  { %v714_v32 = vadd.f32 %v713_v19, %v657_v25  ;;  %v593_v33 = vadd.f32 %v592_v24, %v2123_v30  ;;  %v658_v36 = vmul.f32 %v2123_v30, %v2123_v30  ;;  %v1664_v37 = vpop.f32.mrb[31].mxu0  ;;  %v1724_v40 = vpop.f32.mrb[31].mxu1 }
 0x132   :  { %v715_v41 = vadd.f32 %v714_v32, %v658_v36 }
 0x135   :  { %v2130_v44 = vpop.f32.mrb[32].mxu0  ;;  %v2132_v45 = vpop.f32.mrb[32].mxu1 }
 0x136   :  { %v594_v48 = vadd.f32 %v593_v33, %v2130_v44  ;;  %v659_v49 = vmul.f32 %v2130_v44, %v2130_v44  ;;  %v1667_v52 = vpop.f32.mrb[33].mxu0  ;;  %v1727_v53 = vpop.f32.mrb[33].mxu1 }
 0x137   :  { %v2137_v58 = vpop.f32.mrb[34].mxu0  ;;  %v2139_v59 = vpop.f32.mrb[34].mxu1 }
 0x138   :  { %v716_v60 = vadd.f32 %v715_v41, %v659_v49  ;;  %v595_v61 = vadd.f32 %v594_v48, %v2137_v58  ;;  %v660_v62 = vmul.f32 %v2137_v58, %v2137_v58  ;;  %v1668_v63 = vpop.f32.mrb[35].mxu0  ;;  %v1728_v4 = vpop.f32.mrb[35].mxu1 }
 0x13a   :  { %v717_v5 = vadd.f32 %v716_v60, %v660_v62 }
 0x13d   :  { %v2144_v8 = vpop.f32.mrb[36].mxu0  ;;  %v2146_v9 = vpop.f32.mrb[36].mxu1 }
 0x13e   :  { %v596_v12 = vadd.f32 %v595_v61, %v2144_v8  ;;  %v661_v13 = vmul.f32 %v2144_v8, %v2144_v8  ;;  %v1671_v16 = vpop.f32.mrb[37].mxu0  ;;  %v1731_v17 = vpop.f32.mrb[37].mxu1 }
 0x13f   :  { %v2151_v18 = vpop.f32.mrb[38].mxu0  ;;  %v2153_v19 = vpop.f32.mrb[38].mxu1 }
 0x140   :  { %v718_v24 = vadd.f32 %v717_v5, %v661_v13  ;;  %v597_v25 = vadd.f32 %v596_v12, %v2151_v18  ;;  %v662_v26 = vmul.f32 %v2151_v18, %v2151_v18  ;;  %v1672_v27 = vpop.f32.mrb[39].mxu0  ;;  %v1732_v32 = vpop.f32.mrb[39].mxu1 }
 0x142   :  { %v719_v33 = vadd.f32 %v718_v24, %v662_v26 }
 0x145   :  { %v2158_v36 = vpop.f32.mrb[40].mxu0  ;;  %v2160_v37 = vpop.f32.mrb[40].mxu1 }
 0x146   :  { %2667 = vst [vmem:[#allocation2_spill] sm:$0xff] %v2158_v36  ;;  %2668 = vst [vmem:[#allocation3_spill] sm:$0xff] %v2160_v37  ;;  %v598_v40 = vadd.f32 %v597_v25, %v2158_v36  ;;  %v663_v41 = vmul.f32 %v2158_v36, %v2158_v36  ;;  %v1675_v48 = vpop.f32.mrb[41].mxu0  ;;  %v1735_v49 = vpop.f32.mrb[41].mxu1 }
 0x147   :  { %v2165_v52 = vpop.f32.mrb[42].mxu0  ;;  %v2167_v53 = vpop.f32.mrb[42].mxu1 }
 0x148   :  { %2669 = vst [vmem:[#allocation4_spill] sm:$0xff] %v2165_v52  ;;  %2670 = vst [vmem:[#allocation5_spill] sm:$0xff] %v2167_v53  ;;  %v720_v60 = vadd.f32 %v719_v33, %v663_v41  ;;  %v599_v61 = vadd.f32 %v598_v40, %v2165_v52  ;;  %v664_v62 = vmul.f32 %v2165_v52, %v2165_v52  ;;  %v1676_v63 = vpop.f32.mrb[43].mxu0  ;;  %v1736_v4 = vpop.f32.mrb[43].mxu1 }
 0x14a   :  { %v721_v5 = vadd.f32 %v720_v60, %v664_v62 }
 0x14d   :  { %v2172_v12 = vpop.f32.mrb[44].mxu0  ;;  %v2174_v13 = vpop.f32.mrb[44].mxu1 }
 0x14e   :  { %2671 = vst [vmem:[#allocation6_spill] sm:$0xff] %v2172_v12  ;;  %2672 = vst [vmem:[#allocation7_spill] sm:$0xff] %v2174_v13  ;;  %v600_v16 = vadd.f32 %v599_v61, %v2172_v12  ;;  %v665_v17 = vmul.f32 %v2172_v12, %v2172_v12  ;;  %v1679_v24 = vpop.f32.mrb[45].mxu0  ;;  %v1739_v25 = vpop.f32.mrb[45].mxu1 }
 0x14f   :  { %v2179_v26 = vpop.f32.mrb[46].mxu0  ;;  %v2181_v27 = vpop.f32.mrb[46].mxu1 }
 0x150   :  { %2673 = vst [vmem:[#allocation8_spill] sm:$0xff] %v2179_v26  ;;  %2674 = vst [vmem:[#allocation9_spill] sm:$0xff] %v2181_v27  ;;  %v722_v32 = vadd.f32 %v721_v5, %v665_v17  ;;  %v601_v33 = vadd.f32 %v600_v16, %v2179_v26  ;;  %v666_v40 = vmul.f32 %v2179_v26, %v2179_v26  ;;  %v1680_v41 = vpop.f32.mrb[47].mxu0  ;;  %v1740_v48 = vpop.f32.mrb[47].mxu1 }
 0x152   :  { %v723_v49 = vadd.f32 %v722_v32, %v666_v40 }
 0x155   :  { %v2186_v60 = vpop.f32.mrb[48].mxu0  ;;  %v2188_v61 = vpop.f32.mrb[48].mxu1 }
 0x156   :  { %2675 = vst [vmem:[#allocation10_spill] sm:$0xff] %v2186_v60  ;;  %2676 = vst [vmem:[#allocation11_spill] sm:$0xff] %v2188_v61  ;;  %v602_v62 = vadd.f32 %v601_v33, %v2186_v60  ;;  %v667_v63 = vmul.f32 %v2186_v60, %v2186_v60  ;;  %v1683_v4 = vpop.f32.mrb[49].mxu0  ;;  %v1743_v24 = vpop.f32.mrb[49].mxu1 }
 0x157   :  { %v2193_v5 = vpop.f32.mrb[50].mxu0  ;;  %v2195_v16 = vpop.f32.mrb[50].mxu1 }
 0x158   :  { %2677 = vst [vmem:[#allocation12_spill] sm:$0xff] %v2193_v5  ;;  %2678 = vst [vmem:[#allocation13_spill] sm:$0xff] %v2195_v16  ;;  %v724_v17 = vadd.f32 %v723_v49, %v667_v63  ;;  %v603_v25 = vadd.f32 %v602_v62, %v2193_v5  ;;  %v668_v32 = vmul.f32 %v2193_v5, %v2193_v5  ;;  %v1684_v40 = vpop.f32.mrb[51].mxu0  ;;  %v1744_v41 = vpop.f32.mrb[51].mxu1 }
 0x15a   :  { %v725_v48 = vadd.f32 %v724_v17, %v668_v32 }
 0x15d   :  { %v2200_v26 = vpop.f32.mrb[52].mxu0  ;;  %v2202_v33 = vpop.f32.mrb[52].mxu1 }
 0x15e   :  { %2679 = vst [vmem:[#allocation14_spill] sm:$0xff] %v2200_v26  ;;  %2680 = vst [vmem:[#allocation15_spill] sm:$0xff] %v2202_v33  ;;  %v604_v4 = vadd.f32 %v603_v25, %v2200_v26  ;;  %v669_v24 = vmul.f32 %v2200_v26, %v2200_v26  ;;  %v1687_v60 = vpop.f32.mrb[53].mxu0  ;;  %v1747_v12 = vpop.f32.mrb[53].mxu1 }
 0x15f   :  { %v2207_v49 = vpop.f32.mrb[54].mxu0  ;;  %v2209_v62 = vpop.f32.mrb[54].mxu1 }
 0x160   :  { %2681 = vst [vmem:[#allocation16_spill] sm:$0xff] %v2209_v62  ;;  %v726_v63 = vadd.f32 %v725_v48, %v669_v24  ;;  %v605_v40 = vadd.f32 %v604_v4, %v2207_v49  ;;  %v670_v17 = vmul.f32 %v2207_v49, %v2207_v49  ;;  %v1688_v32 = vpop.f32.mrb[55].mxu0  ;;  %v1748_v41 = vpop.f32.mrb[55].mxu1 }
 0x162   :  { %v727_v5 = vadd.f32 %v726_v63, %v670_v17  ;;  %v673_v63 = vmul.f32 %v2020_v39, %v2020_v39 }
 0x165   :  { %v2214_v52 = vpop.f32.mrb[56].mxu0 }
 0x166   :  { %2682 = vst [vmem:[#allocation17_spill] sm:$0xff] %v2214_v52  ;;  %v606_v25 = vadd.f32 %v605_v40, %v2214_v52  ;;  %v671_v12 = vmul.f32 %v2214_v52, %v2214_v52  ;;  %v1691_v60 = vpop.f32.mrb[57].mxu0  ;;  %v674_v40 = vmul.f32 %v2024_v43, %v2024_v43 }
 0x167   :  { %v2219_v26 = vpop.f32.mrb[58].mxu0 }
 0x168   :  { %2683 = vst [vmem:[#allocation18_spill] sm:$0xff] %v2219_v26  ;;  %v728_v36 = vadd.f32 %v727_v5, %v671_v12  ;;  %v607_v48 = vadd.f32 %v606_v25, %v2219_v26  ;;  %v672_v4 = vmul.f32 %v2219_v26, %v2219_v26  ;;  %v1692_v24 = vpop.f32.mrb[59].mxu0  ;;  %v675_v5 = vmul.f32 %v2034_v51, %v2034_v51 }
 0x169   :  { %v676_v24 = vmul.f32 %v2041_v57, %v2041_v57 }
 0x16a   :  { %v608_v17 = vadd.f32 %v607_v48, %v2020_v39  ;;  %v729_v32 = vadd.f32 %v728_v36, %v672_v4  ;;  %v677_v36 = vmul.f32 %v2048_v1, %v2048_v1 }
 0x16c   :  { %v609_v41 = vadd.f32 %v608_v17, %v2024_v43  ;;  %v730_v60 = vadd.f32 %v729_v32, %v673_v63  ;;  %v678_v63 = vmul.f32 %v2055_v7, %v2055_v7 }
 0x16e   :  { %v610_v25 = vadd.f32 %v609_v41, %v2034_v51  ;;  %v731_v12 = vadd.f32 %v730_v60, %v674_v40  ;;  %v679_v40 = vmul.f32 %v2062_v15, %v2062_v15 }
 0x170   :  { %v611_v26 = vadd.f32 %v610_v25, %v2041_v57  ;;  %v732_v52 = vadd.f32 %v731_v12, %v675_v5  ;;  %v680_v5 = vmul.f32 %v2069_v21, %v2069_v21 }
 0x172   :  { %v612_v48 = vadd.f32 %v611_v26, %v2048_v1  ;;  %v733_v4 = vadd.f32 %v732_v52, %v676_v24  ;;  %v681_v52 = vmul.f32 %v2076_v29, %v2076_v29 }
 0x174   :  { %v613_v17 = vadd.f32 %v612_v48, %v2055_v7  ;;  %v734_v32 = vadd.f32 %v733_v4, %v677_v36  ;;  %v682_v36 = vmul.f32 %v2083_v35, %v2083_v35 }
 0x176   :  { %v614_v41 = vadd.f32 %v613_v17, %v2062_v15  ;;  %v735_v60 = vadd.f32 %v734_v32, %v678_v63  ;;  %v683_v63 = vmul.f32 %v2090_v47, %v2090_v47 }
 0x178   :  { %v736_v25 = vadd.f32 %v735_v60, %v679_v40  ;;  %v615_v12 = vadd.f32 %v614_v41, %v2069_v21  ;;  %v684_v40 = vmul.f32 %v2097_v55, %v2097_v55 }
 0x17a   :  { %v616_v26 = vadd.f32 %v615_v12, %v2076_v29  ;;  %v737_v24 = vadd.f32 %v736_v25, %v680_v5  ;;  %v685_v5 = vmul.f32 %v2104_v3, %v2104_v3 }
 0x17c   :  { %v617_v48 = vadd.f32 %v616_v26, %v2083_v35  ;;  %v738_v4 = vadd.f32 %v737_v24, %v681_v52  ;;  %v686_v52 = vmul.f32 %v2111_v11, %v2111_v11 }
 0x17e   :  { %v618_v17 = vadd.f32 %v617_v48, %v2090_v47  ;;  %v739_v32 = vadd.f32 %v738_v4, %v682_v36  ;;  %v687_v48 = vmul.f32 %v2118_v23, %v2118_v23 }
 0x180   :  { %v619_v41 = vadd.f32 %v618_v17, %v2097_v55  ;;  %v740_v60 = vadd.f32 %v739_v32, %v683_v63  ;;  %v688_v32 = vmul.f32 %v2125_v31, %v2125_v31 }
 0x182   :  { %v620_v25 = vadd.f32 %v619_v41, %v2104_v3  ;;  %v741_v12 = vadd.f32 %v740_v60, %v684_v40  ;;  %v689_v60 = vmul.f32 %v2132_v45, %v2132_v45 }
 0x184   :  { %v621_v26 = vadd.f32 %v620_v25, %v2111_v11  ;;  %v742_v24 = vadd.f32 %v741_v12, %v685_v5  ;;  %v690_v12 = vmul.f32 %v2139_v59, %v2139_v59 }
 0x186   :  { %v622_v36 = vadd.f32 %v621_v26, %v2118_v23  ;;  %v743_v4 = vadd.f32 %v742_v24, %v686_v52  ;;  %v691_v24 = vmul.f32 %v2146_v9, %v2146_v9 }
 0x188   :  { %v744_v17 = vadd.f32 %v743_v4, %v687_v48  ;;  %v623_v63 = vadd.f32 %v622_v36, %v2125_v31  ;;  %v692_v4 = vmul.f32 %v2153_v19, %v2153_v19 }
 0x18a   :  { %v745_v41 = vadd.f32 %v744_v17, %v688_v32  ;;  %v624_v40 = vadd.f32 %v623_v63, %v2132_v45  ;;  %v693_v32 = vmul.f32 %v2160_v37, %v2160_v37 }
 0x18c   :  { %v746_v25 = vadd.f32 %v745_v41, %v689_v60  ;;  %v625_v5 = vadd.f32 %v624_v40, %v2139_v59  ;;  %v694_v60 = vmul.f32 %v2167_v53, %v2167_v53 }
 0x18e   :  { %v747_v26 = vadd.f32 %v746_v25, %v690_v12  ;;  %v626_v52 = vadd.f32 %v625_v5, %v2146_v9  ;;  %v695_v12 = vmul.f32 %v2174_v13, %v2174_v13 }
 0x190   :  { %v748_v36 = vadd.f32 %v747_v26, %v691_v24  ;;  %v627_v48 = vadd.f32 %v626_v52, %v2153_v19  ;;  %v696_v24 = vmul.f32 %v2181_v27, %v2181_v27 }
 0x192   :  { %v749_v17 = vadd.f32 %v748_v36, %v692_v4  ;;  %v628_v63 = vadd.f32 %v627_v48, %v2160_v37  ;;  %v697_v4 = vmul.f32 %v2188_v61, %v2188_v61 }
 0x194   :  { %v750_v41 = vadd.f32 %v749_v17, %v693_v32  ;;  %v629_v40 = vadd.f32 %v628_v63, %v2167_v53  ;;  %v698_v32 = vmul.f32 %v2195_v16, %v2195_v16 }
 0x196   :  { %v751_v25 = vadd.f32 %v750_v41, %v694_v60  ;;  %v630_v5 = vadd.f32 %v629_v40, %v2174_v13  ;;  %v699_v41 = vmul.f32 %v2202_v33, %v2202_v33 }
 0x198   :  { %v752_v26 = vadd.f32 %v751_v25, %v695_v12  ;;  %v631_v52 = vadd.f32 %v630_v5, %v2181_v27  ;;  %v700_v12 = vmul.f32 %v2209_v62, %v2209_v62 }
 0x19a   :  { %v753_v36 = vadd.f32 %v752_v26, %v696_v24  ;;  %v632_v48 = vadd.f32 %v631_v52, %v2188_v61 }
 0x19c   :  { %v754_v17 = vadd.f32 %v753_v36, %v697_v4  ;;  %v633_v63 = vadd.f32 %v632_v48, %v2195_v16 }
 0x19e   :  { %v755_v40 = vadd.f32 %v754_v17, %v698_v32  ;;  %v634_v60 = vadd.f32 %v633_v63, %v2202_v33 }
 0x1a0   :  { %v756_v25 = vadd.f32 %v755_v40, %v699_v41  ;;  %v635_v5 = vadd.f32 %v634_v60, %v2209_v62  ;;  %v775_v62 = vlaneseq }
 0x1a2   :  { %v636_v26 = vrot.slane %v635_v5, 4  ;;  %v757_v52 = vadd.f32 %v756_v25, %v700_v12  ;;  %v2308_v37 = vshrl.u32 %v775_v62, 7  ;;  %v767_v25 = vld [vmem:[%s2645_s2] sm:$0x1] }
 0x1a4   :  { %v637_v24 = vadd.f32 %v636_v26, %v635_v5  ;;  %v758_v36 = vrot.slane %v757_v52, 4  ;;  %2684 = vst [vmem:[#allocation19_spill] sm:$0xff] %v2308_v37  ;;  %v2665_v5 = vsub.s32 0, %v2308_v37  ;;  %v2695_v37 = vld [vmem:[#allocation5_spill] sm:$0xff] }
 0x1a6   :  { %v638_v48 = vrot.slane %v637_v24, 2  ;;  %v759_v4 = vadd.f32 %v758_v36, %v757_v52 }
 0x1a8   :  { %v639_v61 = vadd.f32 %v638_v48, %v637_v24  ;;  %v760_v16 = vrot.slane %v759_v4, 2 }
 0x1aa   :  { %v640_v27 = vrot.slane %v639_v61, 1  ;;  %v761_v13 = vadd.f32 %v760_v16, %v759_v4 }
 0x1ac   :  { %v641_v53 = vadd.f32 %v640_v27, %v639_v61  ;;  %v762_v17 = vrot.slane %v761_v13, 1 }
 0x1ae   :  { %v642_v32 = vmul.f32 0.0022222223, %v641_v53  ;;  %v763_v63 = vadd.f32 %v762_v17, %v761_v13  ;;  %v2317_v53 = vld [vmem:[%s2646_s3] sm:$0x1] }
 0x1b0   :  { %v764_v41 = vmul.f32 0.0022222223, %v763_v63  ;;  %v765_v40 = vmul.f32 %v642_v32, %v642_v32  ;;  %v2685_v63 = vld [vmem:[#allocation2_spill] sm:$0xff] }
 0x1b2   :  { %v766_v60 = vsub.f32 %v764_v41, %v765_v40  ;;  %v2686_v41 = vld [vmem:[#allocation4_spill] sm:$0xff]  ;;  %v2687_v40 = vld [vmem:[#allocation6_spill] sm:$0xff] }
 0x1b4   :  { %v768_v33 = vadd.f32 1e-05, %v766_v60  ;;  %v2688_v60 = vld [vmem:[#allocation8_spill] sm:$0xff] }
 0x1b6   :  { %1804 = vrsqrt.f32 %v768_v33 }
 0x1c0   :  { %v1805_v12 = vpop.eup %1804 }
 0x1c1   :  { %v770_v16 = vmul.f32 %v1805_v12, %v767_v25  ;;  %v2689_v25 = vld [vmem:[#allocation10_spill] sm:$0xff]  ;;  %v2690_v12 = vld [vmem:[#allocation12_spill] sm:$0xff] }
 0x1c3   :  { %v772_v13 = vmul.f32 %v770_v16, %v642_v32  ;;  %v778_v27 = vrot.slane %v770_v16, %v2665_v5  ;;  %v2691_v16 = vld [vmem:[#allocation14_spill] sm:$0xff]  ;;  %v2694_v5 = vld [vmem:[#allocation3_spill] sm:$0xff] }
 0x1c5   :  { %v773_v61 = vsub.f32 %v2317_v53, %v772_v13  ;;  %v780_v33 = vmul.f32 %v778_v27, %v2018_v38  ;;  %v781_v62 = vmul.f32 %v778_v27, %v2022_v42  ;;  %v782_v26 = vmul.f32 %v778_v27, %v2032_v50  ;;  %v2692_v53 = vld [vmem:[#allocation17_spill] sm:$0xff]  ;;  %v2693_v13 = vld [vmem:[#allocation18_spill] sm:$0xff] }
 0x1c6   :  { %v783_v52 = vmul.f32 %v778_v27, %v2039_v56  ;;  %v784_v24 = vmul.f32 %v778_v27, %v2046_v0  ;;  %v785_v36 = vmul.f32 %v778_v27, %v2053_v6  ;;  %v786_v48 = vmul.f32 %v778_v27, %v2060_v14 }
 0x1c7   :  { %v787_v4 = vmul.f32 %v778_v27, %v2067_v20  ;;  %v788_v17 = vmul.f32 %v778_v27, %v2074_v28  ;;  %v789_v32 = vmul.f32 %v778_v27, %v2081_v34  ;;  %v790_v38 = vmul.f32 %v778_v27, %v2088_v46 }
 0x1c8   :  { %v791_v42 = vmul.f32 %v778_v27, %v2095_v54  ;;  %v792_v50 = vmul.f32 %v778_v27, %v2102_v2  ;;  %v793_v56 = vmul.f32 %v778_v27, %v2109_v10  ;;  %v794_v0 = vmul.f32 %v778_v27, %v2116_v22 }
 0x1c9   :  { %v795_v6 = vmul.f32 %v778_v27, %v2123_v30  ;;  %v796_v14 = vmul.f32 %v778_v27, %v2130_v44  ;;  %v797_v20 = vmul.f32 %v778_v27, %v2137_v58  ;;  %v798_v28 = vmul.f32 %v778_v27, %v2144_v8 }
 0x1ca   :  { %v799_v34 = vmul.f32 %v778_v27, %v2151_v18  ;;  %v800_v46 = vmul.f32 %v778_v27, %v2685_v63  ;;  %v801_v54 = vmul.f32 %v778_v27, %v2686_v41  ;;  %v802_v2 = vmul.f32 %v778_v27, %v2687_v40 }
 0x1cb   :  { %v803_v10 = vmul.f32 %v778_v27, %v2688_v60  ;;  %v804_v22 = vmul.f32 %v778_v27, %v2689_v25  ;;  %v805_v30 = vmul.f32 %v778_v27, %v2690_v12  ;;  %v806_v44 = vmul.f32 %v778_v27, %v2691_v16 }
 0x1cc   :  { %v807_v58 = vmul.f32 %v778_v27, %v2207_v49  ;;  %v808_v8 = vmul.f32 %v778_v27, %v2692_v53  ;;  %v809_v18 = vmul.f32 %v778_v27, %v2693_v13  ;;  %v810_v63 = vmul.f32 %v778_v27, %v2020_v39 }
 0x1cd   :  { %v811_v41 = vmul.f32 %v778_v27, %v2024_v43  ;;  %v812_v40 = vmul.f32 %v778_v27, %v2034_v51  ;;  %v813_v60 = vmul.f32 %v778_v27, %v2041_v57  ;;  %v814_v25 = vmul.f32 %v778_v27, %v2048_v1 }
 0x1ce   :  { %v815_v12 = vmul.f32 %v778_v27, %v2055_v7  ;;  %v816_v16 = vmul.f32 %v778_v27, %v2062_v15  ;;  %v817_v49 = vmul.f32 %v778_v27, %v2069_v21  ;;  %v818_v53 = vmul.f32 %v778_v27, %v2076_v29 }
 0x1cf   :  { %v819_v13 = vmul.f32 %v778_v27, %v2083_v35  ;;  %v820_v39 = vmul.f32 %v778_v27, %v2090_v47  ;;  %v821_v43 = vmul.f32 %v778_v27, %v2097_v55  ;;  %v822_v51 = vmul.f32 %v778_v27, %v2104_v3  ;;  %v2696_v3 = vld [vmem:[#allocation7_spill] sm:$0xff] }
 0x1d0   :  { %v823_v57 = vmul.f32 %v778_v27, %v2111_v11  ;;  %v824_v1 = vmul.f32 %v778_v27, %v2118_v23  ;;  %v825_v7 = vmul.f32 %v778_v27, %v2125_v31  ;;  %v826_v15 = vmul.f32 %v778_v27, %v2132_v45  ;;  %v2697_v23 = vld [vmem:[#allocation9_spill] sm:$0xff]  ;;  %v2698_v45 = vld [vmem:[#allocation11_spill] sm:$0xff] }
 0x1d1   :  { %v827_v21 = vmul.f32 %v778_v27, %v2139_v59  ;;  %v828_v29 = vmul.f32 %v778_v27, %v2146_v9  ;;  %v829_v35 = vmul.f32 %v778_v27, %v2153_v19  ;;  %v830_v47 = vmul.f32 %v778_v27, %v2694_v5  ;;  %v2699_v9 = vld [vmem:[#allocation13_spill] sm:$0xff]  ;;  %v2700_v5 = vld [vmem:[#allocation15_spill] sm:$0xff] }
 0x1d2   :  { %v831_v55 = vmul.f32 %v778_v27, %v2695_v37  ;;  %v832_v11 = vmul.f32 %v778_v27, %v2696_v3  ;;  %v833_v31 = vmul.f32 %v778_v27, %v2697_v23  ;;  %v834_v59 = vmul.f32 %v778_v27, %v2698_v45  ;;  %v2701_v3 = vld [vmem:[#allocation16_spill] sm:$0xff]  ;;  %v2702_v45 = vld [vmem:[#allocation19_spill] sm:$0xff] }
 0x1d3   :  { %v835_v19 = vmul.f32 %v778_v27, %v2699_v9  ;;  %v836_v37 = vmul.f32 %v778_v27, %v2700_v5  ;;  %v837_v23 = vmul.f32 %v778_v27, %v2701_v3  ;;  %v2703_v9 = vsub.s32 0, %v2702_v45 }
 0x1d5   :  { %v842_v5 = vrot.slane %v773_v61, %v2703_v9 }
 0x1d7   :  { %v2382_v3 = vadd.f32 %v842_v5, %v780_v33  ;;  %v2384_v27 = vadd.f32 %v842_v5, %v781_v62  ;;  %v2386_v45 = vadd.f32 %v842_v5, %v782_v26  ;;  %v2388_v9 = vadd.f32 %v842_v5, %v783_v52 }
 0x1d8   :  { %v2390_v61 = vadd.f32 %v842_v5, %v784_v24  ;;  %v2392_v33 = vadd.f32 %v842_v5, %v785_v36  ;;  %v2396_v62 = vadd.f32 %v842_v5, %v787_v4  ;;  %v2400_v26 = vadd.f32 %v842_v5, %v789_v32 }
 0x1d9   :  { %2704 = vst [vmem:[#allocation2_spill] sm:$0xff] %v2382_v3  ;;  %2705 = vst [vmem:[#allocation4_spill] sm:$0xff] %v2384_v27  ;;  %v2394_v3 = vadd.f32 %v842_v5, %v786_v48  ;;  %v2398_v27 = vadd.f32 %v842_v5, %v788_v17  ;;  %v2404_v52 = vadd.f32 %v842_v5, %v791_v42 }
 0x1da   :  { %2706 = vst [vmem:[#allocation6_spill] sm:$0xff] %v2386_v45  ;;  %2707 = vst [vmem:[#allocation8_spill] sm:$0xff] %v2388_v9  ;;  %v2402_v45 = vadd.f32 %v842_v5, %v790_v38  ;;  %v2406_v9 = vadd.f32 %v842_v5, %v792_v50  ;;  %v2408_v24 = vadd.f32 %v842_v5, %v793_v56 }
 0x1db   :  { %2708 = vst [vmem:[#allocation10_spill] sm:$0xff] %v2390_v61  ;;  %v2410_v61 = vadd.f32 %v842_v5, %v794_v0  ;;  %v2412_v36 = vadd.f32 %v842_v5, %v795_v6  ;;  %v2414_v48 = vadd.f32 %v842_v5, %v796_v14  ;;  %v2416_v4 = vadd.f32 %v842_v5, %v797_v20 }
 0x1dc   :  { %v2418_v17 = vadd.f32 %v842_v5, %v798_v28  ;;  %v2420_v32 = vadd.f32 %v842_v5, %v799_v34  ;;  %v2422_v38 = vadd.f32 %v842_v5, %v800_v46  ;;  %v2424_v42 = vadd.f32 %v842_v5, %v801_v54 }
 0x1dd   :  { %v2426_v50 = vadd.f32 %v842_v5, %v802_v2  ;;  %v2428_v56 = vadd.f32 %v842_v5, %v803_v10  ;;  %v2430_v0 = vadd.f32 %v842_v5, %v804_v22  ;;  %v2432_v6 = vadd.f32 %v842_v5, %v805_v30 }
 0x1de   :  { %v2434_v14 = vadd.f32 %v842_v5, %v806_v44  ;;  %v2436_v20 = vadd.f32 %v842_v5, %v807_v58  ;;  %v2438_v28 = vadd.f32 %v842_v5, %v808_v8  ;;  %v2440_v34 = vadd.f32 %v842_v5, %v809_v18 }
 0x1df   :  { %v2442_v46 = vadd.f32 %v842_v5, %v810_v63  ;;  %v2444_v54 = vadd.f32 %v842_v5, %v811_v41  ;;  %v2446_v2 = vadd.f32 %v842_v5, %v812_v40  ;;  %v2448_v10 = vadd.f32 %v842_v5, %v813_v60 }
 0x1e0   :  { %v2450_v22 = vadd.f32 %v842_v5, %v814_v25  ;;  %v2452_v30 = vadd.f32 %v842_v5, %v815_v12  ;;  %v2454_v44 = vadd.f32 %v842_v5, %v816_v16  ;;  %v2456_v58 = vadd.f32 %v842_v5, %v817_v49 }
 0x1e1   :  { %v2458_v8 = vadd.f32 %v842_v5, %v818_v53  ;;  %v2460_v18 = vadd.f32 %v842_v5, %v819_v13  ;;  %v2462_v63 = vadd.f32 %v842_v5, %v820_v39  ;;  %v2464_v41 = vadd.f32 %v842_v5, %v821_v43 }
 0x1e2   :  { %v2466_v40 = vadd.f32 %v842_v5, %v822_v51  ;;  %v2468_v60 = vadd.f32 %v842_v5, %v823_v57  ;;  %v2470_v25 = vadd.f32 %v842_v5, %v824_v1  ;;  %v2472_v12 = vadd.f32 %v842_v5, %v825_v7 }
 0x1e3   :  { %v2474_v16 = vadd.f32 %v842_v5, %v826_v15  ;;  %v2476_v49 = vadd.f32 %v842_v5, %v827_v21  ;;  %v2478_v53 = vadd.f32 %v842_v5, %v828_v29  ;;  %v2480_v13 = vadd.f32 %v842_v5, %v829_v35  ;;  %v2718_v29 = vld [vmem:[#allocation2_spill] sm:$0xff]  ;;  %v2719_v35 = vld [vmem:[#allocation4_spill] sm:$0xff] }
 0x1e4   :  { %v2482_v39 = vadd.f32 %v842_v5, %v830_v47  ;;  %v2484_v43 = vadd.f32 %v842_v5, %v831_v55  ;;  %v2486_v51 = vadd.f32 %v842_v5, %v832_v11  ;;  %v2488_v57 = vadd.f32 %v842_v5, %v833_v31  ;;  %v2720_v47 = vld [vmem:[#allocation6_spill] sm:$0xff]  ;;  %v2721_v55 = vld [vmem:[#allocation8_spill] sm:$0xff] }
 0x1e5   :  { %2709 = vst [vmem:[#allocation12_spill] sm:$0xff] %v2478_v53  ;;  %2710 = vst [vmem:[#allocation14_spill] sm:$0xff] %v2480_v13  ;;  %v2490_v1 = vadd.f32 %v842_v5, %v834_v59  ;;  %v2492_v7 = vadd.f32 %v842_v5, %v835_v19  ;;  %v2494_v15 = vadd.f32 %v842_v5, %v836_v37  ;;  %v902_v53 = vmax.f32 %v2718_v29, 0.0  ;;  %v2722_v11 = vld [vmem:[#allocation10_spill] sm:$0xff] }
 0x1e6   :  { %2711 = vst [vmem:[#allocation17_spill] sm:$0xff] %v2482_v39  ;;  %2712 = vst [vmem:[#allocation18_spill] sm:$0xff] %v2484_v43  ;;  %v2496_v21 = vadd.f32 %v842_v5, %v837_v23  ;;  %v903_v13 = vmax.f32 %v2719_v35, 0.0  ;;  %v904_v39 = vmax.f32 %v2720_v47, 0.0  ;;  %v905_v43 = vmax.f32 %v2721_v55, 0.0 }
 0x1e7   :  { %2713 = vst [vmem:[#allocation3_spill] sm:$0xff] %v2486_v51  ;;  %2714 = vst [vmem:[#allocation5_spill] sm:$0xff] %v2490_v1  ;;  %v906_v51 = vmax.f32 %v2722_v11, 0.0  ;;  %v907_v31 = vmax.f32 %v2392_v33, 0.0  ;;  %v908_v59 = vmax.f32 %v2394_v3, 0.0  ;;  %v909_v19 = vmax.f32 %v2396_v62, 0.0 }
 0x1e8   :  { %2715 = vst [vmem:[#allocation7_spill] sm:$0xff] %v2492_v7  ;;  %2716 = vst [vmem:[#allocation9_spill] sm:$0xff] %v2494_v15  ;;  %v910_v37 = vmax.f32 %v2398_v27, 0.0  ;;  %v911_v23 = vmax.f32 %v2400_v26, 0.0  ;;  %v912_v5 = vmax.f32 %v2402_v45, 0.0  ;;  %v913_v29 = vmax.f32 %v2404_v52, 0.0 }
 0x1e9   :  { %2717 = vst [vmem:[#allocation11_spill] sm:$0xff] %v2496_v21  ;;  %v914_v35 = vmax.f32 %v2406_v9, 0.0  ;;  %v915_v47 = vmax.f32 %v2408_v24, 0.0  ;;  %v916_v55 = vmax.f32 %v2410_v61, 0.0  ;;  %v917_v33 = vmax.f32 %v2412_v36, 0.0 }
 0x1ea   :  { %v918_v3 = vmax.f32 %v2414_v48, 0.0  ;;  %v919_v62 = vmax.f32 %v2416_v4, 0.0  ;;  %v920_v27 = vmax.f32 %v2418_v17, 0.0  ;;  %v921_v26 = vmax.f32 %v2420_v32, 0.0 }
 0x1eb   :  { %v922_v45 = vmax.f32 %v2422_v38, 0.0  ;;  %v923_v52 = vmax.f32 %v2424_v42, 0.0  ;;  %v924_v9 = vmax.f32 %v2426_v50, 0.0  ;;  %v925_v24 = vmax.f32 %v2428_v56, 0.0 }
 0x1ec   :  { %v926_v61 = vmax.f32 %v2430_v0, 0.0  ;;  %v927_v36 = vmax.f32 %v2432_v6, 0.0  ;;  %v928_v48 = vmax.f32 %v2434_v14, 0.0  ;;  %v929_v4 = vmax.f32 %v2436_v20, 0.0  ;;  %v2723_v11 = vld [vmem:[#allocation12_spill] sm:$0xff]  ;;  %v2724_v21 = vld [vmem:[#allocation14_spill] sm:$0xff] }
 0x1ed   :  { %v930_v17 = vmax.f32 %v2438_v28, 0.0  ;;  %v931_v32 = vmax.f32 %v2440_v34, 0.0  ;;  %v932_v38 = vmax.f32 %v2442_v46, 0.0  ;;  %v933_v42 = vmax.f32 %v2444_v54, 0.0  ;;  %v2725_v15 = vld [vmem:[#allocation17_spill] sm:$0xff]  ;;  %v2726_v7 = vld [vmem:[#allocation18_spill] sm:$0xff] }
 0x1ee   :  { %v934_v50 = vmax.f32 %v2446_v2, 0.0  ;;  %v935_v56 = vmax.f32 %v2448_v10, 0.0  ;;  %v936_v0 = vmax.f32 %v2450_v22, 0.0  ;;  %v937_v6 = vmax.f32 %v2452_v30, 0.0  ;;  %v2727_v1 = vld [vmem:[#allocation3_spill] sm:$0xff] }
 0x1ef   :  { %v938_v14 = vmax.f32 %v2454_v44, 0.0  ;;  %v939_v20 = vmax.f32 %v2456_v58, 0.0  ;;  %v940_v28 = vmax.f32 %v2458_v8, 0.0  ;;  %v941_v34 = vmax.f32 %v2460_v18, 0.0 }
 0x1f0   :  { %v942_v46 = vmax.f32 %v2462_v63, 0.0  ;;  %v943_v54 = vmax.f32 %v2464_v41, 0.0  ;;  %v944_v2 = vmax.f32 %v2466_v40, 0.0  ;;  %v945_v10 = vmax.f32 %v2468_v60, 0.0 }
 0x1f1   :  { %v946_v22 = vmax.f32 %v2470_v25, 0.0  ;;  %v947_v30 = vmax.f32 %v2472_v12, 0.0  ;;  %v948_v44 = vmax.f32 %v2474_v16, 0.0  ;;  %v949_v58 = vmax.f32 %v2476_v49, 0.0  ;;  %v2728_v25 = vld [vmem:[#allocation5_spill] sm:$0xff]  ;;  %v2729_v16 = vld [vmem:[#allocation7_spill] sm:$0xff] }
 0x1f2   :  { %v950_v8 = vmax.f32 %v2723_v11, 0.0  ;;  %v951_v18 = vmax.f32 %v2724_v21, 0.0  ;;  %v952_v63 = vmax.f32 %v2725_v15, 0.0  ;;  %v953_v41 = vmax.f32 %v2726_v7, 0.0  ;;  %v2730_v11 = vld [vmem:[#allocation9_spill] sm:$0xff]  ;;  %v2731_v15 = vld [vmem:[#allocation11_spill] sm:$0xff] }
 0x1f3   :  { %v954_v40 = vmax.f32 %v2727_v1, 0.0  ;;  %v955_v60 = vmax.f32 %v2488_v57, 0.0  ;;  %v956_v12 = vmax.f32 %v2728_v25, 0.0  ;;  %v957_v49 = vmax.f32 %v2729_v16, 0.0 }
 0x1f4   :  { %v958_v21 = vmax.f32 %v2730_v11, 0.0  ;;  %v959_v7 = vmax.f32 %v2731_v15, 0.0  ;;  %v1410_v1 = vpack.c.bf16 %v903_v13, %v902_v53  ;;  %v1415_v57 = vpack.c.bf16 %v905_v43, %v904_v39 }
 0x1f5   :  { %v1420_v25 = vpack.c.bf16 %v907_v31, %v906_v51  ;;  %v1425_v16 = vpack.c.bf16 %v909_v19, %v908_v59  ;;  %v1430_v11 = vpack.c.bf16 %v911_v23, %v910_v37  ;;  %v1435_v15 = vpack.c.bf16 %v913_v29, %v912_v5 }
 0x1f6   :  { %v1440_v13 = vpack.c.bf16 %v915_v47, %v914_v35  ;;  %v1445_v53 = vpack.c.bf16 %v917_v33, %v916_v55  ;;  %1411 = vst [vmem:[%s2647_s4] sm:$0xff] %v1410_v1   ;;  %1552 = vst [vmem:[%s2647_s4 + $0x8] sm:$0xff] %v1415_v57   ;;  %v1450_v39 = vpack.c.bf16 %v919_v62, %v918_v3 }
 0x1f7   :  { %1553 = vst [vmem:[%s2647_s4 + $0x10] sm:$0xff] %v1420_v25   ;;  %1554 = vst [vmem:[%s2647_s4 + $0x18] sm:$0xff] %v1425_v16   ;;  %v1455_v43 = vpack.c.bf16 %v921_v26, %v920_v27  ;;  %v1460_v51 = vpack.c.bf16 %v923_v52, %v922_v45  ;;  %v1465_v31 = vpack.c.bf16 %v925_v24, %v924_v9 }
 0x1f8   :  { %1555 = vst [vmem:[%s2647_s4 + $0x20] sm:$0xff] %v1430_v11   ;;  %1556 = vst [vmem:[%s2647_s4 + $0x28] sm:$0xff] %v1435_v15   ;;  %v1470_v59 = vpack.c.bf16 %v927_v36, %v926_v61  ;;  %v1475_v19 = vpack.c.bf16 %v929_v4, %v928_v48  ;;  %v1480_v37 = vpack.c.bf16 %v931_v32, %v930_v17 }
 0x1f9   :  { %1557 = vst [vmem:[%s2647_s4 + $0x30] sm:$0xff] %v1440_v13   ;;  %1558 = vst [vmem:[%s2647_s4 + $0x38] sm:$0xff] %v1445_v53   ;;  %v1485_v23 = vpack.c.bf16 %v933_v42, %v932_v38  ;;  %v1490_v5 = vpack.c.bf16 %v935_v56, %v934_v50  ;;  %v1495_v29 = vpack.c.bf16 %v937_v6, %v936_v0 }
 0x1fa   :  { %1559 = vst [vmem:[%s2647_s4 + $0x40] sm:$0xff] %v1450_v39   ;;  %1560 = vst [vmem:[%s2647_s4 + $0x48] sm:$0xff] %v1455_v43   ;;  %v1500_v35 = vpack.c.bf16 %v939_v20, %v938_v14  ;;  %v1505_v47 = vpack.c.bf16 %v941_v34, %v940_v28  ;;  %v1510_v55 = vpack.c.bf16 %v943_v54, %v942_v46 }
 0x1fb   :  { %1561 = vst [vmem:[%s2647_s4 + $0x50] sm:$0xff] %v1460_v51   ;;  %1562 = vst [vmem:[%s2647_s4 + $0x58] sm:$0xff] %v1465_v31   ;;  %v1515_v33 = vpack.c.bf16 %v945_v10, %v944_v2  ;;  %v1520_v3 = vpack.c.bf16 %v947_v30, %v946_v22  ;;  %v1525_v62 = vpack.c.bf16 %v949_v58, %v948_v44 }
 0x1fc   :  { %1563 = vst [vmem:[%s2647_s4 + $0x60] sm:$0xff] %v1470_v59   ;;  %1564 = vst [vmem:[%s2647_s4 + $0x68] sm:$0xff] %v1475_v19   ;;  %v1530_v27 = vpack.c.bf16 %v951_v18, %v950_v8  ;;  %v1535_v26 = vpack.c.bf16 %v953_v41, %v952_v63  ;;  %v1540_v45 = vpack.c.bf16 %v955_v60, %v954_v40 }
 0x1fd   :  { %1565 = vst [vmem:[%s2647_s4 + $0x70] sm:$0xff] %v1480_v37   ;;  %1566 = vst [vmem:[%s2647_s4 + $0x78] sm:$0xff] %v1485_v23   ;;  %v1545_v52 = vpack.c.bf16 %v957_v49, %v956_v12  ;;  %v1550_v9 = vpack.c.bf16 %v959_v7, %v958_v21 }
 0x1fe   :  { %1567 = vst [vmem:[%s2647_s4 + $0x80] sm:$0xff] %v1490_v5   ;;  %1568 = vst [vmem:[%s2647_s4 + $0x88] sm:$0xff] %v1495_v29  }
 0x1ff   :  { %1569 = vst [vmem:[%s2647_s4 + $0x90] sm:$0xff] %v1500_v35   ;;  %1570 = vst [vmem:[%s2647_s4 + $0x98] sm:$0xff] %v1505_v47  }
 0x200   :  { %1571 = vst [vmem:[%s2647_s4 + $0xa0] sm:$0xff] %v1510_v55   ;;  %1572 = vst [vmem:[%s2647_s4 + $0xa8] sm:$0xff] %v1515_v33  }
 0x201   :  { %1573 = vst [vmem:[%s2647_s4 + $0xb0] sm:$0xff] %v1520_v3   ;;  %1574 = vst [vmem:[%s2647_s4 + $0xb8] sm:$0xff] %v1525_v62  }
 0x202   :  { %1575 = vst [vmem:[%s2647_s4 + $0xc0] sm:$0xff] %v1530_v27   ;;  %1576 = vst [vmem:[%s2647_s4 + $0xc8] sm:$0xff] %v1535_v26  }
 0x203   :  { %1577 = vst [vmem:[%s2647_s4 + $0xd0] sm:$0xff] %v1540_v45   ;;  %1578 = vst [vmem:[%s2647_s4 + $0xd8] sm:$0xff] %v1545_v52  }
 0x204   :  { %1579 = vst [vmem:[%s2647_s4 + $0xe0] sm:$0xff] %v1550_v9  }

// kernel: mhcnn_forward.6
= control target key start
LH: loop header
LB: loop body
LE: loop exit
PB: predicated region body
PF: predicated region fallthrough
CT: control target
= control target key end

     0   :  { %v3531_v0 = vmov 0   ;;  %s6000_s1 = inlined_call_operand.vmem [shape: bf16[256,128], index: 1, kind: input, shape index: {}]   ;;  %s6001_s0 = inlined_call_operand.vmem [shape: bf16[912,256], index: 0, kind: input, shape index: {}]   ;;  %s6002_s2 = inlined_call_operand.vmem [shape: f32[1,128], index: 2, kind: input, shape index: {}]   ;;  %s6003_s3 = inlined_call_operand.vmem [shape: f32[1,128], index: 3, kind: input, shape index: {}]   ;;  %s6004_s4 = inlined_call_operand.vmem [shape: bf16[912,128], index: 4, kind: output, shape index: {}]  }
   0x1   :  { %830 = vmatprep.subr.bf16.mxu0 %v3531_v0  ;;  %v3342_v1 = vld [vmem:[%s6000_s1] sm:$0xff]   ;;  %3309 = vmatprep.subr.bf16.mxu1 %v3531_v0  ;;  %v3343_v2 = vld [vmem:[%s6000_s1 + $0x8] sm:$0xff]   ;;  %v3344_v3 = vld [vmem:[%s6000_s1 + $0x10] sm:$0xff]  }
   0x2   :  { %831 = vmatpush1.bf16.msra.mxu0 %v3342_v1  ;;  %3325 = vmatpush1.bf16.msra.mxu1 %v3342_v1  ;;  %v3345_v4 = vld [vmem:[%s6000_s1 + $0x18] sm:$0xff]   ;;  %v3346_v5 = vld [vmem:[%s6000_s1 + $0x20] sm:$0xff]   ;;  %v3347_v7 = vld [vmem:[%s6000_s1 + $0x28] sm:$0xff]  }
   0x3   :  { %832 = vmatprep.subr.bf16.mxu0 %v3531_v0  ;;  %3310 = vmatprep.subr.bf16.mxu1 %v3531_v0  ;;  %v3360_v6 = vld [vmem:[%s6001_s0 + $0x4] ss:$8 sps:$4 sm:$0xff]   ;;  %v3348_v8 = vld [vmem:[%s6000_s1 + $0x30] sm:$0xff]   ;;  %v3349_v9 = vld [vmem:[%s6000_s1 + $0x38] sm:$0xff]  }
   0x4   :  { %862 = vmatprep.mubr.bf16.mxu0 %v3360_v6  ;;  %v3350_v10 = vld [vmem:[%s6000_s1 + $0x40] sm:$0xff]   ;;  %v3351_v11 = vld [vmem:[%s6000_s1 + $0x48] sm:$0xff]   ;;  %v3352_v12 = vld [vmem:[%s6000_s1 + $0x50] sm:$0xff]  }
   0x5   :  { %v3353_v13 = vld [vmem:[%s6000_s1 + $0x58] sm:$0xff]   ;;  %v3354_v14 = vld [vmem:[%s6000_s1 + $0x60] sm:$0xff]   ;;  %v3355_v16 = vld [vmem:[%s6000_s1 + $0x68] sm:$0xff]  }
   0x6   :  { %833 = vmatpush1.bf16.msra.mxu0 %v3343_v2  ;;  %3326 = vmatpush1.bf16.msra.mxu1 %v3343_v2  ;;  %v3405_v15 = vld [vmem:[%s6001_s0 + $0x1d4] ss:$8 sps:$4 sm:$0xff]   ;;  %v3358_v19 = vld [vmem:[%s6001_s0] ss:$8 sps:$4 sm:$0xff]   ;;  %v3403_v20 = vld [vmem:[%s6001_s0 + $0x1d0] ss:$8 sps:$4 sm:$0xff]  }
   0x7   :  { %834 = vmatprep.subr.bf16.mxu0 %v3531_v0  ;;  %3311 = vmatprep.subr.bf16.mxu1 %v3531_v0  ;;  %v3356_v17 = vld [vmem:[%s6000_s1 + $0x70] sm:$0xff]   ;;  %v3357_v18 = vld [vmem:[%s6000_s1 + $0x78] sm:$0xff]   ;;  %v3409_v22 = vld [vmem:[%s6001_s0 + $0x1e4] ss:$8 sps:$4 sm:$0xff]  }
   0x8   :  { %1094 = vmatprep.mubr.bf16.mxu1 %v3405_v15  ;;  %v3361_v21 = vld [vmem:[%s6001_s0 + $0x14] ss:$8 sps:$4 sm:$0xff]   ;;  %v3363_v23 = vld [vmem:[%s6001_s0 + $0x10] ss:$8 sps:$4 sm:$0xff]   ;;  %v3411_v24 = vld [vmem:[%s6001_s0 + $0x1e0] ss:$8 sps:$4 sm:$0xff]  }
   0x9   :  { %v3364_v25 = vld [vmem:[%s6001_s0 + $0x24] ss:$8 sps:$4 sm:$0xff]   ;;  %v3415_v26 = vld [vmem:[%s6001_s0 + $0x1f4] ss:$8 sps:$4 sm:$0xff]   ;;  %v3366_v27 = vld [vmem:[%s6001_s0 + $0x20] ss:$8 sps:$4 sm:$0xff]  }
   0xa   :  { %835 = vmatpush1.bf16.msra.mxu0 %v3344_v3  ;;  %3327 = vmatpush1.bf16.msra.mxu1 %v3344_v3  ;;  %v3417_v28 = vld [vmem:[%s6001_s0 + $0x1f0] ss:$8 sps:$4 sm:$0xff]   ;;  %v3367_v29 = vld [vmem:[%s6001_s0 + $0x34] ss:$8 sps:$4 sm:$0xff]   ;;  %v3421_v30 = vld [vmem:[%s6001_s0 + $0x204] ss:$8 sps:$4 sm:$0xff]  }
   0xb   :  { %836 = vmatprep.subr.bf16.mxu0 %v3531_v0  ;;  %3312 = vmatprep.subr.bf16.mxu1 %v3531_v0  ;;  %v3369_v31 = vld [vmem:[%s6001_s0 + $0x30] ss:$8 sps:$4 sm:$0xff]   ;;  %v3423_v32 = vld [vmem:[%s6001_s0 + $0x200] ss:$8 sps:$4 sm:$0xff]   ;;  %v3370_v33 = vld [vmem:[%s6001_s0 + $0x44] ss:$8 sps:$4 sm:$0xff]  }
   0xc   :  { %v3427_v34 = vld [vmem:[%s6001_s0 + $0x214] ss:$8 sps:$4 sm:$0xff]   ;;  %v3372_v35 = vld [vmem:[%s6001_s0 + $0x40] ss:$8 sps:$4 sm:$0xff]   ;;  %v3429_v36 = vld [vmem:[%s6001_s0 + $0x210] ss:$8 sps:$4 sm:$0xff]  }
   0xd   :  { %v3373_v37 = vld [vmem:[%s6001_s0 + $0x54] ss:$8 sps:$4 sm:$0xff]   ;;  %v3433_v38 = vld [vmem:[%s6001_s0 + $0x224] ss:$8 sps:$4 sm:$0xff]   ;;  %v3375_v39 = vld [vmem:[%s6001_s0 + $0x50] ss:$8 sps:$4 sm:$0xff]  }
   0xe   :  { %837 = vmatpush1.bf16.msra.mxu0 %v3345_v4  ;;  %3328 = vmatpush1.bf16.msra.mxu1 %v3345_v4  ;;  %v3435_v40 = vld [vmem:[%s6001_s0 + $0x220] ss:$8 sps:$4 sm:$0xff]   ;;  %v3376_v41 = vld [vmem:[%s6001_s0 + $0x64] ss:$8 sps:$4 sm:$0xff]   ;;  %v3439_v42 = vld [vmem:[%s6001_s0 + $0x234] ss:$8 sps:$4 sm:$0xff]  }
   0xf   :  { %838 = vmatprep.subr.bf16.mxu0 %v3531_v0  ;;  %3313 = vmatprep.subr.bf16.mxu1 %v3531_v0  ;;  %v3378_v43 = vld [vmem:[%s6001_s0 + $0x60] ss:$8 sps:$4 sm:$0xff]   ;;  %v3441_v44 = vld [vmem:[%s6001_s0 + $0x230] ss:$8 sps:$4 sm:$0xff]   ;;  %v3379_v45 = vld [vmem:[%s6001_s0 + $0x74] ss:$8 sps:$4 sm:$0xff]  }
  0x10   :  { %v3445_v46 = vld [vmem:[%s6001_s0 + $0x244] ss:$8 sps:$4 sm:$0xff]   ;;  %v3381_v47 = vld [vmem:[%s6001_s0 + $0x70] ss:$8 sps:$4 sm:$0xff]   ;;  %v3447_v48 = vld [vmem:[%s6001_s0 + $0x240] ss:$8 sps:$4 sm:$0xff]  }
  0x11   :  { %v3382_v49 = vld [vmem:[%s6001_s0 + $0x84] ss:$8 sps:$4 sm:$0xff]   ;;  %v3451_v50 = vld [vmem:[%s6001_s0 + $0x254] ss:$8 sps:$4 sm:$0xff]   ;;  %v3384_v51 = vld [vmem:[%s6001_s0 + $0x80] ss:$8 sps:$4 sm:$0xff]  }
  0x12   :  { %839 = vmatpush1.bf16.msra.mxu0 %v3346_v5  ;;  %3329 = vmatpush1.bf16.msra.mxu1 %v3346_v5  ;;  %v3453_v52 = vld [vmem:[%s6001_s0 + $0x250] ss:$8 sps:$4 sm:$0xff]   ;;  %v3385_v53 = vld [vmem:[%s6001_s0 + $0x94] ss:$8 sps:$4 sm:$0xff]   ;;  %v3457_v54 = vld [vmem:[%s6001_s0 + $0x264] ss:$8 sps:$4 sm:$0xff]  }
  0x13   :  { %840 = vmatprep.subr.bf16.mxu0 %v3531_v0  ;;  %3314 = vmatprep.subr.bf16.mxu1 %v3531_v0  ;;  %v3387_v55 = vld [vmem:[%s6001_s0 + $0x90] ss:$8 sps:$4 sm:$0xff]   ;;  %v3459_v56 = vld [vmem:[%s6001_s0 + $0x260] ss:$8 sps:$4 sm:$0xff]   ;;  %v3388_v57 = vld [vmem:[%s6001_s0 + $0xa4] ss:$8 sps:$4 sm:$0xff]  }
  0x14   :  { %v3463_v58 = vld [vmem:[%s6001_s0 + $0x274] ss:$8 sps:$4 sm:$0xff]   ;;  %v3390_v59 = vld [vmem:[%s6001_s0 + $0xa0] ss:$8 sps:$4 sm:$0xff]   ;;  %v3465_v60 = vld [vmem:[%s6001_s0 + $0x270] ss:$8 sps:$4 sm:$0xff]  }
  0x15   :  { %v3391_v61 = vld [vmem:[%s6001_s0 + $0xb4] ss:$8 sps:$4 sm:$0xff]   ;;  %v3469_v62 = vld [vmem:[%s6001_s0 + $0x284] ss:$8 sps:$4 sm:$0xff]   ;;  %v3393_v63 = vld [vmem:[%s6001_s0 + $0xb0] ss:$8 sps:$4 sm:$0xff]  }
  0x16   :  { %841 = vmatpush1.bf16.msra.mxu0 %v3347_v7  ;;  %3330 = vmatpush1.bf16.msra.mxu1 %v3347_v7  ;;  %v3394_v1 = vld [vmem:[%s6001_s0 + $0xc4] ss:$8 sps:$4 sm:$0xff]   ;;  %v3475_v2 = vld [vmem:[%s6001_s0 + $0x294] ss:$8 sps:$4 sm:$0xff]   ;;  %v3396_v3 = vld [vmem:[%s6001_s0 + $0xc0] ss:$8 sps:$4 sm:$0xff]  }
  0x17   :  { %842 = vmatprep.subr.bf16.mxu0 %v3531_v0  ;;  %3315 = vmatprep.subr.bf16.mxu1 %v3531_v0  ;;  %v3477_v4 = vld [vmem:[%s6001_s0 + $0x290] ss:$8 sps:$4 sm:$0xff]   ;;  %v3397_v5 = vld [vmem:[%s6001_s0 + $0xd4] ss:$8 sps:$4 sm:$0xff]   ;;  %v3481_v6 = vld [vmem:[%s6001_s0 + $0x2a4] ss:$8 sps:$4 sm:$0xff]  }
  0x18   :  { %v3399_v7 = vld [vmem:[%s6001_s0 + $0xd0] ss:$8 sps:$4 sm:$0xff]  }
  0x19   :  { %v3408_v15 = vld [vmem:[%s6001_s0 + $0xf0] ss:$8 sps:$4 sm:$0xff]  }
  0x1a   :  { %843 = vmatpush1.bf16.msra.mxu0 %v3348_v8  ;;  %3331 = vmatpush1.bf16.msra.mxu1 %v3348_v8  ;;  %v3483_v8 = vld [vmem:[%s6001_s0 + $0x2a0] ss:$8 sps:$4 sm:$0xff]  }
  0x1b   :  { %844 = vmatprep.subr.bf16.mxu0 %v3531_v0  ;;  %3316 = vmatprep.subr.bf16.mxu1 %v3531_v0 }
  0x1e   :  { %845 = vmatpush1.bf16.msra.mxu0 %v3349_v9  ;;  %3332 = vmatpush1.bf16.msra.mxu1 %v3349_v9  ;;  %v3400_v9 = vld [vmem:[%s6001_s0 + $0xe4] ss:$8 sps:$4 sm:$0xff]  }
  0x1f   :  { %846 = vmatprep.subr.bf16.mxu0 %v3531_v0  ;;  %3317 = vmatprep.subr.bf16.mxu1 %v3531_v0 }
  0x22   :  { %847 = vmatpush1.bf16.msra.mxu0 %v3350_v10  ;;  %3333 = vmatpush1.bf16.msra.mxu1 %v3350_v10  ;;  %v3487_v10 = vld [vmem:[%s6001_s0 + $0x2b4] ss:$8 sps:$4 sm:$0xff]  }
  0x23   :  { %848 = vmatprep.subr.bf16.mxu0 %v3531_v0  ;;  %3318 = vmatprep.subr.bf16.mxu1 %v3531_v0 }
  0x26   :  { %849 = vmatpush1.bf16.msra.mxu0 %v3351_v11  ;;  %3334 = vmatpush1.bf16.msra.mxu1 %v3351_v11  ;;  %v3402_v11 = vld [vmem:[%s6001_s0 + $0xe0] ss:$8 sps:$4 sm:$0xff]  }
  0x27   :  { %850 = vmatprep.subr.bf16.mxu0 %v3531_v0  ;;  %3319 = vmatprep.subr.bf16.mxu1 %v3531_v0 }
  0x2a   :  { %851 = vmatpush1.bf16.msra.mxu0 %v3352_v12  ;;  %3335 = vmatpush1.bf16.msra.mxu1 %v3352_v12  ;;  %v3489_v12 = vld [vmem:[%s6001_s0 + $0x2b0] ss:$8 sps:$4 sm:$0xff]  }
  0x2b   :  { %852 = vmatprep.subr.bf16.mxu0 %v3531_v0  ;;  %3320 = vmatprep.subr.bf16.mxu1 %v3531_v0 }
  0x2e   :  { %853 = vmatpush1.bf16.msra.mxu0 %v3353_v13  ;;  %3336 = vmatpush1.bf16.msra.mxu1 %v3353_v13  ;;  %v3406_v13 = vld [vmem:[%s6001_s0 + $0xf4] ss:$8 sps:$4 sm:$0xff]  }
  0x2f   :  { %854 = vmatprep.subr.bf16.mxu0 %v3531_v0  ;;  %3321 = vmatprep.subr.bf16.mxu1 %v3531_v0 }
  0x32   :  { %855 = vmatpush1.bf16.msra.mxu0 %v3354_v14  ;;  %3337 = vmatpush1.bf16.msra.mxu1 %v3354_v14  ;;  %v3490_v14 = vld [vmem:[%s6001_s0 + $0x2c4] ss:$8 sps:$4 sm:$0xff]  }
  0x33   :  { %856 = vmatprep.subr.bf16.mxu0 %v3531_v0  ;;  %3322 = vmatprep.subr.bf16.mxu1 %v3531_v0 }
  0x36   :  { %857 = vmatpush1.bf16.msra.mxu0 %v3355_v16  ;;  %3338 = vmatpush1.bf16.msra.mxu1 %v3355_v16  ;;  %v3492_v16 = vld [vmem:[%s6001_s0 + $0x2c0] ss:$8 sps:$4 sm:$0xff]  }
  0x37   :  { %858 = vmatprep.subr.bf16.mxu0 %v3531_v0  ;;  %3323 = vmatprep.subr.bf16.mxu1 %v3531_v0 }
  0x3a   :  { %859 = vmatpush1.bf16.msra.mxu0 %v3356_v17  ;;  %3339 = vmatpush1.bf16.msra.mxu1 %v3356_v17  ;;  %v3412_v17 = vld [vmem:[%s6001_s0 + $0x104] ss:$8 sps:$4 sm:$0xff]  }
  0x3b   :  { %860 = vmatprep.subr.bf16.mxu0 %v3531_v0  ;;  %3324 = vmatprep.subr.bf16.mxu1 %v3531_v0  ;;  %v3471_v0 = vld [vmem:[%s6001_s0 + $0x280] ss:$8 sps:$4 sm:$0xff]  }
  0x3e   :  { %861 = vmatpush1.bf16.msra.mxu0 %v3357_v18  ;;  %3340 = vmatpush1.bf16.msra.mxu1 %v3357_v18  ;;  %v3493_v18 = vld [vmem:[%s6001_s0 + $0x2d4] ss:$8 sps:$4 sm:$0xff]  }
  0x41   :  { %863 = vmatmul.mubr.bf16.vlgmr.msra.gmra.mrb[0].mxu0 %v3358_v19  ;;  %1095 = vmatmul.mubr.bf16.vlgmr.msra.gmra.mrb[0].mxu1 %v3403_v20  ;;  %v3414_v19 = vld [vmem:[%s6001_s0 + $0x100] ss:$8 sps:$4 sm:$0xff]   ;;  %v3495_v20 = vld [vmem:[%s6001_s0 + $0x2d0] ss:$8 sps:$4 sm:$0xff]  }
  0x42   :  { %870 = vmatprep.mubr.bf16.mxu0 %v3361_v21  ;;  %1102 = vmatprep.mubr.bf16.mxu1 %v3409_v22  ;;  %v3418_v21 = vld [vmem:[%s6001_s0 + $0x114] ss:$8 sps:$4 sm:$0xff]   ;;  %v3496_v22 = vld [vmem:[%s6001_s0 + $0x2e4] ss:$8 sps:$4 sm:$0xff]  }
  0x49   :  { %871 = vmatmul.mubr.bf16.gmra.mrb[4].mxu0 %v3363_v23  ;;  %1103 = vmatmul.mubr.bf16.gmra.mrb[4].mxu1 %v3411_v24  ;;  %v3420_v23 = vld [vmem:[%s6001_s0 + $0x110] ss:$8 sps:$4 sm:$0xff]   ;;  %v3498_v24 = vld [vmem:[%s6001_s0 + $0x2e0] ss:$8 sps:$4 sm:$0xff]  }
  0x4a   :  { %878 = vmatprep.mubr.bf16.mxu0 %v3364_v25  ;;  %1110 = vmatprep.mubr.bf16.mxu1 %v3415_v26  ;;  %v3424_v25 = vld [vmem:[%s6001_s0 + $0x124] ss:$8 sps:$4 sm:$0xff]   ;;  %v3499_v26 = vld [vmem:[%s6001_s0 + $0x2f4] ss:$8 sps:$4 sm:$0xff]  }
  0x51   :  { %879 = vmatmul.mubr.bf16.gmra.mrb[8].mxu0 %v3366_v27  ;;  %1111 = vmatmul.mubr.bf16.gmra.mrb[8].mxu1 %v3417_v28  ;;  %v3426_v27 = vld [vmem:[%s6001_s0 + $0x120] ss:$8 sps:$4 sm:$0xff]   ;;  %v3501_v28 = vld [vmem:[%s6001_s0 + $0x2f0] ss:$8 sps:$4 sm:$0xff]  }
  0x52   :  { %886 = vmatprep.mubr.bf16.mxu0 %v3367_v29  ;;  %1118 = vmatprep.mubr.bf16.mxu1 %v3421_v30  ;;  %v3430_v29 = vld [vmem:[%s6001_s0 + $0x134] ss:$8 sps:$4 sm:$0xff]   ;;  %v3502_v30 = vld [vmem:[%s6001_s0 + $0x304] ss:$8 sps:$4 sm:$0xff]  }
  0x59   :  { %887 = vmatmul.mubr.bf16.gmra.mrb[12].mxu0 %v3369_v31  ;;  %1119 = vmatmul.mubr.bf16.gmra.mrb[12].mxu1 %v3423_v32  ;;  %v3432_v31 = vld [vmem:[%s6001_s0 + $0x130] ss:$8 sps:$4 sm:$0xff]   ;;  %v3504_v32 = vld [vmem:[%s6001_s0 + $0x300] ss:$8 sps:$4 sm:$0xff]  }
  0x5a   :  { %894 = vmatprep.mubr.bf16.mxu0 %v3370_v33  ;;  %1126 = vmatprep.mubr.bf16.mxu1 %v3427_v34  ;;  %v3436_v33 = vld [vmem:[%s6001_s0 + $0x144] ss:$8 sps:$4 sm:$0xff]   ;;  %v3505_v34 = vld [vmem:[%s6001_s0 + $0x314] ss:$8 sps:$4 sm:$0xff]  }
  0x61   :  { %895 = vmatmul.mubr.bf16.gmra.mrb[16].mxu0 %v3372_v35  ;;  %1127 = vmatmul.mubr.bf16.gmra.mrb[16].mxu1 %v3429_v36  ;;  %v3438_v35 = vld [vmem:[%s6001_s0 + $0x140] ss:$8 sps:$4 sm:$0xff]   ;;  %v3507_v36 = vld [vmem:[%s6001_s0 + $0x310] ss:$8 sps:$4 sm:$0xff]  }
  0x62   :  { %902 = vmatprep.mubr.bf16.mxu0 %v3373_v37  ;;  %1134 = vmatprep.mubr.bf16.mxu1 %v3433_v38  ;;  %v3442_v37 = vld [vmem:[%s6001_s0 + $0x154] ss:$8 sps:$4 sm:$0xff]   ;;  %v3508_v38 = vld [vmem:[%s6001_s0 + $0x324] ss:$8 sps:$4 sm:$0xff]  }
  0x69   :  { %903 = vmatmul.mubr.bf16.gmra.mrb[20].mxu0 %v3375_v39  ;;  %1135 = vmatmul.mubr.bf16.gmra.mrb[20].mxu1 %v3435_v40  ;;  %v3444_v39 = vld [vmem:[%s6001_s0 + $0x150] ss:$8 sps:$4 sm:$0xff]   ;;  %v3510_v40 = vld [vmem:[%s6001_s0 + $0x320] ss:$8 sps:$4 sm:$0xff]  }
  0x6a   :  { %910 = vmatprep.mubr.bf16.mxu0 %v3376_v41  ;;  %1142 = vmatprep.mubr.bf16.mxu1 %v3439_v42  ;;  %v3448_v41 = vld [vmem:[%s6001_s0 + $0x164] ss:$8 sps:$4 sm:$0xff]   ;;  %v3511_v42 = vld [vmem:[%s6001_s0 + $0x334] ss:$8 sps:$4 sm:$0xff]  }
  0x71   :  { %911 = vmatmul.mubr.bf16.gmra.mrb[24].mxu0 %v3378_v43  ;;  %1143 = vmatmul.mubr.bf16.gmra.mrb[24].mxu1 %v3441_v44  ;;  %v3450_v43 = vld [vmem:[%s6001_s0 + $0x160] ss:$8 sps:$4 sm:$0xff]   ;;  %v3513_v44 = vld [vmem:[%s6001_s0 + $0x330] ss:$8 sps:$4 sm:$0xff]  }
  0x72   :  { %918 = vmatprep.mubr.bf16.mxu0 %v3379_v45  ;;  %1150 = vmatprep.mubr.bf16.mxu1 %v3445_v46  ;;  %v3454_v45 = vld [vmem:[%s6001_s0 + $0x174] ss:$8 sps:$4 sm:$0xff]   ;;  %v3514_v46 = vld [vmem:[%s6001_s0 + $0x344] ss:$8 sps:$4 sm:$0xff]  }
  0x79   :  { %919 = vmatmul.mubr.bf16.gmra.mrb[28].mxu0 %v3381_v47  ;;  %1151 = vmatmul.mubr.bf16.gmra.mrb[28].mxu1 %v3447_v48  ;;  %v3456_v47 = vld [vmem:[%s6001_s0 + $0x170] ss:$8 sps:$4 sm:$0xff]   ;;  %v3516_v48 = vld [vmem:[%s6001_s0 + $0x340] ss:$8 sps:$4 sm:$0xff]  }
  0x7a   :  { %926 = vmatprep.mubr.bf16.mxu0 %v3382_v49  ;;  %1158 = vmatprep.mubr.bf16.mxu1 %v3451_v50  ;;  %v3460_v49 = vld [vmem:[%s6001_s0 + $0x184] ss:$8 sps:$4 sm:$0xff]   ;;  %v3517_v50 = vld [vmem:[%s6001_s0 + $0x354] ss:$8 sps:$4 sm:$0xff]  }
  0x81   :  { %927 = vmatmul.mubr.bf16.gmra.mrb[32].mxu0 %v3384_v51  ;;  %1159 = vmatmul.mubr.bf16.gmra.mrb[32].mxu1 %v3453_v52  ;;  %v3462_v51 = vld [vmem:[%s6001_s0 + $0x180] ss:$8 sps:$4 sm:$0xff]   ;;  %v3519_v52 = vld [vmem:[%s6001_s0 + $0x350] ss:$8 sps:$4 sm:$0xff]  }
  0x82   :  { %934 = vmatprep.mubr.bf16.mxu0 %v3385_v53  ;;  %1166 = vmatprep.mubr.bf16.mxu1 %v3457_v54  ;;  %v3466_v53 = vld [vmem:[%s6001_s0 + $0x194] ss:$8 sps:$4 sm:$0xff]   ;;  %v3520_v54 = vld [vmem:[%s6001_s0 + $0x364] ss:$8 sps:$4 sm:$0xff]  }
  0x89   :  { %935 = vmatmul.mubr.bf16.gmra.mrb[36].mxu0 %v3387_v55  ;;  %1167 = vmatmul.mubr.bf16.gmra.mrb[36].mxu1 %v3459_v56  ;;  %v3468_v55 = vld [vmem:[%s6001_s0 + $0x190] ss:$8 sps:$4 sm:$0xff]   ;;  %v3522_v56 = vld [vmem:[%s6001_s0 + $0x360] ss:$8 sps:$4 sm:$0xff]  }
  0x8a   :  { %942 = vmatprep.mubr.bf16.mxu0 %v3388_v57  ;;  %1174 = vmatprep.mubr.bf16.mxu1 %v3463_v58  ;;  %v3472_v57 = vld [vmem:[%s6001_s0 + $0x1a4] ss:$8 sps:$4 sm:$0xff]   ;;  %v3523_v58 = vld [vmem:[%s6001_s0 + $0x374] ss:$8 sps:$4 sm:$0xff]  }
  0x91   :  { %943 = vmatmul.mubr.bf16.gmra.mrb[40].mxu0 %v3390_v59  ;;  %1175 = vmatmul.mubr.bf16.gmra.mrb[40].mxu1 %v3465_v60  ;;  %v3474_v59 = vld [vmem:[%s6001_s0 + $0x1a0] ss:$8 sps:$4 sm:$0xff]   ;;  %v3525_v60 = vld [vmem:[%s6001_s0 + $0x370] ss:$8 sps:$4 sm:$0xff]  }
  0x92   :  { %950 = vmatprep.mubr.bf16.mxu0 %v3391_v61  ;;  %1182 = vmatprep.mubr.bf16.mxu1 %v3469_v62  ;;  %v3478_v61 = vld [vmem:[%s6001_s0 + $0x1b4] ss:$8 sps:$4 sm:$0xff]   ;;  %v3526_v62 = vld [vmem:[%s6001_s0 + $0x384] ss:$8 sps:$4 sm:$0xff]  }
  0x99   :  { %951 = vmatmul.mubr.bf16.gmra.mrb[44].mxu0 %v3393_v63  ;;  %1183 = vmatmul.mubr.bf16.gmra.mrb[44].mxu1 %v3471_v0 }
  0x9a   :  { %958 = vmatprep.mubr.bf16.mxu0 %v3394_v1  ;;  %1190 = vmatprep.mubr.bf16.mxu1 %v3475_v2  ;;  %v3480_v2 = vld [vmem:[%s6001_s0 + $0x1b0] ss:$8 sps:$4 sm:$0xff]  }
  0xa1   :  { %959 = vmatmul.mubr.bf16.gmra.mrb[48].mxu0 %v3396_v3  ;;  %1191 = vmatmul.mubr.bf16.gmra.mrb[48].mxu1 %v3477_v4  ;;  %v3528_v4 = vld [vmem:[%s6001_s0 + $0x380] ss:$8 sps:$4 sm:$0xff]  }
  0xa2   :  { %966 = vmatprep.mubr.bf16.mxu0 %v3397_v5  ;;  %1198 = vmatprep.mubr.bf16.mxu1 %v3481_v6  ;;  %v3484_v6 = vld [vmem:[%s6001_s0 + $0x1c4] ss:$8 sps:$4 sm:$0xff]  }
  0xa9   :  { %967 = vmatmul.mubr.bf16.gmra.mrb[52].mxu0 %v3399_v7  ;;  %1199 = vmatmul.mubr.bf16.gmra.mrb[52].mxu1 %v3483_v8 }
  0xaa   :  { %974 = vmatprep.mubr.bf16.mxu0 %v3400_v9  ;;  %1206 = vmatprep.mubr.bf16.mxu1 %v3487_v10 }
  0xb1   :  { %975 = vmatmul.mubr.bf16.gmra.mrb[56].mxu0 %v3402_v11  ;;  %1207 = vmatmul.mubr.bf16.gmra.mrb[56].mxu1 %v3489_v12 }
  0xb2   :  { %982 = vmatprep.mubr.bf16.mxu0 %v3406_v13  ;;  %1214 = vmatprep.mubr.bf16.mxu1 %v3490_v14 }
  0xb9   :  { %983 = vmatmul.mubr.bf16.gmra.mrb[60].mxu0 %v3408_v15  ;;  %1215 = vmatmul.mubr.bf16.gmra.mrb[60].mxu1 %v3492_v16 }
  0xba   :  { %990 = vmatprep.mubr.bf16.mxu0 %v3412_v17  ;;  %1222 = vmatprep.mubr.bf16.mxu1 %v3493_v18 }
  0xc1   :  { %991 = vmatmul.mubr.bf16.gmra.mrb[64].mxu0 %v3414_v19  ;;  %1223 = vmatmul.mubr.bf16.gmra.mrb[64].mxu1 %v3495_v20  ;;  %v3486_v19 = vld [vmem:[%s6001_s0 + $0x1c0] ss:$8 sps:$4 sm:$0xff]  }
  0xc2   :  { %998 = vmatprep.mubr.bf16.mxu0 %v3418_v21  ;;  %1230 = vmatprep.mubr.bf16.mxu1 %v3496_v22 }
  0xc9   :  { %999 = vmatmul.mubr.bf16.gmra.mrb[68].mxu0 %v3420_v23  ;;  %1231 = vmatmul.mubr.bf16.gmra.mrb[68].mxu1 %v3498_v24 }
  0xca   :  { %1006 = vmatprep.mubr.bf16.mxu0 %v3424_v25  ;;  %1238 = vmatprep.mubr.bf16.mxu1 %v3499_v26 }
  0xd1   :  { %1007 = vmatmul.mubr.bf16.gmra.mrb[72].mxu0 %v3426_v27  ;;  %1239 = vmatmul.mubr.bf16.gmra.mrb[72].mxu1 %v3501_v28 }
  0xd2   :  { %1014 = vmatprep.mubr.bf16.mxu0 %v3430_v29  ;;  %1246 = vmatprep.mubr.bf16.mxu1 %v3502_v30 }
  0xd9   :  { %1015 = vmatmul.mubr.bf16.gmra.mrb[76].mxu0 %v3432_v31  ;;  %1247 = vmatmul.mubr.bf16.gmra.mrb[76].mxu1 %v3504_v32 }
  0xda   :  { %1022 = vmatprep.mubr.bf16.mxu0 %v3436_v33  ;;  %1254 = vmatprep.mubr.bf16.mxu1 %v3505_v34 }
  0xe1   :  { %1023 = vmatmul.mubr.bf16.gmra.mrb[80].mxu0 %v3438_v35  ;;  %1255 = vmatmul.mubr.bf16.gmra.mrb[80].mxu1 %v3507_v36 }
  0xe2   :  { %1030 = vmatprep.mubr.bf16.mxu0 %v3442_v37  ;;  %1262 = vmatprep.mubr.bf16.mxu1 %v3508_v38 }
  0xe9   :  { %1031 = vmatmul.mubr.bf16.gmra.mrb[84].mxu0 %v3444_v39  ;;  %1263 = vmatmul.mubr.bf16.gmra.mrb[84].mxu1 %v3510_v40 }
  0xea   :  { %1038 = vmatprep.mubr.bf16.mxu0 %v3448_v41  ;;  %1270 = vmatprep.mubr.bf16.mxu1 %v3511_v42 }
  0xf1   :  { %1039 = vmatmul.mubr.bf16.gmra.mrb[88].mxu0 %v3450_v43  ;;  %1271 = vmatmul.mubr.bf16.gmra.mrb[88].mxu1 %v3513_v44 }
  0xf2   :  { %1046 = vmatprep.mubr.bf16.mxu0 %v3454_v45  ;;  %1278 = vmatprep.mubr.bf16.mxu1 %v3514_v46 }
  0xf9   :  { %1047 = vmatmul.mubr.bf16.gmra.mrb[92].mxu0 %v3456_v47  ;;  %1279 = vmatmul.mubr.bf16.gmra.mrb[92].mxu1 %v3516_v48 }
  0xfa   :  { %1054 = vmatprep.mubr.bf16.mxu0 %v3460_v49  ;;  %1286 = vmatprep.mubr.bf16.mxu1 %v3517_v50 }
 0x101   :  { %1055 = vmatmul.mubr.bf16.gmra.mrb[96].mxu0 %v3462_v51  ;;  %1287 = vmatmul.mubr.bf16.gmra.mrb[96].mxu1 %v3519_v52 }
 0x102   :  { %1062 = vmatprep.mubr.bf16.mxu0 %v3466_v53  ;;  %1294 = vmatprep.mubr.bf16.mxu1 %v3520_v54 }
 0x109   :  { %1063 = vmatmul.mubr.bf16.gmra.mrb[100].mxu0 %v3468_v55  ;;  %1295 = vmatmul.mubr.bf16.gmra.mrb[100].mxu1 %v3522_v56 }
 0x10a   :  { %1070 = vmatprep.mubr.bf16.mxu0 %v3472_v57  ;;  %1302 = vmatprep.mubr.bf16.mxu1 %v3523_v58 }
 0x111   :  { %1071 = vmatmul.mubr.bf16.gmra.mrb[104].mxu0 %v3474_v59  ;;  %1303 = vmatmul.mubr.bf16.gmra.mrb[104].mxu1 %v3525_v60 }
 0x112   :  { %1078 = vmatprep.mubr.bf16.mxu0 %v3478_v61  ;;  %1310 = vmatprep.mubr.bf16.mxu1 %v3526_v62 }
 0x114   :  { %v3967_v63 = vpop.f32.mrb[0].mxu0  ;;  %v3969_v0 = vpop.f32.mrb[0].mxu1 }
 0x115   :  { %6173 = vst [vmem:[#allocation2_spill] sm:$0xff] %v3967_v63  ;;  %v866_v1 = vpop.f32.mrb[1].mxu0  ;;  %v1098_v3 = vpop.f32.mrb[1].mxu1  ;;  %v1439_v8 = vmul.f32 %v3967_v63, %v3967_v63 }
 0x116   :  { %v3977_v5 = vpop.f32.mrb[2].mxu0  ;;  %v3982_v7 = vpop.f32.mrb[2].mxu1 }
 0x117   :  { %6174 = vst [vmem:[#allocation3_spill] sm:$0xff] %v3977_v5  ;;  %v1319_v9 = vadd.f32 %v3977_v5, %v3967_v63  ;;  %v1440_v10 = vmul.f32 %v3977_v5, %v3977_v5  ;;  %v869_v11 = vpop.f32.mrb[3].mxu0  ;;  %v1101_v12 = vpop.f32.mrb[3].mxu1 }
 0x119   :  { %v1553_v13 = vadd.f32 %v1440_v10, %v1439_v8  ;;  %1079 = vmatmul.mubr.bf16.gmra.mrb[108].mxu0 %v3480_v2  ;;  %1311 = vmatmul.mubr.bf16.gmra.mrb[108].mxu1 %v3528_v4 }
 0x11a   :  { %1086 = vmatprep.mubr.bf16.mxu0 %v3484_v6 }
 0x11c   :  { %v3990_v14 = vpop.f32.mrb[4].mxu0  ;;  %v3992_v15 = vpop.f32.mrb[4].mxu1 }
 0x11d   :  { %6175 = vst [vmem:[#allocation4_spill] sm:$0xff] %v3990_v14  ;;  %v1320_v16 = vadd.f32 %v1319_v9, %v3990_v14  ;;  %v1441_v17 = vmul.f32 %v3990_v14, %v3990_v14  ;;  %v874_v18 = vpop.f32.mrb[5].mxu0  ;;  %v1106_v20 = vpop.f32.mrb[5].mxu1 }
 0x11e   :  { %v4000_v21 = vpop.f32.mrb[6].mxu0  ;;  %v4002_v22 = vpop.f32.mrb[6].mxu1 }
 0x11f   :  { %6176 = vst [vmem:[#allocation5_spill] sm:$0xff] %v4000_v21  ;;  %v1554_v23 = vadd.f32 %v1553_v13, %v1441_v17  ;;  %v1321_v24 = vadd.f32 %v1320_v16, %v4000_v21  ;;  %v1442_v25 = vmul.f32 %v4000_v21, %v4000_v21  ;;  %v877_v26 = vpop.f32.mrb[7].mxu0  ;;  %v1109_v27 = vpop.f32.mrb[7].mxu1 }
 0x121   :  { %v1555_v28 = vadd.f32 %v1554_v23, %v1442_v25  ;;  %1087 = vmatmul.mubr.bf16.gmra.mrb[112].mxu0 %v3486_v19 }
 0x124   :  { %v4007_v29 = vpop.f32.mrb[8].mxu0  ;;  %v4009_v30 = vpop.f32.mrb[8].mxu1 }
 0x125   :  { %6177 = vst [vmem:[#allocation6_spill] sm:$0xff] %v4007_v29  ;;  %v1322_v31 = vadd.f32 %v1321_v24, %v4007_v29  ;;  %v1443_v32 = vmul.f32 %v4007_v29, %v4007_v29  ;;  %v882_v33 = vpop.f32.mrb[9].mxu0  ;;  %v1114_v34 = vpop.f32.mrb[9].mxu1 }
 0x126   :  { %v4014_v35 = vpop.f32.mrb[10].mxu0  ;;  %v4016_v36 = vpop.f32.mrb[10].mxu1 }
 0x127   :  { %6178 = vst [vmem:[#allocation7_spill] sm:$0xff] %v4014_v35  ;;  %v1556_v37 = vadd.f32 %v1555_v28, %v1443_v32  ;;  %v1323_v38 = vadd.f32 %v1322_v31, %v4014_v35  ;;  %v1444_v39 = vmul.f32 %v4014_v35, %v4014_v35  ;;  %v885_v40 = vpop.f32.mrb[11].mxu0  ;;  %v1117_v41 = vpop.f32.mrb[11].mxu1 }
 0x129   :  { %v1557_v42 = vadd.f32 %v1556_v37, %v1444_v39 }
 0x12c   :  { %v4021_v43 = vpop.f32.mrb[12].mxu0  ;;  %v4023_v44 = vpop.f32.mrb[12].mxu1 }
 0x12d   :  { %6179 = vst [vmem:[#allocation8_spill] sm:$0xff] %v4021_v43  ;;  %v1324_v45 = vadd.f32 %v1323_v38, %v4021_v43  ;;  %v1445_v46 = vmul.f32 %v4021_v43, %v4021_v43  ;;  %v890_v47 = vpop.f32.mrb[13].mxu0  ;;  %v1122_v48 = vpop.f32.mrb[13].mxu1 }
 0x12e   :  { %v4028_v49 = vpop.f32.mrb[14].mxu0  ;;  %v4030_v50 = vpop.f32.mrb[14].mxu1 }
 0x12f   :  { %6180 = vst [vmem:[#allocation9_spill] sm:$0xff] %v4028_v49  ;;  %v1558_v51 = vadd.f32 %v1557_v42, %v1445_v46  ;;  %v1325_v52 = vadd.f32 %v1324_v45, %v4028_v49  ;;  %v1446_v53 = vmul.f32 %v4028_v49, %v4028_v49  ;;  %v893_v54 = vpop.f32.mrb[15].mxu0  ;;  %v1125_v55 = vpop.f32.mrb[15].mxu1 }
 0x131   :  { %v1559_v56 = vadd.f32 %v1558_v51, %v1446_v53 }
 0x134   :  { %v4035_v57 = vpop.f32.mrb[16].mxu0  ;;  %v4037_v58 = vpop.f32.mrb[16].mxu1 }
 0x135   :  { %6181 = vst [vmem:[#allocation10_spill] sm:$0xff] %v4035_v57  ;;  %v1326_v59 = vadd.f32 %v1325_v52, %v4035_v57  ;;  %v1447_v60 = vmul.f32 %v4035_v57, %v4035_v57  ;;  %v898_v61 = vpop.f32.mrb[17].mxu0  ;;  %v1130_v62 = vpop.f32.mrb[17].mxu1 }
 0x136   :  { %v4042_v1 = vpop.f32.mrb[18].mxu0  ;;  %v4044_v2 = vpop.f32.mrb[18].mxu1 }
 0x137   :  { %6182 = vst [vmem:[#allocation11_spill] sm:$0xff] %v4042_v1  ;;  %v1560_v3 = vadd.f32 %v1559_v56, %v1447_v60  ;;  %v1327_v4 = vadd.f32 %v1326_v59, %v4042_v1  ;;  %v1448_v6 = vmul.f32 %v4042_v1, %v4042_v1  ;;  %v901_v8 = vpop.f32.mrb[19].mxu0  ;;  %v1133_v9 = vpop.f32.mrb[19].mxu1 }
 0x139   :  { %v1561_v10 = vadd.f32 %v1560_v3, %v1448_v6 }
 0x13c   :  { %v4049_v11 = vpop.f32.mrb[20].mxu0  ;;  %v4051_v12 = vpop.f32.mrb[20].mxu1 }
 0x13d   :  { %6183 = vst [vmem:[#allocation12_spill] sm:$0xff] %v4049_v11  ;;  %v1328_v13 = vadd.f32 %v1327_v4, %v4049_v11  ;;  %v1449_v16 = vmul.f32 %v4049_v11, %v4049_v11  ;;  %v906_v17 = vpop.f32.mrb[21].mxu0  ;;  %v1138_v18 = vpop.f32.mrb[21].mxu1 }
 0x13e   :  { %v4056_v19 = vpop.f32.mrb[22].mxu0  ;;  %v4058_v20 = vpop.f32.mrb[22].mxu1 }
 0x13f   :  { %6184 = vst [vmem:[#allocation13_spill] sm:$0xff] %v4056_v19  ;;  %v1562_v23 = vadd.f32 %v1561_v10, %v1449_v16  ;;  %v1329_v24 = vadd.f32 %v1328_v13, %v4056_v19  ;;  %v1450_v25 = vmul.f32 %v4056_v19, %v4056_v19  ;;  %v909_v26 = vpop.f32.mrb[23].mxu0  ;;  %v1141_v27 = vpop.f32.mrb[23].mxu1 }
 0x141   :  { %v1563_v28 = vadd.f32 %v1562_v23, %v1450_v25 }
 0x144   :  { %v4063_v31 = vpop.f32.mrb[24].mxu0  ;;  %v4065_v32 = vpop.f32.mrb[24].mxu1 }
 0x145   :  { %6185 = vst [vmem:[#allocation14_spill] sm:$0xff] %v4063_v31  ;;  %v1330_v33 = vadd.f32 %v1329_v24, %v4063_v31  ;;  %v1451_v34 = vmul.f32 %v4063_v31, %v4063_v31  ;;  %v914_v37 = vpop.f32.mrb[25].mxu0  ;;  %v1146_v38 = vpop.f32.mrb[25].mxu1 }
 0x146   :  { %v4070_v39 = vpop.f32.mrb[26].mxu0  ;;  %v4072_v40 = vpop.f32.mrb[26].mxu1 }
 0x147   :  { %6186 = vst [vmem:[#allocation15_spill] sm:$0xff] %v4070_v39  ;;  %v1564_v41 = vadd.f32 %v1563_v28, %v1451_v34  ;;  %v1331_v42 = vadd.f32 %v1330_v33, %v4070_v39  ;;  %v1452_v45 = vmul.f32 %v4070_v39, %v4070_v39  ;;  %v917_v46 = vpop.f32.mrb[27].mxu0  ;;  %v1149_v47 = vpop.f32.mrb[27].mxu1 }
 0x149   :  { %v1565_v48 = vadd.f32 %v1564_v41, %v1452_v45 }
 0x14c   :  { %v4077_v51 = vpop.f32.mrb[28].mxu0  ;;  %v4079_v52 = vpop.f32.mrb[28].mxu1 }
 0x14d   :  { %6187 = vst [vmem:[#allocation16_spill] sm:$0xff] %v4077_v51  ;;  %v1332_v53 = vadd.f32 %v1331_v42, %v4077_v51  ;;  %v1453_v54 = vmul.f32 %v4077_v51, %v4077_v51  ;;  %v922_v55 = vpop.f32.mrb[29].mxu0  ;;  %v1154_v56 = vpop.f32.mrb[29].mxu1 }
 0x14e   :  { %v4084_v59 = vpop.f32.mrb[30].mxu0  ;;  %v4086_v60 = vpop.f32.mrb[30].mxu1 }
 0x14f   :  { %6188 = vst [vmem:[#allocation17_spill] sm:$0xff] %v4084_v59  ;;  %v1566_v61 = vadd.f32 %v1565_v48, %v1453_v54  ;;  %v1333_v62 = vadd.f32 %v1332_v53, %v4084_v59  ;;  %v1454_v3 = vmul.f32 %v4084_v59, %v4084_v59  ;;  %v925_v4 = vpop.f32.mrb[31].mxu0  ;;  %v1157_v6 = vpop.f32.mrb[31].mxu1 }
 0x151   :  { %v1567_v8 = vadd.f32 %v1566_v61, %v1454_v3 }
 0x154   :  { %v4091_v9 = vpop.f32.mrb[32].mxu0  ;;  %v4093_v10 = vpop.f32.mrb[32].mxu1 }
 0x155   :  { %6189 = vst [vmem:[#allocation18_spill] sm:$0xff] %v4091_v9  ;;  %v1334_v13 = vadd.f32 %v1333_v62, %v4091_v9  ;;  %v1455_v16 = vmul.f32 %v4091_v9, %v4091_v9  ;;  %v930_v17 = vpop.f32.mrb[33].mxu0  ;;  %v1162_v18 = vpop.f32.mrb[33].mxu1 }
 0x156   :  { %v4098_v23 = vpop.f32.mrb[34].mxu0  ;;  %v4100_v24 = vpop.f32.mrb[34].mxu1 }
 0x157   :  { %6190 = vst [vmem:[#allocation19_spill] sm:$0xff] %v4098_v23  ;;  %v1568_v25 = vadd.f32 %v1567_v8, %v1455_v16  ;;  %v1335_v26 = vadd.f32 %v1334_v13, %v4098_v23  ;;  %v1456_v27 = vmul.f32 %v4098_v23, %v4098_v23  ;;  %v933_v28 = vpop.f32.mrb[35].mxu0  ;;  %v1165_v33 = vpop.f32.mrb[35].mxu1 }
 0x159   :  { %v1569_v34 = vadd.f32 %v1568_v25, %v1456_v27 }
 0x15c   :  { %v4105_v37 = vpop.f32.mrb[36].mxu0  ;;  %v4107_v38 = vpop.f32.mrb[36].mxu1 }
 0x15d   :  { %6191 = vst [vmem:[#allocation20_spill] sm:$0xff] %v4105_v37  ;;  %v1336_v41 = vadd.f32 %v1335_v26, %v4105_v37  ;;  %v1457_v42 = vmul.f32 %v4105_v37, %v4105_v37  ;;  %v938_v45 = vpop.f32.mrb[37].mxu0  ;;  %v1170_v46 = vpop.f32.mrb[37].mxu1 }
 0x15e   :  { %v4112_v47 = vpop.f32.mrb[38].mxu0  ;;  %v4114_v48 = vpop.f32.mrb[38].mxu1 }
 0x15f   :  { %6192 = vst [vmem:[#allocation21_spill] sm:$0xff] %v4112_v47  ;;  %v1570_v53 = vadd.f32 %v1569_v34, %v1457_v42  ;;  %v1337_v54 = vadd.f32 %v1336_v41, %v4112_v47  ;;  %v1458_v55 = vmul.f32 %v4112_v47, %v4112_v47  ;;  %v941_v56 = vpop.f32.mrb[39].mxu0  ;;  %v1173_v61 = vpop.f32.mrb[39].mxu1 }
 0x161   :  { %v1571_v62 = vadd.f32 %v1570_v53, %v1458_v55 }
 0x164   :  { %v4119_v3 = vpop.f32.mrb[40].mxu0  ;;  %v4121_v4 = vpop.f32.mrb[40].mxu1 }
 0x165   :  { %6193 = vst [vmem:[#allocation22_spill] sm:$0xff] %v4119_v3  ;;  %v1338_v6 = vadd.f32 %v1337_v54, %v4119_v3  ;;  %v1459_v8 = vmul.f32 %v4119_v3, %v4119_v3  ;;  %v946_v13 = vpop.f32.mrb[41].mxu0  ;;  %v1178_v16 = vpop.f32.mrb[41].mxu1 }
 0x166   :  { %v4126_v17 = vpop.f32.mrb[42].mxu0  ;;  %v4128_v18 = vpop.f32.mrb[42].mxu1 }
 0x167   :  { %6194 = vst [vmem:[#allocation23_spill] sm:$0xff] %v4126_v17  ;;  %v1572_v25 = vadd.f32 %v1571_v62, %v1459_v8  ;;  %v1339_v26 = vadd.f32 %v1338_v6, %v4126_v17  ;;  %v1460_v27 = vmul.f32 %v4126_v17, %v4126_v17  ;;  %v949_v28 = vpop.f32.mrb[43].mxu0  ;;  %v1181_v33 = vpop.f32.mrb[43].mxu1 }
 0x169   :  { %v1573_v34 = vadd.f32 %v1572_v25, %v1460_v27 }
 0x16c   :  { %v4133_v41 = vpop.f32.mrb[44].mxu0  ;;  %v4135_v42 = vpop.f32.mrb[44].mxu1 }
 0x16d   :  { %6195 = vst [vmem:[#allocation24_spill] sm:$0xff] %v4133_v41  ;;  %v1340_v45 = vadd.f32 %v1339_v26, %v4133_v41  ;;  %v1461_v46 = vmul.f32 %v4133_v41, %v4133_v41  ;;  %v954_v53 = vpop.f32.mrb[45].mxu0  ;;  %v1186_v54 = vpop.f32.mrb[45].mxu1 }
 0x16e   :  { %v4140_v55 = vpop.f32.mrb[46].mxu0  ;;  %v4142_v56 = vpop.f32.mrb[46].mxu1 }
 0x16f   :  { %6196 = vst [vmem:[#allocation25_spill] sm:$0xff] %v4140_v55  ;;  %v1574_v61 = vadd.f32 %v1573_v34, %v1461_v46  ;;  %v1341_v62 = vadd.f32 %v1340_v45, %v4140_v55  ;;  %v1462_v6 = vmul.f32 %v4140_v55, %v4140_v55  ;;  %v957_v8 = vpop.f32.mrb[47].mxu0  ;;  %v1189_v13 = vpop.f32.mrb[47].mxu1 }
 0x171   :  { %v1575_v16 = vadd.f32 %v1574_v61, %v1462_v6 }
 0x174   :  { %v4147_v25 = vpop.f32.mrb[48].mxu0  ;;  %v4149_v26 = vpop.f32.mrb[48].mxu1 }
 0x175   :  { %6197 = vst [vmem:[#allocation26_spill] sm:$0xff] %v4147_v25  ;;  %v1342_v27 = vadd.f32 %v1341_v62, %v4147_v25  ;;  %v1463_v28 = vmul.f32 %v4147_v25, %v4147_v25  ;;  %v962_v33 = vpop.f32.mrb[49].mxu0  ;;  %v1194_v53 = vpop.f32.mrb[49].mxu1 }
 0x176   :  { %v4154_v34 = vpop.f32.mrb[50].mxu0  ;;  %v4156_v45 = vpop.f32.mrb[50].mxu1 }
 0x177   :  { %6198 = vst [vmem:[#allocation27_spill] sm:$0xff] %v4154_v34  ;;  %v1576_v46 = vadd.f32 %v1575_v16, %v1463_v28  ;;  %v1343_v54 = vadd.f32 %v1342_v27, %v4154_v34  ;;  %v1464_v61 = vmul.f32 %v4154_v34, %v4154_v34  ;;  %v965_v6 = vpop.f32.mrb[51].mxu0  ;;  %v1197_v8 = vpop.f32.mrb[51].mxu1 }
 0x179   :  { %v1577_v13 = vadd.f32 %v1576_v46, %v1464_v61 }
 0x17c   :  { %v4161_v55 = vpop.f32.mrb[52].mxu0  ;;  %v4163_v62 = vpop.f32.mrb[52].mxu1 }
 0x17d   :  { %6199 = vst [vmem:[#allocation28_spill] sm:$0xff] %v4161_v55  ;;  %v1344_v33 = vadd.f32 %v1343_v54, %v4161_v55  ;;  %v1465_v53 = vmul.f32 %v4161_v55, %v4161_v55  ;;  %v970_v25 = vpop.f32.mrb[53].mxu0  ;;  %v1202_v41 = vpop.f32.mrb[53].mxu1 }
 0x17e   :  { %v4168_v16 = vpop.f32.mrb[54].mxu0  ;;  %v4170_v27 = vpop.f32.mrb[54].mxu1 }
 0x17f   :  { %6200 = vst [vmem:[#allocation29_spill] sm:$0xff] %v4168_v16  ;;  %v1578_v28 = vadd.f32 %v1577_v13, %v1465_v53  ;;  %v1345_v6 = vadd.f32 %v1344_v33, %v4168_v16  ;;  %v1466_v46 = vmul.f32 %v4168_v16, %v4168_v16  ;;  %v973_v61 = vpop.f32.mrb[55].mxu0  ;;  %v1205_v8 = vpop.f32.mrb[55].mxu1 }
 0x181   :  { %v1579_v34 = vadd.f32 %v1578_v28, %v1466_v46 }
 0x184   :  { %v4175_v17 = vpop.f32.mrb[56].mxu0  ;;  %v4177_v54 = vpop.f32.mrb[56].mxu1 }
 0x185   :  { %6201 = vst [vmem:[#allocation30_spill] sm:$0xff] %v4175_v17  ;;  %v1346_v25 = vadd.f32 %v1345_v6, %v4175_v17  ;;  %v1467_v41 = vmul.f32 %v4175_v17, %v4175_v17  ;;  %v978_v55 = vpop.f32.mrb[57].mxu0  ;;  %v1210_v3 = vpop.f32.mrb[57].mxu1 }
 0x186   :  { %v4182_v13 = vpop.f32.mrb[58].mxu0  ;;  %v4184_v33 = vpop.f32.mrb[58].mxu1 }
 0x187   :  { %6202 = vst [vmem:[#allocation31_spill] sm:$0xff] %v4182_v13  ;;  %v1580_v53 = vadd.f32 %v1579_v34, %v1467_v41  ;;  %v1347_v61 = vadd.f32 %v1346_v25, %v4182_v13  ;;  %v1468_v28 = vmul.f32 %v4182_v13, %v4182_v13  ;;  %v981_v46 = vpop.f32.mrb[59].mxu0  ;;  %v1213_v8 = vpop.f32.mrb[59].mxu1 }
 0x189   :  { %v1581_v16 = vadd.f32 %v1580_v53, %v1468_v28 }
 0x18c   :  { %v4189_v47 = vpop.f32.mrb[60].mxu0  ;;  %v4191_v6 = vpop.f32.mrb[60].mxu1 }
 0x18d   :  { %6203 = vst [vmem:[#allocation32_spill] sm:$0xff] %v4189_v47  ;;  %v1348_v55 = vadd.f32 %v1347_v61, %v4189_v47  ;;  %v1469_v3 = vmul.f32 %v4189_v47, %v4189_v47  ;;  %v986_v17 = vpop.f32.mrb[61].mxu0  ;;  %v1218_v37 = vpop.f32.mrb[61].mxu1 }
 0x18e   :  { %v4196_v34 = vpop.f32.mrb[62].mxu0  ;;  %v4198_v25 = vpop.f32.mrb[62].mxu1 }
 0x18f   :  { %6204 = vst [vmem:[#allocation33_spill] sm:$0xff] %v4196_v34  ;;  %v1582_v41 = vadd.f32 %v1581_v16, %v1469_v3  ;;  %v1349_v46 = vadd.f32 %v1348_v55, %v4196_v34  ;;  %v1470_v53 = vmul.f32 %v4196_v34, %v4196_v34  ;;  %v989_v28 = vpop.f32.mrb[63].mxu0  ;;  %v1221_v8 = vpop.f32.mrb[63].mxu1 }
 0x191   :  { %v1583_v13 = vadd.f32 %v1582_v41, %v1470_v53 }
 0x194   :  { %v4203_v23 = vpop.f32.mrb[64].mxu0  ;;  %v4205_v61 = vpop.f32.mrb[64].mxu1 }
 0x195   :  { %6205 = vst [vmem:[#allocation34_spill] sm:$0xff] %v4203_v23  ;;  %v1350_v17 = vadd.f32 %v1349_v46, %v4203_v23  ;;  %v1471_v37 = vmul.f32 %v4203_v23, %v4203_v23  ;;  %v994_v47 = vpop.f32.mrb[65].mxu0  ;;  %v1226_v9 = vpop.f32.mrb[65].mxu1 }
 0x196   :  { %v4210_v16 = vpop.f32.mrb[66].mxu0  ;;  %v4212_v55 = vpop.f32.mrb[66].mxu1 }
 0x197   :  { %6206 = vst [vmem:[#allocation35_spill] sm:$0xff] %v4210_v16  ;;  %v1584_v3 = vadd.f32 %v1583_v13, %v1471_v37  ;;  %v1351_v28 = vadd.f32 %v1350_v17, %v4210_v16  ;;  %v1472_v41 = vmul.f32 %v4210_v16, %v4210_v16  ;;  %v997_v53 = vpop.f32.mrb[67].mxu0  ;;  %v1229_v8 = vpop.f32.mrb[67].mxu1 }
 0x199   :  { %v1585_v34 = vadd.f32 %v1584_v3, %v1472_v41 }
 0x19c   :  { %v4217_v59 = vpop.f32.mrb[68].mxu0  ;;  %v4219_v46 = vpop.f32.mrb[68].mxu1 }
 0x19d   :  { %6207 = vst [vmem:[#allocation36_spill] sm:$0xff] %v4217_v59  ;;  %v1352_v47 = vadd.f32 %v1351_v28, %v4217_v59  ;;  %v1473_v9 = vmul.f32 %v4217_v59, %v4217_v59  ;;  %v1002_v23 = vpop.f32.mrb[69].mxu0  ;;  %v1234_v51 = vpop.f32.mrb[69].mxu1 }
 0x19e   :  { %v4224_v13 = vpop.f32.mrb[70].mxu0  ;;  %v4226_v17 = vpop.f32.mrb[70].mxu1 }
 0x19f   :  { %6208 = vst [vmem:[#allocation37_spill] sm:$0xff] %v4224_v13  ;;  %v1586_v37 = vadd.f32 %v1585_v34, %v1473_v9  ;;  %v1353_v53 = vadd.f32 %v1352_v47, %v4224_v13  ;;  %v1474_v3 = vmul.f32 %v4224_v13, %v4224_v13  ;;  %v1005_v41 = vpop.f32.mrb[71].mxu0  ;;  %v1237_v8 = vpop.f32.mrb[71].mxu1 }
 0x1a1   :  { %v1587_v16 = vadd.f32 %v1586_v37, %v1474_v3 }
 0x1a4   :  { %v4231_v39 = vpop.f32.mrb[72].mxu0  ;;  %v4233_v28 = vpop.f32.mrb[72].mxu1 }
 0x1a5   :  { %6209 = vst [vmem:[#allocation38_spill] sm:$0xff] %v4231_v39  ;;  %v1354_v23 = vadd.f32 %v1353_v53, %v4231_v39  ;;  %v1475_v51 = vmul.f32 %v4231_v39, %v4231_v39  ;;  %v1010_v59 = vpop.f32.mrb[73].mxu0  ;;  %v1242_v31 = vpop.f32.mrb[73].mxu1 }
 0x1a6   :  { %v4238_v34 = vpop.f32.mrb[74].mxu0  ;;  %v4240_v47 = vpop.f32.mrb[74].mxu1 }
 0x1a7   :  { %6210 = vst [vmem:[#allocation39_spill] sm:$0xff] %v4238_v34  ;;  %v1588_v9 = vadd.f32 %v1587_v16, %v1475_v51  ;;  %v1355_v41 = vadd.f32 %v1354_v23, %v4238_v34  ;;  %v1476_v37 = vmul.f32 %v4238_v34, %v4238_v34  ;;  %v1013_v3 = vpop.f32.mrb[75].mxu0  ;;  %v1245_v8 = vpop.f32.mrb[75].mxu1 }
 0x1a9   :  { %v1589_v13 = vadd.f32 %v1588_v9, %v1476_v37 }
 0x1ac   :  { %v4245_v19 = vpop.f32.mrb[76].mxu0  ;;  %v4247_v53 = vpop.f32.mrb[76].mxu1 }
 0x1ad   :  { %6211 = vst [vmem:[#allocation40_spill] sm:$0xff] %v4245_v19  ;;  %v1356_v59 = vadd.f32 %v1355_v41, %v4245_v19  ;;  %v1477_v31 = vmul.f32 %v4245_v19, %v4245_v19  ;;  %v1018_v39 = vpop.f32.mrb[77].mxu0  ;;  %v1250_v11 = vpop.f32.mrb[77].mxu1 }
 0x1ae   :  { %v4252_v16 = vpop.f32.mrb[78].mxu0  ;;  %v4254_v23 = vpop.f32.mrb[78].mxu1 }
 0x1af   :  { %6212 = vst [vmem:[#allocation41_spill] sm:$0xff] %v4252_v16  ;;  %v1590_v51 = vadd.f32 %v1589_v13, %v1477_v31  ;;  %v1357_v3 = vadd.f32 %v1356_v59, %v4252_v16  ;;  %v1478_v9 = vmul.f32 %v4252_v16, %v4252_v16  ;;  %v1021_v37 = vpop.f32.mrb[79].mxu0  ;;  %v1253_v8 = vpop.f32.mrb[79].mxu1 }
 0x1b1   :  { %v1591_v34 = vadd.f32 %v1590_v51, %v1478_v9 }
 0x1b4   :  { %v4259_v1 = vpop.f32.mrb[80].mxu0  ;;  %v4261_v41 = vpop.f32.mrb[80].mxu1 }
 0x1b5   :  { %6213 = vst [vmem:[#allocation42_spill] sm:$0xff] %v4259_v1  ;;  %6214 = vst [vmem:[#allocation43_spill] sm:$0xff] %v4261_v41  ;;  %v1358_v39 = vadd.f32 %v1357_v3, %v4259_v1  ;;  %v1479_v11 = vmul.f32 %v4259_v1, %v4259_v1  ;;  %v1026_v19 = vpop.f32.mrb[81].mxu0  ;;  %v1258_v57 = vpop.f32.mrb[81].mxu1 }
 0x1b6   :  { %v4266_v13 = vpop.f32.mrb[82].mxu0  ;;  %v4268_v59 = vpop.f32.mrb[82].mxu1 }
 0x1b7   :  { %6215 = vst [vmem:[#allocation44_spill] sm:$0xff] %v4266_v13  ;;  %6216 = vst [vmem:[#allocation45_spill] sm:$0xff] %v4268_v59  ;;  %v1592_v31 = vadd.f32 %v1591_v34, %v1479_v11  ;;  %v1359_v37 = vadd.f32 %v1358_v39, %v4266_v13  ;;  %v1480_v51 = vmul.f32 %v4266_v13, %v4266_v13  ;;  %v1029_v9 = vpop.f32.mrb[83].mxu0  ;;  %v1261_v8 = vpop.f32.mrb[83].mxu1 }
 0x1b9   :  { %v1593_v16 = vadd.f32 %v1592_v31, %v1480_v51 }
 0x1bc   :  { %v4273_v49 = vpop.f32.mrb[84].mxu0  ;;  %v4275_v3 = vpop.f32.mrb[84].mxu1 }
 0x1bd   :  { %6217 = vst [vmem:[#allocation46_spill] sm:$0xff] %v4273_v49  ;;  %6218 = vst [vmem:[#allocation47_spill] sm:$0xff] %v4275_v3  ;;  %v1360_v19 = vadd.f32 %v1359_v37, %v4273_v49  ;;  %v1481_v57 = vmul.f32 %v4273_v49, %v4273_v49  ;;  %v1034_v1 = vpop.f32.mrb[85].mxu0  ;;  %v1266_v43 = vpop.f32.mrb[85].mxu1 }
 0x1be   :  { %v4280_v34 = vpop.f32.mrb[86].mxu0  ;;  %v4282_v39 = vpop.f32.mrb[86].mxu1 }
 0x1bf   :  { %6219 = vst [vmem:[#allocation48_spill] sm:$0xff] %v4280_v34  ;;  %6220 = vst [vmem:[#allocation49_spill] sm:$0xff] %v4282_v39  ;;  %v1594_v11 = vadd.f32 %v1593_v16, %v1481_v57  ;;  %v1361_v9 = vadd.f32 %v1360_v19, %v4280_v34  ;;  %v1482_v31 = vmul.f32 %v4280_v34, %v4280_v34  ;;  %v1037_v51 = vpop.f32.mrb[87].mxu0  ;;  %v1269_v8 = vpop.f32.mrb[87].mxu1 }
 0x1c1   :  { %v1595_v13 = vadd.f32 %v1594_v11, %v1482_v31 }
 0x1c4   :  { %v4287_v35 = vpop.f32.mrb[88].mxu0  ;;  %v4289_v37 = vpop.f32.mrb[88].mxu1 }
 0x1c5   :  { %6221 = vst [vmem:[#allocation50_spill] sm:$0xff] %v4287_v35  ;;  %6222 = vst [vmem:[#allocation51_spill] sm:$0xff] %v4289_v37  ;;  %v1362_v1 = vadd.f32 %v1361_v9, %v4287_v35  ;;  %v1483_v43 = vmul.f32 %v4287_v35, %v4287_v35  ;;  %v1042_v49 = vpop.f32.mrb[89].mxu0  ;;  %v1274_v29 = vpop.f32.mrb[89].mxu1 }
 0x1c6   :  { %v4294_v16 = vpop.f32.mrb[90].mxu0  ;;  %v4296_v19 = vpop.f32.mrb[90].mxu1 }
 0x1c7   :  { %6223 = vst [vmem:[#allocation52_spill] sm:$0xff] %v4294_v16  ;;  %6224 = vst [vmem:[#allocation53_spill] sm:$0xff] %v4296_v19  ;;  %v1596_v57 = vadd.f32 %v1595_v13, %v1483_v43  ;;  %v1363_v51 = vadd.f32 %v1362_v1, %v4294_v16  ;;  %v1484_v11 = vmul.f32 %v4294_v16, %v4294_v16  ;;  %v1045_v31 = vpop.f32.mrb[91].mxu0  ;;  %v1277_v8 = vpop.f32.mrb[91].mxu1 }
 0x1c9   :  { %v1597_v34 = vadd.f32 %v1596_v57, %v1484_v11 }
 0x1cc   :  { %v4301_v21 = vpop.f32.mrb[92].mxu0  ;;  %v4303_v9 = vpop.f32.mrb[92].mxu1 }
 0x1cd   :  { %6225 = vst [vmem:[#allocation54_spill] sm:$0xff] %v4301_v21  ;;  %6226 = vst [vmem:[#allocation55_spill] sm:$0xff] %v4303_v9  ;;  %v1364_v49 = vadd.f32 %v1363_v51, %v4301_v21  ;;  %v1485_v29 = vmul.f32 %v4301_v21, %v4301_v21  ;;  %v1050_v35 = vpop.f32.mrb[93].mxu0  ;;  %v1282_v14 = vpop.f32.mrb[93].mxu1 }
 0x1ce   :  { %v4308_v13 = vpop.f32.mrb[94].mxu0  ;;  %v4310_v1 = vpop.f32.mrb[94].mxu1 }
 0x1cf   :  { %6227 = vst [vmem:[#allocation56_spill] sm:$0xff] %v4308_v13  ;;  %6228 = vst [vmem:[#allocation57_spill] sm:$0xff] %v4310_v1  ;;  %v1598_v43 = vadd.f32 %v1597_v34, %v1485_v29  ;;  %v1365_v31 = vadd.f32 %v1364_v49, %v4308_v13  ;;  %v1486_v57 = vmul.f32 %v4308_v13, %v4308_v13  ;;  %v1053_v11 = vpop.f32.mrb[95].mxu0  ;;  %v1285_v8 = vpop.f32.mrb[95].mxu1 }
 0x1d1   :  { %v1599_v16 = vadd.f32 %v1598_v43, %v1486_v57 }
 0x1d4   :  { %v4315_v5 = vpop.f32.mrb[96].mxu0  ;;  %v4317_v51 = vpop.f32.mrb[96].mxu1 }
 0x1d5   :  { %6229 = vst [vmem:[#allocation58_spill] sm:$0xff] %v4315_v5  ;;  %6230 = vst [vmem:[#allocation59_spill] sm:$0xff] %v4317_v51  ;;  %v1366_v35 = vadd.f32 %v1365_v31, %v4315_v5  ;;  %v1487_v14 = vmul.f32 %v4315_v5, %v4315_v5  ;;  %v1058_v21 = vpop.f32.mrb[97].mxu0  ;;  %v1290_v63 = vpop.f32.mrb[97].mxu1 }
 0x1d6   :  { %v4322_v34 = vpop.f32.mrb[98].mxu0  ;;  %v4324_v49 = vpop.f32.mrb[98].mxu1 }
 0x1d7   :  { %6231 = vst [vmem:[#allocation60_spill] sm:$0xff] %v4322_v34  ;;  %6232 = vst [vmem:[#allocation61_spill] sm:$0xff] %v4324_v49  ;;  %v1600_v29 = vadd.f32 %v1599_v16, %v1487_v14  ;;  %v1367_v11 = vadd.f32 %v1366_v35, %v4322_v34  ;;  %v1488_v43 = vmul.f32 %v4322_v34, %v4322_v34  ;;  %v1061_v57 = vpop.f32.mrb[99].mxu0  ;;  %v1293_v8 = vpop.f32.mrb[99].mxu1 }
 0x1d9   :  { %v1601_v13 = vadd.f32 %v1600_v29, %v1488_v43 }
 0x1dc   :  { %v4329_v51 = vpop.f32.mrb[100].mxu0  ;;  %v4331_v31 = vpop.f32.mrb[100].mxu1 }
 0x1dd   :  { %6233 = vst [vmem:[#allocation62_spill] sm:$0xff] %v4329_v51  ;;  %6234 = vst [vmem:[#allocation63_spill] sm:$0xff] %v4331_v31  ;;  %v1368_v21 = vadd.f32 %v1367_v11, %v4329_v51  ;;  %v1489_v63 = vmul.f32 %v4329_v51, %v4329_v51  ;;  %v1066_v5 = vpop.f32.mrb[101].mxu0  ;;  %v1298_v49 = vpop.f32.mrb[101].mxu1 }
 0x1de   :  { %v4336_v16 = vpop.f32.mrb[102].mxu0  ;;  %v4338_v35 = vpop.f32.mrb[102].mxu1 }
 0x1df   :  { %6235 = vst [vmem:[#allocation64_spill] sm:$0xff] %v4336_v16  ;;  %6236 = vst [vmem:[#allocation65_spill] sm:$0xff] %v4338_v35  ;;  %v1602_v14 = vadd.f32 %v1601_v13, %v1489_v63  ;;  %v1369_v57 = vadd.f32 %v1368_v21, %v4336_v16  ;;  %v1490_v29 = vmul.f32 %v4336_v16, %v4336_v16  ;;  %v1069_v43 = vpop.f32.mrb[103].mxu0  ;;  %v1301_v8 = vpop.f32.mrb[103].mxu1 }
 0x1e1   :  { %v1603_v34 = vadd.f32 %v1602_v14, %v1490_v29 }
 0x1e4   :  { %v4343_v31 = vpop.f32.mrb[104].mxu0  ;;  %v4345_v11 = vpop.f32.mrb[104].mxu1 }
 0x1e5   :  { %6237 = vst [vmem:[#allocation66_spill] sm:$0xff] %v4343_v31  ;;  %6238 = vst [vmem:[#allocation67_spill] sm:$0xff] %v4345_v11  ;;  %v1370_v5 = vadd.f32 %v1369_v57, %v4343_v31  ;;  %v1491_v49 = vmul.f32 %v4343_v31, %v4343_v31  ;;  %v1074_v51 = vpop.f32.mrb[105].mxu0  ;;  %v1306_v35 = vpop.f32.mrb[105].mxu1 }
 0x1e6   :  { %v4350_v13 = vpop.f32.mrb[106].mxu0  ;;  %v4352_v21 = vpop.f32.mrb[106].mxu1 }
 0x1e7   :  { %6239 = vst [vmem:[#allocation68_spill] sm:$0xff] %v4350_v13  ;;  %6240 = vst [vmem:[#allocation69_spill] sm:$0xff] %v4352_v21  ;;  %v1604_v63 = vadd.f32 %v1603_v34, %v1491_v49  ;;  %v1371_v43 = vadd.f32 %v1370_v5, %v4350_v13  ;;  %v1492_v14 = vmul.f32 %v4350_v13, %v4350_v13  ;;  %v1077_v29 = vpop.f32.mrb[107].mxu0  ;;  %v1309_v8 = vpop.f32.mrb[107].mxu1 }
 0x1e9   :  { %v1605_v16 = vadd.f32 %v1604_v63, %v1492_v14 }
 0x1ec   :  { %v4357_v11 = vpop.f32.mrb[108].mxu0  ;;  %v4359_v57 = vpop.f32.mrb[108].mxu1 }
 0x1ed   :  { %6241 = vst [vmem:[#allocation70_spill] sm:$0xff] %v4357_v11  ;;  %6242 = vst [vmem:[#allocation71_spill] sm:$0xff] %v4359_v57  ;;  %v1372_v51 = vadd.f32 %v1371_v43, %v4357_v11  ;;  %v1493_v35 = vmul.f32 %v4357_v11, %v4357_v11  ;;  %v1082_v31 = vpop.f32.mrb[109].mxu0  ;;  %v1314_v21 = vpop.f32.mrb[109].mxu1 }
 0x1ee   :  { %v4364_v34 = vpop.f32.mrb[110].mxu0  ;;  %v4366_v5 = vpop.f32.mrb[110].mxu1 }
 0x1ef   :  { %6243 = vst [vmem:[#allocation72_spill] sm:$0xff] %v4366_v5  ;;  %v1606_v49 = vadd.f32 %v1605_v16, %v1493_v35  ;;  %v1373_v29 = vadd.f32 %v1372_v51, %v4364_v34  ;;  %v1494_v63 = vmul.f32 %v4364_v34, %v4364_v34  ;;  %v1085_v14 = vpop.f32.mrb[111].mxu0  ;;  %v1317_v8 = vpop.f32.mrb[111].mxu1 }
 0x1f1   :  { %v1607_v13 = vadd.f32 %v1606_v49, %v1494_v63  ;;  %v1497_v49 = vmul.f32 %v3969_v0, %v3969_v0 }
 0x1f4   :  { %v4371_v57 = vpop.f32.mrb[112].mxu0 }
 0x1f5   :  { %6244 = vst [vmem:[#allocation73_spill] sm:$0xff] %v4371_v57  ;;  %v1374_v43 = vadd.f32 %v1373_v29, %v4371_v57  ;;  %v1495_v31 = vmul.f32 %v4371_v57, %v4371_v57  ;;  %v1090_v21 = vpop.f32.mrb[113].mxu0  ;;  %v1498_v29 = vmul.f32 %v3982_v7, %v3982_v7 }
 0x1f6   :  { %v4376_v11 = vpop.f32.mrb[114].mxu0 }
 0x1f7   :  { %6245 = vst [vmem:[#allocation74_spill] sm:$0xff] %v4376_v11  ;;  %v1608_v5 = vadd.f32 %v1607_v13, %v1495_v31  ;;  %v1375_v16 = vadd.f32 %v1374_v43, %v4376_v11  ;;  %v1496_v51 = vmul.f32 %v4376_v11, %v4376_v11  ;;  %v1093_v35 = vpop.f32.mrb[115].mxu0  ;;  %v1499_v13 = vmul.f32 %v3992_v15, %v3992_v15 }
 0x1f8   :  { %v1500_v35 = vmul.f32 %v4002_v22, %v4002_v22 }
 0x1f9   :  { %v1376_v63 = vadd.f32 %v1375_v16, %v3969_v0  ;;  %v1609_v14 = vadd.f32 %v1608_v5, %v1496_v51  ;;  %v1501_v5 = vmul.f32 %v4009_v30, %v4009_v30 }
 0x1fb   :  { %v1377_v8 = vadd.f32 %v1376_v63, %v3982_v7  ;;  %v1610_v21 = vadd.f32 %v1609_v14, %v1497_v49  ;;  %v1502_v49 = vmul.f32 %v4016_v36, %v4016_v36 }
 0x1fd   :  { %v1378_v43 = vadd.f32 %v1377_v8, %v3992_v15  ;;  %v1611_v31 = vadd.f32 %v1610_v21, %v1498_v29  ;;  %v1503_v29 = vmul.f32 %v4023_v44, %v4023_v44 }
 0x1ff   :  { %v1379_v11 = vadd.f32 %v1378_v43, %v4002_v22  ;;  %v1612_v57 = vadd.f32 %v1611_v31, %v1499_v13  ;;  %v1504_v13 = vmul.f32 %v4030_v50, %v4030_v50 }
 0x201   :  { %v1380_v16 = vadd.f32 %v1379_v11, %v4009_v30  ;;  %v1613_v51 = vadd.f32 %v1612_v57, %v1500_v35  ;;  %v1505_v11 = vmul.f32 %v4037_v58, %v4037_v58 }
 0x203   :  { %v1381_v63 = vadd.f32 %v1380_v16, %v4016_v36  ;;  %v1614_v14 = vadd.f32 %v1613_v51, %v1501_v5  ;;  %v1506_v5 = vmul.f32 %v4044_v2, %v4044_v2 }
 0x205   :  { %v1382_v8 = vadd.f32 %v1381_v63, %v4023_v44  ;;  %v1615_v21 = vadd.f32 %v1614_v14, %v1502_v49  ;;  %v1507_v49 = vmul.f32 %v4051_v12, %v4051_v12 }
 0x207   :  { %v1383_v43 = vadd.f32 %v1382_v8, %v4030_v50  ;;  %v1616_v31 = vadd.f32 %v1615_v21, %v1503_v29  ;;  %v1508_v29 = vmul.f32 %v4058_v20, %v4058_v20 }
 0x209   :  { %v1384_v57 = vadd.f32 %v1383_v43, %v4037_v58  ;;  %v1617_v35 = vadd.f32 %v1616_v31, %v1504_v13  ;;  %v1509_v13 = vmul.f32 %v4065_v32, %v4065_v32 }
 0x20b   :  { %v1385_v16 = vadd.f32 %v1384_v57, %v4044_v2  ;;  %v1618_v51 = vadd.f32 %v1617_v35, %v1505_v11  ;;  %v1510_v11 = vmul.f32 %v4072_v40, %v4072_v40 }
 0x20d   :  { %v1386_v63 = vadd.f32 %v1385_v16, %v4051_v12  ;;  %v1619_v14 = vadd.f32 %v1618_v51, %v1506_v5  ;;  %v1511_v5 = vmul.f32 %v4079_v52, %v4079_v52 }
 0x20f   :  { %v1387_v8 = vadd.f32 %v1386_v63, %v4058_v20  ;;  %v1620_v21 = vadd.f32 %v1619_v14, %v1507_v49  ;;  %v1512_v49 = vmul.f32 %v4086_v60, %v4086_v60 }
 0x211   :  { %v1388_v43 = vadd.f32 %v1387_v8, %v4065_v32  ;;  %v1621_v31 = vadd.f32 %v1620_v21, %v1508_v29  ;;  %v1513_v29 = vmul.f32 %v4093_v10, %v4093_v10 }
 0x213   :  { %v1389_v57 = vadd.f32 %v1388_v43, %v4072_v40  ;;  %v1622_v35 = vadd.f32 %v1621_v31, %v1509_v13  ;;  %v1514_v13 = vmul.f32 %v4100_v24, %v4100_v24 }
 0x215   :  { %v1623_v16 = vadd.f32 %v1622_v35, %v1510_v11  ;;  %v1390_v51 = vadd.f32 %v1389_v57, %v4079_v52  ;;  %v1515_v11 = vmul.f32 %v4107_v38, %v4107_v38 }
 0x217   :  { %v1391_v63 = vadd.f32 %v1390_v51, %v4086_v60  ;;  %v1624_v14 = vadd.f32 %v1623_v16, %v1511_v5  ;;  %v1516_v5 = vmul.f32 %v4114_v48, %v4114_v48 }
 0x219   :  { %v1392_v8 = vadd.f32 %v1391_v63, %v4093_v10  ;;  %v1625_v21 = vadd.f32 %v1624_v14, %v1512_v49  ;;  %v1517_v49 = vmul.f32 %v4121_v4, %v4121_v4 }
 0x21b   :  { %v1393_v43 = vadd.f32 %v1392_v8, %v4100_v24  ;;  %v1626_v31 = vadd.f32 %v1625_v21, %v1513_v29  ;;  %v1518_v29 = vmul.f32 %v4128_v18, %v4128_v18 }
 0x21d   :  { %v1394_v57 = vadd.f32 %v1393_v43, %v4107_v38  ;;  %v1627_v35 = vadd.f32 %v1626_v31, %v1514_v13  ;;  %v1519_v13 = vmul.f32 %v4135_v42, %v4135_v42 }
 0x21f   :  { %v1395_v16 = vadd.f32 %v1394_v57, %v4114_v48  ;;  %v1628_v51 = vadd.f32 %v1627_v35, %v1515_v11  ;;  %v1520_v11 = vmul.f32 %v4142_v56, %v4142_v56 }
 0x221   :  { %v1396_v63 = vadd.f32 %v1395_v16, %v4121_v4  ;;  %v1629_v14 = vadd.f32 %v1628_v51, %v1516_v5  ;;  %v1521_v5 = vmul.f32 %v4149_v26, %v4149_v26 }
 0x223   :  { %v1397_v8 = vadd.f32 %v1396_v63, %v4128_v18  ;;  %v1630_v21 = vadd.f32 %v1629_v14, %v1517_v49  ;;  %v1522_v49 = vmul.f32 %v4156_v45, %v4156_v45 }
 0x225   :  { %v1398_v43 = vadd.f32 %v1397_v8, %v4135_v42  ;;  %v1631_v31 = vadd.f32 %v1630_v21, %v1518_v29  ;;  %v1523_v29 = vmul.f32 %v4163_v62, %v4163_v62 }
 0x227   :  { %v1399_v57 = vadd.f32 %v1398_v43, %v4142_v56  ;;  %v1632_v35 = vadd.f32 %v1631_v31, %v1519_v13  ;;  %v1524_v13 = vmul.f32 %v4170_v27, %v4170_v27 }
 0x229   :  { %v1400_v16 = vadd.f32 %v1399_v57, %v4149_v26  ;;  %v1633_v51 = vadd.f32 %v1632_v35, %v1520_v11  ;;  %v1525_v57 = vmul.f32 %v4177_v54, %v4177_v54 }
 0x22b   :  { %v1401_v63 = vadd.f32 %v1400_v16, %v4156_v45  ;;  %v1634_v14 = vadd.f32 %v1633_v51, %v1521_v5  ;;  %v1526_v51 = vmul.f32 %v4184_v33, %v4184_v33 }
 0x22d   :  { %v1402_v8 = vadd.f32 %v1401_v63, %v4163_v62  ;;  %v1635_v21 = vadd.f32 %v1634_v14, %v1522_v49  ;;  %v1527_v14 = vmul.f32 %v4191_v6, %v4191_v6 }
 0x22f   :  { %v1403_v43 = vadd.f32 %v1402_v8, %v4170_v27  ;;  %v1636_v31 = vadd.f32 %v1635_v21, %v1523_v29  ;;  %v1528_v21 = vmul.f32 %v4198_v25, %v4198_v25 }
 0x231   :  { %v1404_v11 = vadd.f32 %v1403_v43, %v4177_v54  ;;  %v1637_v35 = vadd.f32 %v1636_v31, %v1524_v13  ;;  %v1529_v31 = vmul.f32 %v4205_v61, %v4205_v61 }
 0x233   :  { %v1638_v16 = vadd.f32 %v1637_v35, %v1525_v57  ;;  %v1405_v5 = vadd.f32 %v1404_v11, %v4184_v33  ;;  %v1530_v35 = vmul.f32 %v4212_v55, %v4212_v55 }
 0x235   :  { %v1639_v63 = vadd.f32 %v1638_v16, %v1526_v51  ;;  %v1406_v49 = vadd.f32 %v1405_v5, %v4191_v6  ;;  %v1531_v51 = vmul.f32 %v4219_v46, %v4219_v46 }
 0x237   :  { %v1640_v8 = vadd.f32 %v1639_v63, %v1527_v14  ;;  %v1407_v29 = vadd.f32 %v1406_v49, %v4198_v25  ;;  %v1532_v14 = vmul.f32 %v4226_v17, %v4226_v17 }
 0x239   :  { %v1641_v43 = vadd.f32 %v1640_v8, %v1528_v21  ;;  %v1408_v13 = vadd.f32 %v1407_v29, %v4205_v61  ;;  %v1533_v21 = vmul.f32 %v4233_v28, %v4233_v28 }
 0x23b   :  { %v1642_v11 = vadd.f32 %v1641_v43, %v1529_v31  ;;  %v1409_v57 = vadd.f32 %v1408_v13, %v4212_v55  ;;  %v1534_v31 = vmul.f32 %v4240_v47, %v4240_v47 }
 0x23d   :  { %v1643_v16 = vadd.f32 %v1642_v11, %v1530_v35  ;;  %v1410_v5 = vadd.f32 %v1409_v57, %v4219_v46  ;;  %v1535_v35 = vmul.f32 %v4247_v53, %v4247_v53 }
 0x23f   :  { %v1644_v63 = vadd.f32 %v1643_v16, %v1531_v51  ;;  %v1411_v49 = vadd.f32 %v1410_v5, %v4226_v17  ;;  %v1536_v51 = vmul.f32 %v4254_v23, %v4254_v23 }
 0x241   :  { %v1645_v8 = vadd.f32 %v1644_v63, %v1532_v14  ;;  %v1412_v29 = vadd.f32 %v1411_v49, %v4233_v28  ;;  %v1537_v14 = vmul.f32 %v4261_v41, %v4261_v41 }
 0x243   :  { %v1646_v43 = vadd.f32 %v1645_v8, %v1533_v21  ;;  %v1413_v13 = vadd.f32 %v1412_v29, %v4240_v47  ;;  %v1538_v21 = vmul.f32 %v4268_v59, %v4268_v59 }
 0x245   :  { %v1647_v11 = vadd.f32 %v1646_v43, %v1534_v31  ;;  %v1414_v57 = vadd.f32 %v1413_v13, %v4247_v53  ;;  %v1539_v31 = vmul.f32 %v4275_v3, %v4275_v3 }
 0x247   :  { %v1648_v16 = vadd.f32 %v1647_v11, %v1535_v35  ;;  %v1415_v5 = vadd.f32 %v1414_v57, %v4254_v23  ;;  %v1540_v35 = vmul.f32 %v4282_v39, %v4282_v39 }
 0x249   :  { %v1649_v63 = vadd.f32 %v1648_v16, %v1536_v51  ;;  %v1416_v49 = vadd.f32 %v1415_v5, %v4261_v41  ;;  %v1541_v51 = vmul.f32 %v4289_v37, %v4289_v37 }
 0x24b   :  { %v1650_v8 = vadd.f32 %v1649_v63, %v1537_v14  ;;  %v1417_v29 = vadd.f32 %v1416_v49, %v4268_v59  ;;  %v1542_v14 = vmul.f32 %v4296_v19, %v4296_v19 }
 0x24d   :  { %v1651_v43 = vadd.f32 %v1650_v8, %v1538_v21  ;;  %v1418_v13 = vadd.f32 %v1417_v29, %v4275_v3  ;;  %v1543_v21 = vmul.f32 %v4303_v9, %v4303_v9 }
 0x24f   :  { %v1652_v11 = vadd.f32 %v1651_v43, %v1539_v31  ;;  %v1419_v57 = vadd.f32 %v1418_v13, %v4282_v39  ;;  %v1544_v31 = vmul.f32 %v4310_v1, %v4310_v1 }
 0x251   :  { %v1653_v16 = vadd.f32 %v1652_v11, %v1540_v35  ;;  %v1420_v5 = vadd.f32 %v1419_v57, %v4289_v37  ;;  %v6246_v57 = vld [vmem:[#allocation59_spill] sm:$0xff] }
 0x253   :  { %v1654_v63 = vadd.f32 %v1653_v16, %v1541_v51  ;;  %v1421_v49 = vadd.f32 %v1420_v5, %v4296_v19  ;;  %v1545_v16 = vmul.f32 %v6246_v57, %v6246_v57  ;;  %v6247_v51 = vld [vmem:[#allocation61_spill] sm:$0xff] }
 0x255   :  { %v1655_v8 = vadd.f32 %v1654_v63, %v1542_v14  ;;  %v1422_v29 = vadd.f32 %v1421_v49, %v4303_v9  ;;  %v1546_v49 = vmul.f32 %v6247_v51, %v6247_v51  ;;  %v6248_v9 = vld [vmem:[#allocation63_spill] sm:$0xff] }
 0x257   :  { %v1656_v43 = vadd.f32 %v1655_v8, %v1543_v21  ;;  %v1423_v13 = vadd.f32 %v1422_v29, %v4310_v1  ;;  %v1547_v29 = vmul.f32 %v6248_v9, %v6248_v9  ;;  %v6249_v1 = vld [vmem:[#allocation65_spill] sm:$0xff] }
 0x259   :  { %v1657_v11 = vadd.f32 %v1656_v43, %v1544_v31  ;;  %v1424_v35 = vadd.f32 %v1423_v13, %v6246_v57  ;;  %v1548_v13 = vmul.f32 %v6249_v1, %v6249_v1  ;;  %v6250_v57 = vld [vmem:[#allocation67_spill] sm:$0xff] }
 0x25b   :  { %v1658_v5 = vadd.f32 %v1657_v11, %v1545_v16  ;;  %v1425_v63 = vadd.f32 %v1424_v35, %v6247_v51  ;;  %v1549_v35 = vmul.f32 %v6250_v57, %v6250_v57  ;;  %v6251_v51 = vld [vmem:[#allocation69_spill] sm:$0xff] }
 0x25d   :  { %v1659_v14 = vadd.f32 %v1658_v5, %v1546_v49  ;;  %v1426_v8 = vadd.f32 %v1425_v63, %v6248_v9  ;;  %v1550_v63 = vmul.f32 %v6251_v51, %v6251_v51  ;;  %v6252_v49 = vld [vmem:[#allocation71_spill] sm:$0xff] }
 0x25f   :  { %v1660_v21 = vadd.f32 %v1659_v14, %v1547_v29  ;;  %v1427_v43 = vadd.f32 %v1426_v8, %v6249_v1  ;;  %v1551_v14 = vmul.f32 %v6252_v49, %v6252_v49  ;;  %v6253_v1 = vld [vmem:[#allocation72_spill] sm:$0xff] }
 0x261   :  { %v1661_v31 = vadd.f32 %v1660_v21, %v1548_v13  ;;  %v1428_v11 = vadd.f32 %v1427_v43, %v6250_v57  ;;  %v1552_v43 = vmul.f32 %v6253_v1, %v6253_v1 }
 0x263   :  { %v1662_v16 = vadd.f32 %v1661_v31, %v1549_v35  ;;  %v1429_v5 = vadd.f32 %v1428_v11, %v6251_v51 }
 0x265   :  { %v1663_v29 = vadd.f32 %v1662_v16, %v1550_v63  ;;  %v1430_v8 = vadd.f32 %v1429_v5, %v6252_v49 }
 0x267   :  { %v1664_v9 = vadd.f32 %v1663_v29, %v1551_v14  ;;  %v1431_v21 = vadd.f32 %v1430_v8, %v6253_v1  ;;  %v1683_v1 = vlaneseq }
 0x269   :  { %v1432_v13 = vrot.slane %v1431_v21, 4  ;;  %v1665_v57 = vadd.f32 %v1664_v9, %v1552_v43  ;;  %v4549_v41 = vshrl.u32 %v1683_v1, 7  ;;  %v1675_v9 = vld [vmem:[%s6002_s2] sm:$0x1] }
 0x26a   :  { %v6254_v1 = vld [vmem:[#allocation2_spill] sm:$0xff] }
 0x26b   :  { %v1433_v31 = vadd.f32 %v1432_v13, %v1431_v21  ;;  %v1666_v35 = vrot.slane %v1665_v57, 4  ;;  %v6256_v13 = vld [vmem:[#allocation4_spill] sm:$0xff] }
 0x26d   :  { %v1434_v11 = vrot.slane %v1433_v31, 2  ;;  %v1667_v19 = vadd.f32 %v1666_v35, %v1665_v57  ;;  %v6086_v57 = vsub.s32 0, %v4549_v41  ;;  %v6257_v35 = vld [vmem:[#allocation5_spill] sm:$0xff] }
 0x26f   :  { %v1435_v37 = vadd.f32 %v1434_v11, %v1433_v31  ;;  %v1668_v51 = vrot.slane %v1667_v19, 2 }
 0x271   :  { %v1436_v39 = vrot.slane %v1435_v37, 1  ;;  %v1669_v3 = vadd.f32 %v1668_v51, %v1667_v19 }
 0x273   :  { %v1437_v59 = vadd.f32 %v1436_v39, %v1435_v37  ;;  %v1670_v16 = vrot.slane %v1669_v3, 1  ;;  %v6270_v37 = vld [vmem:[#allocation14_spill] sm:$0xff] }
 0x275   :  { %v1438_v63 = vmul.f32 0.0011111111, %v1437_v59  ;;  %v1671_v5 = vadd.f32 %v1670_v16, %v1669_v3  ;;  %v4558_v59 = vld [vmem:[%s6003_s3] sm:$0x1] }
 0x276   :  { %v6258_v16 = vld [vmem:[#allocation6_spill] sm:$0xff] }
 0x277   :  { %v1672_v14 = vmul.f32 0.0011111111, %v1671_v5  ;;  %v1673_v29 = vmul.f32 %v1438_v63, %v1438_v63  ;;  %v6259_v5 = vld [vmem:[#allocation7_spill] sm:$0xff] }
 0x279   :  { %v1674_v8 = vsub.f32 %v1672_v14, %v1673_v29  ;;  %v6260_v29 = vld [vmem:[#allocation8_spill] sm:$0xff] }
 0x27b   :  { %v1676_v49 = vadd.f32 1e-05, %v1674_v8 }
 0x27d   :  { %3529 = vrsqrt.f32 %v1676_v49  ;;  %v6255_v49 = vld [vmem:[#allocation3_spill] sm:$0xff] }
 0x287   :  { %v3530_v21 = vpop.eup %3529 }
 0x288   :  { %v1678_v19 = vmul.f32 %v3530_v21, %v1675_v9  ;;  %v6261_v9 = vld [vmem:[#allocation9_spill] sm:$0xff] }
 0x28a   :  { %v4560_v3 = vmul.f32 %v1678_v19, %v1438_v63  ;;  %v4564_v39 = vrot.slane %v1678_v19, %v6086_v57  ;;  %v6262_v19 = vld [vmem:[#allocation10_spill] sm:$0xff]  ;;  %v6272_v57 = vld [vmem:[#allocation15_spill] sm:$0xff] }
 0x28c   :  { %v4570_v51 = vmul.f32 %v4564_v39, %v6254_v1  ;;  %v4574_v43 = vmul.f32 %v4564_v39, %v6255_v49  ;;  %v4578_v31 = vmul.f32 %v4564_v39, %v6256_v13  ;;  %v4582_v11 = vmul.f32 %v4564_v39, %v6257_v35  ;;  %v6264_v49 = vld [vmem:[#allocation11_spill] sm:$0xff]  ;;  %v6266_v35 = vld [vmem:[#allocation12_spill] sm:$0xff] }
 0x28d   :  { %v4586_v63 = vmul.f32 %v4564_v39, %v6258_v16  ;;  %v4590_v14 = vmul.f32 %v4564_v39, %v6259_v5  ;;  %v4594_v8 = vmul.f32 %v4564_v39, %v6260_v29  ;;  %v4598_v21 = vmul.f32 %v4564_v39, %v6261_v9  ;;  %v6268_v5 = vld [vmem:[#allocation13_spill] sm:$0xff] }
 0x28e   :  { %v4602_v1 = vmul.f32 %v4564_v39, %v6262_v19  ;;  %v4606_v13 = vmul.f32 %v4564_v39, %v6264_v49  ;;  %v4610_v16 = vmul.f32 %v4564_v39, %v6266_v35  ;;  %v4614_v29 = vmul.f32 %v4564_v39, %v6268_v5 }
 0x28f   :  { %v4618_v9 = vmul.f32 %v4564_v39, %v6270_v37  ;;  %v4622_v19 = vmul.f32 %v4564_v39, %v6272_v57 }
 0x290   :  { %6263 = vst [vmem:[#allocation2_spill] sm:$0xff] %v4602_v1  ;;  %6265 = vst [vmem:[#allocation3_spill] sm:$0xff] %v4606_v13  ;;  %v6274_v1 = vld [vmem:[#allocation16_spill] sm:$0xff]  ;;  %v6276_v13 = vld [vmem:[#allocation17_spill] sm:$0xff] }
 0x291   :  { %6267 = vst [vmem:[#allocation4_spill] sm:$0xff] %v4610_v16  ;;  %6269 = vst [vmem:[#allocation5_spill] sm:$0xff] %v4614_v29  ;;  %v4626_v49 = vmul.f32 %v4564_v39, %v6274_v1  ;;  %v4630_v35 = vmul.f32 %v4564_v39, %v6276_v13  ;;  %v6278_v16 = vld [vmem:[#allocation18_spill] sm:$0xff]  ;;  %v6280_v29 = vld [vmem:[#allocation19_spill] sm:$0xff] }
 0x292   :  { %6271 = vst [vmem:[#allocation6_spill] sm:$0xff] %v4618_v9  ;;  %6273 = vst [vmem:[#allocation7_spill] sm:$0xff] %v4622_v19  ;;  %v4634_v5 = vmul.f32 %v4564_v39, %v6278_v16  ;;  %v4638_v37 = vmul.f32 %v4564_v39, %v6280_v29  ;;  %v6282_v9 = vld [vmem:[#allocation20_spill] sm:$0xff]  ;;  %v6284_v19 = vld [vmem:[#allocation21_spill] sm:$0xff] }
 0x293   :  { %6275 = vst [vmem:[#allocation8_spill] sm:$0xff] %v4626_v49  ;;  %6277 = vst [vmem:[#allocation9_spill] sm:$0xff] %v4630_v35  ;;  %v4642_v57 = vmul.f32 %v4564_v39, %v6282_v9  ;;  %v4646_v1 = vmul.f32 %v4564_v39, %v6284_v19  ;;  %v6286_v49 = vld [vmem:[#allocation22_spill] sm:$0xff]  ;;  %v6288_v35 = vld [vmem:[#allocation23_spill] sm:$0xff] }
 0x294   :  { %6279 = vst [vmem:[#allocation10_spill] sm:$0xff] %v4634_v5  ;;  %6281 = vst [vmem:[#allocation11_spill] sm:$0xff] %v4638_v37  ;;  %v4650_v13 = vmul.f32 %v4564_v39, %v6286_v49  ;;  %v4654_v16 = vmul.f32 %v4564_v39, %v6288_v35  ;;  %v6290_v5 = vld [vmem:[#allocation24_spill] sm:$0xff]  ;;  %v6292_v37 = vld [vmem:[#allocation25_spill] sm:$0xff] }
 0x295   :  { %6283 = vst [vmem:[#allocation12_spill] sm:$0xff] %v4642_v57  ;;  %6285 = vst [vmem:[#allocation13_spill] sm:$0xff] %v4646_v1  ;;  %v4658_v29 = vmul.f32 %v4564_v39, %v6290_v5  ;;  %v4662_v9 = vmul.f32 %v4564_v39, %v6292_v37  ;;  %v6294_v57 = vld [vmem:[#allocation26_spill] sm:$0xff]  ;;  %v6296_v1 = vld [vmem:[#allocation27_spill] sm:$0xff] }
 0x296   :  { %6287 = vst [vmem:[#allocation14_spill] sm:$0xff] %v4650_v13  ;;  %6289 = vst [vmem:[#allocation15_spill] sm:$0xff] %v4654_v16  ;;  %v4666_v19 = vmul.f32 %v4564_v39, %v6294_v57  ;;  %v4670_v49 = vmul.f32 %v4564_v39, %v6296_v1  ;;  %v6298_v13 = vld [vmem:[#allocation28_spill] sm:$0xff]  ;;  %v6300_v16 = vld [vmem:[#allocation29_spill] sm:$0xff] }
 0x297   :  { %6291 = vst [vmem:[#allocation16_spill] sm:$0xff] %v4658_v29  ;;  %6293 = vst [vmem:[#allocation17_spill] sm:$0xff] %v4662_v9  ;;  %v4674_v35 = vmul.f32 %v4564_v39, %v6298_v13  ;;  %v4678_v5 = vmul.f32 %v4564_v39, %v6300_v16  ;;  %v6302_v29 = vld [vmem:[#allocation30_spill] sm:$0xff]  ;;  %v6304_v9 = vld [vmem:[#allocation31_spill] sm:$0xff] }
 0x298   :  { %6295 = vst [vmem:[#allocation18_spill] sm:$0xff] %v4666_v19  ;;  %6297 = vst [vmem:[#allocation19_spill] sm:$0xff] %v4670_v49  ;;  %v4682_v37 = vmul.f32 %v4564_v39, %v6302_v29  ;;  %v4686_v57 = vmul.f32 %v4564_v39, %v6304_v9  ;;  %v6306_v19 = vld [vmem:[#allocation32_spill] sm:$0xff]  ;;  %v6308_v49 = vld [vmem:[#allocation33_spill] sm:$0xff] }
 0x299   :  { %6299 = vst [vmem:[#allocation20_spill] sm:$0xff] %v4674_v35  ;;  %6301 = vst [vmem:[#allocation21_spill] sm:$0xff] %v4678_v5  ;;  %v4690_v1 = vmul.f32 %v4564_v39, %v6306_v19  ;;  %v4694_v13 = vmul.f32 %v4564_v39, %v6308_v49  ;;  %v6310_v35 = vld [vmem:[#allocation34_spill] sm:$0xff]  ;;  %v6312_v5 = vld [vmem:[#allocation35_spill] sm:$0xff] }
 0x29a   :  { %6303 = vst [vmem:[#allocation22_spill] sm:$0xff] %v4682_v37  ;;  %6305 = vst [vmem:[#allocation23_spill] sm:$0xff] %v4686_v57  ;;  %v4698_v16 = vmul.f32 %v4564_v39, %v6310_v35  ;;  %v4702_v29 = vmul.f32 %v4564_v39, %v6312_v5  ;;  %v6314_v37 = vld [vmem:[#allocation36_spill] sm:$0xff]  ;;  %v6316_v57 = vld [vmem:[#allocation37_spill] sm:$0xff] }
 0x29b   :  { %6307 = vst [vmem:[#allocation24_spill] sm:$0xff] %v4690_v1  ;;  %6309 = vst [vmem:[#allocation25_spill] sm:$0xff] %v4694_v13  ;;  %v4706_v9 = vmul.f32 %v4564_v39, %v6314_v37  ;;  %v4710_v19 = vmul.f32 %v4564_v39, %v6316_v57  ;;  %v6318_v1 = vld [vmem:[#allocation38_spill] sm:$0xff]  ;;  %v6320_v13 = vld [vmem:[#allocation39_spill] sm:$0xff] }
 0x29c   :  { %6311 = vst [vmem:[#allocation26_spill] sm:$0xff] %v4698_v16  ;;  %6313 = vst [vmem:[#allocation27_spill] sm:$0xff] %v4702_v29  ;;  %v4714_v49 = vmul.f32 %v4564_v39, %v6318_v1  ;;  %v4718_v35 = vmul.f32 %v4564_v39, %v6320_v13  ;;  %v6322_v16 = vld [vmem:[#allocation40_spill] sm:$0xff]  ;;  %v6324_v29 = vld [vmem:[#allocation41_spill] sm:$0xff] }
 0x29d   :  { %6315 = vst [vmem:[#allocation28_spill] sm:$0xff] %v4706_v9  ;;  %6317 = vst [vmem:[#allocation29_spill] sm:$0xff] %v4710_v19  ;;  %v4722_v5 = vmul.f32 %v4564_v39, %v6322_v16  ;;  %v4726_v37 = vmul.f32 %v4564_v39, %v6324_v29  ;;  %v6326_v9 = vld [vmem:[#allocation42_spill] sm:$0xff]  ;;  %v6328_v19 = vld [vmem:[#allocation44_spill] sm:$0xff] }
 0x29e   :  { %6319 = vst [vmem:[#allocation30_spill] sm:$0xff] %v4714_v49  ;;  %6321 = vst [vmem:[#allocation31_spill] sm:$0xff] %v4718_v35  ;;  %v4730_v57 = vmul.f32 %v4564_v39, %v6326_v9  ;;  %v4734_v1 = vmul.f32 %v4564_v39, %v6328_v19  ;;  %v6330_v49 = vld [vmem:[#allocation46_spill] sm:$0xff]  ;;  %v6332_v35 = vld [vmem:[#allocation48_spill] sm:$0xff] }
 0x29f   :  { %6323 = vst [vmem:[#allocation32_spill] sm:$0xff] %v4722_v5  ;;  %6325 = vst [vmem:[#allocation33_spill] sm:$0xff] %v4726_v37  ;;  %v4738_v13 = vmul.f32 %v4564_v39, %v6330_v49  ;;  %v4742_v16 = vmul.f32 %v4564_v39, %v6332_v35  ;;  %v6334_v5 = vld [vmem:[#allocation50_spill] sm:$0xff]  ;;  %v6336_v37 = vld [vmem:[#allocation52_spill] sm:$0xff] }
 0x2a0   :  { %6327 = vst [vmem:[#allocation34_spill] sm:$0xff] %v4730_v57  ;;  %6329 = vst [vmem:[#allocation35_spill] sm:$0xff] %v4734_v1  ;;  %v4746_v29 = vmul.f32 %v4564_v39, %v6334_v5  ;;  %v4750_v9 = vmul.f32 %v4564_v39, %v6336_v37  ;;  %v6338_v57 = vld [vmem:[#allocation54_spill] sm:$0xff]  ;;  %v6340_v1 = vld [vmem:[#allocation56_spill] sm:$0xff] }
 0x2a1   :  { %6331 = vst [vmem:[#allocation36_spill] sm:$0xff] %v4738_v13  ;;  %6333 = vst [vmem:[#allocation37_spill] sm:$0xff] %v4742_v16  ;;  %v4754_v19 = vmul.f32 %v4564_v39, %v6338_v57  ;;  %v4758_v49 = vmul.f32 %v4564_v39, %v6340_v1  ;;  %v6342_v13 = vld [vmem:[#allocation58_spill] sm:$0xff]  ;;  %v6344_v16 = vld [vmem:[#allocation60_spill] sm:$0xff] }
 0x2a2   :  { %6335 = vst [vmem:[#allocation38_spill] sm:$0xff] %v4746_v29  ;;  %6337 = vst [vmem:[#allocation39_spill] sm:$0xff] %v4750_v9  ;;  %v4762_v35 = vmul.f32 %v4564_v39, %v6342_v13  ;;  %v4766_v5 = vmul.f32 %v4564_v39, %v6344_v16  ;;  %v6345_v29 = vld [vmem:[#allocation62_spill] sm:$0xff]  ;;  %v6347_v9 = vld [vmem:[#allocation64_spill] sm:$0xff] }
 0x2a3   :  { %6339 = vst [vmem:[#allocation40_spill] sm:$0xff] %v4754_v19  ;;  %6341 = vst [vmem:[#allocation41_spill] sm:$0xff] %v4758_v49  ;;  %v4770_v37 = vmul.f32 %v4564_v39, %v6345_v29  ;;  %v4774_v57 = vmul.f32 %v4564_v39, %v6347_v9  ;;  %v6349_v19 = vld [vmem:[#allocation66_spill] sm:$0xff]  ;;  %v6350_v49 = vld [vmem:[#allocation68_spill] sm:$0xff]  ;;  %v4790_v29 = vmul.f32 %v4564_v39, %v4364_v34 }
 0x2a4   :  { %6343 = vst [vmem:[#allocation42_spill] sm:$0xff] %v4762_v35  ;;  %v4778_v1 = vmul.f32 %v4564_v39, %v6349_v19  ;;  %v4782_v13 = vmul.f32 %v4564_v39, %v6350_v49  ;;  %v6351_v35 = vld [vmem:[#allocation70_spill] sm:$0xff]  ;;  %v4802_v49 = vmul.f32 %v4564_v39, %v3969_v0  ;;  %v4810_v34 = vmul.f32 %v4564_v39, %v3992_v15 }
 0x2a5   :  { %6346 = vst [vmem:[#allocation44_spill] sm:$0xff] %v4770_v37  ;;  %6348 = vst [vmem:[#allocation46_spill] sm:$0xff] %v4774_v57  ;;  %v4786_v16 = vmul.f32 %v4564_v39, %v6351_v35  ;;  %v6352_v37 = vld [vmem:[#allocation73_spill] sm:$0xff]  ;;  %v6353_v57 = vld [vmem:[#allocation74_spill] sm:$0xff]  ;;  %v4806_v35 = vmul.f32 %v4564_v39, %v3982_v7  ;;  %v4822_v0 = vmul.f32 %v4564_v39, %v4016_v36 }
 0x2a6   :  { %v4794_v9 = vmul.f32 %v4564_v39, %v6352_v37  ;;  %v4798_v19 = vmul.f32 %v4564_v39, %v6353_v57  ;;  %v4814_v37 = vmul.f32 %v4564_v39, %v4002_v22  ;;  %v4818_v57 = vmul.f32 %v4564_v39, %v4009_v30 }
 0x2a7   :  { %v4826_v7 = vmul.f32 %v4564_v39, %v4023_v44  ;;  %v4830_v15 = vmul.f32 %v4564_v39, %v4030_v50  ;;  %v4834_v22 = vmul.f32 %v4564_v39, %v4037_v58  ;;  %v4838_v30 = vmul.f32 %v4564_v39, %v4044_v2 }
 0x2a8   :  { %v4842_v36 = vmul.f32 %v4564_v39, %v4051_v12  ;;  %v4846_v44 = vmul.f32 %v4564_v39, %v4058_v20  ;;  %v4850_v50 = vmul.f32 %v4564_v39, %v4065_v32  ;;  %v4854_v58 = vmul.f32 %v4564_v39, %v4072_v40 }
 0x2a9   :  { %v4858_v2 = vmul.f32 %v4564_v39, %v4079_v52  ;;  %v4862_v12 = vmul.f32 %v4564_v39, %v4086_v60  ;;  %v4866_v20 = vmul.f32 %v4564_v39, %v4093_v10  ;;  %v4870_v32 = vmul.f32 %v4564_v39, %v4100_v24 }
 0x2aa   :  { %v4874_v40 = vmul.f32 %v4564_v39, %v4107_v38  ;;  %v4878_v52 = vmul.f32 %v4564_v39, %v4114_v48  ;;  %v4882_v60 = vmul.f32 %v4564_v39, %v4121_v4  ;;  %v4886_v10 = vmul.f32 %v4564_v39, %v4128_v18 }
 0x2ab   :  { %v4890_v24 = vmul.f32 %v4564_v39, %v4135_v42  ;;  %v4894_v38 = vmul.f32 %v4564_v39, %v4142_v56  ;;  %v4898_v48 = vmul.f32 %v4564_v39, %v4149_v26  ;;  %v4902_v4 = vmul.f32 %v4564_v39, %v4156_v45 }
 0x2ac   :  { %v4906_v18 = vmul.f32 %v4564_v39, %v4163_v62  ;;  %v4910_v42 = vmul.f32 %v4564_v39, %v4170_v27  ;;  %v4914_v56 = vmul.f32 %v4564_v39, %v4177_v54  ;;  %v4918_v26 = vmul.f32 %v4564_v39, %v4184_v33 }
 0x2ad   :  { %v4922_v45 = vmul.f32 %v4564_v39, %v4191_v6  ;;  %v4926_v62 = vmul.f32 %v4564_v39, %v4198_v25  ;;  %v4930_v27 = vmul.f32 %v4564_v39, %v4205_v61  ;;  %v4934_v54 = vmul.f32 %v4564_v39, %v4212_v55 }
 0x2ae   :  { %v4938_v33 = vmul.f32 %v4564_v39, %v4219_v46  ;;  %v4942_v6 = vmul.f32 %v4564_v39, %v4226_v17  ;;  %v4946_v25 = vmul.f32 %v4564_v39, %v4233_v28  ;;  %v4950_v61 = vmul.f32 %v4564_v39, %v4240_v47 }
 0x2af   :  { %v4954_v55 = vmul.f32 %v4564_v39, %v4247_v53  ;;  %v4958_v46 = vmul.f32 %v4564_v39, %v4254_v23 }
 0x2b0   :  { %6354 = vst [vmem:[#allocation48_spill] sm:$0xff] %v4938_v33  ;;  %6355 = vst [vmem:[#allocation50_spill] sm:$0xff] %v4942_v6  ;;  %v6360_v33 = vld [vmem:[#allocation43_spill] sm:$0xff]  ;;  %v6362_v6 = vld [vmem:[#allocation45_spill] sm:$0xff] }
 0x2b1   :  { %6356 = vst [vmem:[#allocation52_spill] sm:$0xff] %v4946_v25  ;;  %6357 = vst [vmem:[#allocation54_spill] sm:$0xff] %v4950_v61  ;;  %v4962_v17 = vmul.f32 %v4564_v39, %v6360_v33  ;;  %v4966_v28 = vmul.f32 %v4564_v39, %v6362_v6  ;;  %v6364_v25 = vld [vmem:[#allocation47_spill] sm:$0xff]  ;;  %v6366_v61 = vld [vmem:[#allocation49_spill] sm:$0xff] }
 0x2b2   :  { %6358 = vst [vmem:[#allocation56_spill] sm:$0xff] %v4954_v55  ;;  %6359 = vst [vmem:[#allocation58_spill] sm:$0xff] %v4958_v46  ;;  %v4970_v47 = vmul.f32 %v4564_v39, %v6364_v25  ;;  %v4974_v53 = vmul.f32 %v4564_v39, %v6366_v61  ;;  %v6368_v55 = vld [vmem:[#allocation51_spill] sm:$0xff]  ;;  %v6370_v46 = vld [vmem:[#allocation53_spill] sm:$0xff] }
 0x2b3   :  { %6361 = vst [vmem:[#allocation60_spill] sm:$0xff] %v4962_v17  ;;  %6363 = vst [vmem:[#allocation62_spill] sm:$0xff] %v4966_v28  ;;  %v4978_v23 = vmul.f32 %v4564_v39, %v6368_v55  ;;  %v4982_v33 = vmul.f32 %v4564_v39, %v6370_v46  ;;  %v6372_v17 = vld [vmem:[#allocation55_spill] sm:$0xff]  ;;  %v6374_v28 = vld [vmem:[#allocation57_spill] sm:$0xff] }
 0x2b4   :  { %6365 = vst [vmem:[#allocation64_spill] sm:$0xff] %v4970_v47  ;;  %6367 = vst [vmem:[#allocation66_spill] sm:$0xff] %v4974_v53  ;;  %v4986_v6 = vmul.f32 %v4564_v39, %v6372_v17  ;;  %v4990_v25 = vmul.f32 %v4564_v39, %v6374_v28  ;;  %v6376_v47 = vld [vmem:[#allocation59_spill] sm:$0xff]  ;;  %v6378_v53 = vld [vmem:[#allocation61_spill] sm:$0xff] }
 0x2b5   :  { %6369 = vst [vmem:[#allocation68_spill] sm:$0xff] %v4978_v23  ;;  %6371 = vst [vmem:[#allocation70_spill] sm:$0xff] %v4982_v33  ;;  %v4994_v61 = vmul.f32 %v4564_v39, %v6376_v47  ;;  %v4998_v55 = vmul.f32 %v4564_v39, %v6378_v53  ;;  %v6380_v23 = vld [vmem:[#allocation63_spill] sm:$0xff]  ;;  %v6382_v33 = vld [vmem:[#allocation65_spill] sm:$0xff] }
 0x2b6   :  { %6373 = vst [vmem:[#allocation73_spill] sm:$0xff] %v4986_v6  ;;  %6375 = vst [vmem:[#allocation74_spill] sm:$0xff] %v4990_v25  ;;  %v5002_v46 = vmul.f32 %v4564_v39, %v6380_v23  ;;  %v5006_v17 = vmul.f32 %v4564_v39, %v6382_v33  ;;  %v6384_v6 = vld [vmem:[#allocation67_spill] sm:$0xff]  ;;  %v6385_v25 = vld [vmem:[#allocation69_spill] sm:$0xff]  ;;  %v6389_v33 = vsub.f32 %v4558_v59, %v4560_v3 }
 0x2b7   :  { %6377 = vst [vmem:[#allocation43_spill] sm:$0xff] %v4994_v61  ;;  %6379 = vst [vmem:[#allocation45_spill] sm:$0xff] %v4998_v55  ;;  %v5010_v28 = vmul.f32 %v4564_v39, %v6384_v6  ;;  %v5014_v47 = vmul.f32 %v4564_v39, %v6385_v25  ;;  %v6386_v61 = vld [vmem:[#allocation71_spill] sm:$0xff]  ;;  %v6387_v55 = vld [vmem:[#allocation72_spill] sm:$0xff] }
 0x2b8   :  { %6381 = vst [vmem:[#allocation47_spill] sm:$0xff] %v5002_v46  ;;  %6383 = vst [vmem:[#allocation49_spill] sm:$0xff] %v5006_v17  ;;  %v5018_v53 = vmul.f32 %v4564_v39, %v6386_v61  ;;  %v5022_v23 = vmul.f32 %v4564_v39, %v6387_v55  ;;  %v6388_v46 = vsub.s32 0, %v4549_v41  ;;  %v6402_v55 = vld [vmem:[#allocation4_spill] sm:$0xff] }
 0x2ba   :  { %v5029_v17 = vrot.slane %v6389_v33, %v6388_v46  ;;  %v6404_v46 = vld [vmem:[#allocation5_spill] sm:$0xff]  ;;  %v6406_v33 = vld [vmem:[#allocation6_spill] sm:$0xff] }
 0x2bc   :  { %v5033_v6 = vadd.f32 %v5029_v17, %v4570_v51  ;;  %v5037_v25 = vadd.f32 %v5029_v17, %v4574_v43  ;;  %v5041_v61 = vadd.f32 %v5029_v17, %v4578_v31  ;;  %v5045_v41 = vadd.f32 %v5029_v17, %v4582_v11  ;;  %v6398_v43 = vld [vmem:[#allocation2_spill] sm:$0xff]  ;;  %v6400_v11 = vld [vmem:[#allocation3_spill] sm:$0xff] }
 0x2bd   :  { %v5049_v59 = vadd.f32 %v5029_v17, %v4586_v63  ;;  %v5053_v3 = vadd.f32 %v5029_v17, %v4590_v14  ;;  %v5057_v39 = vadd.f32 %v5029_v17, %v4594_v8  ;;  %v5061_v51 = vadd.f32 %v5029_v17, %v4598_v21 }
 0x2be   :  { %6390 = vst [vmem:[#allocation51_spill] sm:$0xff] %v5033_v6  ;;  %6391 = vst [vmem:[#allocation53_spill] sm:$0xff] %v5037_v25  ;;  %v5065_v31 = vadd.f32 %v5029_v17, %v6398_v43  ;;  %v5069_v63 = vadd.f32 %v5029_v17, %v6400_v11  ;;  %v5073_v14 = vadd.f32 %v5029_v17, %v6402_v55 }
 0x2bf   :  { %6392 = vst [vmem:[#allocation55_spill] sm:$0xff] %v5041_v61  ;;  %6393 = vst [vmem:[#allocation57_spill] sm:$0xff] %v5045_v41  ;;  %v5077_v8 = vadd.f32 %v5029_v17, %v6404_v46  ;;  %v5081_v21 = vadd.f32 %v5029_v17, %v6406_v33 }
 0x2c0   :  { %6394 = vst [vmem:[#allocation59_spill] sm:$0xff] %v5049_v59  ;;  %6395 = vst [vmem:[#allocation61_spill] sm:$0xff] %v5053_v3 }
 0x2c1   :  { %6396 = vst [vmem:[#allocation63_spill] sm:$0xff] %v5057_v39  ;;  %6397 = vst [vmem:[#allocation65_spill] sm:$0xff] %v5061_v51  ;;  %v6408_v51 = vld [vmem:[#allocation7_spill] sm:$0xff] }
 0x2c2   :  { %6399 = vst [vmem:[#allocation67_spill] sm:$0xff] %v5065_v31  ;;  %6401 = vst [vmem:[#allocation69_spill] sm:$0xff] %v5069_v63  ;;  %v5085_v43 = vadd.f32 %v5029_v17, %v6408_v51  ;;  %v6410_v31 = vld [vmem:[#allocation8_spill] sm:$0xff]  ;;  %v6412_v63 = vld [vmem:[#allocation9_spill] sm:$0xff] }
 0x2c3   :  { %6403 = vst [vmem:[#allocation71_spill] sm:$0xff] %v5073_v14  ;;  %6405 = vst [vmem:[#allocation72_spill] sm:$0xff] %v5077_v8  ;;  %v5089_v11 = vadd.f32 %v5029_v17, %v6410_v31  ;;  %v5093_v55 = vadd.f32 %v5029_v17, %v6412_v63  ;;  %v6414_v14 = vld [vmem:[#allocation10_spill] sm:$0xff]  ;;  %v6416_v8 = vld [vmem:[#allocation11_spill] sm:$0xff] }
 0x2c4   :  { %6407 = vst [vmem:[#allocation2_spill] sm:$0xff] %v5081_v21  ;;  %6409 = vst [vmem:[#allocation3_spill] sm:$0xff] %v5085_v43  ;;  %v5097_v46 = vadd.f32 %v5029_v17, %v6414_v14  ;;  %v5101_v33 = vadd.f32 %v5029_v17, %v6416_v8  ;;  %v6418_v21 = vld [vmem:[#allocation12_spill] sm:$0xff]  ;;  %v6420_v43 = vld [vmem:[#allocation13_spill] sm:$0xff] }
 0x2c5   :  { %6411 = vst [vmem:[#allocation4_spill] sm:$0xff] %v5089_v11  ;;  %6413 = vst [vmem:[#allocation5_spill] sm:$0xff] %v5093_v55  ;;  %v5105_v51 = vadd.f32 %v5029_v17, %v6418_v21  ;;  %v5109_v31 = vadd.f32 %v5029_v17, %v6420_v43  ;;  %v6422_v11 = vld [vmem:[#allocation14_spill] sm:$0xff]  ;;  %v6424_v55 = vld [vmem:[#allocation15_spill] sm:$0xff] }
 0x2c6   :  { %6415 = vst [vmem:[#allocation6_spill] sm:$0xff] %v5097_v46  ;;  %6417 = vst [vmem:[#allocation7_spill] sm:$0xff] %v5101_v33  ;;  %v5113_v63 = vadd.f32 %v5029_v17, %v6422_v11  ;;  %v5117_v14 = vadd.f32 %v5029_v17, %v6424_v55  ;;  %v6426_v46 = vld [vmem:[#allocation16_spill] sm:$0xff]  ;;  %v6428_v33 = vld [vmem:[#allocation17_spill] sm:$0xff] }
 0x2c7   :  { %6419 = vst [vmem:[#allocation8_spill] sm:$0xff] %v5105_v51  ;;  %6421 = vst [vmem:[#allocation9_spill] sm:$0xff] %v5109_v31  ;;  %v5121_v8 = vadd.f32 %v5029_v17, %v6426_v46  ;;  %v5125_v21 = vadd.f32 %v5029_v17, %v6428_v33  ;;  %v6430_v51 = vld [vmem:[#allocation18_spill] sm:$0xff]  ;;  %v6432_v31 = vld [vmem:[#allocation19_spill] sm:$0xff] }
 0x2c8   :  { %6423 = vst [vmem:[#allocation10_spill] sm:$0xff] %v5113_v63  ;;  %6425 = vst [vmem:[#allocation11_spill] sm:$0xff] %v5117_v14  ;;  %v5129_v43 = vadd.f32 %v5029_v17, %v6430_v51  ;;  %v5133_v11 = vadd.f32 %v5029_v17, %v6432_v31  ;;  %v6434_v63 = vld [vmem:[#allocation20_spill] sm:$0xff]  ;;  %v6436_v14 = vld [vmem:[#allocation21_spill] sm:$0xff] }
 0x2c9   :  { %6427 = vst [vmem:[#allocation12_spill] sm:$0xff] %v5121_v8  ;;  %6429 = vst [vmem:[#allocation13_spill] sm:$0xff] %v5125_v21  ;;  %v5137_v55 = vadd.f32 %v5029_v17, %v6434_v63  ;;  %v5141_v46 = vadd.f32 %v5029_v17, %v6436_v14  ;;  %v6438_v8 = vld [vmem:[#allocation22_spill] sm:$0xff]  ;;  %v6440_v21 = vld [vmem:[#allocation23_spill] sm:$0xff] }
 0x2ca   :  { %6431 = vst [vmem:[#allocation14_spill] sm:$0xff] %v5129_v43  ;;  %6433 = vst [vmem:[#allocation15_spill] sm:$0xff] %v5133_v11  ;;  %v5145_v33 = vadd.f32 %v5029_v17, %v6438_v8  ;;  %v5149_v51 = vadd.f32 %v5029_v17, %v6440_v21  ;;  %v6442_v43 = vld [vmem:[#allocation24_spill] sm:$0xff]  ;;  %v6444_v11 = vld [vmem:[#allocation25_spill] sm:$0xff] }
 0x2cb   :  { %6435 = vst [vmem:[#allocation16_spill] sm:$0xff] %v5137_v55  ;;  %6437 = vst [vmem:[#allocation17_spill] sm:$0xff] %v5141_v46  ;;  %v5153_v31 = vadd.f32 %v5029_v17, %v6442_v43  ;;  %v5157_v63 = vadd.f32 %v5029_v17, %v6444_v11  ;;  %v6446_v55 = vld [vmem:[#allocation26_spill] sm:$0xff]  ;;  %v6448_v46 = vld [vmem:[#allocation27_spill] sm:$0xff] }
 0x2cc   :  { %6439 = vst [vmem:[#allocation18_spill] sm:$0xff] %v5145_v33  ;;  %6441 = vst [vmem:[#allocation19_spill] sm:$0xff] %v5149_v51  ;;  %v5161_v14 = vadd.f32 %v5029_v17, %v6446_v55  ;;  %v5165_v8 = vadd.f32 %v5029_v17, %v6448_v46  ;;  %v6450_v33 = vld [vmem:[#allocation28_spill] sm:$0xff]  ;;  %v6452_v51 = vld [vmem:[#allocation29_spill] sm:$0xff] }
 0x2cd   :  { %6443 = vst [vmem:[#allocation20_spill] sm:$0xff] %v5153_v31  ;;  %6445 = vst [vmem:[#allocation21_spill] sm:$0xff] %v5157_v63  ;;  %v5169_v21 = vadd.f32 %v5029_v17, %v6450_v33  ;;  %v5173_v43 = vadd.f32 %v5029_v17, %v6452_v51  ;;  %v6454_v31 = vld [vmem:[#allocation30_spill] sm:$0xff]  ;;  %v6456_v63 = vld [vmem:[#allocation31_spill] sm:$0xff] }
 0x2ce   :  { %6447 = vst [vmem:[#allocation22_spill] sm:$0xff] %v5161_v14  ;;  %6449 = vst [vmem:[#allocation23_spill] sm:$0xff] %v5165_v8  ;;  %v5177_v11 = vadd.f32 %v5029_v17, %v6454_v31  ;;  %v5181_v55 = vadd.f32 %v5029_v17, %v6456_v63  ;;  %v6458_v14 = vld [vmem:[#allocation32_spill] sm:$0xff]  ;;  %v6460_v8 = vld [vmem:[#allocation33_spill] sm:$0xff] }
 0x2cf   :  { %6451 = vst [vmem:[#allocation24_spill] sm:$0xff] %v5169_v21  ;;  %6453 = vst [vmem:[#allocation25_spill] sm:$0xff] %v5173_v43  ;;  %v5185_v46 = vadd.f32 %v5029_v17, %v6458_v14  ;;  %v5189_v33 = vadd.f32 %v5029_v17, %v6460_v8  ;;  %v6462_v21 = vld [vmem:[#allocation34_spill] sm:$0xff]  ;;  %v6464_v43 = vld [vmem:[#allocation35_spill] sm:$0xff] }
 0x2d0   :  { %6455 = vst [vmem:[#allocation26_spill] sm:$0xff] %v5177_v11  ;;  %6457 = vst [vmem:[#allocation27_spill] sm:$0xff] %v5181_v55  ;;  %v5193_v51 = vadd.f32 %v5029_v17, %v6462_v21  ;;  %v5197_v31 = vadd.f32 %v5029_v17, %v6464_v43  ;;  %v6466_v11 = vld [vmem:[#allocation36_spill] sm:$0xff]  ;;  %v6468_v55 = vld [vmem:[#allocation37_spill] sm:$0xff] }
 0x2d1   :  { %6459 = vst [vmem:[#allocation28_spill] sm:$0xff] %v5185_v46  ;;  %6461 = vst [vmem:[#allocation29_spill] sm:$0xff] %v5189_v33  ;;  %v5201_v63 = vadd.f32 %v5029_v17, %v6466_v11  ;;  %v5205_v14 = vadd.f32 %v5029_v17, %v6468_v55  ;;  %v6469_v46 = vld [vmem:[#allocation38_spill] sm:$0xff]  ;;  %v6471_v33 = vld [vmem:[#allocation39_spill] sm:$0xff] }
 0x2d2   :  { %6463 = vst [vmem:[#allocation30_spill] sm:$0xff] %v5193_v51  ;;  %6465 = vst [vmem:[#allocation31_spill] sm:$0xff] %v5197_v31  ;;  %v5209_v8 = vadd.f32 %v5029_v17, %v6469_v46  ;;  %v5213_v21 = vadd.f32 %v5029_v17, %v6471_v33  ;;  %v6473_v51 = vld [vmem:[#allocation40_spill] sm:$0xff]  ;;  %v6474_v31 = vld [vmem:[#allocation41_spill] sm:$0xff]  ;;  %v5229_v46 = vadd.f32 %v5029_v17, %v4766_v5 }
 0x2d3   :  { %6467 = vst [vmem:[#allocation32_spill] sm:$0xff] %v5201_v63  ;;  %v5217_v43 = vadd.f32 %v5029_v17, %v6473_v51  ;;  %v5221_v11 = vadd.f32 %v5029_v17, %v6474_v31  ;;  %v6475_v63 = vld [vmem:[#allocation42_spill] sm:$0xff]  ;;  %v5241_v31 = vadd.f32 %v5029_v17, %v4778_v1  ;;  %v5249_v5 = vadd.f32 %v5029_v17, %v4786_v16 }
 0x2d4   :  { %6470 = vst [vmem:[#allocation33_spill] sm:$0xff] %v5209_v8  ;;  %6472 = vst [vmem:[#allocation34_spill] sm:$0xff] %v5213_v21  ;;  %v5225_v55 = vadd.f32 %v5029_v17, %v6475_v63  ;;  %v6476_v8 = vld [vmem:[#allocation44_spill] sm:$0xff]  ;;  %v6477_v21 = vld [vmem:[#allocation46_spill] sm:$0xff]  ;;  %v5245_v63 = vadd.f32 %v5029_v17, %v4782_v13  ;;  %v5261_v1 = vadd.f32 %v5029_v17, %v4798_v19 }
 0x2d5   :  { %v5233_v33 = vadd.f32 %v5029_v17, %v6476_v8  ;;  %v5237_v51 = vadd.f32 %v5029_v17, %v6477_v21  ;;  %v5253_v8 = vadd.f32 %v5029_v17, %v4790_v29  ;;  %v5257_v21 = vadd.f32 %v5029_v17, %v4794_v9 }
 0x2d6   :  { %v5265_v13 = vadd.f32 %v5029_v17, %v4802_v49  ;;  %v5269_v16 = vadd.f32 %v5029_v17, %v4806_v35  ;;  %v5273_v29 = vadd.f32 %v5029_v17, %v4810_v34  ;;  %v5277_v9 = vadd.f32 %v5029_v17, %v4814_v37  ;;  %v6565_v61 = vld [vmem:[#allocation25_spill] sm:$0xff] }
 0x2d7   :  { %v5281_v19 = vadd.f32 %v5029_v17, %v4818_v57  ;;  %v5285_v49 = vadd.f32 %v5029_v17, %v4822_v0  ;;  %v5289_v35 = vadd.f32 %v5029_v17, %v4826_v7  ;;  %v5293_v34 = vadd.f32 %v5029_v17, %v4830_v15  ;;  %v6566_v41 = vld [vmem:[#allocation26_spill] sm:$0xff]  ;;  %v6567_v59 = vld [vmem:[#allocation27_spill] sm:$0xff] }
 0x2d8   :  { %v5297_v37 = vadd.f32 %v5029_v17, %v4834_v22  ;;  %v5301_v57 = vadd.f32 %v5029_v17, %v4838_v30  ;;  %v5305_v0 = vadd.f32 %v5029_v17, %v4842_v36  ;;  %v5309_v7 = vadd.f32 %v5029_v17, %v4846_v44  ;;  %v6568_v3 = vld [vmem:[#allocation28_spill] sm:$0xff]  ;;  %v6569_v39 = vld [vmem:[#allocation29_spill] sm:$0xff] }
 0x2d9   :  { %v5313_v15 = vadd.f32 %v5029_v17, %v4850_v50  ;;  %v5317_v22 = vadd.f32 %v5029_v17, %v4854_v58  ;;  %v5321_v30 = vadd.f32 %v5029_v17, %v4858_v2  ;;  %v5325_v36 = vadd.f32 %v5029_v17, %v4862_v12 }
 0x2da   :  { %v5329_v44 = vadd.f32 %v5029_v17, %v4866_v20  ;;  %v5333_v50 = vadd.f32 %v5029_v17, %v4870_v32  ;;  %v5337_v58 = vadd.f32 %v5029_v17, %v4874_v40  ;;  %v5341_v2 = vadd.f32 %v5029_v17, %v4878_v52 }
 0x2db   :  { %6478 = vst [vmem:[#allocation35_spill] sm:$0xff] %v5325_v36  ;;  %v5345_v12 = vadd.f32 %v5029_v17, %v4882_v60  ;;  %v5349_v20 = vadd.f32 %v5029_v17, %v4886_v10  ;;  %v5353_v32 = vadd.f32 %v5029_v17, %v4890_v24  ;;  %v5357_v40 = vadd.f32 %v5029_v17, %v4894_v38  ;;  %v6573_v6 = vld [vmem:[#allocation33_spill] sm:$0xff]  ;;  %v6574_v25 = vld [vmem:[#allocation34_spill] sm:$0xff] }
 0x2dc   :  { %6479 = vst [vmem:[#allocation36_spill] sm:$0xff] %v5329_v44  ;;  %6480 = vst [vmem:[#allocation37_spill] sm:$0xff] %v5333_v50  ;;  %v5361_v52 = vadd.f32 %v5029_v17, %v4898_v48  ;;  %v5365_v60 = vadd.f32 %v5029_v17, %v4902_v4  ;;  %v5369_v10 = vadd.f32 %v5029_v17, %v4906_v18  ;;  %v6609_v50 = vld [vmem:[#allocation59_spill] sm:$0xff]  ;;  %v6631_v36 = vld [vmem:[#allocation5_spill] sm:$0xff] }
 0x2dd   :  { %6481 = vst [vmem:[#allocation38_spill] sm:$0xff] %v5337_v58  ;;  %6482 = vst [vmem:[#allocation39_spill] sm:$0xff] %v5341_v2  ;;  %v5373_v24 = vadd.f32 %v5029_v17, %v4910_v42  ;;  %v5377_v38 = vadd.f32 %v5029_v17, %v4914_v56  ;;  %v5381_v48 = vadd.f32 %v5029_v17, %v4918_v26  ;;  %v6611_v58 = vld [vmem:[#allocation61_spill] sm:$0xff]  ;;  %v6627_v44 = vld [vmem:[#allocation3_spill] sm:$0xff] }
 0x2de   :  { %6483 = vst [vmem:[#allocation40_spill] sm:$0xff] %v5345_v12  ;;  %6484 = vst [vmem:[#allocation41_spill] sm:$0xff] %v5349_v20  ;;  %v5385_v4 = vadd.f32 %v5029_v17, %v4922_v45  ;;  %v5389_v18 = vadd.f32 %v5029_v17, %v4926_v62  ;;  %v5393_v42 = vadd.f32 %v5029_v17, %v4930_v27 }
 0x2df   :  { %6485 = vst [vmem:[#allocation42_spill] sm:$0xff] %v5353_v32  ;;  %6486 = vst [vmem:[#allocation44_spill] sm:$0xff] %v5357_v40  ;;  %v5397_v56 = vadd.f32 %v5029_v17, %v4934_v54  ;;  %v6601_v40 = vld [vmem:[#allocation51_spill] sm:$0xff] }
 0x2e0   :  { %6487 = vst [vmem:[#allocation46_spill] sm:$0xff] %v5361_v52  ;;  %6488 = vst [vmem:[#allocation75_spill] sm:$0xff] %v5365_v60  ;;  %v6617_v32 = vld [vmem:[#allocation67_spill] sm:$0xff]  ;;  %v6619_v60 = vld [vmem:[#allocation69_spill] sm:$0xff] }
 0x2e1   :  { %6489 = vst [vmem:[#allocation76_spill] sm:$0xff] %v5369_v10  ;;  %6490 = vst [vmem:[#allocation77_spill] sm:$0xff] %v5373_v24  ;;  %v6623_v52 = vld [vmem:[#allocation72_spill] sm:$0xff] }
 0x2e2   :  { %6491 = vst [vmem:[#allocation78_spill] sm:$0xff] %v5377_v38  ;;  %6492 = vst [vmem:[#allocation79_spill] sm:$0xff] %v5381_v48  ;;  %v6497_v38 = vld [vmem:[#allocation48_spill] sm:$0xff]  ;;  %v6499_v48 = vld [vmem:[#allocation50_spill] sm:$0xff] }
 0x2e3   :  { %6493 = vst [vmem:[#allocation80_spill] sm:$0xff] %v5385_v4  ;;  %6494 = vst [vmem:[#allocation81_spill] sm:$0xff] %v5389_v18  ;;  %v5401_v26 = vadd.f32 %v5029_v17, %v6497_v38  ;;  %v5405_v45 = vadd.f32 %v5029_v17, %v6499_v48  ;;  %v6501_v4 = vld [vmem:[#allocation52_spill] sm:$0xff]  ;;  %v6503_v18 = vld [vmem:[#allocation54_spill] sm:$0xff] }
 0x2e4   :  { %6495 = vst [vmem:[#allocation82_spill] sm:$0xff] %v5393_v42  ;;  %6496 = vst [vmem:[#allocation83_spill] sm:$0xff] %v5397_v56  ;;  %v5409_v62 = vadd.f32 %v5029_v17, %v6501_v4  ;;  %v5413_v27 = vadd.f32 %v5029_v17, %v6503_v18  ;;  %v6505_v42 = vld [vmem:[#allocation56_spill] sm:$0xff]  ;;  %v6507_v56 = vld [vmem:[#allocation58_spill] sm:$0xff] }
 0x2e5   :  { %6498 = vst [vmem:[#allocation48_spill] sm:$0xff] %v5401_v26  ;;  %6500 = vst [vmem:[#allocation50_spill] sm:$0xff] %v5405_v45  ;;  %v5417_v54 = vadd.f32 %v5029_v17, %v6505_v42  ;;  %v5421_v38 = vadd.f32 %v5029_v17, %v6507_v56  ;;  %v6509_v26 = vld [vmem:[#allocation60_spill] sm:$0xff]  ;;  %v6511_v45 = vld [vmem:[#allocation62_spill] sm:$0xff] }
 0x2e6   :  { %6502 = vst [vmem:[#allocation52_spill] sm:$0xff] %v5409_v62  ;;  %6504 = vst [vmem:[#allocation54_spill] sm:$0xff] %v5413_v27  ;;  %v5425_v48 = vadd.f32 %v5029_v17, %v6509_v26  ;;  %v5429_v4 = vadd.f32 %v5029_v17, %v6511_v45  ;;  %v6513_v62 = vld [vmem:[#allocation64_spill] sm:$0xff]  ;;  %v6515_v27 = vld [vmem:[#allocation66_spill] sm:$0xff] }
 0x2e7   :  { %6506 = vst [vmem:[#allocation56_spill] sm:$0xff] %v5417_v54  ;;  %6508 = vst [vmem:[#allocation58_spill] sm:$0xff] %v5421_v38  ;;  %v5433_v18 = vadd.f32 %v5029_v17, %v6513_v62  ;;  %v5437_v42 = vadd.f32 %v5029_v17, %v6515_v27  ;;  %v6517_v54 = vld [vmem:[#allocation68_spill] sm:$0xff]  ;;  %v6519_v38 = vld [vmem:[#allocation70_spill] sm:$0xff] }
 0x2e8   :  { %6510 = vst [vmem:[#allocation60_spill] sm:$0xff] %v5425_v48  ;;  %6512 = vst [vmem:[#allocation62_spill] sm:$0xff] %v5429_v4  ;;  %v5441_v56 = vadd.f32 %v5029_v17, %v6517_v54  ;;  %v5445_v26 = vadd.f32 %v5029_v17, %v6519_v38  ;;  %v6521_v48 = vld [vmem:[#allocation73_spill] sm:$0xff]  ;;  %v6523_v4 = vld [vmem:[#allocation74_spill] sm:$0xff] }
 0x2e9   :  { %6514 = vst [vmem:[#allocation64_spill] sm:$0xff] %v5433_v18  ;;  %6516 = vst [vmem:[#allocation66_spill] sm:$0xff] %v5437_v42  ;;  %v5449_v45 = vadd.f32 %v5029_v17, %v6521_v48  ;;  %v5453_v62 = vadd.f32 %v5029_v17, %v6523_v4  ;;  %v6525_v18 = vld [vmem:[#allocation43_spill] sm:$0xff]  ;;  %v6527_v42 = vld [vmem:[#allocation45_spill] sm:$0xff]  ;;  %v5473_v4 = vadd.f32 %v5029_v17, %v5010_v28 }
 0x2ea   :  { %6518 = vst [vmem:[#allocation68_spill] sm:$0xff] %v5441_v56  ;;  %6520 = vst [vmem:[#allocation70_spill] sm:$0xff] %v5445_v26  ;;  %v5457_v27 = vadd.f32 %v5029_v17, %v6525_v18  ;;  %v5461_v54 = vadd.f32 %v5029_v17, %v6527_v42  ;;  %v6529_v56 = vld [vmem:[#allocation47_spill] sm:$0xff]  ;;  %v6531_v26 = vld [vmem:[#allocation49_spill] sm:$0xff]  ;;  %v5477_v18 = vadd.f32 %v5029_v17, %v5014_v47 }
 0x2eb   :  { %6522 = vst [vmem:[#allocation73_spill] sm:$0xff] %v5449_v45  ;;  %6524 = vst [vmem:[#allocation74_spill] sm:$0xff] %v5453_v62  ;;  %v5465_v38 = vadd.f32 %v5029_v17, %v6529_v56  ;;  %v5469_v48 = vadd.f32 %v5029_v17, %v6531_v26  ;;  %v5481_v42 = vadd.f32 %v5029_v17, %v5018_v53  ;;  %v6570_v53 = vld [vmem:[#allocation30_spill] sm:$0xff]  ;;  %v6603_v45 = vld [vmem:[#allocation53_spill] sm:$0xff] }
 0x2ec   :  { %6526 = vst [vmem:[#allocation43_spill] sm:$0xff] %v5457_v27  ;;  %6528 = vst [vmem:[#allocation45_spill] sm:$0xff] %v5461_v54  ;;  %v5485_v56 = vadd.f32 %v5029_v17, %v5022_v23  ;;  %v6571_v54 = vld [vmem:[#allocation31_spill] sm:$0xff]  ;;  %v6572_v17 = vld [vmem:[#allocation32_spill] sm:$0xff]  ;;  %v6604_v47 = vmax.f32 %v6603_v45, 0.0  ;;  %v6610_v23 = vmax.f32 %v6609_v50, 0.0 }
 0x2ed   :  { %6530 = vst [vmem:[#allocation47_spill] sm:$0xff] %v5465_v38  ;;  %6532 = vst [vmem:[#allocation49_spill] sm:$0xff] %v5469_v48  ;;  %v6612_v38 = vmax.f32 %v6611_v58, 0.0  ;;  %v6613_v26 = vld [vmem:[#allocation63_spill] sm:$0xff]  ;;  %v6615_v48 = vld [vmem:[#allocation65_spill] sm:$0xff]  ;;  %v6620_v45 = vmax.f32 %v6619_v60, 0.0 }
 0x2ee   :  { %6533 = vst [vmem:[#allocation84_spill] sm:$0xff] %v5473_v4  ;;  %6534 = vst [vmem:[#allocation85_spill] sm:$0xff] %v5477_v18  ;;  %v6602_v4 = vmax.f32 %v6601_v40, 0.0  ;;  %v6605_v18 = vld [vmem:[#allocation55_spill] sm:$0xff]  ;;  %v6614_v12 = vmax.f32 %v6613_v26, 0.0  ;;  %v6616_v20 = vmax.f32 %v6615_v48, 0.0 }
 0x2ef   :  { %6535 = vst [vmem:[#allocation86_spill] sm:$0xff] %v5481_v42  ;;  %6536 = vst [vmem:[#allocation87_spill] sm:$0xff] %v5485_v56  ;;  %v6562_v56 = vld [vmem:[#allocation22_spill] sm:$0xff]  ;;  %v6606_v10 = vmax.f32 %v6605_v18, 0.0  ;;  %v6607_v42 = vld [vmem:[#allocation57_spill] sm:$0xff]  ;;  %v2981_v2 = vpack.c.bf16 %v6612_v38, %v6610_v23  ;;  %v6618_v40 = vmax.f32 %v6617_v32, 0.0 }
 0x2f0   :  { %v2971_v62 = vpack.c.bf16 %v6604_v47, %v6602_v4  ;;  %v6608_v24 = vmax.f32 %v6607_v42, 0.0  ;;  %v2986_v28 = vpack.c.bf16 %v6616_v20, %v6614_v12  ;;  %v6621_v47 = vld [vmem:[#allocation71_spill] sm:$0xff]  ;;  %v6624_v42 = vmax.f32 %v6623_v52, 0.0  ;;  %v6629_v23 = vld [vmem:[#allocation4_spill] sm:$0xff] }
 0x2f1   :  { %v2991_v4 = vpack.c.bf16 %v6620_v45, %v6618_v40  ;;  %v6622_v18 = vmax.f32 %v6621_v47, 0.0  ;;  %v6628_v58 = vmax.f32 %v6627_v44, 0.0  ;;  %v6630_v26 = vmax.f32 %v6629_v23, 0.0  ;;  %3254 = vst [vmem:[%s6004_s4 + $0x10] sm:$0xff] %v2981_v2   ;;  %v6633_v44 = vld [vmem:[#allocation6_spill] sm:$0xff]  ;;  %v6637_v60 = vld [vmem:[#allocation8_spill] sm:$0xff] }
 0x2f2   :  { %v2976_v27 = vpack.c.bf16 %v6608_v24, %v6606_v10  ;;  %v6625_v24 = vld [vmem:[#allocation2_spill] sm:$0xff]  ;;  %v6632_v48 = vmax.f32 %v6631_v36, 0.0  ;;  %2972 = vst [vmem:[%s6004_s4] sm:$0xff] %v2971_v62   ;;  %3255 = vst [vmem:[%s6004_s4 + $0x18] sm:$0xff] %v2986_v28   ;;  %v6634_v20 = vmax.f32 %v6633_v44, 0.0  ;;  %v6635_v36 = vld [vmem:[#allocation7_spill] sm:$0xff]  ;;  %v6638_v40 = vmax.f32 %v6637_v60, 0.0 }
 0x2f3   :  { %v2996_v10 = vpack.c.bf16 %v6624_v42, %v6622_v18  ;;  %v6626_v50 = vmax.f32 %v6625_v24, 0.0  ;;  %v6636_v32 = vmax.f32 %v6635_v36, 0.0  ;;  %v6639_v62 = vld [vmem:[#allocation9_spill] sm:$0xff]  ;;  %v6641_v18 = vld [vmem:[#allocation10_spill] sm:$0xff]  ;;  %v6643_v42 = vld [vmem:[#allocation11_spill] sm:$0xff]  ;;  %3256 = vst [vmem:[%s6004_s4 + $0x20] sm:$0xff] %v2991_v4  }
 0x2f4   :  { %v3006_v12 = vpack.c.bf16 %v6632_v48, %v6630_v26  ;;  %3253 = vst [vmem:[%s6004_s4 + $0x8] sm:$0xff] %v2976_v27   ;;  %v6640_v45 = vmax.f32 %v6639_v62, 0.0  ;;  %v6642_v27 = vmax.f32 %v6641_v18, 0.0  ;;  %v6644_v24 = vmax.f32 %v6643_v42, 0.0  ;;  %v6645_v2 = vld [vmem:[#allocation12_spill] sm:$0xff]  ;;  %v6647_v23 = vld [vmem:[#allocation13_spill] sm:$0xff] }
 0x2f5   :  { %v3001_v38 = vpack.c.bf16 %v6628_v58, %v6626_v50  ;;  %v3011_v52 = vpack.c.bf16 %v6636_v32, %v6634_v20  ;;  %v6646_v58 = vmax.f32 %v6645_v2, 0.0  ;;  %v6648_v26 = vmax.f32 %v6647_v23, 0.0  ;;  %3257 = vst [vmem:[%s6004_s4 + $0x28] sm:$0xff] %v2996_v10   ;;  %v6649_v48 = vld [vmem:[#allocation14_spill] sm:$0xff]  ;;  %v6651_v20 = vld [vmem:[#allocation15_spill] sm:$0xff]  ;;  %v6653_v60 = vld [vmem:[#allocation16_spill] sm:$0xff] }
 0x2f6   :  { %v3016_v47 = vpack.c.bf16 %v6640_v45, %v6638_v40  ;;  %v3021_v50 = vpack.c.bf16 %v6644_v24, %v6642_v27  ;;  %3259 = vst [vmem:[%s6004_s4 + $0x38] sm:$0xff] %v3006_v12   ;;  %v6650_v44 = vmax.f32 %v6649_v48, 0.0  ;;  %v6652_v36 = vmax.f32 %v6651_v20, 0.0  ;;  %v6655_v4 = vld [vmem:[#allocation17_spill] sm:$0xff]  ;;  %v6657_v18 = vld [vmem:[#allocation18_spill] sm:$0xff]  ;;  %v6659_v27 = vld [vmem:[#allocation19_spill] sm:$0xff] }
 0x2f7   :  { %v3026_v28 = vpack.c.bf16 %v6648_v26, %v6646_v58  ;;  %3258 = vst [vmem:[%s6004_s4 + $0x30] sm:$0xff] %v3001_v38   ;;  %v6654_v40 = vmax.f32 %v6653_v60, 0.0  ;;  %v6656_v62 = vmax.f32 %v6655_v4, 0.0  ;;  %v6658_v10 = vmax.f32 %v6657_v18, 0.0  ;;  %v6661_v38 = vld [vmem:[#allocation20_spill] sm:$0xff]  ;;  %v6663_v58 = vld [vmem:[#allocation21_spill] sm:$0xff] }
 0x2f8   :  { %v3031_v32 = vpack.c.bf16 %v6652_v36, %v6650_v44  ;;  %v6660_v42 = vmax.f32 %v6659_v27, 0.0  ;;  %v6662_v2 = vmax.f32 %v6661_v38, 0.0  ;;  %v6664_v23 = vmax.f32 %v6663_v58, 0.0  ;;  %3260 = vst [vmem:[%s6004_s4 + $0x40] sm:$0xff] %v3011_v52   ;;  %3261 = vst [vmem:[%s6004_s4 + $0x48] sm:$0xff] %v3016_v47   ;;  %v6666_v48 = vld [vmem:[#allocation23_spill] sm:$0xff] }
 0x2f9   :  { %v3036_v45 = vpack.c.bf16 %v6656_v62, %v6654_v40  ;;  %3262 = vst [vmem:[%s6004_s4 + $0x50] sm:$0xff] %v3021_v50   ;;  %3263 = vst [vmem:[%s6004_s4 + $0x58] sm:$0xff] %v3026_v28   ;;  %v6665_v26 = vmax.f32 %v6562_v56, 0.0  ;;  %v6667_v44 = vmax.f32 %v6666_v48, 0.0  ;;  %v6668_v36 = vld [vmem:[#allocation24_spill] sm:$0xff]  ;;  %v6670_v52 = vmax.f32 %v6565_v61, 0.0 }
 0x2fa   :  { %v3041_v24 = vpack.c.bf16 %v6660_v42, %v6658_v10  ;;  %v3046_v12 = vpack.c.bf16 %v6664_v23, %v6662_v2  ;;  %v6669_v60 = vmax.f32 %v6668_v36, 0.0  ;;  %v6671_v47 = vmax.f32 %v6566_v41, 0.0  ;;  %3264 = vst [vmem:[%s6004_s4 + $0x60] sm:$0xff] %v3031_v32  }
 0x2fb   :  { %v3051_v20 = vpack.c.bf16 %v6667_v44, %v6665_v26  ;;  %v6672_v4 = vmax.f32 %v6567_v59, 0.0  ;;  %v6673_v50 = vmax.f32 %v6568_v3, 0.0  ;;  %v6674_v18 = vmax.f32 %v6569_v39, 0.0  ;;  %3265 = vst [vmem:[%s6004_s4 + $0x68] sm:$0xff] %v3036_v45  }
 0x2fc   :  { %v3056_v40 = vpack.c.bf16 %v6670_v52, %v6669_v60  ;;  %3266 = vst [vmem:[%s6004_s4 + $0x70] sm:$0xff] %v3041_v24   ;;  %3267 = vst [vmem:[%s6004_s4 + $0x78] sm:$0xff] %v3046_v12   ;;  %v6675_v61 = vmax.f32 %v6570_v53, 0.0  ;;  %v6676_v41 = vmax.f32 %v6571_v54, 0.0  ;;  %v6677_v3 = vmax.f32 %v6572_v17, 0.0 }
 0x2fd   :  { %v3061_v62 = vpack.c.bf16 %v6672_v4, %v6671_v47  ;;  %v3066_v28 = vpack.c.bf16 %v6674_v18, %v6673_v50  ;;  %v6678_v39 = vmax.f32 %v5205_v14, 0.0  ;;  %v6679_v32 = vmax.f32 %v6573_v6, 0.0  ;;  %3268 = vst [vmem:[%s6004_s4 + $0x80] sm:$0xff] %v3051_v20   ;;  %v6714_v47 = vld [vmem:[#allocation38_spill] sm:$0xff] }
 0x2fe   :  { %v3071_v59 = vpack.c.bf16 %v6676_v41, %v6675_v61  ;;  %v6680_v45 = vmax.f32 %v6574_v25, 0.0  ;;  %v6681_v27 = vmax.f32 %v5217_v43, 0.0  ;;  %v6682_v42 = vmax.f32 %v5221_v11, 0.0  ;;  %3269 = vst [vmem:[%s6004_s4 + $0x88] sm:$0xff] %v3056_v40   ;;  %v6720_v41 = vld [vmem:[#allocation41_spill] sm:$0xff] }
 0x2ff   :  { %v3076_v56 = vpack.c.bf16 %v6678_v39, %v6677_v3  ;;  %3270 = vst [vmem:[%s6004_s4 + $0x90] sm:$0xff] %v3061_v62   ;;  %3271 = vst [vmem:[%s6004_s4 + $0x98] sm:$0xff] %v3066_v28   ;;  %v6683_v6 = vmax.f32 %v5225_v55, 0.0  ;;  %v6684_v25 = vmax.f32 %v5229_v46, 0.0  ;;  %v6685_v43 = vmax.f32 %v5233_v33, 0.0  ;;  %v6716_v62 = vld [vmem:[#allocation39_spill] sm:$0xff] }
 0x300   :  { %v3081_v10 = vpack.c.bf16 %v6680_v45, %v6679_v32  ;;  %v3086_v24 = vpack.c.bf16 %v6682_v42, %v6681_v27  ;;  %v6686_v11 = vmax.f32 %v5237_v51, 0.0  ;;  %v6687_v53 = vmax.f32 %v5241_v31, 0.0  ;;  %3272 = vst [vmem:[%s6004_s4 + $0xa0] sm:$0xff] %v3071_v59   ;;  %v6718_v28 = vld [vmem:[#allocation40_spill] sm:$0xff]  ;;  %v6728_v42 = vld [vmem:[#allocation75_spill] sm:$0xff] }
 0x301   :  { %v3091_v14 = vpack.c.bf16 %v6684_v25, %v6683_v6  ;;  %v6688_v17 = vmax.f32 %v5245_v63, 0.0  ;;  %v6689_v2 = vmax.f32 %v5249_v5, 0.0  ;;  %v6690_v58 = vmax.f32 %v5253_v8, 0.0  ;;  %3273 = vst [vmem:[%s6004_s4 + $0xa8] sm:$0xff] %v3076_v56   ;;  %v6724_v56 = vld [vmem:[#allocation44_spill] sm:$0xff] }
 0x302   :  { %v3096_v54 = vpack.c.bf16 %v6686_v11, %v6685_v43  ;;  %3274 = vst [vmem:[%s6004_s4 + $0xb0] sm:$0xff] %v3081_v10   ;;  %3275 = vst [vmem:[%s6004_s4 + $0xb8] sm:$0xff] %v3086_v24   ;;  %v6691_v55 = vmax.f32 %v5257_v21, 0.0  ;;  %v6692_v46 = vmax.f32 %v5261_v1, 0.0  ;;  %v6693_v51 = vmax.f32 %v5265_v13, 0.0  ;;  %v6726_v10 = vld [vmem:[#allocation46_spill] sm:$0xff] }
 0x303   :  { %v3101_v38 = vpack.c.bf16 %v6688_v17, %v6687_v53  ;;  %v3106_v23 = vpack.c.bf16 %v6690_v58, %v6689_v2  ;;  %v6694_v31 = vmax.f32 %v5269_v16, 0.0  ;;  %v6695_v5 = vmax.f32 %v5273_v29, 0.0  ;;  %3276 = vst [vmem:[%s6004_s4 + $0xc0] sm:$0xff] %v3091_v14   ;;  %v6730_v25 = vld [vmem:[#allocation76_spill] sm:$0xff]  ;;  %v6732_v43 = vld [vmem:[#allocation77_spill] sm:$0xff]  ;;  %v6734_v53 = vld [vmem:[#allocation78_spill] sm:$0xff] }
 0x304   :  { %v3111_v33 = vpack.c.bf16 %v6692_v46, %v6691_v55  ;;  %v6696_v8 = vmax.f32 %v5277_v9, 0.0  ;;  %v6697_v26 = vmax.f32 %v5281_v19, 0.0  ;;  %v6698_v48 = vmax.f32 %v5285_v49, 0.0  ;;  %3277 = vst [vmem:[%s6004_s4 + $0xc8] sm:$0xff] %v3096_v54   ;;  %v6740_v46 = vld [vmem:[#allocation81_spill] sm:$0xff] }
 0x305   :  { %v3116_v63 = vpack.c.bf16 %v6694_v31, %v6693_v51  ;;  %3278 = vst [vmem:[%s6004_s4 + $0xd0] sm:$0xff] %v3101_v38   ;;  %3279 = vst [vmem:[%s6004_s4 + $0xd8] sm:$0xff] %v3106_v23   ;;  %v6699_v21 = vmax.f32 %v5289_v35, 0.0  ;;  %v6700_v1 = vmax.f32 %v5293_v34, 0.0  ;;  %v6701_v16 = vmax.f32 %v5297_v37, 0.0  ;;  %v6708_v34 = vld [vmem:[#allocation35_spill] sm:$0xff] }
 0x306   :  { %v3121_v12 = vpack.c.bf16 %v6696_v8, %v6695_v5  ;;  %v3126_v44 = vpack.c.bf16 %v6698_v48, %v6697_v26  ;;  %v6702_v29 = vmax.f32 %v5301_v57, 0.0  ;;  %v6703_v19 = vmax.f32 %v5305_v0, 0.0  ;;  %3280 = vst [vmem:[%s6004_s4 + $0xe0] sm:$0xff] %v3111_v33   ;;  %v6710_v0 = vld [vmem:[#allocation36_spill] sm:$0xff]  ;;  %v6736_v38 = vld [vmem:[#allocation79_spill] sm:$0xff]  ;;  %v6742_v31 = vld [vmem:[#allocation82_spill] sm:$0xff] }
 0x307   :  { %v3131_v13 = vpack.c.bf16 %v6700_v1, %v6699_v21  ;;  %v6704_v49 = vmax.f32 %v5309_v7, 0.0  ;;  %v6705_v36 = vmax.f32 %v5313_v15, 0.0  ;;  %v6706_v60 = vmax.f32 %v5317_v22, 0.0  ;;  %3281 = vst [vmem:[%s6004_s4 + $0xe8] sm:$0xff] %v3116_v63   ;;  %v6712_v15 = vld [vmem:[#allocation37_spill] sm:$0xff]  ;;  %v6738_v23 = vld [vmem:[#allocation80_spill] sm:$0xff] }
 0x308   :  { %v3136_v9 = vpack.c.bf16 %v6702_v29, %v6701_v16  ;;  %3282 = vst [vmem:[%s6004_s4 + $0xf0] sm:$0xff] %v3121_v12   ;;  %3283 = vst [vmem:[%s6004_s4 + $0xf8] sm:$0xff] %v3126_v44   ;;  %v6707_v35 = vmax.f32 %v5321_v30, 0.0  ;;  %v6709_v37 = vmax.f32 %v6708_v34, 0.0  ;;  %v6711_v7 = vmax.f32 %v6710_v0, 0.0  ;;  %v6722_v30 = vld [vmem:[#allocation42_spill] sm:$0xff] }
 0x309   :  { %v3141_v20 = vpack.c.bf16 %v6704_v49, %v6703_v19  ;;  %v3146_v52 = vpack.c.bf16 %v6706_v60, %v6705_v36  ;;  %v6713_v22 = vmax.f32 %v6712_v15, 0.0  ;;  %v6715_v4 = vmax.f32 %v6714_v47, 0.0  ;;  %3284 = vst [vmem:[%s6004_s4 + $0x100] sm:$0xff] %v3131_v13   ;;  %v6744_v5 = vld [vmem:[#allocation83_spill] sm:$0xff]  ;;  %v6746_v26 = vld [vmem:[#allocation48_spill] sm:$0xff]  ;;  %v6748_v44 = vld [vmem:[#allocation50_spill] sm:$0xff] }
 0x30a   :  { %v3151_v57 = vpack.c.bf16 %v6709_v37, %v6707_v35  ;;  %v6717_v50 = vmax.f32 %v6716_v62, 0.0  ;;  %v6719_v61 = vmax.f32 %v6718_v28, 0.0  ;;  %v6721_v59 = vmax.f32 %v6720_v41, 0.0  ;;  %3285 = vst [vmem:[%s6004_s4 + $0x108] sm:$0xff] %v3136_v9   ;;  %v6750_v13 = vld [vmem:[#allocation52_spill] sm:$0xff]  ;;  %v6752_v29 = vld [vmem:[#allocation54_spill] sm:$0xff] }
 0x30b   :  { %v3156_v40 = vpack.c.bf16 %v6713_v22, %v6711_v7  ;;  %3286 = vst [vmem:[%s6004_s4 + $0x110] sm:$0xff] %v3141_v20   ;;  %3287 = vst [vmem:[%s6004_s4 + $0x118] sm:$0xff] %v3146_v52   ;;  %v6723_v39 = vmax.f32 %v6722_v30, 0.0  ;;  %v6725_v32 = vmax.f32 %v6724_v56, 0.0  ;;  %v6727_v27 = vmax.f32 %v6726_v10, 0.0  ;;  %v6754_v49 = vld [vmem:[#allocation56_spill] sm:$0xff] }
 0x30c   :  { %v3161_v18 = vpack.c.bf16 %v6717_v50, %v6715_v4  ;;  %v3166_v3 = vpack.c.bf16 %v6721_v59, %v6719_v61  ;;  %v6729_v24 = vmax.f32 %v6728_v42, 0.0  ;;  %v6731_v14 = vmax.f32 %v6730_v25, 0.0  ;;  %3288 = vst [vmem:[%s6004_s4 + $0x120] sm:$0xff] %v3151_v57   ;;  %v6756_v36 = vld [vmem:[#allocation58_spill] sm:$0xff]  ;;  %v6758_v35 = vld [vmem:[#allocation60_spill] sm:$0xff]  ;;  %v6770_v61 = vld [vmem:[#allocation73_spill] sm:$0xff] }
 0x30d   :  { %v3171_v45 = vpack.c.bf16 %v6725_v32, %v6723_v39  ;;  %v6733_v11 = vmax.f32 %v6732_v43, 0.0  ;;  %v6735_v17 = vmax.f32 %v6734_v53, 0.0  ;;  %v6737_v2 = vmax.f32 %v6736_v38, 0.0  ;;  %3289 = vst [vmem:[%s6004_s4 + $0x128] sm:$0xff] %v3156_v40   ;;  %v6760_v37 = vld [vmem:[#allocation62_spill] sm:$0xff]  ;;  %v6762_v7 = vld [vmem:[#allocation64_spill] sm:$0xff] }
 0x30e   :  { %v3176_v6 = vpack.c.bf16 %v6729_v24, %v6727_v27  ;;  %3290 = vst [vmem:[%s6004_s4 + $0x130] sm:$0xff] %v3161_v18   ;;  %3291 = vst [vmem:[%s6004_s4 + $0x138] sm:$0xff] %v3166_v3   ;;  %v6739_v55 = vmax.f32 %v6738_v23, 0.0  ;;  %v6741_v33 = vmax.f32 %v6740_v46, 0.0  ;;  %v6743_v63 = vmax.f32 %v6742_v31, 0.0  ;;  %v6764_v22 = vld [vmem:[#allocation66_spill] sm:$0xff] }
 0x30f   :  { %v3181_v54 = vpack.c.bf16 %v6733_v11, %v6731_v14  ;;  %v3186_v58 = vpack.c.bf16 %v6737_v2, %v6735_v17  ;;  %v6745_v8 = vmax.f32 %v6744_v5, 0.0  ;;  %v6747_v48 = vmax.f32 %v6746_v26, 0.0  ;;  %3292 = vst [vmem:[%s6004_s4 + $0x140] sm:$0xff] %v3171_v45   ;;  %v6766_v4 = vld [vmem:[#allocation68_spill] sm:$0xff]  ;;  %v6768_v50 = vld [vmem:[#allocation70_spill] sm:$0xff]  ;;  %v6774_v39 = vld [vmem:[#allocation43_spill] sm:$0xff] }
 0x310   :  { %v3191_v51 = vpack.c.bf16 %v6741_v33, %v6739_v55  ;;  %v6749_v21 = vmax.f32 %v6748_v44, 0.0  ;;  %v6751_v16 = vmax.f32 %v6750_v13, 0.0  ;;  %v6753_v9 = vmax.f32 %v6752_v29, 0.0  ;;  %3293 = vst [vmem:[%s6004_s4 + $0x148] sm:$0xff] %v3176_v6   ;;  %v6772_v59 = vld [vmem:[#allocation74_spill] sm:$0xff]  ;;  %v6776_v32 = vld [vmem:[#allocation45_spill] sm:$0xff] }
 0x311   :  { %v3196_v12 = vpack.c.bf16 %v6745_v8, %v6743_v63  ;;  %3294 = vst [vmem:[%s6004_s4 + $0x150] sm:$0xff] %v3181_v54   ;;  %3295 = vst [vmem:[%s6004_s4 + $0x158] sm:$0xff] %v3186_v58   ;;  %v6755_v20 = vmax.f32 %v6754_v49, 0.0  ;;  %v6757_v60 = vmax.f32 %v6756_v36, 0.0  ;;  %v6759_v34 = vmax.f32 %v6758_v35, 0.0  ;;  %v6778_v27 = vld [vmem:[#allocation47_spill] sm:$0xff] }
 0x312   :  { %v3201_v1 = vpack.c.bf16 %v6749_v21, %v6747_v48  ;;  %v3206_v19 = vpack.c.bf16 %v6753_v9, %v6751_v16  ;;  %v6761_v57 = vmax.f32 %v6760_v37, 0.0  ;;  %v6763_v15 = vmax.f32 %v6762_v7, 0.0  ;;  %3296 = vst [vmem:[%s6004_s4 + $0x160] sm:$0xff] %v3191_v51   ;;  %v6780_v24 = vld [vmem:[#allocation49_spill] sm:$0xff]  ;;  %v6782_v14 = vld [vmem:[#allocation84_spill] sm:$0xff]  ;;  %v6786_v17 = vld [vmem:[#allocation86_spill] sm:$0xff] }
 0x313   :  { %v3211_v52 = vpack.c.bf16 %v6757_v60, %v6755_v20  ;;  %v6765_v40 = vmax.f32 %v6764_v22, 0.0  ;;  %v6767_v62 = vmax.f32 %v6766_v4, 0.0  ;;  %v6769_v18 = vmax.f32 %v6768_v50, 0.0  ;;  %3297 = vst [vmem:[%s6004_s4 + $0x168] sm:$0xff] %v3196_v12   ;;  %v6784_v11 = vld [vmem:[#allocation85_spill] sm:$0xff]  ;;  %v6788_v2 = vld [vmem:[#allocation87_spill] sm:$0xff] }
 0x314   :  { %v3216_v0 = vpack.c.bf16 %v6761_v57, %v6759_v34  ;;  %3298 = vst [vmem:[%s6004_s4 + $0x170] sm:$0xff] %v3201_v1   ;;  %3299 = vst [vmem:[%s6004_s4 + $0x178] sm:$0xff] %v3206_v19   ;;  %v6771_v41 = vmax.f32 %v6770_v61, 0.0  ;;  %v6773_v3 = vmax.f32 %v6772_v59, 0.0  ;;  %v6775_v56 = vmax.f32 %v6774_v39, 0.0 }
 0x315   :  { %v3221_v47 = vpack.c.bf16 %v6765_v40, %v6763_v15  ;;  %v3226_v28 = vpack.c.bf16 %v6769_v18, %v6767_v62  ;;  %v6777_v45 = vmax.f32 %v6776_v32, 0.0  ;;  %v6779_v42 = vmax.f32 %v6778_v27, 0.0  ;;  %3300 = vst [vmem:[%s6004_s4 + $0x180] sm:$0xff] %v3211_v52  }
 0x316   :  { %v3231_v30 = vpack.c.bf16 %v6773_v3, %v6771_v41  ;;  %v6781_v6 = vmax.f32 %v6780_v24, 0.0  ;;  %v6783_v43 = vmax.f32 %v6782_v14, 0.0  ;;  %v6785_v54 = vmax.f32 %v6784_v11, 0.0  ;;  %3301 = vst [vmem:[%s6004_s4 + $0x188] sm:$0xff] %v3216_v0  }
 0x317   :  { %v3236_v10 = vpack.c.bf16 %v6777_v45, %v6775_v56  ;;  %3302 = vst [vmem:[%s6004_s4 + $0x190] sm:$0xff] %v3221_v47   ;;  %3303 = vst [vmem:[%s6004_s4 + $0x198] sm:$0xff] %v3226_v28   ;;  %v6787_v38 = vmax.f32 %v6786_v17, 0.0  ;;  %v6789_v58 = vmax.f32 %v6788_v2, 0.0 }
 0x318   :  { %v3241_v25 = vpack.c.bf16 %v6781_v6, %v6779_v42  ;;  %v3246_v53 = vpack.c.bf16 %v6785_v54, %v6783_v43  ;;  %3304 = vst [vmem:[%s6004_s4 + $0x1a0] sm:$0xff] %v3231_v30  }
 0x319   :  { %v3251_v23 = vpack.c.bf16 %v6789_v58, %v6787_v38  ;;  %3305 = vst [vmem:[%s6004_s4 + $0x1a8] sm:$0xff] %v3236_v10  }
 0x31a   :  { %3306 = vst [vmem:[%s6004_s4 + $0x1b0] sm:$0xff] %v3241_v25   ;;  %3307 = vst [vmem:[%s6004_s4 + $0x1b8] sm:$0xff] %v3246_v53  }
 0x31b   :  { %3308 = vst [vmem:[%s6004_s4 + $0x1c0] sm:$0xff] %v3251_v23  }

// kernel: mhcnn_forward.7
= control target key start
LH: loop header
LB: loop body
LE: loop exit
PB: predicated region body
PF: predicated region fallthrough
CT: control target
= control target key end

     0   :  { %s2053_s1 = inlined_call_operand.vmem [shape: bf16[384,128], index: 1, kind: input, shape index: {}]   ;;  %s2054_s0 = inlined_call_operand.vmem [shape: bf16[224,384], index: 0, kind: input, shape index: {}]   ;;  %s2055_s2 = inlined_call_operand.vmem [shape: f32[1,128], index: 2, kind: input, shape index: {}]   ;;  %s2056_s3 = inlined_call_operand.vmem [shape: f32[1,128], index: 3, kind: input, shape index: {}]   ;;  %s2057_s4 = inlined_call_operand.vmem [shape: bf16[224,128], index: 4, kind: output, shape index: {}]  }
   0x1   :  { %v1496_v0 = vld [vmem:[%s2053_s1 + $0x40] sm:$0xff]   ;;  %v1499_v3 = vld [vmem:[%s2053_s1 + $0x48] sm:$0xff]   ;;  %v1502_v6 = vld [vmem:[%s2053_s1 + $0x50] sm:$0xff]  }
   0x2   :  { %v1497_v1 = vld [vmem:[%s2053_s1] sm:$0xff]   ;;  %1330 = vmatprep.subr.bf16.mxu0 %v1496_v0  ;;  %v1500_v4 = vld [vmem:[%s2053_s1 + $0x8] sm:$0xff]   ;;  %v1503_v7 = vld [vmem:[%s2053_s1 + $0x10] sm:$0xff]  }
   0x3   :  { %v1498_v2 = vld [vmem:[%s2053_s1 + $0x80] sm:$0xff]   ;;  %1331 = vmatpush3.bf16.msra.mxu0 %v1497_v1  ;;  %v1501_v5 = vld [vmem:[%s2053_s1 + $0x88] sm:$0xff]   ;;  %v1504_v8 = vld [vmem:[%s2053_s1 + $0x90] sm:$0xff]  }
   0x4   :  { %1452 = vmatprep.subr.bf16.mxu1 %v1498_v2  ;;  %1332 = vmatprep.subr.bf16.mxu0 %v1499_v3  ;;  %v1505_v9 = vld [vmem:[%s2053_s1 + $0x58] sm:$0xff]   ;;  %v1508_v12 = vld [vmem:[%s2053_s1 + $0x60] sm:$0xff]   ;;  %v1511_v15 = vld [vmem:[%s2053_s1 + $0x68] sm:$0xff]  }
   0x5   :  { %1453 = vmatpush3.bf16.msra.mxu1 %v1498_v2  ;;  %v1506_v10 = vld [vmem:[%s2053_s1 + $0x18] sm:$0xff]   ;;  %v1510_v13 = vld [vmem:[%s2053_s1 + $0xa0] sm:$0xff]   ;;  %v1513_v16 = vld [vmem:[%s2053_s1 + $0xa8] sm:$0xff]  }
   0x6   :  { %1454 = vmatprep.subr.bf16.mxu1 %v1501_v5  ;;  %v1507_v11 = vld [vmem:[%s2053_s1 + $0x98] sm:$0xff]   ;;  %v1509_v14 = vld [vmem:[%s2053_s1 + $0x20] sm:$0xff]   ;;  %v1512_v17 = vld [vmem:[%s2053_s1 + $0x28] sm:$0xff]  }
   0x7   :  { %1333 = vmatpush3.bf16.msra.mxu0 %v1500_v4  ;;  %v1514_v18 = vld [vmem:[%s2053_s1 + $0x70] sm:$0xff]   ;;  %v1517_v21 = vld [vmem:[%s2053_s1 + $0x78] sm:$0xff]   ;;  %v1520_v26 = vld [vmem:[%s2054_s0] ss:$12 sps:$4 sm:$0xff]  }
   0x8   :  { %1334 = vmatprep.subr.bf16.mxu0 %v1502_v6  ;;  %v1515_v19 = vld [vmem:[%s2053_s1 + $0x30] sm:$0xff]   ;;  %v1519_v22 = vld [vmem:[%s2053_s1 + $0xb8] sm:$0xff]   ;;  %v1524_v28 = vld [vmem:[%s2054_s0 + $0x20] ss:$12 sps:$4 sm:$0xff]  }
   0x9   :  { %1455 = vmatpush3.bf16.msra.mxu1 %v1501_v5  ;;  %v1516_v20 = vld [vmem:[%s2053_s1 + $0xb0] sm:$0xff]   ;;  %v1518_v25 = vld [vmem:[%s2053_s1 + $0x38] sm:$0xff]   ;;  %v1540_v36 = vld [vmem:[%s2054_s0 + $0x80] ss:$12 sps:$4 sm:$0xff]  }
   0xa   :  { %1456 = vmatprep.subr.bf16.mxu1 %v1504_v8  ;;  %v1522_v23 = vld [vmem:[%s2054_s0 + $0x4] ss:$12 sps:$4 sm:$0xff]   ;;  %v1523_v24 = vld [vmem:[%s2054_s0 + $0x8] ss:$12 sps:$4 sm:$0xff]   ;;  %v1533_v35 = vld [vmem:[%s2054_s0 + $0x4c] ss:$12 sps:$4 sm:$0xff]  }
   0xb   :  { %1335 = vmatpush3.bf16.msra.mxu0 %v1503_v7  ;;  %522 = vmatprep.mubr.bf16.mxu0 %v1522_v23  ;;  %v1525_v27 = vld [vmem:[%s2054_s0 + $0x1c] ss:$12 sps:$4 sm:$0xff]   ;;  %v1531_v29 = vld [vmem:[%s2054_s0 + $0x38] ss:$12 sps:$4 sm:$0xff]   ;;  %v1528_v31 = vld [vmem:[%s2054_s0 + $0x34] ss:$12 sps:$4 sm:$0xff]  }
   0xc   :  { %1336 = vmatprep.subr.bf16.mxu0 %v1505_v9  ;;  %1468 = vmatprep.mubr.bf16.mxu1 %v1523_v24  ;;  %v1527_v30 = vld [vmem:[%s2054_s0 + $0x18] ss:$12 sps:$4 sm:$0xff]   ;;  %v1532_v32 = vld [vmem:[%s2054_s0 + $0x50] ss:$12 sps:$4 sm:$0xff]   ;;  %v1539_v33 = vld [vmem:[%s2054_s0 + $0x68] ss:$12 sps:$4 sm:$0xff]  }
   0xd   :  { %1457 = vmatpush3.bf16.msra.mxu1 %v1504_v8  ;;  %v1530_v34 = vld [vmem:[%s2054_s0 + $0x30] ss:$12 sps:$4 sm:$0xff]   ;;  %v1547_v37 = vld [vmem:[%s2054_s0 + $0x98] ss:$12 sps:$4 sm:$0xff]   ;;  %v1535_v38 = vld [vmem:[%s2054_s0 + $0x48] ss:$12 sps:$4 sm:$0xff]  }
   0xe   :  { %1458 = vmatprep.subr.bf16.mxu1 %v1507_v11  ;;  %v1536_v39 = vld [vmem:[%s2054_s0 + $0x64] ss:$12 sps:$4 sm:$0xff]   ;;  %v1555_v41 = vld [vmem:[%s2054_s0 + $0xc8] ss:$12 sps:$4 sm:$0xff]   ;;  %v1538_v42 = vld [vmem:[%s2054_s0 + $0x60] ss:$12 sps:$4 sm:$0xff]  }
   0xf   :  { %1337 = vmatpush3.bf16.msra.mxu0 %v1506_v10  ;;  %v1548_v40 = vld [vmem:[%s2054_s0 + $0xb0] ss:$12 sps:$4 sm:$0xff]   ;;  %v1556_v44 = vld [vmem:[%s2054_s0 + $0xe0] ss:$12 sps:$4 sm:$0xff]   ;;  %v1563_v45 = vld [vmem:[%s2054_s0 + $0xf8] ss:$12 sps:$4 sm:$0xff]  }
  0x10   :  { %1338 = vmatprep.subr.bf16.mxu0 %v1508_v12  ;;  %v1541_v43 = vld [vmem:[%s2054_s0 + $0x7c] ss:$12 sps:$4 sm:$0xff]   ;;  %v1543_v46 = vld [vmem:[%s2054_s0 + $0x78] ss:$12 sps:$4 sm:$0xff]   ;;  %v1544_v47 = vld [vmem:[%s2054_s0 + $0x94] ss:$12 sps:$4 sm:$0xff]  }
  0x11   :  { %1459 = vmatpush3.bf16.msra.mxu1 %v1507_v11  ;;  %v1564_v48 = vld [vmem:[%s2054_s0 + $0x110] ss:$12 sps:$4 sm:$0xff]   ;;  %v1571_v49 = vld [vmem:[%s2054_s0 + $0x128] ss:$12 sps:$4 sm:$0xff]   ;;  %v1549_v51 = vld [vmem:[%s2054_s0 + $0xac] ss:$12 sps:$4 sm:$0xff]  }
  0x12   :  { %1460 = vmatprep.subr.bf16.mxu1 %v1510_v13  ;;  %v1546_v50 = vld [vmem:[%s2054_s0 + $0x90] ss:$12 sps:$4 sm:$0xff]   ;;  %v1572_v52 = vld [vmem:[%s2054_s0 + $0x140] ss:$12 sps:$4 sm:$0xff]   ;;  %v1551_v53 = vld [vmem:[%s2054_s0 + $0xa8] ss:$12 sps:$4 sm:$0xff]  }
  0x13   :  { %1339 = vmatpush3.bf16.msra.mxu0 %v1509_v14  ;;  %v1552_v54 = vld [vmem:[%s2054_s0 + $0xc4] ss:$12 sps:$4 sm:$0xff]   ;;  %v1554_v55 = vld [vmem:[%s2054_s0 + $0xc0] ss:$12 sps:$4 sm:$0xff]   ;;  %v1557_v56 = vld [vmem:[%s2054_s0 + $0xdc] ss:$12 sps:$4 sm:$0xff]  }
  0x14   :  { %1340 = vmatprep.subr.bf16.mxu0 %v1511_v15  ;;  %v1559_v57 = vld [vmem:[%s2054_s0 + $0xd8] ss:$12 sps:$4 sm:$0xff]   ;;  %v1560_v58 = vld [vmem:[%s2054_s0 + $0xf4] ss:$12 sps:$4 sm:$0xff]   ;;  %v1562_v59 = vld [vmem:[%s2054_s0 + $0xf0] ss:$12 sps:$4 sm:$0xff]  }
  0x15   :  { %1461 = vmatpush3.bf16.msra.mxu1 %v1510_v13  ;;  %v1565_v60 = vld [vmem:[%s2054_s0 + $0x10c] ss:$12 sps:$4 sm:$0xff]   ;;  %v1567_v61 = vld [vmem:[%s2054_s0 + $0x108] ss:$12 sps:$4 sm:$0xff]   ;;  %v1568_v62 = vld [vmem:[%s2054_s0 + $0x124] ss:$12 sps:$4 sm:$0xff]  }
  0x16   :  { %1462 = vmatprep.subr.bf16.mxu1 %v1513_v16  ;;  %v1570_v63 = vld [vmem:[%s2054_s0 + $0x120] ss:$12 sps:$4 sm:$0xff]   ;;  %v1573_v0 = vld [vmem:[%s2054_s0 + $0x13c] ss:$12 sps:$4 sm:$0xff]   ;;  %v1575_v1 = vld [vmem:[%s2054_s0 + $0x138] ss:$12 sps:$4 sm:$0xff]  }
  0x17   :  { %1341 = vmatpush3.bf16.msra.mxu0 %v1512_v17 }
  0x18   :  { %1342 = vmatprep.subr.bf16.mxu0 %v1514_v18 }
  0x19   :  { %1463 = vmatpush3.bf16.msra.mxu1 %v1513_v16 }
  0x1a   :  { %1464 = vmatprep.subr.bf16.mxu1 %v1516_v20 }
  0x1b   :  { %1343 = vmatpush3.bf16.msra.mxu0 %v1515_v19 }
  0x1c   :  { %1344 = vmatprep.subr.bf16.mxu0 %v1517_v21 }
  0x1d   :  { %1465 = vmatpush3.bf16.msra.mxu1 %v1516_v20 }
  0x1e   :  { %1466 = vmatprep.subr.bf16.mxu1 %v1519_v22 }
  0x1f   :  { %1345 = vmatpush3.bf16.msra.mxu0 %v1518_v25 }
  0x21   :  { %1467 = vmatpush3.bf16.msra.mxu1 %v1519_v22 }
  0x22   :  { %523 = vmatmul.mubr.bf16.vlgmr.msra.gmra.mrb[0].mxu0 %v1520_v26 }
  0x23   :  { %530 = vmatprep.mubr.bf16.mxu0 %v1525_v27 }
  0x24   :  { %1469 = vmatmul.mubr.bf16.vlgmr.msra.gmra.mrb[0].mxu1 %v1524_v28 }
  0x25   :  { %1472 = vmatprep.mubr.bf16.mxu1 %v1531_v29 }
  0x2a   :  { %531 = vmatmul.mubr.bf16.gmra.mrb[4].mxu0 %v1527_v30 }
  0x2b   :  { %538 = vmatprep.mubr.bf16.mxu0 %v1528_v31 }
  0x2c   :  { %1473 = vmatmul.mubr.bf16.gmra.mrb[4].mxu1 %v1532_v32 }
  0x2d   :  { %1476 = vmatprep.mubr.bf16.mxu1 %v1539_v33 }
  0x32   :  { %539 = vmatmul.mubr.bf16.gmra.mrb[8].mxu0 %v1530_v34 }
  0x33   :  { %546 = vmatprep.mubr.bf16.mxu0 %v1533_v35 }
  0x34   :  { %1477 = vmatmul.mubr.bf16.gmra.mrb[8].mxu1 %v1540_v36 }
  0x35   :  { %1480 = vmatprep.mubr.bf16.mxu1 %v1547_v37 }
  0x3a   :  { %547 = vmatmul.mubr.bf16.gmra.mrb[12].mxu0 %v1535_v38 }
  0x3b   :  { %554 = vmatprep.mubr.bf16.mxu0 %v1536_v39 }
  0x3c   :  { %1481 = vmatmul.mubr.bf16.gmra.mrb[12].mxu1 %v1548_v40 }
  0x3d   :  { %1484 = vmatprep.mubr.bf16.mxu1 %v1555_v41 }
  0x42   :  { %555 = vmatmul.mubr.bf16.gmra.mrb[16].mxu0 %v1538_v42 }
  0x43   :  { %562 = vmatprep.mubr.bf16.mxu0 %v1541_v43 }
  0x44   :  { %1485 = vmatmul.mubr.bf16.gmra.mrb[16].mxu1 %v1556_v44 }
  0x45   :  { %1488 = vmatprep.mubr.bf16.mxu1 %v1563_v45 }
  0x4a   :  { %563 = vmatmul.mubr.bf16.gmra.mrb[20].mxu0 %v1543_v46 }
  0x4b   :  { %570 = vmatprep.mubr.bf16.mxu0 %v1544_v47 }
  0x4c   :  { %1489 = vmatmul.mubr.bf16.gmra.mrb[20].mxu1 %v1564_v48 }
  0x4d   :  { %1492 = vmatprep.mubr.bf16.mxu1 %v1571_v49 }
  0x52   :  { %571 = vmatmul.mubr.bf16.gmra.mrb[24].mxu0 %v1546_v50 }
  0x53   :  { %578 = vmatprep.mubr.bf16.mxu0 %v1549_v51 }
  0x54   :  { %1493 = vmatmul.mubr.bf16.gmra.mrb[24].mxu1 %v1572_v52 }
  0x5a   :  { %579 = vmatmul.mubr.bf16.gmra.mrb[28].mxu0 %v1551_v53 }
  0x5b   :  { %586 = vmatprep.mubr.bf16.mxu0 %v1552_v54 }
  0x62   :  { %587 = vmatmul.mubr.bf16.gmra.mrb[32].mxu0 %v1554_v55 }
  0x63   :  { %594 = vmatprep.mubr.bf16.mxu0 %v1557_v56 }
  0x6a   :  { %595 = vmatmul.mubr.bf16.gmra.mrb[36].mxu0 %v1559_v57 }
  0x6b   :  { %602 = vmatprep.mubr.bf16.mxu0 %v1560_v58 }
  0x72   :  { %603 = vmatmul.mubr.bf16.gmra.mrb[40].mxu0 %v1562_v59 }
  0x73   :  { %610 = vmatprep.mubr.bf16.mxu0 %v1565_v60 }
  0x7a   :  { %611 = vmatmul.mubr.bf16.gmra.mrb[44].mxu0 %v1567_v61 }
  0x7b   :  { %618 = vmatprep.mubr.bf16.mxu0 %v1568_v62 }
  0x82   :  { %619 = vmatmul.mubr.bf16.gmra.mrb[48].mxu0 %v1570_v63 }
  0x83   :  { %626 = vmatprep.mubr.bf16.mxu0 %v1573_v0 }
  0x8a   :  { %627 = vmatmul.mubr.bf16.gmra.mrb[52].mxu0 %v1575_v1 }
  0xf5   :  { %v1346_v2 = vpop.f32.mrb[0].mxu0 }
  0xf6   :  { %v1347_v3 = vpop.f32.mrb[1].mxu0 }
  0xf7   :  { %v1348_v4 = vadd.f32 %v1347_v3, %v1346_v2  ;;  %v1349_v5 = vpop.f32.mrb[2].mxu0  ;;  %v1470_v6 = vpop.f32.mrb[0].mxu1 }
  0xf8   :  { %v1350_v7 = vpop.f32.mrb[3].mxu0  ;;  %v669_v8 = vpop.f32.mrb[1].mxu1 }
  0xf9   :  { %v1351_v9 = vadd.f32 %v1350_v7, %v1349_v5  ;;  %v1801_v10 = vadd.f32 %v1348_v4, %v669_v8  ;;  %v1471_v11 = vpop.f32.mrb[2].mxu1 }
  0xfa   :  { %v672_v12 = vpop.f32.mrb[3].mxu1 }
  0xfb   :  { %v1803_v13 = vadd.f32 %v1351_v9, %v672_v12  ;;  %v814_v41 = vmul.f32 %v1801_v10, %v1801_v10 }
  0xfd   :  { %v1352_v14 = vpop.f32.mrb[4].mxu0  ;;  %v815_v38 = vmul.f32 %v1803_v13, %v1803_v13  ;;  %v780_v42 = vadd.f32 %v1803_v13, %v1801_v10 }
  0xfe   :  { %v1353_v15 = vpop.f32.mrb[5].mxu0 }
  0xff   :  { %v1354_v16 = vadd.f32 %v1353_v15, %v1352_v14  ;;  %v1355_v17 = vpop.f32.mrb[6].mxu0  ;;  %v1474_v18 = vpop.f32.mrb[4].mxu1  ;;  %v842_v49 = vadd.f32 %v815_v38, %v814_v41 }
 0x100   :  { %v1356_v19 = vpop.f32.mrb[7].mxu0  ;;  %v685_v20 = vpop.f32.mrb[5].mxu1 }
 0x101   :  { %v1805_v21 = vadd.f32 %v1470_v6, %v1354_v16  ;;  %v1357_v22 = vadd.f32 %v1356_v19, %v1355_v17  ;;  %v1475_v23 = vpop.f32.mrb[6].mxu1 }
 0x102   :  { %v688_v24 = vpop.f32.mrb[7].mxu1 }
 0x103   :  { %v1807_v25 = vadd.f32 %v1471_v11, %v1357_v22  ;;  %v816_v43 = vmul.f32 %v1805_v21, %v1805_v21  ;;  %v781_v50 = vadd.f32 %v780_v42, %v1805_v21 }
 0x105   :  { %v1358_v26 = vpop.f32.mrb[8].mxu0  ;;  %v843_v55 = vadd.f32 %v842_v49, %v816_v43  ;;  %v817_v56 = vmul.f32 %v1807_v25, %v1807_v25  ;;  %v782_v58 = vadd.f32 %v781_v50, %v1807_v25 }
 0x106   :  { %v1359_v27 = vpop.f32.mrb[9].mxu0 }
 0x107   :  { %v1360_v28 = vadd.f32 %v1359_v27, %v1358_v26  ;;  %v1361_v29 = vpop.f32.mrb[10].mxu0  ;;  %v1478_v30 = vpop.f32.mrb[8].mxu1  ;;  %v844_v63 = vadd.f32 %v843_v55, %v817_v56 }
 0x108   :  { %v1362_v31 = vpop.f32.mrb[11].mxu0  ;;  %v701_v32 = vpop.f32.mrb[9].mxu1 }
 0x109   :  { %v1363_v33 = vadd.f32 %v1362_v31, %v1361_v29  ;;  %v1809_v34 = vadd.f32 %v1360_v28, %v685_v20  ;;  %v1479_v35 = vpop.f32.mrb[10].mxu1 }
 0x10a   :  { %v704_v36 = vpop.f32.mrb[11].mxu1 }
 0x10b   :  { %v1811_v37 = vadd.f32 %v1363_v33, %v688_v24  ;;  %v818_v59 = vmul.f32 %v1809_v34, %v1809_v34  ;;  %v783_v62 = vadd.f32 %v782_v58, %v1809_v34 }
 0x10d   :  { %v1364_v39 = vpop.f32.mrb[12].mxu0  ;;  %v845_v5 = vadd.f32 %v844_v63, %v818_v59  ;;  %v819_v6 = vmul.f32 %v1811_v37, %v1811_v37  ;;  %v784_v12 = vadd.f32 %v783_v62, %v1811_v37 }
 0x10e   :  { %v1365_v40 = vpop.f32.mrb[13].mxu0 }
 0x10f   :  { %v1366_v44 = vadd.f32 %v1365_v40, %v1364_v39  ;;  %v1367_v45 = vpop.f32.mrb[14].mxu0  ;;  %v1821_v46 = vpop.f32.mrb[12].mxu1  ;;  %v846_v16 = vadd.f32 %v845_v5, %v819_v6 }
 0x110   :  { %v1368_v47 = vpop.f32.mrb[15].mxu0  ;;  %v1823_v48 = vpop.f32.mrb[13].mxu1 }
 0x111   :  { %v1826_v51 = vadd.f32 %v1474_v18, %v1366_v44  ;;  %v1369_v52 = vadd.f32 %v1368_v47, %v1367_v45  ;;  %v1828_v53 = vpop.f32.mrb[14].mxu1 }
 0x112   :  { %v1830_v54 = vpop.f32.mrb[15].mxu1 }
 0x113   :  { %v1834_v57 = vadd.f32 %v1475_v23, %v1369_v52  ;;  %v820_v14 = vmul.f32 %v1826_v51, %v1826_v51  ;;  %v785_v17 = vadd.f32 %v784_v12, %v1826_v51 }
 0x115   :  { %v1370_v60 = vpop.f32.mrb[16].mxu0  ;;  %v847_v20 = vadd.f32 %v846_v16, %v820_v14  ;;  %v821_v22 = vmul.f32 %v1834_v57, %v1834_v57  ;;  %v786_v29 = vadd.f32 %v785_v17, %v1834_v57 }
 0x116   :  { %v1371_v61 = vpop.f32.mrb[17].mxu0 }
 0x117   :  { %v1372_v0 = vadd.f32 %v1371_v61, %v1370_v60  ;;  %v1373_v1 = vpop.f32.mrb[18].mxu0  ;;  %v1840_v2 = vpop.f32.mrb[16].mxu1  ;;  %v848_v40 = vadd.f32 %v847_v20, %v821_v22 }
 0x118   :  { %v1374_v3 = vpop.f32.mrb[19].mxu0  ;;  %v1842_v4 = vpop.f32.mrb[17].mxu1 }
 0x119   :  { %v1375_v7 = vadd.f32 %v1374_v3, %v1373_v1  ;;  %v1846_v8 = vadd.f32 %v1372_v0, %v701_v32  ;;  %v1848_v9 = vpop.f32.mrb[18].mxu1 }
 0x11a   :  { %v1850_v11 = vpop.f32.mrb[19].mxu1 }
 0x11b   :  { %v1855_v15 = vadd.f32 %v1375_v7, %v704_v36  ;;  %v822_v31 = vmul.f32 %v1846_v8, %v1846_v8  ;;  %v787_v39 = vadd.f32 %v786_v29, %v1846_v8 }
 0x11d   :  { %v1376_v18 = vpop.f32.mrb[20].mxu0  ;;  %v849_v42 = vadd.f32 %v848_v40, %v822_v31  ;;  %v823_v43 = vmul.f32 %v1855_v15, %v1855_v15  ;;  %v788_v47 = vadd.f32 %v787_v39, %v1855_v15 }
 0x11e   :  { %v1377_v19 = vpop.f32.mrb[21].mxu0 }
 0x11f   :  { %v1378_v23 = vadd.f32 %v1377_v19, %v1376_v18  ;;  %v1379_v24 = vpop.f32.mrb[22].mxu0  ;;  %v1860_v26 = vpop.f32.mrb[20].mxu1 }
 0x120   :  { %v1380_v27 = vpop.f32.mrb[23].mxu0  ;;  %v1862_v28 = vpop.f32.mrb[21].mxu1 }
 0x121   :  { %v1867_v32 = vadd.f32 %v1478_v30, %v1378_v23  ;;  %v1381_v33 = vadd.f32 %v1380_v27, %v1379_v24  ;;  %v1869_v36 = vpop.f32.mrb[22].mxu1 }
 0x122   :  { %v1871_v38 = vpop.f32.mrb[23].mxu1 }
 0x123   :  { %v1874_v41 = vadd.f32 %v1479_v35, %v1381_v33  ;;  %v824_v30 = vmul.f32 %v1867_v32, %v1867_v32  ;;  %v850_v35 = vadd.f32 %v849_v42, %v823_v43  ;;  %v789_v58 = vadd.f32 %v788_v47, %v1867_v32 }
 0x125   :  { %v1382_v44 = vpop.f32.mrb[24].mxu0  ;;  %v851_v63 = vadd.f32 %v850_v35, %v824_v30  ;;  %v825_v0 = vmul.f32 %v1874_v41, %v1874_v41  ;;  %v790_v3 = vadd.f32 %v789_v58, %v1874_v41 }
 0x126   :  { %v1383_v45 = vpop.f32.mrb[25].mxu0 }
 0x127   :  { %v1384_v49 = vadd.f32 %v1383_v45, %v1382_v44  ;;  %v1385_v50 = vpop.f32.mrb[26].mxu0  ;;  %v1881_v52 = vpop.f32.mrb[24].mxu1  ;;  %v852_v12 = vadd.f32 %v851_v63, %v825_v0 }
 0x128   :  { %v1386_v55 = vpop.f32.mrb[27].mxu0  ;;  %v1883_v56 = vpop.f32.mrb[25].mxu1 }
 0x129   :  { %v1387_v59 = vadd.f32 %v1386_v55, %v1385_v50  ;;  %v1887_v60 = vadd.f32 %v1384_v49, %v1823_v48  ;;  %v1889_v61 = vpop.f32.mrb[26].mxu1 }
 0x12a   :  { %v1891_v62 = vpop.f32.mrb[27].mxu1 }
 0x12b   :  { %v1896_v1 = vadd.f32 %v1387_v59, %v1830_v54  ;;  %v826_v5 = vmul.f32 %v1887_v60, %v1887_v60  ;;  %v791_v48 = vadd.f32 %v790_v3, %v1887_v60 }
 0x12d   :  { %v1388_v6 = vpop.f32.mrb[28].mxu0  ;;  %v853_v18 = vadd.f32 %v852_v12, %v826_v5  ;;  %v827_v19 = vmul.f32 %v1896_v1, %v1896_v1  ;;  %v792_v22 = vadd.f32 %v791_v48, %v1896_v1 }
 0x12e   :  { %v1389_v7 = vpop.f32.mrb[29].mxu0 }
 0x12f   :  { %v1390_v14 = vadd.f32 %v1389_v7, %v1388_v6  ;;  %v1391_v16 = vpop.f32.mrb[30].mxu0  ;;  %v854_v27 = vadd.f32 %v853_v18, %v827_v19 }
 0x130   :  { %v1392_v17 = vpop.f32.mrb[31].mxu0 }
 0x131   :  { %v1905_v54 = vadd.f32 %v1821_v46, %v1390_v14  ;;  %v1393_v20 = vadd.f32 %v1392_v17, %v1391_v16 }
 0x133   :  { %v828_v23 = vmul.f32 %v1905_v54, %v1905_v54  ;;  %v1911_v24 = vadd.f32 %v1828_v53, %v1393_v20  ;;  %v793_v29 = vadd.f32 %v792_v22, %v1905_v54 }
 0x135   :  { %v1394_v31 = vpop.f32.mrb[32].mxu0  ;;  %v855_v39 = vadd.f32 %v854_v27, %v828_v23  ;;  %v829_v40 = vmul.f32 %v1911_v24, %v1911_v24  ;;  %v794_v47 = vadd.f32 %v793_v29, %v1911_v24 }
 0x136   :  { %v1395_v33 = vpop.f32.mrb[33].mxu0 }
 0x137   :  { %v1396_v46 = vadd.f32 %v1395_v33, %v1394_v31  ;;  %v1397_v42 = vpop.f32.mrb[34].mxu0  ;;  %v856_v49 = vadd.f32 %v855_v39, %v829_v40 }
 0x138   :  { %v1398_v43 = vpop.f32.mrb[35].mxu0 }
 0x139   :  { %v1399_v44 = vadd.f32 %v1398_v43, %v1397_v42  ;;  %v1917_v45 = vadd.f32 %v1396_v46, %v1842_v4 }
 0x13b   :  { %v795_v53 = vadd.f32 %v794_v47, %v1917_v45  ;;  %v830_v30 = vmul.f32 %v1917_v45, %v1917_v45  ;;  %v1924_v50 = vadd.f32 %v1399_v44, %v1850_v11 }
 0x13d   :  { %v857_v55 = vadd.f32 %v856_v49, %v830_v30  ;;  %v796_v35 = vadd.f32 %v795_v53, %v1924_v50  ;;  %v831_v58 = vmul.f32 %v1924_v50, %v1924_v50  ;;  %v1400_v59 = vpop.f32.mrb[36].mxu0 }
 0x13e   :  { %v1401_v4 = vpop.f32.mrb[37].mxu0 }
 0x13f   :  { %v858_v63 = vadd.f32 %v857_v55, %v831_v58  ;;  %v1402_v0 = vadd.f32 %v1401_v4, %v1400_v59  ;;  %v1403_v3 = vpop.f32.mrb[38].mxu0 }
 0x140   :  { %v1404_v5 = vpop.f32.mrb[39].mxu0 }
 0x141   :  { %v1930_v6 = vadd.f32 %v1840_v2, %v1402_v0  ;;  %v1405_v7 = vadd.f32 %v1404_v5, %v1403_v3 }
 0x143   :  { %v797_v48 = vadd.f32 %v796_v35, %v1930_v6  ;;  %v832_v11 = vmul.f32 %v1930_v6, %v1930_v6  ;;  %v1936_v12 = vadd.f32 %v1848_v9, %v1405_v7 }
 0x145   :  { %v859_v14 = vadd.f32 %v858_v63, %v832_v11  ;;  %v833_v16 = vmul.f32 %v1936_v12, %v1936_v12  ;;  %v1406_v17 = vpop.f32.mrb[40].mxu0  ;;  %v798_v18 = vadd.f32 %v797_v48, %v1936_v12 }
 0x146   :  { %v1407_v19 = vpop.f32.mrb[41].mxu0 }
 0x147   :  { %v1408_v20 = vadd.f32 %v1407_v19, %v1406_v17  ;;  %v1409_v2 = vpop.f32.mrb[42].mxu0  ;;  %v860_v22 = vadd.f32 %v859_v14, %v833_v16 }
 0x148   :  { %v1410_v23 = vpop.f32.mrb[43].mxu0 }
 0x149   :  { %v1411_v27 = vadd.f32 %v1410_v23, %v1409_v2  ;;  %v1942_v29 = vadd.f32 %v1408_v20, %v1862_v28 }
 0x14b   :  { %v799_v31 = vadd.f32 %v798_v18, %v1942_v29  ;;  %v834_v9 = vmul.f32 %v1942_v29, %v1942_v29  ;;  %v1948_v33 = vadd.f32 %v1411_v27, %v1871_v38 }
 0x14d   :  { %v861_v39 = vadd.f32 %v860_v22, %v834_v9  ;;  %v800_v40 = vadd.f32 %v799_v31, %v1948_v33  ;;  %v835_v46 = vmul.f32 %v1948_v33, %v1948_v33  ;;  %v1412_v42 = vpop.f32.mrb[44].mxu0 }
 0x14e   :  { %v1413_v43 = vpop.f32.mrb[45].mxu0 }
 0x14f   :  { %v862_v44 = vadd.f32 %v861_v39, %v835_v46  ;;  %v1414_v47 = vadd.f32 %v1413_v43, %v1412_v42  ;;  %v1415_v28 = vpop.f32.mrb[46].mxu0 }
 0x150   :  { %v1416_v53 = vpop.f32.mrb[47].mxu0 }
 0x151   :  { %v1954_v30 = vadd.f32 %v1860_v26, %v1414_v47  ;;  %v1417_v49 = vadd.f32 %v1416_v53, %v1415_v28 }
 0x153   :  { %v801_v55 = vadd.f32 %v800_v40, %v1954_v30  ;;  %v836_v38 = vmul.f32 %v1954_v30, %v1954_v30  ;;  %v1960_v35 = vadd.f32 %v1869_v36, %v1417_v49 }
 0x155   :  { %v863_v58 = vadd.f32 %v862_v44, %v836_v38  ;;  %v837_v59 = vmul.f32 %v1960_v35, %v1960_v35  ;;  %v1418_v4 = vpop.f32.mrb[48].mxu0  ;;  %v802_v63 = vadd.f32 %v801_v55, %v1960_v35 }
 0x156   :  { %v1419_v0 = vpop.f32.mrb[49].mxu0 }
 0x157   :  { %v1420_v3 = vadd.f32 %v1419_v0, %v1418_v4  ;;  %v1421_v26 = vpop.f32.mrb[50].mxu0  ;;  %v864_v5 = vadd.f32 %v863_v58, %v837_v59 }
 0x158   :  { %v1422_v7 = vpop.f32.mrb[51].mxu0 }
 0x159   :  { %v1423_v48 = vadd.f32 %v1422_v7, %v1421_v26  ;;  %v1966_v11 = vadd.f32 %v1420_v3, %v1883_v56 }
 0x15b   :  { %v803_v14 = vadd.f32 %v802_v63, %v1966_v11  ;;  %v838_v36 = vmul.f32 %v1966_v11, %v1966_v11  ;;  %v1972_v16 = vadd.f32 %v1423_v48, %v1891_v62  ;;  %v886_v48 = vlaneseq }
 0x15d   :  { %v865_v17 = vadd.f32 %v864_v5, %v838_v36  ;;  %v804_v18 = vadd.f32 %v803_v14, %v1972_v16  ;;  %v839_v19 = vmul.f32 %v1972_v16, %v1972_v16  ;;  %v1424_v20 = vpop.f32.mrb[52].mxu0  ;;  %v887_v14 = vshrl.u32 %v886_v48, 7  ;;  %v878_v36 = vld [vmem:[%s2055_s2] sm:$0x1] }
 0x15e   :  { %v1425_v2 = vpop.f32.mrb[53].mxu0 }
 0x15f   :  { %v866_v22 = vadd.f32 %v865_v17, %v839_v19  ;;  %v1426_v23 = vadd.f32 %v1425_v2, %v1424_v20  ;;  %v1427_v56 = vpop.f32.mrb[54].mxu0  ;;  %v888_v17 = vsub.s32 0, %v887_v14  ;;  %v882_v20 = vld [vmem:[%s2056_s3] sm:$0x1] }
 0x160   :  { %v1428_v27 = vpop.f32.mrb[55].mxu0 }
 0x161   :  { %v774_v31 = vadd.f32 %v1881_v52, %v1426_v23  ;;  %v1429_v9 = vadd.f32 %v1428_v27, %v1427_v56 }
 0x163   :  { %v805_v39 = vadd.f32 %v804_v18, %v774_v31  ;;  %v840_v40 = vmul.f32 %v774_v31, %v774_v31  ;;  %v777_v62 = vadd.f32 %v1889_v61, %v1429_v9 }
 0x165   :  { %v867_v46 = vadd.f32 %v866_v22, %v840_v40  ;;  %v806_v42 = vadd.f32 %v805_v39, %v777_v62  ;;  %v841_v43 = vmul.f32 %v777_v62, %v777_v62 }
 0x167   :  { %v807_v44 = vrot.slane %v806_v42, 4  ;;  %v868_v47 = vadd.f32 %v867_v46, %v841_v43 }
 0x169   :  { %v808_v28 = vadd.f32 %v807_v44, %v806_v42  ;;  %v869_v53 = vrot.slane %v868_v47, 4 }
 0x16b   :  { %v809_v49 = vrot.slane %v808_v28, 2  ;;  %v870_v55 = vadd.f32 %v869_v53, %v868_v47 }
 0x16d   :  { %v810_v38 = vadd.f32 %v809_v49, %v808_v28  ;;  %v871_v58 = vrot.slane %v870_v55, 2 }
 0x16f   :  { %v811_v59 = vrot.slane %v810_v38, 1  ;;  %v872_v4 = vadd.f32 %v871_v58, %v870_v55 }
 0x171   :  { %v812_v63 = vadd.f32 %v811_v59, %v810_v38  ;;  %v873_v52 = vrot.slane %v872_v4, 1 }
 0x173   :  { %v813_v0 = vmul.f32 0.004761905, %v812_v63  ;;  %v874_v3 = vadd.f32 %v873_v52, %v872_v4 }
 0x175   :  { %v875_v26 = vmul.f32 0.004761905, %v874_v3  ;;  %v876_v5 = vmul.f32 %v813_v0, %v813_v0 }
 0x177   :  { %v877_v61 = vsub.f32 %v875_v26, %v876_v5 }
 0x179   :  { %v879_v7 = vadd.f32 1e-05, %v877_v61 }
 0x17b   :  { %1576 = vrsqrt.f32 %v879_v7 }
 0x185   :  { %v1577_v18 = vpop.eup %1576 }
 0x186   :  { %v881_v19 = vmul.f32 %v1577_v18, %v878_v36 }
 0x188   :  { %v883_v2 = vmul.f32 %v881_v19, %v813_v0  ;;  %v889_v22 = vrot.slane %v881_v19, %v888_v17 }
 0x18a   :  { %v884_v23 = vsub.f32 %v882_v20, %v883_v2  ;;  %v891_v56 = vmul.f32 %v889_v22, %v1801_v10  ;;  %v892_v27 = vmul.f32 %v889_v22, %v1803_v13  ;;  %v893_v9 = vmul.f32 %v889_v22, %v1805_v21 }
 0x18b   :  { %v894_v39 = vmul.f32 %v889_v22, %v1807_v25  ;;  %v895_v40 = vmul.f32 %v889_v22, %v1809_v34  ;;  %v896_v46 = vmul.f32 %v889_v22, %v1811_v37  ;;  %v897_v42 = vmul.f32 %v889_v22, %v1826_v51 }
 0x18c   :  { %v898_v43 = vmul.f32 %v889_v22, %v1834_v57  ;;  %v899_v44 = vmul.f32 %v889_v22, %v1846_v8  ;;  %v906_v47 = vmul.f32 %v889_v22, %v1911_v24  ;;  %v907_v10 = vmul.f32 %v889_v22, %v1917_v45 }
 0x18d   :  { %v908_v13 = vmul.f32 %v889_v22, %v1924_v50  ;;  %v909_v21 = vmul.f32 %v889_v22, %v1930_v6  ;;  %v910_v25 = vmul.f32 %v889_v22, %v1936_v12  ;;  %v911_v34 = vmul.f32 %v889_v22, %v1942_v29 }
 0x18e   :  { %v912_v37 = vmul.f32 %v889_v22, %v1948_v33  ;;  %v913_v51 = vmul.f32 %v889_v22, %v1954_v30  ;;  %v914_v57 = vmul.f32 %v889_v22, %v1960_v35  ;;  %v915_v8 = vmul.f32 %v889_v22, %v1966_v11 }
 0x18f   :  { %v916_v24 = vmul.f32 %v889_v22, %v1972_v16  ;;  %v917_v28 = vmul.f32 %v889_v22, %v774_v31  ;;  %v900_v45 = vmul.f32 %v889_v22, %v1855_v15  ;;  %v901_v50 = vmul.f32 %v889_v22, %v1867_v32 }
 0x190   :  { %v918_v6 = vmul.f32 %v889_v22, %v777_v62  ;;  %v923_v53 = vrot.slane %v884_v23, %v888_v17  ;;  %v902_v12 = vmul.f32 %v889_v22, %v1874_v41  ;;  %v903_v29 = vmul.f32 %v889_v22, %v1887_v60 }
 0x191   :  { %v904_v33 = vmul.f32 %v889_v22, %v1896_v1  ;;  %v905_v30 = vmul.f32 %v889_v22, %v1905_v54 }
 0x192   :  { %v925_v35 = vadd.f32 %v923_v53, %v891_v56  ;;  %v926_v49 = vadd.f32 %v923_v53, %v892_v27  ;;  %v927_v11 = vadd.f32 %v923_v53, %v893_v9  ;;  %v928_v55 = vadd.f32 %v923_v53, %v894_v39 }
 0x193   :  { %v929_v16 = vadd.f32 %v923_v53, %v895_v40  ;;  %v930_v31 = vadd.f32 %v923_v53, %v896_v46  ;;  %v931_v38 = vadd.f32 %v923_v53, %v897_v42  ;;  %v932_v15 = vadd.f32 %v923_v53, %v898_v43 }
 0x194   :  { %v933_v58 = vadd.f32 %v923_v53, %v899_v44  ;;  %v934_v32 = vadd.f32 %v923_v53, %v900_v45  ;;  %v935_v62 = vadd.f32 %v923_v53, %v901_v50  ;;  %v936_v59 = vadd.f32 %v923_v53, %v902_v12 }
 0x195   :  { %v937_v4 = vadd.f32 %v923_v53, %v903_v29  ;;  %v938_v41 = vadd.f32 %v923_v53, %v904_v33  ;;  %v939_v63 = vadd.f32 %v923_v53, %v905_v30  ;;  %v940_v60 = vadd.f32 %v923_v53, %v906_v47 }
 0x196   :  { %v941_v52 = vadd.f32 %v923_v53, %v907_v10  ;;  %v942_v1 = vadd.f32 %v923_v53, %v908_v13  ;;  %v943_v0 = vadd.f32 %v923_v53, %v909_v21  ;;  %v944_v54 = vadd.f32 %v923_v53, %v910_v25 }
 0x197   :  { %v945_v3 = vadd.f32 %v923_v53, %v911_v34  ;;  %v946_v26 = vadd.f32 %v923_v53, %v912_v37  ;;  %v947_v5 = vadd.f32 %v923_v53, %v913_v51  ;;  %v948_v61 = vadd.f32 %v923_v53, %v914_v57 }
 0x198   :  { %v949_v7 = vadd.f32 %v923_v53, %v915_v8  ;;  %v950_v48 = vadd.f32 %v923_v53, %v916_v24  ;;  %v951_v14 = vadd.f32 %v923_v53, %v917_v28  ;;  %v952_v36 = vadd.f32 %v923_v53, %v918_v6 }
 0x199   :  { %v953_v17 = vmax.f32 %v925_v35, 0.0  ;;  %v954_v18 = vmax.f32 %v926_v49, 0.0  ;;  %v955_v19 = vmax.f32 %v927_v11, 0.0  ;;  %v956_v20 = vmax.f32 %v928_v55, 0.0 }
 0x19a   :  { %v957_v2 = vmax.f32 %v929_v16, 0.0  ;;  %v958_v22 = vmax.f32 %v930_v31, 0.0  ;;  %v959_v23 = vmax.f32 %v931_v38, 0.0  ;;  %v960_v56 = vmax.f32 %v932_v15, 0.0 }
 0x19b   :  { %v961_v27 = vmax.f32 %v933_v58, 0.0  ;;  %v962_v9 = vmax.f32 %v934_v32, 0.0  ;;  %v963_v39 = vmax.f32 %v935_v62, 0.0  ;;  %v964_v40 = vmax.f32 %v936_v59, 0.0 }
 0x19c   :  { %v965_v46 = vmax.f32 %v937_v4, 0.0  ;;  %v966_v42 = vmax.f32 %v938_v41, 0.0  ;;  %v967_v43 = vmax.f32 %v939_v63, 0.0  ;;  %v968_v44 = vmax.f32 %v940_v60, 0.0 }
 0x19d   :  { %v969_v47 = vmax.f32 %v941_v52, 0.0  ;;  %v970_v10 = vmax.f32 %v942_v1, 0.0  ;;  %v971_v13 = vmax.f32 %v943_v0, 0.0  ;;  %v972_v21 = vmax.f32 %v944_v54, 0.0 }
 0x19e   :  { %v973_v25 = vmax.f32 %v945_v3, 0.0  ;;  %v974_v34 = vmax.f32 %v946_v26, 0.0  ;;  %v975_v37 = vmax.f32 %v947_v5, 0.0  ;;  %v976_v51 = vmax.f32 %v948_v61, 0.0 }
 0x19f   :  { %v977_v57 = vmax.f32 %v949_v7, 0.0  ;;  %v978_v8 = vmax.f32 %v950_v48, 0.0  ;;  %v979_v24 = vmax.f32 %v951_v14, 0.0  ;;  %v980_v28 = vmax.f32 %v952_v36, 0.0 }
 0x1a0   :  { %v1250_v45 = vpack.c.bf16 %v954_v18, %v953_v17  ;;  %v1255_v50 = vpack.c.bf16 %v956_v20, %v955_v19  ;;  %v1260_v6 = vpack.c.bf16 %v958_v22, %v957_v2  ;;  %v1265_v53 = vpack.c.bf16 %v960_v56, %v959_v23 }
 0x1a1   :  { %v1270_v12 = vpack.c.bf16 %v962_v9, %v961_v27  ;;  %v1275_v29 = vpack.c.bf16 %v964_v40, %v963_v39  ;;  %v1280_v33 = vpack.c.bf16 %v966_v42, %v965_v46  ;;  %v1285_v30 = vpack.c.bf16 %v968_v44, %v967_v43 }
 0x1a2   :  { %1251 = vst [vmem:[%s2057_s4] sm:$0xff] %v1250_v45   ;;  %1317 = vst [vmem:[%s2057_s4 + $0x8] sm:$0xff] %v1255_v50   ;;  %v1290_v35 = vpack.c.bf16 %v970_v10, %v969_v47  ;;  %v1295_v49 = vpack.c.bf16 %v972_v21, %v971_v13  ;;  %v1300_v11 = vpack.c.bf16 %v974_v34, %v973_v25 }
 0x1a3   :  { %1318 = vst [vmem:[%s2057_s4 + $0x10] sm:$0xff] %v1260_v6   ;;  %1319 = vst [vmem:[%s2057_s4 + $0x18] sm:$0xff] %v1265_v53   ;;  %v1305_v55 = vpack.c.bf16 %v976_v51, %v975_v37  ;;  %v1310_v16 = vpack.c.bf16 %v978_v8, %v977_v57  ;;  %v1315_v31 = vpack.c.bf16 %v980_v28, %v979_v24 }
 0x1a4   :  { %1320 = vst [vmem:[%s2057_s4 + $0x20] sm:$0xff] %v1270_v12   ;;  %1321 = vst [vmem:[%s2057_s4 + $0x28] sm:$0xff] %v1275_v29  }
 0x1a5   :  { %1322 = vst [vmem:[%s2057_s4 + $0x30] sm:$0xff] %v1280_v33   ;;  %1323 = vst [vmem:[%s2057_s4 + $0x38] sm:$0xff] %v1285_v30  }
 0x1a6   :  { %1324 = vst [vmem:[%s2057_s4 + $0x40] sm:$0xff] %v1290_v35   ;;  %1325 = vst [vmem:[%s2057_s4 + $0x48] sm:$0xff] %v1295_v49  }
 0x1a7   :  { %1326 = vst [vmem:[%s2057_s4 + $0x50] sm:$0xff] %v1300_v11   ;;  %1327 = vst [vmem:[%s2057_s4 + $0x58] sm:$0xff] %v1305_v55  }
 0x1a8   :  { %1328 = vst [vmem:[%s2057_s4 + $0x60] sm:$0xff] %v1310_v16   ;;  %1329 = vst [vmem:[%s2057_s4 + $0x68] sm:$0xff] %v1315_v31  }

// kernel: mhcnn_forward.8
= control target key start
LH: loop header
LB: loop body
LE: loop exit
PB: predicated region body
PF: predicated region fallthrough
CT: control target
= control target key end

     0   :  { %s940_s1 = inlined_call_operand.vmem [shape: bf16[512,128], index: 1, kind: input, shape index: {}]   ;;  %s941_s0 = inlined_call_operand.vmem [shape: bf16[48,512], index: 0, kind: input, shape index: {}]   ;;  %s942_s2 = inlined_call_operand.vmem [shape: f32[1,128], index: 2, kind: input, shape index: {}]   ;;  %s943_s3 = inlined_call_operand.vmem [shape: f32[1,128], index: 3, kind: input, shape index: {}]   ;;  %s944_s4 = inlined_call_operand.vmem [shape: bf16[48,128], index: 4, kind: output, shape index: {}]  }
   0x1   :  { %v704_v0 = vld [vmem:[%s940_s1 + $0x40] sm:$0xff]   ;;  %v708_v4 = vld [vmem:[%s940_s1 + $0x48] sm:$0xff]   ;;  %v712_v8 = vld [vmem:[%s940_s1 + $0x50] sm:$0xff]  }
   0x2   :  { %v705_v1 = vld [vmem:[%s940_s1 + $0xc0] sm:$0xff]   ;;  %636 = vmatprep.subr.bf16.mxu0 %v704_v0  ;;  %v709_v5 = vld [vmem:[%s940_s1 + $0xc8] sm:$0xff]   ;;  %v713_v9 = vld [vmem:[%s940_s1 + $0xd0] sm:$0xff]  }
   0x3   :  { %v706_v2 = vld [vmem:[%s940_s1] sm:$0xff]   ;;  %670 = vmatprep.subr.bf16.mxu1 %v705_v1  ;;  %v710_v6 = vld [vmem:[%s940_s1 + $0x8] sm:$0xff]   ;;  %v714_v10 = vld [vmem:[%s940_s1 + $0x10] sm:$0xff]  }
   0x4   :  { %v707_v3 = vld [vmem:[%s940_s1 + $0x80] sm:$0xff]   ;;  %637 = vmatpush3.bf16.msra.mxu0 %v706_v2  ;;  %v711_v7 = vld [vmem:[%s940_s1 + $0x88] sm:$0xff]   ;;  %v715_v11 = vld [vmem:[%s940_s1 + $0x90] sm:$0xff]  }
   0x5   :  { %671 = vmatpush3.bf16.msra.mxu1 %v707_v3  ;;  %638 = vmatprep.subr.bf16.mxu0 %v708_v4  ;;  %v716_v12 = vld [vmem:[%s940_s1 + $0x58] sm:$0xff]   ;;  %v720_v16 = vld [vmem:[%s940_s1 + $0x60] sm:$0xff]   ;;  %v724_v20 = vld [vmem:[%s940_s1 + $0x68] sm:$0xff]  }
   0x6   :  { %672 = vmatprep.subr.bf16.mxu1 %v709_v5  ;;  %v717_v13 = vld [vmem:[%s940_s1 + $0xd8] sm:$0xff]   ;;  %v721_v17 = vld [vmem:[%s940_s1 + $0xe0] sm:$0xff]   ;;  %v725_v21 = vld [vmem:[%s940_s1 + $0xe8] sm:$0xff]  }
   0x7   :  { %v718_v14 = vld [vmem:[%s940_s1 + $0x18] sm:$0xff]   ;;  %v722_v18 = vld [vmem:[%s940_s1 + $0x20] sm:$0xff]   ;;  %v726_v22 = vld [vmem:[%s940_s1 + $0x28] sm:$0xff]  }
   0x8   :  { %639 = vmatpush3.bf16.msra.mxu0 %v710_v6  ;;  %v719_v15 = vld [vmem:[%s940_s1 + $0x98] sm:$0xff]   ;;  %v723_v19 = vld [vmem:[%s940_s1 + $0xa0] sm:$0xff]   ;;  %v727_v23 = vld [vmem:[%s940_s1 + $0xa8] sm:$0xff]  }
   0x9   :  { %673 = vmatpush3.bf16.msra.mxu1 %v711_v7  ;;  %640 = vmatprep.subr.bf16.mxu0 %v712_v8  ;;  %v728_v24 = vld [vmem:[%s940_s1 + $0x70] sm:$0xff]   ;;  %v732_v28 = vld [vmem:[%s940_s1 + $0x78] sm:$0xff]  }
   0xa   :  { %674 = vmatprep.subr.bf16.mxu1 %v713_v9  ;;  %v729_v25 = vld [vmem:[%s940_s1 + $0xf0] sm:$0xff]   ;;  %v733_v29 = vld [vmem:[%s940_s1 + $0xf8] sm:$0xff]  }
   0xb   :  { %v730_v26 = vld [vmem:[%s940_s1 + $0x30] sm:$0xff]   ;;  %v734_v30 = vld [vmem:[%s940_s1 + $0x38] sm:$0xff]  }
   0xc   :  { %641 = vmatpush3.bf16.msra.mxu0 %v714_v10  ;;  %v731_v27 = vld [vmem:[%s940_s1 + $0xb0] sm:$0xff]   ;;  %v735_v31 = vld [vmem:[%s940_s1 + $0xb8] sm:$0xff]  }
   0xd   :  { %675 = vmatpush3.bf16.msra.mxu1 %v715_v11  ;;  %642 = vmatprep.subr.bf16.mxu0 %v716_v12  ;;  %v736_v32 = vld [vmem:[%s941_s0] ss:$16 sps:$4 sm:$0xff]   ;;  %v738_v33 = vld [vmem:[%s941_s0 + $0x4] ss:$16 sps:$4 sm:$0xff]   ;;  %v739_v34 = vld [vmem:[%s941_s0 + $0x8] ss:$16 sps:$4 sm:$0xff]  }
   0xe   :  { %676 = vmatprep.subr.bf16.mxu1 %v717_v13  ;;  %v741_v35 = vld [vmem:[%s941_s0 + $0xc] ss:$16 sps:$4 sm:$0xff]   ;;  %378 = vmatprep.mubr.bf16.mxu0 %v738_v33  ;;  %v742_v36 = vld [vmem:[%s941_s0 + $0x24] ss:$16 sps:$4 sm:$0xff]   ;;  %v746_v38 = vld [vmem:[%s941_s0 + $0x20] ss:$16 sps:$4 sm:$0xff]  }
   0xf   :  { %435 = vmatprep.mubr.bf16.mxu1 %v741_v35  ;;  %v744_v37 = vld [vmem:[%s941_s0 + $0x2c] ss:$16 sps:$4 sm:$0xff]   ;;  %v747_v39 = vld [vmem:[%s941_s0 + $0x28] ss:$16 sps:$4 sm:$0xff]   ;;  %v748_v40 = vld [vmem:[%s941_s0 + $0x44] ss:$16 sps:$4 sm:$0xff]  }
  0x10   :  { %643 = vmatpush3.bf16.msra.mxu0 %v718_v14  ;;  %v750_v41 = vld [vmem:[%s941_s0 + $0x4c] ss:$16 sps:$4 sm:$0xff]   ;;  %v752_v42 = vld [vmem:[%s941_s0 + $0x40] ss:$16 sps:$4 sm:$0xff]   ;;  %v753_v43 = vld [vmem:[%s941_s0 + $0x48] ss:$16 sps:$4 sm:$0xff]  }
  0x11   :  { %677 = vmatpush3.bf16.msra.mxu1 %v719_v15  ;;  %644 = vmatprep.subr.bf16.mxu0 %v720_v16 }
  0x12   :  { %678 = vmatprep.subr.bf16.mxu1 %v721_v17 }
  0x14   :  { %645 = vmatpush3.bf16.msra.mxu0 %v722_v18 }
  0x15   :  { %679 = vmatpush3.bf16.msra.mxu1 %v723_v19  ;;  %646 = vmatprep.subr.bf16.mxu0 %v724_v20 }
  0x16   :  { %680 = vmatprep.subr.bf16.mxu1 %v725_v21 }
  0x18   :  { %647 = vmatpush3.bf16.msra.mxu0 %v726_v22 }
  0x19   :  { %681 = vmatpush3.bf16.msra.mxu1 %v727_v23  ;;  %648 = vmatprep.subr.bf16.mxu0 %v728_v24 }
  0x1a   :  { %682 = vmatprep.subr.bf16.mxu1 %v729_v25 }
  0x1c   :  { %649 = vmatpush3.bf16.msra.mxu0 %v730_v26 }
  0x1d   :  { %683 = vmatpush3.bf16.msra.mxu1 %v731_v27  ;;  %650 = vmatprep.subr.bf16.mxu0 %v732_v28 }
  0x1e   :  { %684 = vmatprep.subr.bf16.mxu1 %v733_v29 }
  0x20   :  { %651 = vmatpush3.bf16.msra.mxu0 %v734_v30 }
  0x21   :  { %685 = vmatpush3.bf16.msra.mxu1 %v735_v31 }
  0x23   :  { %379 = vmatmul.mubr.bf16.vlgmr.msra.gmra.mrb[0].mxu0 %v736_v32 }
  0x24   :  { %436 = vmatmul.mubr.bf16.vlgmr.msra.gmra.mrb[0].mxu1 %v739_v34  ;;  %386 = vmatprep.mubr.bf16.mxu0 %v742_v36 }
  0x25   :  { %443 = vmatprep.mubr.bf16.mxu1 %v744_v37 }
  0x2b   :  { %387 = vmatmul.mubr.bf16.gmra.mrb[4].mxu0 %v746_v38 }
  0x2c   :  { %444 = vmatmul.mubr.bf16.gmra.mrb[4].mxu1 %v747_v39  ;;  %394 = vmatprep.mubr.bf16.mxu0 %v748_v40 }
  0x2d   :  { %451 = vmatprep.mubr.bf16.mxu1 %v750_v41 }
  0x33   :  { %395 = vmatmul.mubr.bf16.gmra.mrb[8].mxu0 %v752_v42 }
  0x34   :  { %452 = vmatmul.mubr.bf16.gmra.mrb[8].mxu1 %v753_v43 }
  0xf6   :  { %v652_v44 = vpop.f32.mrb[0].mxu0 }
  0xf7   :  { %v686_v45 = vpop.f32.mrb[0].mxu1  ;;  %v653_v46 = vpop.f32.mrb[1].mxu0 }
  0xf8   :  { %v654_v47 = vadd.f32 %v653_v46, %v652_v44  ;;  %v687_v48 = vpop.f32.mrb[1].mxu1  ;;  %v655_v49 = vpop.f32.mrb[2].mxu0 }
  0xf9   :  { %v688_v50 = vadd.f32 %v687_v48, %v686_v45  ;;  %v689_v51 = vpop.f32.mrb[2].mxu1  ;;  %v656_v52 = vpop.f32.mrb[3].mxu0 }
  0xfa   :  { %v657_v53 = vadd.f32 %v656_v52, %v655_v49  ;;  %v690_v54 = vpop.f32.mrb[3].mxu1 }
  0xfb   :  { %v913_v55 = vadd.f32 %v688_v50, %v654_v47  ;;  %v691_v56 = vadd.f32 %v690_v54, %v689_v51 }
  0xfd   :  { %v915_v57 = vadd.f32 %v691_v56, %v657_v53  ;;  %v472_v59 = vmul.f32 %v913_v55, %v913_v55  ;;  %v500_v56 = vlaneseq }
  0xfe   :  { %v658_v58 = vpop.f32.mrb[4].mxu0 }
  0xff   :  { %v460_v60 = vadd.f32 %v915_v57, %v913_v55  ;;  %v473_v61 = vmul.f32 %v915_v57, %v915_v57  ;;  %v692_v62 = vpop.f32.mrb[4].mxu1  ;;  %v659_v63 = vpop.f32.mrb[5].mxu0 }
 0x100   :  { %v660_v0 = vadd.f32 %v659_v63, %v658_v58  ;;  %v693_v1 = vpop.f32.mrb[5].mxu1  ;;  %v661_v2 = vpop.f32.mrb[6].mxu0  ;;  %v501_v58 = vshrl.u32 %v500_v56, 7  ;;  %v496_v63 = vld [vmem:[%s943_s3] sm:$0x1] }
 0x101   :  { %v478_v3 = vadd.f32 %v473_v61, %v472_v59  ;;  %v694_v4 = vadd.f32 %v693_v1, %v692_v62  ;;  %v695_v5 = vpop.f32.mrb[6].mxu1  ;;  %v662_v6 = vpop.f32.mrb[7].mxu0  ;;  %v492_v59 = vld [vmem:[%s942_s2] sm:$0x1] }
 0x102   :  { %v663_v7 = vadd.f32 %v662_v6, %v661_v2  ;;  %v696_v8 = vpop.f32.mrb[7].mxu1 }
 0x103   :  { %v446_v9 = vadd.f32 %v694_v4, %v660_v0  ;;  %v697_v10 = vadd.f32 %v696_v8, %v695_v5 }
 0x105   :  { %v461_v11 = vadd.f32 %v460_v60, %v446_v9  ;;  %v474_v12 = vmul.f32 %v446_v9, %v446_v9  ;;  %v449_v13 = vadd.f32 %v697_v10, %v663_v7  ;;  %v502_v60 = vsub.s32 0, %v501_v58 }
 0x106   :  { %v664_v14 = vpop.f32.mrb[8].mxu0 }
 0x107   :  { %v479_v15 = vadd.f32 %v478_v3, %v474_v12  ;;  %v462_v16 = vadd.f32 %v461_v11, %v449_v13  ;;  %v475_v17 = vmul.f32 %v449_v13, %v449_v13  ;;  %v698_v18 = vpop.f32.mrb[8].mxu1  ;;  %v665_v19 = vpop.f32.mrb[9].mxu0 }
 0x108   :  { %v666_v20 = vadd.f32 %v665_v19, %v664_v14  ;;  %v699_v21 = vpop.f32.mrb[9].mxu1  ;;  %v667_v22 = vpop.f32.mrb[10].mxu0 }
 0x109   :  { %v480_v23 = vadd.f32 %v479_v15, %v475_v17  ;;  %v700_v24 = vadd.f32 %v699_v21, %v698_v18  ;;  %v701_v25 = vpop.f32.mrb[10].mxu1  ;;  %v668_v26 = vpop.f32.mrb[11].mxu0 }
 0x10a   :  { %v669_v27 = vadd.f32 %v668_v26, %v667_v22  ;;  %v702_v28 = vpop.f32.mrb[11].mxu1 }
 0x10b   :  { %v454_v29 = vadd.f32 %v700_v24, %v666_v20  ;;  %v703_v30 = vadd.f32 %v702_v28, %v701_v25 }
 0x10d   :  { %v463_v31 = vadd.f32 %v462_v16, %v454_v29  ;;  %v476_v32 = vmul.f32 %v454_v29, %v454_v29  ;;  %v457_v33 = vadd.f32 %v703_v30, %v669_v27 }
 0x10f   :  { %v481_v34 = vadd.f32 %v480_v23, %v476_v32  ;;  %v464_v35 = vadd.f32 %v463_v31, %v457_v33  ;;  %v477_v36 = vmul.f32 %v457_v33, %v457_v33 }
 0x111   :  { %v465_v37 = vrot.slane %v464_v35, 4  ;;  %v482_v38 = vadd.f32 %v481_v34, %v477_v36 }
 0x113   :  { %v466_v39 = vadd.f32 %v465_v37, %v464_v35  ;;  %v483_v40 = vrot.slane %v482_v38, 4 }
 0x115   :  { %v467_v41 = vrot.slane %v466_v39, 2  ;;  %v484_v42 = vadd.f32 %v483_v40, %v482_v38 }
 0x117   :  { %v468_v43 = vadd.f32 %v467_v41, %v466_v39  ;;  %v485_v44 = vrot.slane %v484_v42, 2 }
 0x119   :  { %v469_v45 = vrot.slane %v468_v43, 1  ;;  %v486_v46 = vadd.f32 %v485_v44, %v484_v42 }
 0x11b   :  { %v470_v47 = vadd.f32 %v469_v45, %v468_v43  ;;  %v487_v48 = vrot.slane %v486_v46, 1 }
 0x11d   :  { %v471_v49 = vmul.f32 0.023809524, %v470_v47  ;;  %v488_v50 = vadd.f32 %v487_v48, %v486_v46 }
 0x11f   :  { %v489_v51 = vmul.f32 0.023809524, %v488_v50  ;;  %v490_v52 = vmul.f32 %v471_v49, %v471_v49 }
 0x121   :  { %v491_v53 = vsub.f32 %v489_v51, %v490_v52 }
 0x123   :  { %v493_v54 = vadd.f32 1e-05, %v491_v53 }
 0x125   :  { %754 = vrsqrt.f32 %v493_v54 }
 0x12f   :  { %v755_v61 = vpop.eup %754 }
 0x130   :  { %v495_v62 = vmul.f32 %v755_v61, %v492_v59 }
 0x132   :  { %v497_v0 = vmul.f32 %v495_v62, %v471_v49  ;;  %v503_v1 = vrot.slane %v495_v62, %v502_v60 }
 0x134   :  { %v498_v2 = vsub.f32 %v496_v63, %v497_v0  ;;  %v505_v3 = vmul.f32 %v503_v1, %v913_v55  ;;  %v506_v4 = vmul.f32 %v503_v1, %v915_v57  ;;  %v507_v5 = vmul.f32 %v503_v1, %v446_v9 }
 0x135   :  { %v508_v6 = vmul.f32 %v503_v1, %v449_v13  ;;  %v509_v7 = vmul.f32 %v503_v1, %v454_v29  ;;  %v510_v8 = vmul.f32 %v503_v1, %v457_v33 }
 0x136   :  { %v515_v10 = vrot.slane %v498_v2, %v502_v60 }
 0x138   :  { %v517_v11 = vadd.f32 %v515_v10, %v505_v3  ;;  %v518_v12 = vadd.f32 %v515_v10, %v506_v4  ;;  %v519_v14 = vadd.f32 %v515_v10, %v507_v5  ;;  %v520_v15 = vadd.f32 %v515_v10, %v508_v6 }
 0x139   :  { %v521_v16 = vadd.f32 %v515_v10, %v509_v7  ;;  %v522_v17 = vadd.f32 %v515_v10, %v510_v8 }
 0x13a   :  { %v523_v18 = vmax.f32 %v517_v11, 0.0  ;;  %v524_v19 = vmax.f32 %v518_v12, 0.0  ;;  %v525_v20 = vmax.f32 %v519_v14, 0.0  ;;  %v526_v21 = vmax.f32 %v520_v15, 0.0 }
 0x13b   :  { %v527_v22 = vmax.f32 %v521_v16, 0.0  ;;  %v528_v23 = vmax.f32 %v522_v17, 0.0 }
 0x13c   :  { %v622_v55 = vpack.c.bf16 %v524_v19, %v523_v18  ;;  %v627_v24 = vpack.c.bf16 %v526_v21, %v525_v20 }
 0x13d   :  { %v632_v57 = vpack.c.bf16 %v528_v23, %v527_v22 }
 0x13e   :  { %623 = vst [vmem:[%s944_s4] sm:$0xff] %v622_v55   ;;  %634 = vst [vmem:[%s944_s4 + $0x8] sm:$0xff] %v627_v24  }
 0x13f   :  { %635 = vst [vmem:[%s944_s4 + $0x10] sm:$0xff] %v632_v57  }

// kernel: mhcnn_forward.9
= control target key start
LH: loop header
LB: loop body
LE: loop exit
PB: predicated region body
PF: predicated region fallthrough
CT: control target
= control target key end

     0   :  { %v2654_v34 = vmov 0.0   ;;  %vm2655_vm0 = vmmov 0   ;;  %vm1293_vm1 = vcmask 1048064   ;;  %vm1214_vm2 = vcmask 523264   ;;  %s3512_s1 = inlined_call_operand.vmem [shape: bf16[640,128], index: 1, kind: input, shape index: {}]   ;;  %s3513_s0 = inlined_call_operand.vmem [shape: bf16[48,640], index: 0, kind: input, shape index: {}]   ;;  %s3514_s4 = inlined_call_operand.vmem [shape: bf16[128,768], index: 4, kind: input, shape index: {}]   ;;  %s3515_s2 = inlined_call_operand.vmem [shape: f32[1,128], index: 2, kind: input, shape index: {}]   ;;  %s3516_s3 = inlined_call_operand.vmem [shape: f32[1,128], index: 3, kind: input, shape index: {}]   ;;  %s3517_s5 = inlined_call_operand.vmem [shape: f32[1,768], index: 5, kind: input, shape index: {}]   ;;  %s3518_s6 = inlined_call_operand.vmem [shape: f32[8,48], index: 6, kind: input, shape index: {}]   ;;  %s3519_s7 = inlined_call_operand.vmem [shape: f32[64,128], index: 7, kind: input, shape index: {}]   ;;  %s3520_s8 = inlined_call_operand.vmem [shape: f32[1,128], index: 8, kind: input, shape index: {}]   ;;  %s3521_s9 = inlined_call_operand.vmem [shape: f32[8,128], index: 9, kind: output, shape index: {}]  }
   0x1   :  { %v2423_v0 = vld [vmem:[%s3512_s1 + $0x40] sm:$0xff]   ;;  %v2427_v4 = vld [vmem:[%s3512_s1 + $0x48] sm:$0xff]   ;;  %v2431_v8 = vld [vmem:[%s3512_s1 + $0x50] sm:$0xff]   ;;  %vm1420_vm3 = vcmask 392192  }
   0x2   :  { %v2424_v1 = vld [vmem:[%s3512_s1 + $0xc0] sm:$0xff]   ;;  %2112 = vmatprep.subr.bf16.mxu0 %v2423_v0  ;;  %v2428_v5 = vld [vmem:[%s3512_s1 + $0xc8] sm:$0xff]   ;;  %v2432_v9 = vld [vmem:[%s3512_s1 + $0xd0] sm:$0xff]  }
   0x3   :  { %v2425_v2 = vld [vmem:[%s3512_s1] sm:$0xff]   ;;  %2146 = vmatprep.subr.bf16.mxu1 %v2424_v1  ;;  %v2429_v6 = vld [vmem:[%s3512_s1 + $0x8] sm:$0xff]   ;;  %v2433_v10 = vld [vmem:[%s3512_s1 + $0x10] sm:$0xff]  }
   0x4   :  { %v2426_v3 = vld [vmem:[%s3512_s1 + $0x80] sm:$0xff]   ;;  %2113 = vmatpush3.bf16.msra.mxu0 %v2425_v2  ;;  %v2430_v7 = vld [vmem:[%s3512_s1 + $0x88] sm:$0xff]   ;;  %v2434_v11 = vld [vmem:[%s3512_s1 + $0x90] sm:$0xff]  }
   0x5   :  { %2147 = vmatpush3.bf16.msra.mxu1 %v2426_v3  ;;  %2114 = vmatprep.subr.bf16.mxu0 %v2427_v4  ;;  %v2435_v12 = vld [vmem:[%s3512_s1 + $0x58] sm:$0xff]   ;;  %v2439_v16 = vld [vmem:[%s3512_s1 + $0x60] sm:$0xff]   ;;  %v2443_v20 = vld [vmem:[%s3512_s1 + $0x68] sm:$0xff]  }
   0x6   :  { %2148 = vmatprep.subr.bf16.mxu1 %v2428_v5  ;;  %v2436_v13 = vld [vmem:[%s3512_s1 + $0xd8] sm:$0xff]   ;;  %v2440_v17 = vld [vmem:[%s3512_s1 + $0xe0] sm:$0xff]   ;;  %v2444_v21 = vld [vmem:[%s3512_s1 + $0xe8] sm:$0xff]  }
   0x7   :  { %v2437_v14 = vld [vmem:[%s3512_s1 + $0x18] sm:$0xff]   ;;  %v2441_v18 = vld [vmem:[%s3512_s1 + $0x20] sm:$0xff]   ;;  %v2445_v22 = vld [vmem:[%s3512_s1 + $0x28] sm:$0xff]  }
   0x8   :  { %2115 = vmatpush3.bf16.msra.mxu0 %v2429_v6  ;;  %v2438_v15 = vld [vmem:[%s3512_s1 + $0x98] sm:$0xff]   ;;  %v2442_v19 = vld [vmem:[%s3512_s1 + $0xa0] sm:$0xff]   ;;  %v2446_v23 = vld [vmem:[%s3512_s1 + $0xa8] sm:$0xff]  }
   0x9   :  { %2149 = vmatpush3.bf16.msra.mxu1 %v2430_v7  ;;  %2116 = vmatprep.subr.bf16.mxu0 %v2431_v8  ;;  %v2447_v24 = vld [vmem:[%s3512_s1 + $0x70] sm:$0xff]   ;;  %v2451_v28 = vld [vmem:[%s3512_s1 + $0x78] sm:$0xff]   ;;  %v2460_v36 = vld [vmem:[%s3513_s0 + $0xc] ss:$20 sps:$4 sm:$0xff]  }
   0xa   :  { %2150 = vmatprep.subr.bf16.mxu1 %v2432_v9  ;;  %v2448_v25 = vld [vmem:[%s3512_s1 + $0xf0] sm:$0xff]   ;;  %v2452_v29 = vld [vmem:[%s3512_s1 + $0xf8] sm:$0xff]   ;;  %v2461_v37 = vld [vmem:[%s3512_s1 + $0x100] sm:$0xff]   ;;  %538 = vmatprep.mubr.bf16.mxu1 %v2460_v36 }
   0xb   :  { %v2449_v26 = vld [vmem:[%s3512_s1 + $0x30] sm:$0xff]   ;;  %v2453_v30 = vld [vmem:[%s3512_s1 + $0x38] sm:$0xff]   ;;  %v2462_v38 = vld [vmem:[%s3512_s1 + $0x108] sm:$0xff]  }
   0xc   :  { %2117 = vmatpush3.bf16.msra.mxu0 %v2433_v10  ;;  %v2450_v27 = vld [vmem:[%s3512_s1 + $0xb0] sm:$0xff]   ;;  %v2454_v31 = vld [vmem:[%s3512_s1 + $0xb8] sm:$0xff]   ;;  %v2464_v39 = vld [vmem:[%s3513_s0 + $0x2c] ss:$20 sps:$4 sm:$0xff]  }
   0xd   :  { %2151 = vmatpush3.bf16.msra.mxu1 %v2434_v11  ;;  %2118 = vmatprep.subr.bf16.mxu0 %v2435_v12  ;;  %v2455_v32 = vld [vmem:[%s3513_s0] ss:$20 sps:$4 sm:$0xff]   ;;  %v2457_v33 = vld [vmem:[%s3513_s0 + $0x4] ss:$20 sps:$4 sm:$0xff]   ;;  %v2458_v35 = vld [vmem:[%s3513_s0 + $0x8] ss:$20 sps:$4 sm:$0xff]  }
   0xe   :  { %2152 = vmatprep.subr.bf16.mxu1 %v2436_v13  ;;  %481 = vmatprep.mubr.bf16.mxu0 %v2457_v33  ;;  %v2463_v40 = vld [vmem:[%s3512_s1 + $0x110] sm:$0xff]   ;;  %v2468_v42 = vld [vmem:[%s3513_s0 + $0x28] ss:$20 sps:$4 sm:$0xff]   ;;  %v2471_v47 = vld [vmem:[%s3512_s1 + $0x120] sm:$0xff]  }
   0xf   :  { %v2466_v41 = vld [vmem:[%s3513_s0 + $0x34] ss:$20 sps:$4 sm:$0xff]   ;;  %v2469_v43 = vld [vmem:[%s3513_s0 + $0x30] ss:$20 sps:$4 sm:$0xff]   ;;  %v2470_v46 = vld [vmem:[%s3512_s1 + $0x118] sm:$0xff]  }
  0x10   :  { %2119 = vmatpush3.bf16.msra.mxu0 %v2437_v14  ;;  %v2472_v44 = vld [vmem:[%s3513_s0 + $0x54] ss:$20 sps:$4 sm:$0xff]   ;;  %v2474_v45 = vld [vmem:[%s3513_s0 + $0x5c] ss:$20 sps:$4 sm:$0xff]   ;;  %v2477_v49 = vld [vmem:[%s3513_s0 + $0x58] ss:$20 sps:$4 sm:$0xff]  }
  0x11   :  { %2153 = vmatpush3.bf16.msra.mxu1 %v2438_v15  ;;  %2120 = vmatprep.subr.bf16.mxu0 %v2439_v16  ;;  %v2476_v48 = vld [vmem:[%s3513_s0 + $0x50] ss:$20 sps:$4 sm:$0xff]   ;;  %v2478_v50 = vld [vmem:[%s3512_s1 + $0x128] sm:$0xff]   ;;  %v2480_v52 = vld [vmem:[%s3512_s1 + $0x138] sm:$0xff]  }
  0x12   :  { %2154 = vmatprep.subr.bf16.mxu1 %v2440_v17  ;;  %v2479_v51 = vld [vmem:[%s3512_s1 + $0x130] sm:$0xff]   ;;  %v2482_v54 = vld [vmem:[%s3513_s0 + $0x38] ss:$20 sps:$4 sm:$0xff]   ;;  %v2486_v56 = vld [vmem:[%s3514_s4 + $0x4] ss:$24 sps:$4 sm:$0xff]  }
  0x13   :  { %v2481_v53 = vld [vmem:[%s3513_s0 + $0x10] ss:$20 sps:$4 sm:$0xff]   ;;  %v2483_v55 = vld [vmem:[%s3513_s0 + $0x60] ss:$20 sps:$4 sm:$0xff]  }
  0x14   :  { %2121 = vmatpush3.bf16.msra.mxu0 %v2441_v18  ;;  %v2484_v57 = vld [vmem:[%s3514_s4] ss:$24 sps:$4 sm:$0xff]   ;;  %v2489_v59 = vld [vmem:[%s3514_s4 + $0xc] ss:$24 sps:$4 sm:$0xff]   ;;  %v2490_v61 = vld [vmem:[%s3514_s4 + $0x30] ss:$24 sps:$4 sm:$0xff]  }
  0x15   :  { %2155 = vmatpush3.bf16.msra.mxu1 %v2442_v19  ;;  %2122 = vmatprep.subr.bf16.mxu0 %v2443_v20  ;;  %v2487_v58 = vld [vmem:[%s3514_s4 + $0x8] ss:$24 sps:$4 sm:$0xff]   ;;  %v2492_v60 = vld [vmem:[%s3514_s4 + $0x34] ss:$24 sps:$4 sm:$0xff]   ;;  %v2493_v63 = vld [vmem:[%s3514_s4 + $0x38] ss:$24 sps:$4 sm:$0xff]  }
  0x16   :  { %2156 = vmatprep.subr.bf16.mxu1 %v2444_v21  ;;  %v2495_v62 = vld [vmem:[%s3514_s4 + $0x3c] ss:$24 sps:$4 sm:$0xff]   ;;  %v2496_v1 = vld [vmem:[%s3514_s4 + $0x60] ss:$24 sps:$4 sm:$0xff]   ;;  %v2501_v2 = vld [vmem:[%s3514_s4 + $0x6c] ss:$24 sps:$4 sm:$0xff]  }
  0x17   :  { %v2498_v0 = vld [vmem:[%s3514_s4 + $0x64] ss:$24 sps:$4 sm:$0xff]   ;;  %v2499_v3 = vld [vmem:[%s3514_s4 + $0x68] ss:$24 sps:$4 sm:$0xff]   ;;  %v2504_v4 = vld [vmem:[%s3514_s4 + $0x94] ss:$24 sps:$4 sm:$0xff]  }
  0x18   :  { %2123 = vmatpush3.bf16.msra.mxu0 %v2445_v22  ;;  %v2502_v5 = vld [vmem:[%s3514_s4 + $0x90] ss:$24 sps:$4 sm:$0xff]   ;;  %v2507_v6 = vld [vmem:[%s3514_s4 + $0x9c] ss:$24 sps:$4 sm:$0xff]   ;;  %v2508_v9 = vld [vmem:[%s3514_s4 + $0xc0] ss:$24 sps:$4 sm:$0xff]  }
  0x19   :  { %2157 = vmatpush3.bf16.msra.mxu1 %v2446_v23  ;;  %2124 = vmatprep.subr.bf16.mxu0 %v2447_v24  ;;  %v2505_v7 = vld [vmem:[%s3514_s4 + $0x98] ss:$24 sps:$4 sm:$0xff]   ;;  %v2510_v8 = vld [vmem:[%s3514_s4 + $0xc4] ss:$24 sps:$4 sm:$0xff]   ;;  %v2511_v11 = vld [vmem:[%s3514_s4 + $0xc8] ss:$24 sps:$4 sm:$0xff]  }
  0x1a   :  { %2158 = vmatprep.subr.bf16.mxu1 %v2448_v25  ;;  %v2513_v10 = vld [vmem:[%s3514_s4 + $0xcc] ss:$24 sps:$4 sm:$0xff]   ;;  %v2514_v13 = vld [vmem:[%s3514_s4 + $0xf0] ss:$24 sps:$4 sm:$0xff]   ;;  %v2519_v14 = vld [vmem:[%s3514_s4 + $0xfc] ss:$24 sps:$4 sm:$0xff]  }
  0x1b   :  { %v2516_v12 = vld [vmem:[%s3514_s4 + $0xf4] ss:$24 sps:$4 sm:$0xff]   ;;  %v2517_v15 = vld [vmem:[%s3514_s4 + $0xf8] ss:$24 sps:$4 sm:$0xff]   ;;  %v2522_v16 = vld [vmem:[%s3514_s4 + $0x124] ss:$24 sps:$4 sm:$0xff]  }
  0x1c   :  { %2125 = vmatpush3.bf16.msra.mxu0 %v2449_v26  ;;  %v2520_v17 = vld [vmem:[%s3514_s4 + $0x120] ss:$24 sps:$4 sm:$0xff]   ;;  %v2525_v18 = vld [vmem:[%s3514_s4 + $0x12c] ss:$24 sps:$4 sm:$0xff]   ;;  %v2526_v21 = vld [vmem:[%s3514_s4 + $0x150] ss:$24 sps:$4 sm:$0xff]  }
  0x1d   :  { %2159 = vmatpush3.bf16.msra.mxu1 %v2450_v27  ;;  %2126 = vmatprep.subr.bf16.mxu0 %v2451_v28  ;;  %v2523_v19 = vld [vmem:[%s3514_s4 + $0x128] ss:$24 sps:$4 sm:$0xff]   ;;  %v2528_v20 = vld [vmem:[%s3514_s4 + $0x154] ss:$24 sps:$4 sm:$0xff]   ;;  %v2656_v23 = vmov 0  }
  0x1e   :  { %2160 = vmatprep.subr.bf16.mxu1 %v2452_v29  ;;  %v2531_v22 = vld [vmem:[%s3514_s4 + $0x15c] ss:$24 sps:$4 sm:$0xff]   ;;  %v2529_v25 = vld [vmem:[%s3514_s4 + $0x158] ss:$24 sps:$4 sm:$0xff]  }
  0x1f   :  { %v2534_v24 = vld [vmem:[%s3514_s4 + $0x14] ss:$24 sps:$4 sm:$0xff]  }
  0x20   :  { %2127 = vmatpush3.bf16.msra.mxu0 %v2453_v30 }
  0x21   :  { %2161 = vmatpush3.bf16.msra.mxu1 %v2454_v31  ;;  %2228 = vmatprep.subr.bf16.mxu0 %v2654_v34 }
  0x22   :  { %1012 = vmatprep.subr.bf16.mxu1 %v2486_v56 }
  0x23   :  { %482 = vmatmul.mubr.bf16.vlgmr.msra.gmra.mrb[0].mxu0 %v2455_v32 }
  0x24   :  { %539 = vmatmul.mubr.bf16.vlgmr.msra.gmra.mrb[0].mxu1 %v2458_v35  ;;  %2229 = vmatpush3.bf16.msra.mxu0 %v2461_v37 }
  0x25   :  { %2230 = vmatprep.subr.bf16.mxu0 %v2654_v34  ;;  %489 = vmatprep.mubr.bf16.mxu0 %v2464_v39 }
  0x26   :  { %546 = vmatprep.mubr.bf16.mxu1 %v2466_v41  ;;  %1013 = vmatpush1.bf16.msra.mxu1 %v2484_v57 }
  0x27   :  { %1014 = vmatprep.subr.bf16.mxu1 %v2492_v60 }
  0x28   :  { %2231 = vmatpush3.bf16.msra.mxu0 %v2462_v38 }
  0x29   :  { %2232 = vmatprep.subr.bf16.mxu0 %v2654_v34 }
  0x2a   :  { %1015 = vmatpush1.bf16.msra.mxu1 %v2490_v61 }
  0x2b   :  { %490 = vmatmul.mubr.bf16.gmra.mrb[4].mxu0 %v2468_v42  ;;  %1016 = vmatprep.subr.bf16.mxu1 %v2498_v0 }
  0x2c   :  { %2233 = vmatpush3.bf16.msra.mxu0 %v2463_v40  ;;  %547 = vmatmul.mubr.bf16.gmra.mrb[4].mxu1 %v2469_v43 }
  0x2d   :  { %2234 = vmatprep.subr.bf16.mxu0 %v2654_v34  ;;  %497 = vmatprep.mubr.bf16.mxu0 %v2472_v44 }
  0x2e   :  { %554 = vmatprep.mubr.bf16.mxu1 %v2474_v45  ;;  %1017 = vmatpush1.bf16.msra.mxu1 %v2496_v1 }
  0x2f   :  { %1018 = vmatprep.subr.bf16.mxu1 %v2504_v4 }
  0x30   :  { %2235 = vmatpush3.bf16.msra.mxu0 %v2470_v46 }
  0x31   :  { %2236 = vmatprep.subr.bf16.mxu0 %v2654_v34 }
  0x32   :  { %1019 = vmatpush1.bf16.msra.mxu1 %v2502_v5 }
  0x33   :  { %498 = vmatmul.mubr.bf16.gmra.mrb[8].mxu0 %v2476_v48  ;;  %1020 = vmatprep.subr.bf16.mxu1 %v2510_v8 }
  0x34   :  { %2237 = vmatpush3.bf16.msra.mxu0 %v2471_v47  ;;  %555 = vmatmul.mubr.bf16.gmra.mrb[8].mxu1 %v2477_v49 }
  0x35   :  { %2238 = vmatprep.subr.bf16.mxu0 %v2654_v34  ;;  %2244 = vmatprep.mubr.msk.bf16.mxu0 %vm2655_vm0, %v2654_v34 }
  0x36   :  { %1021 = vmatpush1.bf16.msra.mxu1 %v2508_v9  ;;  %1044 = vmatprep.mubr.bf16.mxu1 %v2656_v23 }
  0x37   :  { %1022 = vmatprep.subr.bf16.mxu1 %v2516_v12 }
  0x38   :  { %2239 = vmatpush3.bf16.msra.mxu0 %v2478_v50 }
  0x39   :  { %2240 = vmatprep.subr.bf16.mxu0 %v2654_v34 }
  0x3a   :  { %1023 = vmatpush1.bf16.msra.mxu1 %v2514_v13 }
  0x3b   :  { %1024 = vmatprep.subr.bf16.mxu1 %v2522_v16 }
  0x3c   :  { %2241 = vmatpush3.bf16.msra.mxu0 %v2479_v51 }
  0x3d   :  { %2242 = vmatprep.subr.bf16.mxu0 %v2654_v34 }
  0x3e   :  { %1025 = vmatpush1.bf16.msra.mxu1 %v2520_v17 }
  0x3f   :  { %1026 = vmatprep.subr.bf16.mxu1 %v2528_v20 }
  0x40   :  { %2243 = vmatpush3.bf16.msra.mxu0 %v2480_v52 }
  0x41   :  { %1075 = vmatprep.subr.bf16.mxu0 %v2489_v59 }
  0x42   :  { %1027 = vmatpush1.bf16.msra.mxu1 %v2526_v21 }
  0x43   :  { %2245 = vmatmul.mubr.bf16.vlgmr.msra.gmra.mrb[12].mxu0 %v2481_v53  ;;  %1138 = vmatprep.subr.bf16.mxu1 %v2534_v24 }
  0x44   :  { %2248 = vmatprep.mubr.msk.bf16.mxu0 %vm2655_vm0, %v2654_v34  ;;  %1076 = vmatpush1.bf16.msra.mxu0 %v2487_v58 }
  0x45   :  { %1077 = vmatprep.subr.bf16.mxu0 %v2495_v62 }
  0x48   :  { %1078 = vmatpush1.bf16.msra.mxu0 %v2493_v63 }
  0x49   :  { %1079 = vmatprep.subr.bf16.mxu0 %v2501_v2 }
  0x4b   :  { %2249 = vmatmul.mubr.bf16.gmra.mrb[16].mxu0 %v2482_v54 }
  0x4c   :  { %2252 = vmatprep.mubr.msk.bf16.mxu0 %vm2655_vm0, %v2654_v34  ;;  %1080 = vmatpush1.bf16.msra.mxu0 %v2499_v3 }
  0x4d   :  { %1081 = vmatprep.subr.bf16.mxu0 %v2507_v6 }
  0x50   :  { %1082 = vmatpush1.bf16.msra.mxu0 %v2505_v7 }
  0x51   :  { %1083 = vmatprep.subr.bf16.mxu0 %v2513_v10 }
  0x53   :  { %2253 = vmatmul.mubr.bf16.gmra.mrb[20].mxu0 %v2483_v55 }
  0x54   :  { %1084 = vmatpush1.bf16.msra.mxu0 %v2511_v11  ;;  %1107 = vmatprep.mubr.bf16.mxu0 %v2656_v23 }
  0x55   :  { %1085 = vmatprep.subr.bf16.mxu0 %v2519_v14 }
  0x58   :  { %1086 = vmatpush1.bf16.msra.mxu0 %v2517_v15 }
  0x59   :  { %1087 = vmatprep.subr.bf16.mxu0 %v2525_v18 }
  0x5c   :  { %1088 = vmatpush1.bf16.msra.mxu0 %v2523_v19 }
  0x5d   :  { %1089 = vmatprep.subr.bf16.mxu0 %v2531_v22 }
  0x60   :  { %1090 = vmatpush1.bf16.msra.mxu0 %v2529_v25 }
  0xf6   :  { %v2128_v26 = vpop.f32.mrb[0].mxu0 }
  0xf7   :  { %v2162_v27 = vpop.f32.mrb[0].mxu1  ;;  %v2129_v28 = vpop.f32.mrb[1].mxu0 }
  0xf8   :  { %v2130_v29 = vadd.f32 %v2129_v28, %v2128_v26  ;;  %v2163_v30 = vpop.f32.mrb[1].mxu1  ;;  %v2131_v31 = vpop.f32.mrb[2].mxu0 }
  0xf9   :  { %v2164_v32 = vadd.f32 %v2163_v30, %v2162_v27  ;;  %v2165_v33 = vpop.f32.mrb[2].mxu1  ;;  %v2132_v35 = vpop.f32.mrb[3].mxu0 }
  0xfa   :  { %v2133_v36 = vadd.f32 %v2132_v35, %v2131_v31  ;;  %v2166_v37 = vpop.f32.mrb[3].mxu1 }
  0xfb   :  { %v2167_v38 = vadd.f32 %v2166_v37, %v2165_v33  ;;  %v541_v39 = vadd.f32 %v2164_v32, %v2130_v29 }
  0xfd   :  { %v544_v40 = vadd.f32 %v2167_v38, %v2133_v36 }
  0xfe   :  { %v2134_v41 = vpop.f32.mrb[4].mxu0 }
  0xff   :  { %v2168_v42 = vpop.f32.mrb[4].mxu1  ;;  %v2135_v43 = vpop.f32.mrb[5].mxu0 }
 0x100   :  { %v2136_v44 = vadd.f32 %v2135_v43, %v2134_v41  ;;  %v2169_v45 = vpop.f32.mrb[5].mxu1  ;;  %v2137_v46 = vpop.f32.mrb[6].mxu0 }
 0x101   :  { %v2170_v47 = vadd.f32 %v2169_v45, %v2168_v42  ;;  %v2171_v48 = vpop.f32.mrb[6].mxu1  ;;  %v2138_v49 = vpop.f32.mrb[7].mxu0 }
 0x102   :  { %v2139_v50 = vadd.f32 %v2138_v49, %v2137_v46  ;;  %v2172_v51 = vpop.f32.mrb[7].mxu1 }
 0x103   :  { %v2173_v52 = vadd.f32 %v2172_v51, %v2171_v48  ;;  %v549_v53 = vadd.f32 %v2170_v47, %v2136_v44 }
 0x105   :  { %v552_v54 = vadd.f32 %v2173_v52, %v2139_v50 }
 0x106   :  { %v2140_v55 = vpop.f32.mrb[8].mxu0 }
 0x107   :  { %v2174_v56 = vpop.f32.mrb[8].mxu1  ;;  %v2141_v57 = vpop.f32.mrb[9].mxu0 }
 0x108   :  { %v2142_v58 = vadd.f32 %v2141_v57, %v2140_v55  ;;  %v2175_v59 = vpop.f32.mrb[9].mxu1  ;;  %v2143_v60 = vpop.f32.mrb[10].mxu0 }
 0x109   :  { %v2176_v61 = vadd.f32 %v2175_v59, %v2174_v56  ;;  %v2177_v62 = vpop.f32.mrb[10].mxu1  ;;  %v2144_v63 = vpop.f32.mrb[11].mxu0 }
 0x10a   :  { %v2145_v0 = vadd.f32 %v2144_v63, %v2143_v60  ;;  %v2178_v1 = vpop.f32.mrb[11].mxu1  ;;  %v652_v60 = vld [vmem:[%s3515_s2] sm:$0x1] }
 0x10b   :  { %v2179_v2 = vadd.f32 %v2178_v1, %v2177_v62  ;;  %v557_v3 = vadd.f32 %v2176_v61, %v2142_v58  ;;  %v660_v58 = vlaneseq }
 0x10d   :  { %v560_v4 = vadd.f32 %v2179_v2, %v2145_v0  ;;  %v2994_v59 = vshrl.u32 %v660_v58, 7  ;;  %v656_v0 = vld [vmem:[%s3516_s3] sm:$0x1] }
 0x10f   :  { %v3000_v61 = vsub.s32 0, %v2994_v59 }
 0x116   :  { %v597_v5 = vpop.f32.mrb[12].mxu0 }
 0x117   :  { %v2989_v6 = vadd.f32 %v597_v5, %v541_v39  ;;  %v2246_v7 = vpop.f32.mrb[13].mxu0 }
 0x118   :  { %v600_v8 = vpop.f32.mrb[14].mxu0 }
 0x119   :  { %v601_v9 = vadd.f32 %v600_v8, %v544_v40  ;;  %v2247_v10 = vpop.f32.mrb[15].mxu0  ;;  %v632_v11 = vmul.f32 %v2989_v6, %v2989_v6 }
 0x11b   :  { %v620_v12 = vadd.f32 %v601_v9, %v2989_v6  ;;  %v633_v13 = vmul.f32 %v601_v9, %v601_v9 }
 0x11d   :  { %v638_v14 = vadd.f32 %v633_v13, %v632_v11 }
 0x11e   :  { %v605_v15 = vpop.f32.mrb[16].mxu0 }
 0x11f   :  { %v606_v16 = vadd.f32 %v605_v15, %v549_v53  ;;  %v2250_v17 = vpop.f32.mrb[17].mxu0 }
 0x120   :  { %v608_v18 = vpop.f32.mrb[18].mxu0 }
 0x121   :  { %v621_v19 = vadd.f32 %v620_v12, %v606_v16  ;;  %v634_v20 = vmul.f32 %v606_v16, %v606_v16  ;;  %v609_v21 = vadd.f32 %v608_v18, %v552_v54  ;;  %v2251_v22 = vpop.f32.mrb[19].mxu0 }
 0x123   :  { %v639_v24 = vadd.f32 %v638_v14, %v634_v20  ;;  %v622_v25 = vadd.f32 %v621_v19, %v609_v21  ;;  %v635_v26 = vmul.f32 %v609_v21, %v609_v21 }
 0x125   :  { %v640_v27 = vadd.f32 %v639_v24, %v635_v26  ;;  %v2537_v26 = vld [vmem:[%s3514_s4 + $0x44] ss:$24 sps:$4 sm:$0xff]  }
 0x126   :  { %v613_v28 = vpop.f32.mrb[20].mxu0 }
 0x127   :  { %v614_v29 = vadd.f32 %v613_v28, %v557_v3  ;;  %v2254_v30 = vpop.f32.mrb[21].mxu0 }
 0x128   :  { %v616_v31 = vpop.f32.mrb[22].mxu0  ;;  %v2540_v30 = vld [vmem:[%s3514_s4 + $0x74] ss:$24 sps:$4 sm:$0xff]  }
 0x129   :  { %v623_v32 = vadd.f32 %v622_v25, %v614_v29  ;;  %v636_v33 = vmul.f32 %v614_v29, %v614_v29  ;;  %v617_v35 = vadd.f32 %v616_v31, %v560_v4  ;;  %v2255_v36 = vpop.f32.mrb[23].mxu0  ;;  %v2538_v31 = vld [vmem:[%s3514_s4 + $0x70] ss:$24 sps:$4 sm:$0xff]  }
 0x12a   :  { %v2544_v36 = vld [vmem:[%s3514_s4 + $0xd0] ss:$24 sps:$4 sm:$0xff]  }
 0x12b   :  { %v641_v37 = vadd.f32 %v640_v27, %v636_v33  ;;  %v624_v38 = vadd.f32 %v623_v32, %v617_v35  ;;  %v637_v39 = vmul.f32 %v617_v35, %v617_v35  ;;  %v2543_v32 = vld [vmem:[%s3514_s4 + $0xa4] ss:$24 sps:$4 sm:$0xff]   ;;  %v2541_v33 = vld [vmem:[%s3514_s4 + $0xa0] ss:$24 sps:$4 sm:$0xff]  }
 0x12d   :  { %v625_v40 = vrot.slane %v624_v38, 4  ;;  %v642_v41 = vadd.f32 %v641_v37, %v637_v39  ;;  %v2549_v37 = vld [vmem:[%s3514_s4 + $0x104] ss:$24 sps:$4 sm:$0xff]   ;;  %v2552_v39 = vld [vmem:[%s3514_s4 + $0x134] ss:$24 sps:$4 sm:$0xff]  }
 0x12f   :  { %v626_v42 = vadd.f32 %v625_v40, %v624_v38  ;;  %v643_v43 = vrot.slane %v642_v41, 4  ;;  %v2547_v38 = vld [vmem:[%s3514_s4 + $0x100] ss:$24 sps:$4 sm:$0xff]   ;;  %v2550_v40 = vld [vmem:[%s3514_s4 + $0x130] ss:$24 sps:$4 sm:$0xff]  }
 0x131   :  { %v627_v44 = vrot.slane %v626_v42, 2  ;;  %v644_v45 = vadd.f32 %v643_v43, %v642_v41  ;;  %v2555_v41 = vld [vmem:[%s3514_s4 + $0x164] ss:$24 sps:$4 sm:$0xff]   ;;  %v752_v43 = vsub.s32 2, %v2994_v59 }
 0x133   :  { %v628_v46 = vadd.f32 %v627_v44, %v626_v42  ;;  %v645_v47 = vrot.slane %v644_v45, 2  ;;  %v2553_v42 = vld [vmem:[%s3514_s4 + $0x160] ss:$24 sps:$4 sm:$0xff]  }
 0x134   :  { %v3068_v44 = vld [vmem:[%s3517_s5] sm:$0x3f] }
 0x135   :  { %v629_v48 = vrot.slane %v628_v46, 1  ;;  %v646_v49 = vadd.f32 %v645_v47, %v644_v45  ;;  %v748_v45 = vsub.s32 1, %v2994_v59  ;;  %v3074_v47 = vrot.slane %v3068_v44, %v3000_v61 }
 0x137   :  { %v630_v50 = vadd.f32 %v629_v48, %v628_v46  ;;  %v647_v51 = vrot.slane %v646_v49, 1  ;;  %v756_v46 = vsub.s32 3, %v2994_v59  ;;  %v3080_v48 = vrot.slane %v3068_v44, %v748_v45 }
 0x139   :  { %v631_v52 = vmul.f32 0.023809524, %v630_v50  ;;  %v648_v53 = vadd.f32 %v647_v51, %v646_v49  ;;  %v3083_v49 = vrot.slane %v3068_v44, %v756_v46 }
 0x13b   :  { %v649_v54 = vmul.f32 0.023809524, %v648_v53  ;;  %v650_v55 = vmul.f32 %v631_v52, %v631_v52 }
 0x13d   :  { %v651_v56 = vsub.f32 %v649_v54, %v650_v55 }
 0x13f   :  { %v653_v57 = vadd.f32 1e-05, %v651_v56 }
 0x141   :  { %2556 = vrsqrt.f32 %v653_v57 }
 0x14b   :  { %v2557_v62 = vpop.eup %2556 }
 0x14c   :  { %v655_v63 = vmul.f32 %v2557_v62, %v652_v60 }
 0x14e   :  { %v657_v1 = vmul.f32 %v655_v63, %v631_v52  ;;  %v663_v2 = vrot.slane %v655_v63, %v3000_v61 }
 0x150   :  { %v658_v3 = vsub.f32 %v656_v0, %v657_v1  ;;  %v670_v4 = vmul.f32 %v663_v2, %v617_v35  ;;  %v665_v5 = vmul.f32 %v663_v2, %v2989_v6  ;;  %v666_v7 = vmul.f32 %v663_v2, %v601_v9  ;;  %v2532_v6 = vld [vmem:[%s3514_s4 + $0x10] ss:$24 sps:$4 sm:$0xff]   ;;  %v2546_v35 = vld [vmem:[%s3514_s4 + $0xd4] ss:$24 sps:$4 sm:$0xff]  }
 0x151   :  { %v667_v8 = vmul.f32 %v663_v2, %v606_v16  ;;  %v668_v10 = vmul.f32 %v663_v2, %v609_v21  ;;  %v669_v11 = vmul.f32 %v663_v2, %v614_v29  ;;  %v2535_v29 = vld [vmem:[%s3514_s4 + $0x40] ss:$24 sps:$4 sm:$0xff]   ;;  %s2657_s4 = smov 64  }
 0x152   :  { %v675_v12 = vrot.slane %v658_v3, %v3000_v61 }
 0x154   :  { %v677_v13 = vadd.f32 %v675_v12, %v665_v5  ;;  %v678_v14 = vadd.f32 %v675_v12, %v666_v7  ;;  %v679_v15 = vadd.f32 %v675_v12, %v667_v8  ;;  %v680_v17 = vadd.f32 %v675_v12, %v668_v10 }
 0x155   :  { %v681_v18 = vadd.f32 %v675_v12, %v669_v11  ;;  %v682_v19 = vadd.f32 %v675_v12, %v670_v4 }
 0x156   :  { %v683_v20 = vmax.f32 %v677_v13, 0.0  ;;  %v684_v22 = vmax.f32 %v678_v14, 0.0  ;;  %v685_v24 = vmax.f32 %v679_v15, 0.0  ;;  %v686_v25 = vmax.f32 %v680_v17, 0.0 }
 0x157   :  { %v687_v9 = vmax.f32 %v681_v18, 0.0  ;;  %v688_v16 = vmax.f32 %v682_v19, 0.0 }
 0x158   :  { %v689_v21 = vpack.c.bf16 %v684_v22, %v683_v20  ;;  %v690_v27 = vpack.c.bf16 %v686_v25, %v685_v24 }
 0x159   :  { %v691_v28 = vpack.c.bf16 %v688_v16, %v687_v9 }
 0x15a   :  { %1045 = vmatmul.mubr.bf16.vlgmr.msra.gmra.mrb[12].mxu1 %v689_v21  ;;  %1108 = vmatmul.mubr.bf16.vlgmr.msra.gmra.mrb[24].mxu0 %v689_v21 }
 0x15b   :  { %1139 = vmatpush1.bf16.msra.mxu1 %v2532_v6  ;;  %1054 = vmatprep.mubr.bf16.mxu1 %v2656_v23 }
 0x15c   :  { %1140 = vmatprep.subr.bf16.mxu1 %v2537_v26  ;;  %1117 = vmatprep.mubr.bf16.mxu0 %v2656_v23 }
 0x15f   :  { %1141 = vmatpush1.bf16.msra.mxu1 %v2535_v29 }
 0x160   :  { %1142 = vmatprep.subr.bf16.mxu1 %v2540_v30 }
 0x162   :  { %1055 = vmatmul.mubr.bf16.gmra.mrb[16].mxu1 %v690_v27  ;;  %1118 = vmatmul.mubr.bf16.gmra.mrb[28].mxu0 %v690_v27 }
 0x163   :  { %1143 = vmatpush1.bf16.msra.mxu1 %v2538_v31  ;;  %1064 = vmatprep.mubr.bf16.mxu1 %v2656_v23 }
 0x164   :  { %1144 = vmatprep.subr.bf16.mxu1 %v2543_v32  ;;  %1127 = vmatprep.mubr.bf16.mxu0 %v2656_v23 }
 0x167   :  { %1145 = vmatpush1.bf16.msra.mxu1 %v2541_v33 }
 0x168   :  { %1146 = vmatprep.subr.bf16.mxu1 %v2546_v35 }
 0x16a   :  { %1065 = vmatmul.mubr.bf16.gmra.mrb[20].mxu1 %v691_v28  ;;  %1128 = vmatmul.mubr.bf16.gmra.mrb[32].mxu0 %v691_v28 }
 0x16b   :  { %1147 = vmatpush1.bf16.msra.mxu1 %v2544_v36  ;;  %1170 = vmatprep.mubr.bf16.mxu1 %v2656_v23 }
 0x16c   :  { %1148 = vmatprep.subr.bf16.mxu1 %v2549_v37  ;;  %2283 = vmatprep.mubr.msk.f32.mxu0 %vm2655_vm0, %v2654_v34 }
 0x16f   :  { %1149 = vmatpush1.bf16.msra.mxu1 %v2547_v38 }
 0x170   :  { %1150 = vmatprep.subr.bf16.mxu1 %v2552_v39 }
 0x173   :  { %1151 = vmatpush1.bf16.msra.mxu1 %v2550_v40 }
 0x174   :  { %1152 = vmatprep.subr.bf16.mxu1 %v2555_v41 }
 0x177   :  { %1153 = vmatpush1.bf16.msra.mxu1 %v2553_v42 }
 0x17a   :  { %1171 = vmatmul.mubr.bf16.vlgmr.msra.gmra.mrb[24].mxu1 %v689_v21 }
 0x17b   :  { %1180 = vmatprep.mubr.bf16.mxu1 %v2656_v23 }
 0x182   :  { %1181 = vmatmul.mubr.bf16.gmra.mrb[28].mxu1 %v690_v27 }
 0x183   :  { %1190 = vmatprep.mubr.bf16.mxu1 %v2656_v23  ;;  %v3077_v23 = vrot.slane %v3068_v44, %v752_v43 }
 0x18a   :  { %1191 = vmatmul.mubr.bf16.gmra.mrb[32].mxu1 %v691_v28 }
 0x18b   :  { %2268 = vmatprep.mubr.msk.f32.mxu1 %vm2655_vm0, %v2654_v34 }
 0x22d   :  { %v1046_v50 = vpop.f32.mrb[12].mxu1  ;;  %v1109_v51 = vpop.f32.mrb[24].mxu0 }
 0x22e   :  { %v1047_v52 = vadd.f32 %v1046_v50, %v3074_v47  ;;  %v1110_v53 = vadd.f32 %v1109_v51, %v3077_v23  ;;  %v1048_v54 = vpop.f32.mrb[13].mxu1  ;;  %v1111_v55 = vpop.f32.mrb[25].mxu0 }
 0x22f   :  { %v1049_v56 = vadd.f32 %v1048_v54, %v3080_v48  ;;  %v1112_v57 = vadd.f32 %v1111_v55, %v3083_v49  ;;  %v1050_v58 = vpop.f32.mrb[14].mxu1  ;;  %v1113_v60 = vpop.f32.mrb[26].mxu0 }
 0x230   :  { %v3089_v61 = vmul.f32 %v1110_v53, %v1047_v52  ;;  %v1051_v62 = vadd.f32 %v1050_v58, %v3074_v47  ;;  %v1114_v63 = vadd.f32 %v1113_v60, %v3077_v23  ;;  %v1052_v0 = vpop.f32.mrb[15].mxu1  ;;  %v1115_v1 = vpop.f32.mrb[27].mxu0 }
 0x231   :  { %v3093_v2 = vmul.f32 %v1112_v57, %v1049_v56  ;;  %v1053_v3 = vadd.f32 %v1052_v0, %v3080_v48  ;;  %v1116_v4 = vadd.f32 %v1115_v1, %v3083_v49 }
 0x232   :  { %v3097_v5 = vmul.f32 %v1114_v63, %v1051_v62  ;;  %v1294_v7 = vsel %vm1293_vm1, %v3089_v61, -inf }
 0x233   :  { %v3101_v8 = vmul.f32 %v1116_v4, %v1053_v3  ;;  %1295 = vmax.xlane.f32.xlu0 %v1294_v7  ;;  %v1713_v10 = vsel %vm1293_vm1, %v3093_v2, -inf }
 0x234   :  { %1714 = vmax.xlane.f32.xlu1 %v1713_v10  ;;  %v1297_v18 = vsel %vm1293_vm1, %v3097_v5, -inf  ;;  %v1218_v0 = vsel %vm1214_vm2, %v3097_v5, -inf }
 0x235   :  { %v1056_v11 = vpop.f32.mrb[16].mxu1  ;;  %v1119_v12 = vpop.f32.mrb[28].mxu0  ;;  %v1716_v25 = vsel %vm1293_vm1, %v3101_v8, -inf }
 0x236   :  { %v1057_v13 = vadd.f32 %v1056_v11, %v3074_v47  ;;  %v1120_v14 = vadd.f32 %v1119_v12, %v3077_v23  ;;  %v1058_v15 = vpop.f32.mrb[17].mxu1  ;;  %v1121_v17 = vpop.f32.mrb[29].mxu0 }
 0x237   :  { %v1059_v19 = vadd.f32 %v1058_v15, %v3080_v48  ;;  %v1122_v20 = vadd.f32 %v1121_v17, %v3083_v49  ;;  %v1060_v22 = vpop.f32.mrb[18].mxu1  ;;  %v1123_v24 = vpop.f32.mrb[30].mxu0  ;;  %1298 = vmax.xlane.f32.xlu0 %v1297_v18 }
 0x238   :  { %v3113_v6 = vmul.f32 %v1120_v14, %v1057_v13  ;;  %v1061_v9 = vadd.f32 %v1060_v22, %v3074_v47  ;;  %v1124_v16 = vadd.f32 %v1123_v24, %v3077_v23  ;;  %v1062_v21 = vpop.f32.mrb[19].mxu1  ;;  %v1125_v26 = vpop.f32.mrb[31].mxu0  ;;  %1717 = vmax.xlane.f32.xlu1 %v1716_v25  ;;  %v1567_v13 = vsel %vm1214_vm2, %v3101_v8, -inf }
 0x239   :  { %v3117_v27 = vmul.f32 %v1122_v20, %v1059_v19  ;;  %v1063_v28 = vadd.f32 %v1062_v21, %v3080_v48  ;;  %v1126_v29 = vadd.f32 %v1125_v26, %v3083_v49  ;;  %v1564_v22 = vsel %vm1214_vm2, %v3093_v2, -inf }
 0x23a   :  { %v3121_v30 = vmul.f32 %v1124_v16, %v1061_v9  ;;  %v1300_v31 = vsel %vm1293_vm1, %v3113_v6, -inf  ;;  %v1221_v4 = vsel %vm1214_vm2, %v3113_v6, -inf }
 0x23b   :  { %v3125_v32 = vmul.f32 %v1126_v29, %v1063_v28  ;;  %1301 = vmax.xlane.f32.xlu0 %v1300_v31  ;;  %v1719_v41 = vsel %vm1293_vm1, %v3117_v27, -inf  ;;  %v1570_v9 = vsel %vm1214_vm2, %v3117_v27, -inf }
 0x23c   :  { %v1303_v33 = vsel %vm1293_vm1, %v3121_v30, -inf  ;;  %v1224_v11 = vsel %vm1214_vm2, %v3121_v30, -inf }
 0x23d   :  { %v1066_v35 = vpop.f32.mrb[20].mxu1  ;;  %v1129_v36 = vpop.f32.mrb[32].mxu0  ;;  %1304 = vmax.xlane.f32.xlu1 %v1303_v33  ;;  %v1722_v55 = vsel %vm1293_vm1, %v3125_v32, -inf  ;;  %v1573_v20 = vsel %vm1214_vm2, %v3125_v32, -inf }
 0x23e   :  { %v1067_v37 = vadd.f32 %v1066_v35, %v3074_v47  ;;  %v1130_v38 = vadd.f32 %v1129_v36, %v3077_v23  ;;  %v1068_v39 = vpop.f32.mrb[21].mxu1  ;;  %v1131_v40 = vpop.f32.mrb[33].mxu0 }
 0x23f   :  { %v1069_v42 = vadd.f32 %v1068_v39, %v3080_v48  ;;  %v1132_v43 = vadd.f32 %v1131_v40, %v3083_v49  ;;  %v1070_v45 = vpop.f32.mrb[22].mxu1  ;;  %v1133_v46 = vpop.f32.mrb[34].mxu0  ;;  %1720 = vmax.xlane.f32.xlu0 %v1719_v41 }
 0x240   :  { %v3135_v50 = vmul.f32 %v1130_v38, %v1067_v37  ;;  %v1071_v51 = vadd.f32 %v1070_v45, %v3074_v47  ;;  %v1134_v52 = vadd.f32 %v1133_v46, %v3077_v23  ;;  %v1072_v53 = vpop.f32.mrb[23].mxu1  ;;  %v1135_v54 = vpop.f32.mrb[35].mxu0 }
 0x241   :  { %v3141_v56 = vmul.f32 %v1132_v43, %v1069_v42  ;;  %v1073_v57 = vadd.f32 %v1072_v53, %v3080_v48  ;;  %v1136_v58 = vadd.f32 %v1135_v54, %v3083_v49  ;;  %1723 = vmax.xlane.f32.xlu1 %v1722_v55  ;;  %v1215_v49 = vsel %vm1214_vm2, %v3089_v61, -inf }
 0x242   :  { %v3145_v60 = vmul.f32 %v1134_v52, %v1071_v51  ;;  %v1306_v62 = vsel %vm1293_vm1, %v3135_v50, -inf  ;;  %v1227_v12 = vsel %vm1214_vm2, %v3135_v50, -inf }
 0x243   :  { %v3149_v47 = vmul.f32 %v1136_v58, %v1073_v57  ;;  %1307 = vmax.xlane.f32.xlu0 %v1306_v62  ;;  %v1725_v63 = vsel %vm1293_vm1, %v3141_v56, -inf }
 0x244   :  { %v1309_v23 = vsel %vm1293_vm1, %v3145_v60, -inf  ;;  %v1230_v17 = vsel %vm1214_vm2, %v3145_v60, -inf }
 0x245   :  { %1310 = vmax.xlane.f32.xlu1 %v1309_v23  ;;  %v1728_v48 = vsel %vm1293_vm1, %v3149_v47, -inf }
 0x247   :  { %1726 = vmax.xlane.f32.xlu0 %v1725_v63 }
 0x249   :  { %1729 = vmax.xlane.f32.xlu1 %v1728_v48 }
 0x24b   :  { %1216 = vmax.xlane.f32.xlu0 %v1215_v49 }
 0x24d   :  { %v3161_v1 = vpop.f32.mrb[24].mxu1  ;;  %1219 = vmax.xlane.f32.xlu1 %v1218_v0 }
 0x24e   :  { %v3163_v3 = vpop.f32.mrb[25].mxu1 }
 0x24f   :  { %v3167_v7 = vpop.f32.mrb[26].mxu1  ;;  %1222 = vmax.xlane.f32.xlu0 %v1221_v4 }
 0x250   :  { %v3169_v10 = vpop.f32.mrb[27].mxu1 }
 0x251   :  { %1225 = vmax.xlane.f32.xlu1 %v1224_v11 }
 0x253   :  { %1228 = vmax.xlane.f32.xlu0 %v1227_v12 }
 0x255   :  { %v3177_v14 = vpop.f32.mrb[28].mxu1  ;;  %1568 = vmax.xlane.f32.xlu1 %v1567_v13 }
 0x256   :  { %v3179_v15 = vpop.f32.mrb[29].mxu1 }
 0x257   :  { %v3183_v18 = vpop.f32.mrb[30].mxu1  ;;  %1231 = vmax.xlane.f32.xlu0 %v1230_v17 }
 0x258   :  { %v3185_v19 = vpop.f32.mrb[31].mxu1 }
 0x259   :  { %1574 = vmax.xlane.f32.xlu1 %v1573_v20 }
 0x25b   :  { %1565 = vmax.xlane.f32.xlu0 %v1564_v22 }
 0x25d   :  { %v3191_v24 = vpop.f32.mrb[32].mxu1 }
 0x25e   :  { %v3193_v25 = vpop.f32.mrb[33].mxu1 }
 0x25f   :  { %v3197_v16 = vpop.f32.mrb[34].mxu1  ;;  %1571 = vmax.xlane.f32.xlu0 %v1570_v9 }
 0x260   :  { %v3199_v21 = vpop.f32.mrb[35].mxu1 }
 0x2c0   :  { %v1296_v26 = vpop.xlane.xlu0 %1295 }
 0x2c1   :  { %v1312_v28 = vsub.f32 %v3089_v61, %v1296_v26  ;;  %v1715_v29 = vpop.xlane.xlu1 %1714 }
 0x2c2   :  { %v1731_v31 = vsub.f32 %v3093_v2, %v1715_v29 }
 0x2c3   :  { %v1318_v33 = vmul.f32 1.442695, %v1312_v28 }
 0x2c4   :  { %v1737_v35 = vmul.f32 1.442695, %v1731_v31  ;;  %v1299_v36 = vpop.xlane.xlu0 %1298 }
 0x2c5   :  { %2558 = vpow2.f32 %v1318_v33  ;;  %v1313_v37 = vsub.f32 %v3097_v5, %v1299_v36  ;;  %v1718_v38 = vpop.xlane.xlu1 %1717 }
 0x2c6   :  { %2560 = vpow2.f32 %v1737_v35  ;;  %v1732_v39 = vsub.f32 %v3101_v8, %v1718_v38 }
 0x2c7   :  { %v1320_v40 = vmul.f32 1.442695, %v1313_v37 }
 0x2c8   :  { %v1302_v41 = vpop.xlane.xlu0 %1301  ;;  %v1739_v43 = vmul.f32 1.442695, %v1732_v39 }
 0x2c9   :  { %2562 = vpow2.f32 %v1320_v40  ;;  %v1314_v42 = vsub.f32 %v3113_v6, %v1302_v41  ;;  %v1576_v41 = vsel %vm1214_vm2, %v3141_v56, -inf }
 0x2ca   :  { %v1305_v45 = vpop.xlane.xlu1 %1304 }
 0x2cb   :  { %v1322_v46 = vmul.f32 1.442695, %v1314_v42  ;;  %v1315_v51 = vsub.f32 %v3121_v30, %v1305_v45  ;;  %v1579_v42 = vsel %vm1214_vm2, %v3149_v47, -inf }
 0x2cc   :  { %v1721_v52 = vpop.xlane.xlu0 %1720 }
 0x2cd   :  { %2564 = vpow2.f32 %v1322_v46  ;;  %v1733_v53 = vsub.f32 %v3117_v27, %v1721_v52  ;;  %v1324_v54 = vmul.f32 1.442695, %v1315_v51 }
 0x2ce   :  { %2566 = vpow2.f32 %v1739_v43  ;;  %v1724_v55 = vpop.xlane.xlu1 %1723 }
 0x2cf   :  { %v3208_v57 = vpop.eup %2558  ;;  %v1741_v58 = vmul.f32 1.442695, %v1733_v53  ;;  %v1734_v62 = vsub.f32 %v3125_v32, %v1724_v55 }
 0x2d0   :  { %v3211_v23 = vpop.eup %2560  ;;  %v1308_v63 = vpop.xlane.xlu0 %1307  ;;  %1336 = vrot.lane.b32.xlu0 %v3208_v57, %s2657_s4 }
 0x2d1   :  { %2568 = vpow2.f32 %v1741_v58  ;;  %v1316_v48 = vsub.f32 %v3135_v50, %v1308_v63  ;;  %1755 = vrot.lane.b32.xlu1 %v3211_v23, %s2657_s4  ;;  %v1743_v49 = vmul.f32 1.442695, %v1734_v62 }
 0x2d2   :  { %2570 = vpow2.f32 %v1324_v54  ;;  %v1311_v0 = vpop.xlane.xlu1 %1310 }
 0x2d3   :  { %v3218_v4 = vpop.eup %2562  ;;  %v1326_v11 = vmul.f32 1.442695, %v1316_v48  ;;  %v1317_v12 = vsub.f32 %v3145_v60, %v1311_v0 }
 0x2d4   :  { %v1727_v13 = vpop.xlane.xlu0 %1726 }
 0x2d5   :  { %2572 = vpow2.f32 %v1326_v11  ;;  %v1735_v17 = vsub.f32 %v3141_v56, %v1727_v13  ;;  %1338 = vrot.lane.b32.xlu1 %v3218_v4, %s2657_s4  ;;  %v1328_v20 = vmul.f32 1.442695, %v1317_v12 }
 0x2d6   :  { %2574 = vpow2.f32 %v1743_v49  ;;  %v1730_v22 = vpop.xlane.xlu1 %1729 }
 0x2d7   :  { %v3224_v9 = vpop.eup %2564  ;;  %v1745_v26 = vmul.f32 1.442695, %v1735_v17  ;;  %v1736_v28 = vsub.f32 %v3149_v47, %v1730_v22 }
 0x2d8   :  { %v3227_v29 = vpop.eup %2566  ;;  %1340 = vrot.lane.b32.xlu0 %v3224_v9, %s2657_s4  ;;  %v1217_v43 = vpop.xlane.xlu0 %1216 }
 0x2d9   :  { %2576 = vpow2.f32 %v1745_v26  ;;  %1757 = vrot.lane.b32.xlu1 %v3227_v29, %s2657_s4  ;;  %v1747_v31 = vmul.f32 1.442695, %v1736_v28  ;;  %v1233_v0 = vsub.f32 %v3089_v61, %v1217_v43 }
 0x2da   :  { %2578 = vpow2.f32 %v1328_v20  ;;  %v1220_v51 = vpop.xlane.xlu1 %1219 }
 0x2db   :  { %v3233_v33 = vpop.eup %2568  ;;  %2580 = vpow2.f32 %v1747_v31  ;;  %v1239_v17 = vmul.f32 1.442695, %v1233_v0  ;;  %v1234_v26 = vsub.f32 %v3097_v5, %v1220_v51 }
 0x2dc   :  { %v3235_v35 = vpop.eup %2570  ;;  %1759 = vrot.lane.b32.xlu0 %v3233_v33, %s2657_s4  ;;  %v1223_v45 = vpop.xlane.xlu0 %1222 }
 0x2dd   :  { %1342 = vrot.lane.b32.xlu1 %v3235_v35, %s2657_s4  ;;  %v1235_v20 = vsub.f32 %v3113_v6, %v1223_v45  ;;  %2582 = vpow2.f32 %v1239_v17 }
 0x2de   :  { %v1226_v53 = vpop.xlane.xlu1 %1225 }
 0x2df   :  { %v3241_v36 = vpop.eup %2572  ;;  %v1243_v61 = vmul.f32 1.442695, %v1235_v20 }
 0x2e0   :  { %v3243_v37 = vpop.eup %2574  ;;  %1344 = vrot.lane.b32.xlu0 %v3241_v36, %s2657_s4  ;;  %v1229_v46 = vpop.xlane.xlu0 %1228 }
 0x2e1   :  { %1761 = vrot.lane.b32.xlu1 %v3243_v37, %s2657_s4  ;;  %2584 = vpow2.f32 %v1243_v61 }
 0x2e2   :  { %v1569_v55 = vpop.xlane.xlu1 %1568 }
 0x2e3   :  { %v3249_v38 = vpop.eup %2576 }
 0x2e4   :  { %v3251_v39 = vpop.eup %2578  ;;  %1763 = vrot.lane.b32.xlu0 %v3249_v38, %s2657_s4  ;;  %v1232_v52 = vpop.xlane.xlu0 %1231 }
 0x2e5   :  { %1346 = vrot.lane.b32.xlu1 %v3251_v39, %s2657_s4  ;;  %v3257_v40 = vpop.eup %2580 }
 0x2e6   :  { %v3265_v62 = vpop.xlane.xlu1 %1574 }
 0x2e8   :  { %v1566_v54 = vpop.xlane.xlu0 %1565 }
 0x2e9   :  { %1765 = vrot.lane.b32.xlu1 %v3257_v40, %s2657_s4  ;;  %v1582_v51 = vsub.f32 %v3093_v2, %v1566_v54  ;;  %v1583_v2 = vsub.f32 %v3101_v8, %v1569_v55 }
 0x2ec   :  { %v1572_v58 = vpop.xlane.xlu0 %1571 }
 0x303   :  { %1577 = vmax.xlane.f32.xlu0 %v1576_v41 }
 0x30d   :  { %1580 = vmax.xlane.f32.xlu1 %v1579_v42  ;;  %v1237_v42 = vsub.f32 %v3135_v50, %v1229_v46  ;;  %v1238_v50 = vsub.f32 %v3145_v60, %v1232_v52  ;;  %v3286_v60 = vpop.eup %2582 }
 0x30e   :  { %v1251_v8 = vsel %vm1214_vm2, %v3286_v60, 0.0  ;;  %v3293_v55 = vpop.eup %2584 }
 0x30f   :  { %v1247_v45 = vmul.f32 1.442695, %v1237_v42  ;;  %v1249_v54 = vmul.f32 1.442695, %v1238_v50  ;;  %v1257_v42 = vsel %vm1214_vm2, %v3293_v55, 0.0 }
 0x342   :  { %v1337_v63 = vpop.permute.xlu0 %1336 }
 0x343   :  { %v1756_v48 = vpop.permute.xlu1 %1755  ;;  %v1354_v49 = vsel %vm1214_vm2, %v1337_v63, 0.0  ;;  %v1241_v63 = vmul.f32 1.442695, %v1234_v26 }
 0x344   :  { %1355 = vadd.xlane.f32.xlu0 %v1354_v49  ;;  %v1773_v12 = vsel %vm1214_vm2, %v1756_v48, 0.0  ;;  %v1236_v48 = vsub.f32 %v3121_v30, %v1226_v53  ;;  %v1588_v53 = vmul.f32 1.442695, %v1582_v51 }
 0x345   :  { %2586 = vpow2.f32 %v1241_v63 }
 0x346   :  { %2588 = vpow2.f32 %v1247_v45 }
 0x347   :  { %v1339_v11 = vpop.permute.xlu1 %1338 }
 0x348   :  { %1774 = vadd.xlane.f32.xlu0 %v1773_v12  ;;  %v1357_v13 = vsel %vm1214_vm2, %v1339_v11, 0.0  ;;  %v1245_v11 = vmul.f32 1.442695, %v1236_v48 }
 0x349   :  { %1358 = vadd.xlane.f32.xlu1 %v1357_v13  ;;  %v1584_v13 = vsub.f32 %v3117_v27, %v1572_v58  ;;  %v1585_v27 = vsub.f32 %v3125_v32, %v3265_v62 }
 0x34a   :  { %v1341_v22 = vpop.permute.xlu0 %1340  ;;  %2590 = vpow2.f32 %v1245_v11 }
 0x34b   :  { %v1758_v28 = vpop.permute.xlu1 %1757  ;;  %v1360_v31 = vsel %vm1214_vm2, %v1341_v22, 0.0  ;;  %2592 = vpow2.f32 %v1588_v53  ;;  %v1592_v26 = vmul.f32 1.442695, %v1584_v13  ;;  %v1594_v61 = vmul.f32 1.442695, %v1585_v27 }
 0x34c   :  { %1361 = vadd.xlane.f32.xlu0 %v1360_v31  ;;  %v1776_v41 = vsel %vm1214_vm2, %v1758_v28, 0.0  ;;  %v1590_v28 = vmul.f32 1.442695, %v1583_v2  ;;  %2594 = vpow2.f32 %v1249_v54 }
 0x34d   :  { %1777 = vadd.xlane.f32.xlu1 %v1776_v41  ;;  %2596 = vpow2.f32 %v1592_v26 }
 0x34e   :  { %v1760_v43 = vpop.permute.xlu0 %1759  ;;  %2598 = vpow2.f32 %v1590_v28 }
 0x34f   :  { %v1343_v49 = vpop.permute.xlu1 %1342  ;;  %v1779_v6 = vsel %vm1214_vm2, %v1760_v43, 0.0  ;;  %v3296_v41 = vpop.eup %2586  ;;  %2600 = vpow2.f32 %v1594_v61 }
 0x350   :  { %1780 = vadd.xlane.f32.xlu0 %v1779_v6  ;;  %v1363_v5 = vsel %vm1214_vm2, %v1343_v49, 0.0  ;;  %v3300_v43 = vpop.eup %2588  ;;  %v1254_v32 = vsel %vm1214_vm2, %v3296_v41, 0.0 }
 0x351   :  { %1364 = vadd.xlane.f32.xlu1 %v1363_v5  ;;  %v1263_v63 = vsel %vm1214_vm2, %v3300_v43, 0.0 }
 0x352   :  { %v1345_v0 = vpop.permute.xlu0 %1344 }
 0x353   :  { %v1762_v46 = vpop.permute.xlu1 %1761  ;;  %v1366_v12 = vsel %vm1214_vm2, %v1345_v0, 0.0 }
 0x354   :  { %1367 = vadd.xlane.f32.xlu0 %v1366_v12  ;;  %v1782_v30 = vsel %vm1214_vm2, %v1762_v46, 0.0  ;;  %v3304_v62 = vpop.eup %2590 }
 0x355   :  { %1783 = vadd.xlane.f32.xlu1 %v1782_v30  ;;  %v3308_v48 = vpop.eup %2592  ;;  %v1260_v49 = vsel %vm1214_vm2, %v3304_v62, 0.0  ;;  %v2658_v30 = vmov 0.0|0.0  }
 0x356   :  { %v1764_v17 = vpop.permute.xlu0 %1763  ;;  %v3312_v6 = vpop.eup %2594  ;;  %v1600_v5 = vsel %vm1214_vm2, %v3308_v48, 0.0  ;;  %2344 = vmatprep.subr.bf16.mxu0 %v2658_v30  ;;  %2335 = vmatprep.subr.bf16.mxu1 %v2658_v30 }
 0x357   :  { %v1347_v20 = vpop.permute.xlu1 %1346  ;;  %v1785_v22 = vsel %vm1214_vm2, %v1764_v17, 0.0  ;;  %v3316_v45 = vpop.eup %2596  ;;  %v1266_v51 = vsel %vm1214_vm2, %v3312_v6, 0.0 }
 0x358   :  { %1786 = vadd.xlane.f32.xlu0 %v1785_v22  ;;  %v1369_v52 = vsel %vm1214_vm2, %v1347_v20, 0.0  ;;  %v3320_v0 = vpop.eup %2598  ;;  %v1606_v11 = vsel %vm1214_vm2, %v3316_v45, 0.0 }
 0x359   :  { %1370 = vadd.xlane.f32.xlu1 %v1369_v52  ;;  %v1603_v50 = vsel %vm1214_vm2, %v3320_v0, 0.0  ;;  %v3326_v46 = vpop.eup %2600 }
 0x35a   :  { %v1609_v12 = vsel %vm1214_vm2, %v3326_v46, 0.0 }
 0x35b   :  { %v1766_v58 = vpop.permute.xlu1 %1765 }
 0x35c   :  { %1252 = vadd.xlane.f32.xlu0 %v1251_v8  ;;  %v1788_v31 = vsel %vm1214_vm2, %v1766_v58, 0.0 }
 0x35d   :  { %1789 = vadd.xlane.f32.xlu1 %v1788_v31 }
 0x360   :  { %1258 = vadd.xlane.f32.xlu0 %v1257_v42 }
 0x361   :  { %1255 = vadd.xlane.f32.xlu1 %v1254_v32  ;;  %v764_v32 = vsub.s32 5, %v2994_v59 }
 0x364   :  { %1264 = vadd.xlane.f32.xlu0 %v1263_v63 }
 0x365   :  { %1261 = vadd.xlane.f32.xlu1 %v1260_v49 }
 0x368   :  { %1601 = vadd.xlane.f32.xlu0 %v1600_v5 }
 0x369   :  { %1267 = vadd.xlane.f32.xlu1 %v1266_v51 }
 0x36c   :  { %1607 = vadd.xlane.f32.xlu0 %v1606_v11 }
 0x36d   :  { %1604 = vadd.xlane.f32.xlu1 %v1603_v50  ;;  %v3353_v50 = vrot.slane %v3068_v44, %v764_v32 }
 0x371   :  { %1610 = vadd.xlane.f32.xlu1 %v1609_v12 }
 0x390   :  { %v1578_v53 = vpop.xlane.xlu0 %1577 }
 0x391   :  { %v1586_v13 = vsub.f32 %v3141_v56, %v1578_v53 }
 0x393   :  { %v1596_v17 = vmul.f32 1.442695, %v1586_v13 }
 0x395   :  { %2602 = vpow2.f32 %v1596_v17 }
 0x39a   :  { %v1581_v2 = vpop.xlane.xlu1 %1580 }
 0x39b   :  { %v1587_v54 = vsub.f32 %v3149_v47, %v1581_v2  ;;  %v760_v47 = vsub.s32 4, %v2994_v59 }
 0x39d   :  { %v1598_v20 = vmul.f32 1.442695, %v1587_v54  ;;  %v3344_v61 = vrot.slane %v3068_v44, %v760_v47  ;;  %v3364_v44 = vadd.f32 %v3163_v3, %v3353_v50 }
 0x39f   :  { %v3334_v22 = vpop.eup %2602  ;;  %2604 = vpow2.f32 %v1598_v20  ;;  %v3350_v51 = vadd.f32 %v3161_v1, %v3344_v61  ;;  %v3358_v59 = vadd.f32 %v3167_v7, %v3344_v61  ;;  %v3376_v3 = vadd.f32 %v3177_v14, %v3344_v61 }
 0x3a0   :  { %v1612_v52 = vsel %vm1214_vm2, %v3334_v22, 0.0 }
 0x3a1   :  { %1613 = vadd.xlane.f32.xlu0 %v1612_v52  ;;  %v3369_v52 = vadd.f32 %v3169_v10, %v3353_v50 }
 0x3a9   :  { %v3338_v26 = vpop.eup %2604 }
 0x3aa   :  { %v1615_v28 = vsel %vm1214_vm2, %v3338_v26, 0.0 }
 0x3ab   :  { %1616 = vadd.xlane.f32.xlu1 %v1615_v28 }
 0x3d1   :  { %v1356_v56 = vpop.xlane.xlu0 %1355 }
 0x3d2   :  { %2606 = vrcp.f32 %v1356_v56 }
 0x3d5   :  { %v1775_v27 = vpop.xlane.xlu0 %1774 }
 0x3d6   :  { %2608 = vrcp.f32 %v1775_v27  ;;  %v1359_v58 = vpop.xlane.xlu1 %1358 }
 0x3d7   :  { %2610 = vrcp.f32 %v1359_v58 }
 0x3d9   :  { %v1362_v8 = vpop.xlane.xlu0 %1361 }
 0x3da   :  { %2612 = vrcp.f32 %v1362_v8  ;;  %v1778_v31 = vpop.xlane.xlu1 %1777 }
 0x3db   :  { %2614 = vrcp.f32 %v1778_v31 }
 0x3dc   :  { %v2607_v42 = vpop.eup %2606 }
 0x3dd   :  { %v1781_v63 = vpop.xlane.xlu0 %1780  ;;  %v1378_v49 = vmul.f32 %v2607_v42, %v3208_v57 }
 0x3de   :  { %2616 = vrcp.f32 %v1781_v63  ;;  %v1365_v5 = vpop.xlane.xlu1 %1364 }
 0x3df   :  { %2618 = vrcp.f32 %v1365_v5  ;;  %v1384_v13 = vmul.f32 %v1378_v49, %v3350_v51 }
 0x3e0   :  { %v2609_v11 = vpop.eup %2608 }
 0x3e1   :  { %v2611_v12 = vpop.eup %2610  ;;  %v1368_v53 = vpop.xlane.xlu0 %1367  ;;  %v1797_v1 = vmul.f32 %v2609_v11, %v3211_v23  ;;  %v1390_v28 = vmax.f32 %v1384_v13, 0.0  ;;  %v3389_v11 = vadd.f32 %v3179_v15, %v3353_v50 }
 0x3e2   :  { %2620 = vrcp.f32 %v1368_v53  ;;  %v1784_v57 = vpop.xlane.xlu1 %1783  ;;  %v1379_v17 = vmul.f32 %v2611_v12, %v3218_v4 }
 0x3e3   :  { %2622 = vrcp.f32 %v1784_v57  ;;  %v1803_v58 = vmul.f32 %v1797_v1, %v3364_v44 }
 0x3e4   :  { %v2613_v2 = vpop.eup %2612  ;;  %v1385_v54 = vmul.f32 %v1379_v17, %v3358_v59 }
 0x3e5   :  { %v2615_v20 = vpop.eup %2614  ;;  %v1787_v7 = vpop.xlane.xlu0 %1786  ;;  %v1380_v56 = vmul.f32 %v2613_v2, %v3224_v9  ;;  %v3381_v9 = vadd.f32 %v3183_v18, %v3344_v61  ;;  %v1809_v14 = vmax.f32 %v1803_v58, 0.0 }
 0x3e6   :  { %2624 = vrcp.f32 %v1787_v7  ;;  %v1371_v4 = vpop.xlane.xlu1 %1370  ;;  %v1391_v23 = vmax.f32 %v1385_v54, 0.0  ;;  %v1798_v27 = vmul.f32 %v2615_v20, %v3227_v29  ;;  %v1193_v7 = vadd.f32 %v3191_v24, %v3344_v61 }
 0x3e7   :  { %2626 = vrcp.f32 %v1371_v4  ;;  %v1386_v32 = vmul.f32 %v1380_v56, %v3376_v3  ;;  %v3405_v4 = vadd.f32 %v3197_v16, %v3344_v61 }
 0x3e8   :  { %v2617_v47 = vpop.eup %2616  ;;  %v2393_v8 = vpack.i.bf16 %v1391_v23, %v1390_v28  ;;  %v1804_v10 = vmul.f32 %v1798_v27, %v3369_v52 }
 0x3e9   :  { %v2619_v31 = vpop.eup %2618  ;;  %v1253_v42 = vpop.xlane.xlu0 %1252  ;;  %v1799_v29 = vmul.f32 %v2617_v47, %v3233_v33  ;;  %v3394_v33 = vadd.f32 %v3185_v19, %v3353_v50  ;;  %v1392_v17 = vmax.f32 %v1386_v32, 0.0 }
 0x3ea   :  { %2628 = vrcp.f32 %v1253_v42  ;;  %v1790_v63 = vpop.xlane.xlu1 %1789  ;;  %2394 = vrot.lane.b32.xlu0 %v2393_v8, %s2657_s4  ;;  %v1810_v49 = vmax.f32 %v1804_v10, 0.0  ;;  %v1381_v5 = vmul.f32 %v2619_v31, %v3235_v35  ;;  %v3412_v8 = vadd.f32 %v3193_v25, %v3353_v50 }
 0x3eb   :  { %2630 = vrcp.f32 %v1790_v63  ;;  %v1805_v1 = vmul.f32 %v1799_v29, %v3389_v11 }
 0x3ec   :  { %v2621_v18 = vpop.eup %2620  ;;  %v2398_v12 = vpack.i.bf16 %v1810_v49, %v1809_v14  ;;  %v1387_v53 = vmul.f32 %v1381_v5, %v3381_v9 }
 0x3ed   :  { %v2623_v13 = vpop.eup %2622  ;;  %v1259_v57 = vpop.xlane.xlu0 %1258  ;;  %v1382_v54 = vmul.f32 %v2621_v18, %v3241_v36  ;;  %v1811_v27 = vmax.f32 %v1805_v1, 0.0 }
 0x3ee   :  { %2632 = vrcp.f32 %v1259_v57  ;;  %v1256_v35 = vpop.xlane.xlu1 %1255  ;;  %2399 = vrot.lane.b32.xlu1 %v2398_v12, %s2657_s4  ;;  %v1393_v15 = vmax.f32 %v1387_v53, 0.0  ;;  %v1800_v2 = vmul.f32 %v2623_v13, %v3243_v37 }
 0x3ef   :  { %2634 = vrcp.f32 %v1256_v35  ;;  %v1388_v24 = vmul.f32 %v1382_v54, %v1193_v7 }
 0x3f0   :  { %v2625_v20 = vpop.eup %2624  ;;  %v2403_v19 = vpack.i.bf16 %v1393_v15, %v1392_v17  ;;  %v1806_v28 = vmul.f32 %v1800_v2, %v3394_v33 }
 0x3f1   :  { %v2627_v56 = vpop.eup %2626  ;;  %v1265_v23 = vpop.xlane.xlu0 %1264  ;;  %v1801_v58 = vmul.f32 %v2625_v20, %v3249_v38  ;;  %v3417_v38 = vadd.f32 %v3199_v21, %v3353_v50  ;;  %v1394_v25 = vmax.f32 %v1388_v24, 0.0 }
 0x3f2   :  { %2636 = vrcp.f32 %v1265_v23  ;;  %v1262_v37 = vpop.xlane.xlu1 %1261  ;;  %2404 = vrot.lane.b32.xlu1 %v2403_v19, %s2657_s4  ;;  %v1812_v36 = vmax.f32 %v1806_v28, 0.0  ;;  %v1383_v47 = vmul.f32 %v2627_v56, %v3251_v39 }
 0x3f3   :  { %2638 = vrcp.f32 %v1262_v37  ;;  %v1807_v39 = vmul.f32 %v1801_v58, %v3412_v8 }
 0x3f4   :  { %v2629_v10 = vpop.eup %2628  ;;  %v2408_v16 = vpack.i.bf16 %v1812_v36, %v1811_v27  ;;  %v1389_v61 = vmul.f32 %v1383_v47, %v3405_v4 }
 0x3f5   :  { %v2631_v31 = vpop.eup %2630  ;;  %v1275_v42 = vmul.f32 %v2629_v10, %v3286_v60  ;;  %v1602_v32 = vpop.xlane.xlu0 %1601  ;;  %v1813_v12 = vmax.f32 %v1807_v39, 0.0 }
 0x3f6   :  { %2640 = vrcp.f32 %v1602_v32  ;;  %v1268_v29 = vpop.xlane.xlu1 %1267  ;;  %2409 = vrot.lane.b32.xlu1 %v2408_v16, %s2657_s4  ;;  %v1395_v63 = vmax.f32 %v1389_v61, 0.0  ;;  %v1802_v14 = vmul.f32 %v2631_v31, %v3257_v40 }
 0x3f7   :  { %2642 = vrcp.f32 %v1268_v29  ;;  %v1281_v60 = vmul.f32 %v1275_v42, %v3350_v51 }
 0x3f8   :  { %v2633_v49 = vpop.eup %2632  ;;  %v2413_v5 = vpack.i.bf16 %v1395_v63, %v1394_v25  ;;  %v1808_v18 = vmul.f32 %v1802_v14, %v3417_v38 }
 0x3f9   :  { %v2635_v21 = vpop.eup %2634  ;;  %v1608_v50 = vpop.xlane.xlu0 %1607  ;;  %v1277_v53 = vmul.f32 %v2633_v49, %v3293_v55  ;;  %v1287_v55 = vmax.f32 %v1281_v60, 0.0 }
 0x3fa   :  { %v1276_v13 = vmul.f32 %v2635_v21, %v3296_v41  ;;  %2644 = vrcp.f32 %v1608_v50  ;;  %v1605_v57 = vpop.xlane.xlu1 %1604  ;;  %2414 = vrot.lane.b32.xlu0 %v2413_v5, %s2657_s4  ;;  %v1814_v17 = vmax.f32 %v1808_v18, 0.0 }
 0x3fb   :  { %2646 = vrcp.f32 %v1605_v57  ;;  %v1283_v20 = vmul.f32 %v1277_v53, %v3376_v3 }
 0x3fc   :  { %v2637_v40 = vpop.eup %2636  ;;  %v2418_v1 = vpack.i.bf16 %v1814_v17, %v1813_v12  ;;  %v1282_v35 = vmul.f32 %v1276_v13, %v3358_v59 }
 0x3fd   :  { %v2639_v15 = vpop.eup %2638  ;;  %v1279_v2 = vmul.f32 %v2637_v40, %v3300_v43 }
 0x3fe   :  { %v1278_v54 = vmul.f32 %v2639_v15, %v3304_v62  ;;  %v1611_v51 = vpop.xlane.xlu1 %1610  ;;  %2419 = vrot.lane.b32.xlu1 %v2418_v1, %s2657_s4  ;;  %v1288_v41 = vmax.f32 %v1282_v35, 0.0  ;;  %v1289_v62 = vmax.f32 %v1283_v20, 0.0  ;;  %v1910_v20 = vld [vmem:[%s3519_s7] sm:$0xff] }
 0x3ff   :  { %2648 = vrcp.f32 %v1611_v51  ;;  %v1285_v27 = vmul.f32 %v1279_v2, %v1193_v7 }
 0x400   :  { %v2641_v19 = vpop.eup %2640  ;;  %v2345_v28 = vpack.c.bf16 %v1288_v41, %v1287_v55  ;;  %v1284_v56 = vmul.f32 %v1278_v54, %v3381_v9 }
 0x401   :  { %v2643_v23 = vpop.eup %2642  ;;  %v1624_v59 = vmul.f32 %v2641_v19, %v3308_v48  ;;  %v1291_v24 = vmax.f32 %v1285_v27, 0.0  ;;  %v1911_v19 = vld [vmem:[%s3519_s7 + $0x8] sm:$0xff] }
 0x402   :  { %v1280_v43 = vmul.f32 %v2643_v23, %v3312_v6  ;;  %2346 = vmatpush3.bf16.msra.mxu0 %v2345_v28  ;;  %v1290_v58 = vmax.f32 %v1284_v56, 0.0 }
 0x403   :  { %2347 = vmatprep.subr.bf16.mxu0 %v2658_v30  ;;  %v1630_v48 = vmul.f32 %v1624_v59, %v3364_v44  ;;  %v2372_v59 = vpack.c.bf16 %v1911_v19, %v1910_v20 }
 0x404   :  { %v2645_v37 = vpop.eup %2644  ;;  %v2348_v36 = vpack.c.bf16 %v1290_v58, %v1289_v62  ;;  %v1286_v3 = vmul.f32 %v1280_v43, %v3405_v4  ;;  %v1912_v43 = vld [vmem:[%s3519_s7 + $0x10] sm:$0xff]  ;;  %v1913_v62 = vld [vmem:[%s3519_s7 + $0x18] sm:$0xff] }
 0x405   :  { %v2647_v47 = vpop.eup %2646  ;;  %v1626_v10 = vmul.f32 %v2645_v37, %v3316_v45  ;;  %v3447_v45 = vld [vmem:[%s3518_s6] sm:$0xff]  ;;  %v2375_v37 = vpack.c.bf16 %v1913_v62, %v1912_v43 }
 0x406   :  { %v1625_v9 = vmul.f32 %v2647_v47, %v3320_v0  ;;  %2349 = vmatpush3.bf16.msra.mxu0 %v2348_v36  ;;  %v1292_v7 = vmax.f32 %v1286_v3, 0.0  ;;  %v1636_v0 = vmax.f32 %v1630_v48, 0.0  ;;  %v1914_v36 = vld [vmem:[%s3519_s7 + $0x20] sm:$0xff]  ;;  %v1915_v3 = vld [vmem:[%s3519_s7 + $0x28] sm:$0xff] }
 0x407   :  { %2350 = vmatprep.subr.bf16.mxu0 %v2658_v30  ;;  %v1632_v42 = vmul.f32 %v1626_v10, %v3389_v11  ;;  %v2378_v47 = vpack.c.bf16 %v1915_v3, %v1914_v36  ;;  %v1917_v10 = vld [vmem:[%s3519_s7 + $0x38] sm:$0xff] }
 0x408   :  { %v2351_v6 = vpack.c.bf16 %v1292_v7, %v1291_v24  ;;  %v1631_v16 = vmul.f32 %v1625_v9, %v3369_v52  ;;  %v1916_v24 = vld [vmem:[%s3519_s7 + $0x30] sm:$0xff] }
 0x409   :  { %v2649_v61 = vpop.eup %2648  ;;  %v2381_v9 = vpack.c.bf16 %v1917_v10, %v1916_v24 }
 0x40a   :  { %v1627_v31 = vmul.f32 %v2649_v61, %v3326_v46  ;;  %2352 = vmatpush3.bf16.msra.mxu0 %v2351_v6  ;;  %v1637_v4 = vmax.f32 %v1631_v16, 0.0  ;;  %v1638_v46 = vmax.f32 %v1632_v42, 0.0 }
 0x40b   :  { %2353 = vmatprep.subr.bf16.mxu0 %v2658_v30 }
 0x40c   :  { %v2354_v44 = vpack.c.bf16 %v1637_v4, %v1636_v0  ;;  %v1633_v32 = vmul.f32 %v1627_v31, %v3394_v33 }
 0x40d   :  { %2284 = vmatmul.mubr.msk.f32.vlgmr.msra.gmra.mrb[36].mxu0 %vm1420_vm3, %v3447_v45 }
 0x40e   :  { %2355 = vmatpush3.bf16.msra.mxu0 %v2354_v44  ;;  %v1639_v52 = vmax.f32 %v1633_v32, 0.0  ;;  %2298 = vmatprep.mubr.msk.f32.mxu0 %vm2655_vm0, %v2654_v34 }
 0x40f   :  { %2356 = vmatprep.subr.bf16.mxu0 %v2658_v30 }
 0x410   :  { %v2357_v39 = vpack.c.bf16 %v1639_v52, %v1638_v46 }
 0x412   :  { %2358 = vmatpush3.bf16.msra.mxu0 %v2357_v39 }
 0x413   :  { %2359 = vmatprep.subr.bf16.mxu0 %v2658_v30 }
 0x42e   :  { %v1614_v11 = vpop.xlane.xlu0 %1613 }
 0x42f   :  { %2650 = vrcp.f32 %v1614_v11 }
 0x438   :  { %v1617_v29 = vpop.xlane.xlu1 %1616 }
 0x439   :  { %2652 = vrcp.f32 %v1617_v29  ;;  %v2651_v33 = vpop.eup %2650 }
 0x43a   :  { %v1628_v25 = vmul.f32 %v2651_v33, %v3334_v22 }
 0x43c   :  { %v1634_v49 = vmul.f32 %v1628_v25, %v3412_v8 }
 0x43e   :  { %v1640_v18 = vmax.f32 %v1634_v49, 0.0 }
 0x443   :  { %v2653_v63 = vpop.eup %2652 }
 0x444   :  { %v1629_v14 = vmul.f32 %v2653_v63, %v3338_v26 }
 0x446   :  { %v1635_v5 = vmul.f32 %v1629_v14, %v3417_v38 }
 0x448   :  { %v1641_v21 = vmax.f32 %v1635_v5, 0.0 }
 0x44a   :  { %v2360_v50 = vpack.c.bf16 %v1641_v21, %v1640_v18 }
 0x44c   :  { %2361 = vmatpush3.bf16.msra.mxu0 %v2360_v50 }
 0x44d   :  { %2362 = vmatprep.subr.bf16.mxu0 %v2658_v30 }
 0x44f   :  { %2299 = vmatmul.mubr.msk.f32.vlgmr.msra.gmra.mrb[36].mxu0 %vm1420_vm3, %v3447_v45 }
 0x450   :  { %2313 = vmatprep.mubr.msk.f32.mxu0 %vm2655_vm0, %v2654_v34 }
 0x45c   :  { %v2395_v22 = vpop.permute.xlu0 %2394 }
 0x45d   :  { %v2397_v12 = vunpack.i.h.bf16 %v2395_v22  ;;  %v2396_v60 = vunpack.i.l.bf16 %v2395_v22 }
 0x45f   :  { %v2336_v26 = vpack.c.bf16 %v2397_v12, %v2396_v60 }
 0x460   :  { %v2400_v53 = vpop.permute.xlu1 %2399 }
 0x461   :  { %v2402_v8 = vunpack.i.h.bf16 %v2400_v53  ;;  %v2401_v13 = vunpack.i.l.bf16 %v2400_v53  ;;  %2337 = vmatpush3.bf16.msra.mxu1 %v2336_v26 }
 0x462   :  { %2338 = vmatprep.subr.bf16.mxu1 %v2658_v30 }
 0x463   :  { %v2363_v38 = vpack.c.bf16 %v2402_v8, %v2401_v13 }
 0x464   :  { %v2405_v57 = vpop.permute.xlu1 %2404 }
 0x465   :  { %v2407_v17 = vunpack.i.h.bf16 %v2405_v57  ;;  %v2406_v40 = vunpack.i.l.bf16 %v2405_v57  ;;  %2364 = vmatpush3.bf16.msra.mxu0 %v2363_v38 }
 0x466   :  { %2365 = vmatprep.subr.bf16.mxu0 %v2658_v30 }
 0x467   :  { %v2339_v1 = vpack.c.bf16 %v2407_v17, %v2406_v40 }
 0x468   :  { %v2410_v35 = vpop.permute.xlu1 %2409 }
 0x469   :  { %v2412_v15 = vunpack.i.h.bf16 %v2410_v35  ;;  %v2411_v2 = vunpack.i.l.bf16 %v2410_v35  ;;  %2340 = vmatpush3.bf16.msra.mxu1 %v2339_v1 }
 0x46a   :  { %2341 = vmatprep.subr.bf16.mxu1 %v2658_v30 }
 0x46b   :  { %v2366_v54 = vpack.c.bf16 %v2412_v15, %v2411_v2 }
 0x46c   :  { %v2415_v51 = vpop.permute.xlu0 %2414 }
 0x46d   :  { %v2417_v55 = vunpack.i.h.bf16 %v2415_v51  ;;  %v2416_v41 = vunpack.i.l.bf16 %v2415_v51  ;;  %2367 = vmatpush3.bf16.msra.mxu0 %v2366_v54 }
 0x46e   :  { %2368 = vmatprep.subr.bf16.mxu0 %v2658_v30 }
 0x46f   :  { %v2342_v28 = vpack.c.bf16 %v2417_v55, %v2416_v41 }
 0x470   :  { %v2420_v56 = vpop.permute.xlu1 %2419 }
 0x471   :  { %v2422_v23 = vunpack.i.h.bf16 %v2420_v56  ;;  %v2421_v27 = vunpack.i.l.bf16 %v2420_v56  ;;  %2343 = vmatpush3.bf16.msra.mxu1 %v2342_v28 }
 0x472   :  { %2371 = vmatprep.subr.bf16.mxu1 %v2658_v30 }
 0x473   :  { %v2369_v58 = vpack.c.bf16 %v2422_v23, %v2421_v27 }
 0x474   :  { %2269 = vmatmul.mubr.msk.f32.vlgmr.msra.gmra.mrb[36].mxu1 %vm1420_vm3, %v3447_v45 }
 0x475   :  { %2370 = vmatpush3.bf16.msra.mxu0 %v2369_v58  ;;  %2373 = vmatpush3.bf16.msra.mxu1 %v2372_v59 }
 0x476   :  { %2374 = vmatprep.subr.bf16.mxu1 %v2658_v30  ;;  %2332 = vmatprep.mubr.msk.f32.mxu1 %vm2655_vm0, %v2654_v34 }
 0x478   :  { %2314 = vmatmul.mubr.msk.f32.vlgmr.msra.gmra.mrb[36].mxu0 %vm1420_vm3, %v3447_v45 }
 0x479   :  { %2376 = vmatpush3.bf16.msra.mxu1 %v2375_v37 }
 0x47a   :  { %2377 = vmatprep.subr.bf16.mxu1 %v2658_v30 }
 0x47d   :  { %2379 = vmatpush3.bf16.msra.mxu1 %v2378_v47 }
 0x47e   :  { %2380 = vmatprep.subr.bf16.mxu1 %v2658_v30  ;;  %v2110_v30 = vld [vmem:[%s3520_s8] ss:$0 sm:$0xff] }
 0x481   :  { %2382 = vmatpush3.bf16.msra.mxu1 %v2381_v9 }
 0x547   :  { %v1490_v34 = vpop.f32.mrb[36].mxu1 }
 0x548   :  { %v2270_v7 = vpop.f32.mrb[37].mxu1 }
 0x54b   :  { %v1905_v48 = vpop.f32.mrb[36].mxu0 }
 0x54c   :  { %v2383_v6 = vadd.f32 %v1905_v48, %v1490_v34  ;;  %v2315_v16 = vpop.f32.mrb[37].mxu0 }
 0x54e   :  { %2333 = vmatmul.mubr.msk.f32.vlgmr.msra.gmra.mrb[38].mxu1 %vm1214_vm2, %v2383_v6 }
 0x621   :  { %v1994_v61 = vpop.f32.mrb[38].mxu1 }
 0x622   :  { %v1995_v31 = vadd.f32 %v2110_v30, %v1994_v61  ;;  %v2334_v45 = vpop.f32.mrb[39].mxu1 }
 0x624   :  { %1998 = vst [vmem:[%s3521_s9] sm:$0xff] %v1995_v31 }

</bundles_post_ra>
